<compile_context>
chip_gen: v7x
topology: tpu7x:2x2x1
jax: 0.10.0
libtpu: 0.0.40
codegen_flags: <defaults>
</compile_context>

<pallas_src>
import math
from functools import partial

import jax
import jax.numpy as jnp
from jax.experimental import pallas as pl
from jax.experimental.pallas import tpu as pltpu

EPS = 1e-5                 # PyTorch BatchNorm2d default eps
LANE = 128                 # TPU lane width; all channel dims padded to this
VMEM_LIMIT = 32 * 1024 * 1024


# ----------------------------------------------------------------------------
# Small helpers
# ----------------------------------------------------------------------------
def _round_up(x, m):
    return ((x + m - 1) // m) * m


def _pad_last(a, target):
    pad = target - a.shape[-1]
    if pad == 0:
        return a
    return jnp.pad(a, [(0, 0)] * (a.ndim - 1) + [(0, pad)])


def _pick_oh_block(oh, ow, target_rows=512):
    """Largest divisor of `oh` whose row-tile stays <= target_rows rows and keeps
    the output block's second-to-last dim full-extent or a multiple of 8."""
    limit = max(1, target_rows // max(ow, 1))
    for b in range(min(oh, limit), 0, -1):
        if oh % b == 0 and (b == oh or (b * ow) % 8 == 0):
            return b
    return oh


def _phase_split(a_nhwc):
    """Split a (channel-padded) NHWC activation into the 4 stride-2 phase grids
    used for in-kernel 5x5/stride-2 patch extraction.  ~1x input HBM bytes
    (vs 25x for im2col).  Returns (N*4, OH+2, OW+2, C)."""
    n, h, w, c = a_nhwc.shape
    oh, ow = (h + 1) // 2, (w + 1) // 2
    ph, pw = oh + 2, ow + 2
    ap = jnp.pad(a_nhwc, ((0, 0), (2, 2 * ph - h - 2), (2, 2 * pw - w - 2), (0, 0)))
    phases = jnp.stack([ap[:, dr::2, dc::2, :] for dr in (0, 1) for dc in (0, 1)],
                       axis=1)                            # (N, 4, PH, PW, C)
    return phases.reshape(n * 4, ph, pw, c)


# ----------------------------------------------------------------------------
# Pallas kernels
# ----------------------------------------------------------------------------
def _conv_gemm_stats_kernel(ph_ref, w_ref, y_ref, st_ref, *,
                            oh_blk, ow, cin_p, cout_p):
    """Pass 1 of a conv layer.

    ph_ref : (4, OH+2, OW+2, Cin_p) bf16   4 stride-2 phase grids of one image
    w_ref  : (25, Cin_p, Cout_p)    bf16   per-tap weight matrices
    y_ref  : (1, oh_blk*OW, Cout_p) f32    pre-BN conv output tile
    st_ref : (1, 2, Cout_p)         f32    partial (sum, sum^2) per channel

    Conv bias is omitted: it cancels exactly under train-mode BatchNorm
    ((y+b) - mean(y+b) == y - mean(y)).
    """
    oh0 = pl.program_id(1) * oh_blk
    rows = oh_blk * ow
    acc = jnp.zeros((rows, cout_p), jnp.float32)
    for kh in range(5):
        for kw in range(5):
            p = (kh % 2) * 2 + (kw % 2)                   # stride-2 phase of tap
            patch = ph_ref[p, pl.ds(oh0 + kh // 2, oh_blk), pl.ds(kw // 2, ow), :]
            acc = acc + jnp.dot(patch.reshape(rows, cin_p),
                                w_ref[kh * 5 + kw],
                                preferred_element_type=jnp.float32)
    y_ref[...] = acc.reshape(1, rows, cout_p)
    s = jnp.sum(acc, axis=0, keepdims=True)
    sq = jnp.sum(acc * acc, axis=0, keepdims=True)
    st_ref[...] = jnp.concatenate([s, sq], axis=0).reshape(1, 2, cout_p)


def _bn_relu_kernel(y_ref, ss_ref, o_ref):
    """Pass 2: folded BatchNorm (single FMA per element) + ReLU, bf16 output."""
    cp = ss_ref.shape[-1]
    scale = ss_ref[pl.ds(0, 1), :].reshape(1, 1, cp)
    shift = ss_ref[pl.ds(1, 1), :].reshape(1, 1, cp)
    o_ref[...] = jnp.maximum(y_ref[...] * scale + shift, 0.0).astype(o_ref.dtype)


def _fc_stack_kernel(x_ref, w1_ref, b1_ref, w2_ref, b2_ref, w3_ref, b3_ref, o_ref):
    """All three Linear+ReLU layers fused; intermediate activations stay in VMEM."""
    h = jnp.dot(x_ref[...], w1_ref[...], preferred_element_type=jnp.float32)
    h = jnp.maximum(h + b1_ref[...], 0.0).astype(jnp.bfloat16)
    h = jnp.dot(h, w2_ref[...], preferred_element_type=jnp.float32)
    h = jnp.maximum(h + b2_ref[...], 0.0).astype(jnp.bfloat16)
    h = jnp.dot(h, w3_ref[...], preferred_element_type=jnp.float32)
    o_ref[...] = jnp.maximum(h + b3_ref[...], 0.0)


# ----------------------------------------------------------------------------
# Layer wrappers
# ----------------------------------------------------------------------------
def _conv_bn_relu_layer(a_nhwc, w25, gamma_p, beta_p):
    """a_nhwc: (N,H,W,Cin_p) bf16 -> (N,OH,OW,Cout_p) bf16 (conv+BN+ReLU)."""
    n, h, w, cin_p = a_nhwc.shape
    oh, ow = (h + 1) // 2, (w + 1) // 2
    cout_p = w25.shape[-1]
    phases = _phase_split(a_nhwc)                       # (N*4, OH+2, OW+2, Cin_p)
    oh_blk = _pick_oh_block(oh, ow)
    ohb = oh // oh_blk
    rows_blk = oh_blk * ow

    kernel = partial(_conv_gemm_stats_kernel, oh_blk=oh_blk, ow=ow,
                     cin_p=cin_p, cout_p=cout_p)
    y, stats = pl.pallas_call(
        kernel,
        grid=(n, ohb),
        in_specs=[
            pl.BlockSpec((4, oh + 2, ow + 2, cin_p), lambda i, b: (i, 0, 0, 0)),
            pl.BlockSpec((25, cin_p, cout_p), lambda i, b: (0, 0, 0)),
        ],
        out_specs=[
            pl.BlockSpec((1, rows_blk, cout_p), lambda i, b: (i, b, 0)),
            pl.BlockSpec((1, 2, cout_p), lambda i, b, _ohb=ohb: (i * _ohb + b, 0, 0)),
        ],
        out_shape=[
            jax.ShapeDtypeStruct((n, oh * ow, cout_p), jnp.float32),
            jax.ShapeDtypeStruct((n * ohb, 2, cout_p), jnp.float32),
        ],
        compiler_params=pltpu.CompilerParams(
            dimension_semantics=("parallel", "parallel"),
            vmem_limit_bytes=VMEM_LIMIT),
        cost_estimate=pl.CostEstimate(
            flops=2 * n * oh * ow * 25 * cin_p * cout_p,
            transcendentals=0,
            bytes_accessed=(phases.size * 2 + w25.size * 2
                            + n * oh * ow * cout_p * 4 + n * ohb * 2 * cout_p * 4)),
    )(phases, w25)

    # Exact global batch statistics (all N*OH*OW rows) -> folded scale/shift.
    tot = jnp.sum(stats, axis=0)                        # (2, Cout_p)
    m = float(n * oh * ow)
    mean = tot[0] / m
    var = jnp.maximum(tot[1] / m - mean * mean, 0.0)    # biased var (train-mode BN)
    scale = gamma_p * jax.lax.rsqrt(var + EPS)
    shift = beta_p - mean * scale
    ss = jnp.stack([scale, shift], axis=0).astype(jnp.float32)   # (2, Cout_p)

    act = pl.pallas_call(
        _bn_relu_kernel,
        grid=(n, ohb),
        in_specs=[pl.BlockSpec((1, rows_blk, cout_p), lambda i, b: (i, b, 0)),
                  pl.BlockSpec((2, cout_p), lambda i, b: (0, 0))],
        out_specs=pl.BlockSpec((1, rows_blk, cout_p), lambda i, b: (i, b, 0)),
        out_shape=jax.ShapeDtypeStruct((n, oh * ow, cout_p), jnp.bfloat16),
        compiler_params=pltpu.CompilerParams(
            dimension_semantics=("parallel", "parallel"),
            vmem_limit_bytes=VMEM_LIMIT),
    )(y, ss)
    return act.reshape(n, oh, ow, cout_p)


def _fc_stack(h_bf16, prep):
    """Fused fc1->relu->fc2->relu->fc3->relu.  h: (N, K1) bf16 (NHWC-flattened)."""
    n, k1 = h_bf16.shape
    d2p = prep["fw2"].shape[0]
    dop = prep["fw3"].shape[1]
    if n % 8 == 0:
        nb = min(n, 256)
        while n % nb:
            nb -= 8
    else:
        nb = n
    return pl.pallas_call(
        _fc_stack_kernel,
        grid=(n // nb,),
        in_specs=[
            pl.BlockSpec((nb, k1), lambda i: (i, 0)),
            pl.BlockSpec((k1, d2p), lambda i: (0, 0)),
            pl.BlockSpec((1, d2p), lambda i: (0, 0)),
            pl.BlockSpec((d2p, d2p), lambda i: (0, 0)),
            pl.BlockSpec((1, d2p), lambda i: (0, 0)),
            pl.BlockSpec((d2p, dop), lambda i: (0, 0)),
            pl.BlockSpec((1, dop), lambda i: (0, 0)),
        ],
        out_specs=pl.BlockSpec((nb, dop), lambda i: (i, 0)),
        out_shape=jax.ShapeDtypeStruct((n, dop), jnp.float32),
        compiler_params=pltpu.CompilerParams(
            dimension_semantics=("parallel",),
            vmem_limit_bytes=VMEM_LIMIT),
    )(h_bf16, prep["fw1"], prep["fb1"], prep["fw2"], prep["fb2"],
      prep["fw3"], prep["fb3"])


@partial(jax.jit, static_argnames=("dim_out",))
def encoder_forward(prep, x_nchw, *, dim_out):
    # NCHW (PyTorch) -> NHWC, zero-pad channels to the 128-lane width, bf16.
    x = jnp.transpose(x_nchw, (0, 2, 3, 1)).astype(jnp.float32)
    a = _pad_last(x, _round_up(x.shape[-1], LANE)).astype(jnp.bfloat16)
    for layer in prep["conv"]:
        a = _conv_bn_relu_layer(a, layer["w"], layer["gamma"], layer["beta"])
    # `x.view(N,-1)` (NCHW order) is absorbed into fc1's weight-row permutation,
    # so the NHWC(-padded) flatten feeds fc1 directly -- no transpose needed.
    n = a.shape[0]
    h = a.reshape(n, -1)
    out = _fc_stack(h, prep)
    return out[:, :dim_out]


# ----------------------------------------------------------------------------
# Parameters: synthetic init (module shapes) + one-time Pallas-friendly prep
# ----------------------------------------------------------------------------
def init_params(key, dim_in, dim_out, dim1, dim2, im_size):
    dim_hidden = [dim1, dim1 * 2, dim1 * 4, dim2, dim2]
    fc1_in = dim_hidden[2] * math.ceil(im_size / 8) ** 2
    ks = jax.random.split(key, 12)

    def conv_w(k, cin, cout):
        std = 1.0 / math.sqrt(cin * 5 * 5)
        return jax.random.normal(k, (5, 5, cin, cout), jnp.float32) * std

    def lin_w(k, fin, fout):
        std = 1.0 / math.sqrt(fin)
        return jax.random.normal(k, (fin, fout), jnp.float32) * std

    return {
        "w1": conv_w(ks[0], dim_in, dim_hidden[0]),
        "b1": jax.random.normal(ks[1], (dim_hidden[0],), jnp.float32) * 0.01,
        "g1": jnp.ones((dim_hidden[0],), jnp.float32),
        "bt1": jnp.zeros((dim_hidden[0],), jnp.float32),
        "w2": conv_w(ks[2], dim_hidden[0], dim_hidden[1]),
        "b2": jax.random.normal(ks[3], (dim_hidden[1],), jnp.float32) * 0.01,
        "g2": jnp.ones((dim_hidden[1],), jnp.float32),
        "bt2": jnp.zeros((dim_hidden[1],), jnp.float32),
        "w3": conv_w(ks[4], dim_hidden[1], dim_hidden[2]),
        "b3": jax.random.normal(ks[5], (dim_hidden[2],), jnp.float32) * 0.01,
        "g3": jnp.ones((dim_hidden[2],), jnp.float32),
        "bt3": jnp.zeros((dim_hidden[2],), jnp.float32),
        "fw1": lin_w(ks[6], fc1_in, dim_hidden[3]),
        "fb1": jax.random.normal(ks[7], (dim_hidden[3],), jnp.float32) * 0.01,
        "fw2": lin_w(ks[8], dim_hidden[3], dim_hidden[4]),
        "fb2": jax.random.normal(ks[9], (dim_hidden[4],), jnp.float32) * 0.01,
        "fw3": lin_w(ks[10], dim_hidden[4], dim_out),
        "fb3": jax.random.normal(ks[11], (dim_out,), jnp.float32) * 0.01,
    }


def prepare_params(params, dim_in, dim_out, dim1, dim2, im_size):
    """One-time (outside the forward pass) repacking: pad channel dims to 128,
    reshape conv weights to per-tap matrices, cast GEMM operands to bf16, and
    fold the NCHW->flatten permutation into fc1's weight rows."""
    dim_hidden = [dim1, dim1 * 2, dim1 * 4, dim2, dim2]
    cins = [dim_in, dim_hidden[0], dim_hidden[1]]
    couts = [dim_hidden[0], dim_hidden[1], dim_hidden[2]]

    conv = []
    for i in range(3):
        cin_p = _round_up(cins[i], LANE)
        cout_p = _round_up(couts[i], LANE)
        w = jnp.pad(params[f"w{i + 1}"],
                    ((0, 0), (0, 0), (0, cin_p - cins[i]), (0, cout_p - couts[i])))
        conv.append({
            "w": w.reshape(25, cin_p, cout_p).astype(jnp.bfloat16),
            # padded channels get gamma=beta=0 so they stay exactly zero.
            "gamma": _pad_last(params[f"g{i + 1}"], cout_p),
            "beta": _pad_last(params[f"bt{i + 1}"], cout_p),
            # conv bias b{i+1} is dropped: it cancels under train-mode BN.
        })

    s3 = math.ceil(im_size / 8)                       # conv3 output spatial size
    c3, c3p = dim_hidden[2], _round_up(dim_hidden[2], LANE)
    d2p = _round_up(dim2, LANE)
    dop = _round_up(dim_out, LANE)

    # fc1 rows are indexed (c, h, w) in PyTorch's NCHW flatten; re-order them to
    # the padded NHWC flatten (h, w, c_padded) produced by the conv stack.
    fw1 = params["fw1"].reshape(c3, s3, s3, dim2)
    fw1 = jnp.transpose(fw1, (1, 2, 0, 3))
    fw1 = jnp.pad(fw1, ((0, 0), (0, 0), (0, c3p - c3), (0, d2p - dim2)))
    fw1 = fw1.reshape(s3 * s3 * c3p, d2p).astype(jnp.bfloat16)

    fw2 = jnp.pad(params["fw2"], ((0, d2p - dim2), (0, d2p - dim2))).astype(jnp.bfloat16)
    fw3 = jnp.pad(params["fw3"], ((0, d2p - dim2), (0, dop - dim_out))).astype(jnp.bfloat16)
    fb1 = _pad_last(params["fb1"], d2p).reshape(1, d2p)
    fb2 = _pad_last(params["fb2"], d2p).reshape(1, d2p)
    fb3 = _pad_last(params["fb3"], dop).reshape(1, dop)
    return {"conv": conv, "fw1": fw1, "fb1": fb1, "fw2": fw2, "fb2": fb2,
            "fw3": fw3, "fb3": fb3}


# ----------------------------------------------------------------------------
# Demo / smoke test
# ----------------------------------------------------------------------------
if __name__ == "__main__":
    # Small shapes consistent with the module:
    # Encoder(dim_in=4, dim_out=16, dim1=8, dim2=32, im_size=16), batch=2.
    dim_in, dim_out, dim1, dim2, im_size, batch = 4, 16, 8, 32, 16, 2

    key = jax.random.PRNGKey(0)
    k_x, k_p = jax.random.split(key)
    x = jax.random.normal(k_x, (batch, dim_in, im_size, im_size), jnp.float32)
    params = init_params(k_p, dim_in, dim_out, dim1, dim2, im_size)
    prep = prepare_params(params, dim_in, dim_out, dim1, dim2, im_size)

    out = encoder_forward(prep, x, dim_out=dim_out)
    out = jax.block_until_ready(out)

    assert out.shape == (batch, dim_out), out.shape
    assert bool(jnp.all(out >= 0.0))       # final ReLU
    assert bool(jnp.all(jnp.isfinite(out)))
    print("KERNEL_OK")
</pallas_src>

<mosaic_0001>
module attributes {stable_mosaic.version = 11 : i64} {
  func.func @_conv_gemm_stats_kernel(%arg0: i32, %arg1: i32, %arg2: memref<4x10x10x128xbf16, #tpu.memory_space<vmem>>, %arg3: memref<25x128x128xbf16, #tpu.memory_space<vmem>>, %arg4: memref<1x64x128xf32, #tpu.memory_space<vmem>>, %arg5: memref<1x2x128xf32, #tpu.memory_space<vmem>>) attributes {dimension_semantics = [#tpu.dimension_semantics<parallel>, #tpu.dimension_semantics<parallel>], iteration_bounds = array<i64: 2, 1>, scalar_prefetch = 0 : i64, scratch_operands = 0 : i64, tpu.core_type = #tpu.core_type<tc>, window_params = [{transform_indices = @transform_0, window_bounds = array<i64: 4, 10, 10, 128>}, {pipeline_mode = #tpu.pipeline_mode<synchronous>, transform_indices = @transform_1, window_bounds = array<i64: 25, 128, 128>}, {transform_indices = @transform_2, window_bounds = array<i64: 1, 64, 128>}, {transform_indices = @transform_3, window_bounds = array<i64: 1, 2, 128>}]} {
    %c8_i32 = arith.constant 8 : i32
    %0 = arith.muli %arg1, %c8_i32 : i32
    %cst = arith.constant 0.000000e+00 : f32
    %1 = vector.broadcast %cst : f32 to vector<64x128xf32>
    %c0_i32 = arith.constant 0 : i32
    %2 = arith.addi %0, %c0_i32 : i32
    %c0 = arith.constant 0 : index
    %3 = arith.index_cast %2 : i32 to index
    %c0_0 = arith.constant 0 : index
    %c0_1 = arith.constant 0 : index
    %4 = vector.load %arg2[%c0, %3, %c0_0, %c0_1] : memref<4x10x10x128xbf16, #tpu.memory_space<vmem>>, vector<1x8x8x128xbf16>
    %5 = vector.shape_cast %4 : vector<1x8x8x128xbf16> to vector<8x8x128xbf16>
    %6 = vector.shape_cast %5 : vector<8x8x128xbf16> to vector<64x128xbf16>
    %c0_2 = arith.constant 0 : index
    %c0_3 = arith.constant 0 : index
    %c0_4 = arith.constant 0 : index
    %7 = vector.load %arg3[%c0_2, %c0_3, %c0_4] : memref<25x128x128xbf16, #tpu.memory_space<vmem>>, vector<1x128x128xbf16>
    %8 = vector.shape_cast %7 : vector<1x128x128xbf16> to vector<128x128xbf16>
    %cst_5 = arith.constant dense<0.000000e+00> : vector<64x128xf32>
    %9 = tpu.matmul %6, %8, %cst_5 {dimension_numbers = #tpu.dot_dimension_numbers<[1], [0], [0], [1], [0, 0, 1, 1], [], []>} : vector<64x128xbf16>, vector<128x128xbf16>, vector<64x128xf32> -> vector<64x128xf32>
    %10 = arith.addf %1, %9 : vector<64x128xf32>
    %c0_i32_6 = arith.constant 0 : i32
    %11 = arith.addi %0, %c0_i32_6 : i32
    %c1 = arith.constant 1 : index
    %12 = arith.index_cast %11 : i32 to index
    %c0_7 = arith.constant 0 : index
    %c0_8 = arith.constant 0 : index
    %13 = vector.load %arg2[%c1, %12, %c0_7, %c0_8] : memref<4x10x10x128xbf16, #tpu.memory_space<vmem>>, vector<1x8x8x128xbf16>
    %14 = vector.shape_cast %13 : vector<1x8x8x128xbf16> to vector<8x8x128xbf16>
    %15 = vector.shape_cast %14 : vector<8x8x128xbf16> to vector<64x128xbf16>
    %c1_9 = arith.constant 1 : index
    %c0_10 = arith.constant 0 : index
    %c0_11 = arith.constant 0 : index
    %16 = vector.load %arg3[%c1_9, %c0_10, %c0_11] : memref<25x128x128xbf16, #tpu.memory_space<vmem>>, vector<1x128x128xbf16>
    %17 = vector.shape_cast %16 : vector<1x128x128xbf16> to vector<128x128xbf16>
    %cst_12 = arith.constant dense<0.000000e+00> : vector<64x128xf32>
    %18 = tpu.matmul %15, %17, %cst_12 {dimension_numbers = #tpu.dot_dimension_numbers<[1], [0], [0], [1], [0, 0, 1, 1], [], []>} : vector<64x128xbf16>, vector<128x128xbf16>, vector<64x128xf32> -> vector<64x128xf32>
    %19 = arith.addf %10, %18 : vector<64x128xf32>
    %c0_i32_13 = arith.constant 0 : i32
    %20 = arith.addi %0, %c0_i32_13 : i32
    %c0_14 = arith.constant 0 : index
    %21 = arith.index_cast %20 : i32 to index
    %c1_15 = arith.constant 1 : index
    %c0_16 = arith.constant 0 : index
    %22 = vector.load %arg2[%c0_14, %21, %c1_15, %c0_16] : memref<4x10x10x128xbf16, #tpu.memory_space<vmem>>, vector<1x8x8x128xbf16>
    %23 = vector.shape_cast %22 : vector<1x8x8x128xbf16> to vector<8x8x128xbf16>
    %24 = vector.shape_cast %23 : vector<8x8x128xbf16> to vector<64x128xbf16>
    %c2 = arith.constant 2 : index
    %c0_17 = arith.constant 0 : index
    %c0_18 = arith.constant 0 : index
    %25 = vector.load %arg3[%c2, %c0_17, %c0_18] : memref<25x128x128xbf16, #tpu.memory_space<vmem>>, vector<1x128x128xbf16>
    %26 = vector.shape_cast %25 : vector<1x128x128xbf16> to vector<128x128xbf16>
    %cst_19 = arith.constant dense<0.000000e+00> : vector<64x128xf32>
    %27 = tpu.matmul %24, %26, %cst_19 {dimension_numbers = #tpu.dot_dimension_numbers<[1], [0], [0], [1], [0, 0, 1, 1], [], []>} : vector<64x128xbf16>, vector<128x128xbf16>, vector<64x128xf32> -> vector<64x128xf32>
    %28 = arith.addf %19, %27 : vector<64x128xf32>
    %c0_i32_20 = arith.constant 0 : i32
    %29 = arith.addi %0, %c0_i32_20 : i32
    %c1_21 = arith.constant 1 : index
    %30 = arith.index_cast %29 : i32 to index
    %c1_22 = arith.constant 1 : index
    %c0_23 = arith.constant 0 : index
    %31 = vector.load %arg2[%c1_21, %30, %c1_22, %c0_23] : memref<4x10x10x128xbf16, #tpu.memory_space<vmem>>, vector<1x8x8x128xbf16>
    %32 = vector.shape_cast %31 : vector<1x8x8x128xbf16> to vector<8x8x128xbf16>
    %33 = vector.shape_cast %32 : vector<8x8x128xbf16> to vector<64x128xbf16>
    %c3 = arith.constant 3 : index
    %c0_24 = arith.constant 0 : index
    %c0_25 = arith.constant 0 : index
    %34 = vector.load %arg3[%c3, %c0_24, %c0_25] : memref<25x128x128xbf16, #tpu.memory_space<vmem>>, vector<1x128x128xbf16>
    %35 = vector.shape_cast %34 : vector<1x128x128xbf16> to vector<128x128xbf16>
    %cst_26 = arith.constant dense<0.000000e+00> : vector<64x128xf32>
    %36 = tpu.matmul %33, %35, %cst_26 {dimension_numbers = #tpu.dot_dimension_numbers<[1], [0], [0], [1], [0, 0, 1, 1], [], []>} : vector<64x128xbf16>, vector<128x128xbf16>, vector<64x128xf32> -> vector<64x128xf32>
    %37 = arith.addf %28, %36 : vector<64x128xf32>
    %c0_i32_27 = arith.constant 0 : i32
    %38 = arith.addi %0, %c0_i32_27 : i32
    %c0_28 = arith.constant 0 : index
    %39 = arith.index_cast %38 : i32 to index
    %c2_29 = arith.constant 2 : index
    %c0_30 = arith.constant 0 : index
    %40 = vector.load %arg2[%c0_28, %39, %c2_29, %c0_30] : memref<4x10x10x128xbf16, #tpu.memory_space<vmem>>, vector<1x8x8x128xbf16>
    %41 = vector.shape_cast %40 : vector<1x8x8x128xbf16> to vector<8x8x128xbf16>
    %42 = vector.shape_cast %41 : vector<8x8x128xbf16> to vector<64x128xbf16>
    %c4 = arith.constant 4 : index
    %c0_31 = arith.constant 0 : index
    %c0_32 = arith.constant 0 : index
    %43 = vector.load %arg3[%c4, %c0_31, %c0_32] : memref<25x128x128xbf16, #tpu.memory_space<vmem>>, vector<1x128x128xbf16>
    %44 = vector.shape_cast %43 : vector<1x128x128xbf16> to vector<128x128xbf16>
    %cst_33 = arith.constant dense<0.000000e+00> : vector<64x128xf32>
    %45 = tpu.matmul %42, %44, %cst_33 {dimension_numbers = #tpu.dot_dimension_numbers<[1], [0], [0], [1], [0, 0, 1, 1], [], []>} : vector<64x128xbf16>, vector<128x128xbf16>, vector<64x128xf32> -> vector<64x128xf32>
    %46 = arith.addf %37, %45 : vector<64x128xf32>
    %c0_i32_34 = arith.constant 0 : i32
    %47 = arith.addi %0, %c0_i32_34 : i32
    %c2_35 = arith.constant 2 : index
    %48 = arith.index_cast %47 : i32 to index
    %c0_36 = arith.constant 0 : index
    %c0_37 = arith.constant 0 : index
    %49 = vector.load %arg2[%c2_35, %48, %c0_36, %c0_37] : memref<4x10x10x128xbf16, #tpu.memory_space<vmem>>, vector<1x8x8x128xbf16>
    %50 = vector.shape_cast %49 : vector<1x8x8x128xbf16> to vector<8x8x128xbf16>
    %51 = vector.shape_cast %50 : vector<8x8x128xbf16> to vector<64x128xbf16>
    %c5 = arith.constant 5 : index
    %c0_38 = arith.constant 0 : index
    %c0_39 = arith.constant 0 : index
    %52 = vector.load %arg3[%c5, %c0_38, %c0_39] : memref<25x128x128xbf16, #tpu.memory_space<vmem>>, vector<1x128x128xbf16>
    %53 = vector.shape_cast %52 : vector<1x128x128xbf16> to vector<128x128xbf16>
    %cst_40 = arith.constant dense<0.000000e+00> : vector<64x128xf32>
    %54 = tpu.matmul %51, %53, %cst_40 {dimension_numbers = #tpu.dot_dimension_numbers<[1], [0], [0], [1], [0, 0, 1, 1], [], []>} : vector<64x128xbf16>, vector<128x128xbf16>, vector<64x128xf32> -> vector<64x128xf32>
    %55 = arith.addf %46, %54 : vector<64x128xf32>
    %c0_i32_41 = arith.constant 0 : i32
    %56 = arith.addi %0, %c0_i32_41 : i32
    %c3_42 = arith.constant 3 : index
    %57 = arith.index_cast %56 : i32 to index
    %c0_43 = arith.constant 0 : index
    %c0_44 = arith.constant 0 : index
    %58 = vector.load %arg2[%c3_42, %57, %c0_43, %c0_44] : memref<4x10x10x128xbf16, #tpu.memory_space<vmem>>, vector<1x8x8x128xbf16>
    %59 = vector.shape_cast %58 : vector<1x8x8x128xbf16> to vector<8x8x128xbf16>
    %60 = vector.shape_cast %59 : vector<8x8x128xbf16> to vector<64x128xbf16>
    %c6 = arith.constant 6 : index
    %c0_45 = arith.constant 0 : index
    %c0_46 = arith.constant 0 : index
    %61 = vector.load %arg3[%c6, %c0_45, %c0_46] : memref<25x128x128xbf16, #tpu.memory_space<vmem>>, vector<1x128x128xbf16>
    %62 = vector.shape_cast %61 : vector<1x128x128xbf16> to vector<128x128xbf16>
    %cst_47 = arith.constant dense<0.000000e+00> : vector<64x128xf32>
    %63 = tpu.matmul %60, %62, %cst_47 {dimension_numbers = #tpu.dot_dimension_numbers<[1], [0], [0], [1], [0, 0, 1, 1], [], []>} : vector<64x128xbf16>, vector<128x128xbf16>, vector<64x128xf32> -> vector<64x128xf32>
    %64 = arith.addf %55, %63 : vector<64x128xf32>
    %c0_i32_48 = arith.constant 0 : i32
    %65 = arith.addi %0, %c0_i32_48 : i32
    %c2_49 = arith.constant 2 : index
    %66 = arith.index_cast %65 : i32 to index
    %c1_50 = arith.constant 1 : index
    %c0_51 = arith.constant 0 : index
    %67 = vector.load %arg2[%c2_49, %66, %c1_50, %c0_51] : memref<4x10x10x128xbf16, #tpu.memory_space<vmem>>, vector<1x8x8x128xbf16>
    %68 = vector.shape_cast %67 : vector<1x8x8x128xbf16> to vector<8x8x128xbf16>
    %69 = vector.shape_cast %68 : vector<8x8x128xbf16> to vector<64x128xbf16>
    %c7 = arith.constant 7 : index
    %c0_52 = arith.constant 0 : index
    %c0_53 = arith.constant 0 : index
    %70 = vector.load %arg3[%c7, %c0_52, %c0_53] : memref<25x128x128xbf16, #tpu.memory_space<vmem>>, vector<1x128x128xbf16>
    %71 = vector.shape_cast %70 : vector<1x128x128xbf16> to vector<128x128xbf16>
    %cst_54 = arith.constant dense<0.000000e+00> : vector<64x128xf32>
    %72 = tpu.matmul %69, %71, %cst_54 {dimension_numbers = #tpu.dot_dimension_numbers<[1], [0], [0], [1], [0, 0, 1, 1], [], []>} : vector<64x128xbf16>, vector<128x128xbf16>, vector<64x128xf32> -> vector<64x128xf32>
    %73 = arith.addf %64, %72 : vector<64x128xf32>
    %c0_i32_55 = arith.constant 0 : i32
    %74 = arith.addi %0, %c0_i32_55 : i32
    %c3_56 = arith.constant 3 : index
    %75 = arith.index_cast %74 : i32 to index
    %c1_57 = arith.constant 1 : index
    %c0_58 = arith.constant 0 : index
    %76 = vector.load %arg2[%c3_56, %75, %c1_57, %c0_58] : memref<4x10x10x128xbf16, #tpu.memory_space<vmem>>, vector<1x8x8x128xbf16>
    %77 = vector.shape_cast %76 : vector<1x8x8x128xbf16> to vector<8x8x128xbf16>
    %78 = vector.shape_cast %77 : vector<8x8x128xbf16> to vector<64x128xbf16>
    %c8 = arith.constant 8 : index
    %c0_59 = arith.constant 0 : index
    %c0_60 = arith.constant 0 : index
    %79 = vector.load %arg3[%c8, %c0_59, %c0_60] : memref<25x128x128xbf16, #tpu.memory_space<vmem>>, vector<1x128x128xbf16>
    %80 = vector.shape_cast %79 : vector<1x128x128xbf16> to vector<128x128xbf16>
    %cst_61 = arith.constant dense<0.000000e+00> : vector<64x128xf32>
    %81 = tpu.matmul %78, %80, %cst_61 {dimension_numbers = #tpu.dot_dimension_numbers<[1], [0], [0], [1], [0, 0, 1, 1], [], []>} : vector<64x128xbf16>, vector<128x128xbf16>, vector<64x128xf32> -> vector<64x128xf32>
    %82 = arith.addf %73, %81 : vector<64x128xf32>
    %c0_i32_62 = arith.constant 0 : i32
    %83 = arith.addi %0, %c0_i32_62 : i32
    %c2_63 = arith.constant 2 : index
    %84 = arith.index_cast %83 : i32 to index
    %c2_64 = arith.constant 2 : index
    %c0_65 = arith.constant 0 : index
    %85 = vector.load %arg2[%c2_63, %84, %c2_64, %c0_65] : memref<4x10x10x128xbf16, #tpu.memory_space<vmem>>, vector<1x8x8x128xbf16>
    %86 = vector.shape_cast %85 : vector<1x8x8x128xbf16> to vector<8x8x128xbf16>
    %87 = vector.shape_cast %86 : vector<8x8x128xbf16> to vector<64x128xbf16>
    %c9 = arith.constant 9 : index
    %c0_66 = arith.constant 0 : index
    %c0_67 = arith.constant 0 : index
    %88 = vector.load %arg3[%c9, %c0_66, %c0_67] : memref<25x128x128xbf16, #tpu.memory_space<vmem>>, vector<1x128x128xbf16>
    %89 = vector.shape_cast %88 : vector<1x128x128xbf16> to vector<128x128xbf16>
    %cst_68 = arith.constant dense<0.000000e+00> : vector<64x128xf32>
    %90 = tpu.matmul %87, %89, %cst_68 {dimension_numbers = #tpu.dot_dimension_numbers<[1], [0], [0], [1], [0, 0, 1, 1], [], []>} : vector<64x128xbf16>, vector<128x128xbf16>, vector<64x128xf32> -> vector<64x128xf32>
    %91 = arith.addf %82, %90 : vector<64x128xf32>
    %c1_i32 = arith.constant 1 : i32
    %92 = arith.addi %0, %c1_i32 : i32
    %c0_69 = arith.constant 0 : index
    %93 = arith.index_cast %92 : i32 to index
    %c0_70 = arith.constant 0 : index
    %c0_71 = arith.constant 0 : index
    %94 = vector.load %arg2[%c0_69, %93, %c0_70, %c0_71] : memref<4x10x10x128xbf16, #tpu.memory_space<vmem>>, vector<1x8x8x128xbf16>
    %95 = vector.shape_cast %94 : vector<1x8x8x128xbf16> to vector<8x8x128xbf16>
    %96 = vector.shape_cast %95 : vector<8x8x128xbf16> to vector<64x128xbf16>
    %c10 = arith.constant 10 : index
    %c0_72 = arith.constant 0 : index
    %c0_73 = arith.constant 0 : index
    %97 = vector.load %arg3[%c10, %c0_72, %c0_73] : memref<25x128x128xbf16, #tpu.memory_space<vmem>>, vector<1x128x128xbf16>
    %98 = vector.shape_cast %97 : vector<1x128x128xbf16> to vector<128x128xbf16>
    %cst_74 = arith.constant dense<0.000000e+00> : vector<64x128xf32>
    %99 = tpu.matmul %96, %98, %cst_74 {dimension_numbers = #tpu.dot_dimension_numbers<[1], [0], [0], [1], [0, 0, 1, 1], [], []>} : vector<64x128xbf16>, vector<128x128xbf16>, vector<64x128xf32> -> vector<64x128xf32>
    %100 = arith.addf %91, %99 : vector<64x128xf32>
    %c1_i32_75 = arith.constant 1 : i32
    %101 = arith.addi %0, %c1_i32_75 : i32
    %c1_76 = arith.constant 1 : index
    %102 = arith.index_cast %101 : i32 to index
    %c0_77 = arith.constant 0 : index
    %c0_78 = arith.constant 0 : index
    %103 = vector.load %arg2[%c1_76, %102, %c0_77, %c0_78] : memref<4x10x10x128xbf16, #tpu.memory_space<vmem>>, vector<1x8x8x128xbf16>
    %104 = vector.shape_cast %103 : vector<1x8x8x128xbf16> to vector<8x8x128xbf16>
    %105 = vector.shape_cast %104 : vector<8x8x128xbf16> to vector<64x128xbf16>
    %c11 = arith.constant 11 : index
    %c0_79 = arith.constant 0 : index
    %c0_80 = arith.constant 0 : index
    %106 = vector.load %arg3[%c11, %c0_79, %c0_80] : memref<25x128x128xbf16, #tpu.memory_space<vmem>>, vector<1x128x128xbf16>
    %107 = vector.shape_cast %106 : vector<1x128x128xbf16> to vector<128x128xbf16>
    %cst_81 = arith.constant dense<0.000000e+00> : vector<64x128xf32>
    %108 = tpu.matmul %105, %107, %cst_81 {dimension_numbers = #tpu.dot_dimension_numbers<[1], [0], [0], [1], [0, 0, 1, 1], [], []>} : vector<64x128xbf16>, vector<128x128xbf16>, vector<64x128xf32> -> vector<64x128xf32>
    %109 = arith.addf %100, %108 : vector<64x128xf32>
    %c1_i32_82 = arith.constant 1 : i32
    %110 = arith.addi %0, %c1_i32_82 : i32
    %c0_83 = arith.constant 0 : index
    %111 = arith.index_cast %110 : i32 to index
    %c1_84 = arith.constant 1 : index
    %c0_85 = arith.constant 0 : index
    %112 = vector.load %arg2[%c0_83, %111, %c1_84, %c0_85] : memref<4x10x10x128xbf16, #tpu.memory_space<vmem>>, vector<1x8x8x128xbf16>
    %113 = vector.shape_cast %112 : vector<1x8x8x128xbf16> to vector<8x8x128xbf16>
    %114 = vector.shape_cast %113 : vector<8x8x128xbf16> to vector<64x128xbf16>
    %c12 = arith.constant 12 : index
    %c0_86 = arith.constant 0 : index
    %c0_87 = arith.constant 0 : index
    %115 = vector.load %arg3[%c12, %c0_86, %c0_87] : memref<25x128x128xbf16, #tpu.memory_space<vmem>>, vector<1x128x128xbf16>
    %116 = vector.shape_cast %115 : vector<1x128x128xbf16> to vector<128x128xbf16>
    %cst_88 = arith.constant dense<0.000000e+00> : vector<64x128xf32>
    %117 = tpu.matmul %114, %116, %cst_88 {dimension_numbers = #tpu.dot_dimension_numbers<[1], [0], [0], [1], [0, 0, 1, 1], [], []>} : vector<64x128xbf16>, vector<128x128xbf16>, vector<64x128xf32> -> vector<64x128xf32>
    %118 = arith.addf %109, %117 : vector<64x128xf32>
    %c1_i32_89 = arith.constant 1 : i32
    %119 = arith.addi %0, %c1_i32_89 : i32
    %c1_90 = arith.constant 1 : index
    %120 = arith.index_cast %119 : i32 to index
    %c1_91 = arith.constant 1 : index
    %c0_92 = arith.constant 0 : index
    %121 = vector.load %arg2[%c1_90, %120, %c1_91, %c0_92] : memref<4x10x10x128xbf16, #tpu.memory_space<vmem>>, vector<1x8x8x128xbf16>
    %122 = vector.shape_cast %121 : vector<1x8x8x128xbf16> to vector<8x8x128xbf16>
    %123 = vector.shape_cast %122 : vector<8x8x128xbf16> to vector<64x128xbf16>
    %c13 = arith.constant 13 : index
    %c0_93 = arith.constant 0 : index
    %c0_94 = arith.constant 0 : index
    %124 = vector.load %arg3[%c13, %c0_93, %c0_94] : memref<25x128x128xbf16, #tpu.memory_space<vmem>>, vector<1x128x128xbf16>
    %125 = vector.shape_cast %124 : vector<1x128x128xbf16> to vector<128x128xbf16>
    %cst_95 = arith.constant dense<0.000000e+00> : vector<64x128xf32>
    %126 = tpu.matmul %123, %125, %cst_95 {dimension_numbers = #tpu.dot_dimension_numbers<[1], [0], [0], [1], [0, 0, 1, 1], [], []>} : vector<64x128xbf16>, vector<128x128xbf16>, vector<64x128xf32> -> vector<64x128xf32>
    %127 = arith.addf %118, %126 : vector<64x128xf32>
    %c1_i32_96 = arith.constant 1 : i32
    %128 = arith.addi %0, %c1_i32_96 : i32
    %c0_97 = arith.constant 0 : index
    %129 = arith.index_cast %128 : i32 to index
    %c2_98 = arith.constant 2 : index
    %c0_99 = arith.constant 0 : index
    %130 = vector.load %arg2[%c0_97, %129, %c2_98, %c0_99] : memref<4x10x10x128xbf16, #tpu.memory_space<vmem>>, vector<1x8x8x128xbf16>
    %131 = vector.shape_cast %130 : vector<1x8x8x128xbf16> to vector<8x8x128xbf16>
    %132 = vector.shape_cast %131 : vector<8x8x128xbf16> to vector<64x128xbf16>
    %c14 = arith.constant 14 : index
    %c0_100 = arith.constant 0 : index
    %c0_101 = arith.constant 0 : index
    %133 = vector.load %arg3[%c14, %c0_100, %c0_101] : memref<25x128x128xbf16, #tpu.memory_space<vmem>>, vector<1x128x128xbf16>
    %134 = vector.shape_cast %133 : vector<1x128x128xbf16> to vector<128x128xbf16>
    %cst_102 = arith.constant dense<0.000000e+00> : vector<64x128xf32>
    %135 = tpu.matmul %132, %134, %cst_102 {dimension_numbers = #tpu.dot_dimension_numbers<[1], [0], [0], [1], [0, 0, 1, 1], [], []>} : vector<64x128xbf16>, vector<128x128xbf16>, vector<64x128xf32> -> vector<64x128xf32>
    %136 = arith.addf %127, %135 : vector<64x128xf32>
    %c1_i32_103 = arith.constant 1 : i32
    %137 = arith.addi %0, %c1_i32_103 : i32
    %c2_104 = arith.constant 2 : index
    %138 = arith.index_cast %137 : i32 to index
    %c0_105 = arith.constant 0 : index
    %c0_106 = arith.constant 0 : index
    %139 = vector.load %arg2[%c2_104, %138, %c0_105, %c0_106] : memref<4x10x10x128xbf16, #tpu.memory_space<vmem>>, vector<1x8x8x128xbf16>
    %140 = vector.shape_cast %139 : vector<1x8x8x128xbf16> to vector<8x8x128xbf16>
    %141 = vector.shape_cast %140 : vector<8x8x128xbf16> to vector<64x128xbf16>
    %c15 = arith.constant 15 : index
    %c0_107 = arith.constant 0 : index
    %c0_108 = arith.constant 0 : index
    %142 = vector.load %arg3[%c15, %c0_107, %c0_108] : memref<25x128x128xbf16, #tpu.memory_space<vmem>>, vector<1x128x128xbf16>
    %143 = vector.shape_cast %142 : vector<1x128x128xbf16> to vector<128x128xbf16>
    %cst_109 = arith.constant dense<0.000000e+00> : vector<64x128xf32>
    %144 = tpu.matmul %141, %143, %cst_109 {dimension_numbers = #tpu.dot_dimension_numbers<[1], [0], [0], [1], [0, 0, 1, 1], [], []>} : vector<64x128xbf16>, vector<128x128xbf16>, vector<64x128xf32> -> vector<64x128xf32>
    %145 = arith.addf %136, %144 : vector<64x128xf32>
    %c1_i32_110 = arith.constant 1 : i32
    %146 = arith.addi %0, %c1_i32_110 : i32
    %c3_111 = arith.constant 3 : index
    %147 = arith.index_cast %146 : i32 to index
    %c0_112 = arith.constant 0 : index
    %c0_113 = arith.constant 0 : index
    %148 = vector.load %arg2[%c3_111, %147, %c0_112, %c0_113] : memref<4x10x10x128xbf16, #tpu.memory_space<vmem>>, vector<1x8x8x128xbf16>
    %149 = vector.shape_cast %148 : vector<1x8x8x128xbf16> to vector<8x8x128xbf16>
    %150 = vector.shape_cast %149 : vector<8x8x128xbf16> to vector<64x128xbf16>
    %c16 = arith.constant 16 : index
    %c0_114 = arith.constant 0 : index
    %c0_115 = arith.constant 0 : index
    %151 = vector.load %arg3[%c16, %c0_114, %c0_115] : memref<25x128x128xbf16, #tpu.memory_space<vmem>>, vector<1x128x128xbf16>
    %152 = vector.shape_cast %151 : vector<1x128x128xbf16> to vector<128x128xbf16>
    %cst_116 = arith.constant dense<0.000000e+00> : vector<64x128xf32>
    %153 = tpu.matmul %150, %152, %cst_116 {dimension_numbers = #tpu.dot_dimension_numbers<[1], [0], [0], [1], [0, 0, 1, 1], [], []>} : vector<64x128xbf16>, vector<128x128xbf16>, vector<64x128xf32> -> vector<64x128xf32>
    %154 = arith.addf %145, %153 : vector<64x128xf32>
    %c1_i32_117 = arith.constant 1 : i32
    %155 = arith.addi %0, %c1_i32_117 : i32
    %c2_118 = arith.constant 2 : index
    %156 = arith.index_cast %155 : i32 to index
    %c1_119 = arith.constant 1 : index
    %c0_120 = arith.constant 0 : index
    %157 = vector.load %arg2[%c2_118, %156, %c1_119, %c0_120] : memref<4x10x10x128xbf16, #tpu.memory_space<vmem>>, vector<1x8x8x128xbf16>
    %158 = vector.shape_cast %157 : vector<1x8x8x128xbf16> to vector<8x8x128xbf16>
    %159 = vector.shape_cast %158 : vector<8x8x128xbf16> to vector<64x128xbf16>
    %c17 = arith.constant 17 : index
    %c0_121 = arith.constant 0 : index
    %c0_122 = arith.constant 0 : index
    %160 = vector.load %arg3[%c17, %c0_121, %c0_122] : memref<25x128x128xbf16, #tpu.memory_space<vmem>>, vector<1x128x128xbf16>
    %161 = vector.shape_cast %160 : vector<1x128x128xbf16> to vector<128x128xbf16>
    %cst_123 = arith.constant dense<0.000000e+00> : vector<64x128xf32>
    %162 = tpu.matmul %159, %161, %cst_123 {dimension_numbers = #tpu.dot_dimension_numbers<[1], [0], [0], [1], [0, 0, 1, 1], [], []>} : vector<64x128xbf16>, vector<128x128xbf16>, vector<64x128xf32> -> vector<64x128xf32>
    %163 = arith.addf %154, %162 : vector<64x128xf32>
    %c1_i32_124 = arith.constant 1 : i32
    %164 = arith.addi %0, %c1_i32_124 : i32
    %c3_125 = arith.constant 3 : index
    %165 = arith.index_cast %164 : i32 to index
    %c1_126 = arith.constant 1 : index
    %c0_127 = arith.constant 0 : index
    %166 = vector.load %arg2[%c3_125, %165, %c1_126, %c0_127] : memref<4x10x10x128xbf16, #tpu.memory_space<vmem>>, vector<1x8x8x128xbf16>
    %167 = vector.shape_cast %166 : vector<1x8x8x128xbf16> to vector<8x8x128xbf16>
    %168 = vector.shape_cast %167 : vector<8x8x128xbf16> to vector<64x128xbf16>
    %c18 = arith.constant 18 : index
    %c0_128 = arith.constant 0 : index
    %c0_129 = arith.constant 0 : index
    %169 = vector.load %arg3[%c18, %c0_128, %c0_129] : memref<25x128x128xbf16, #tpu.memory_space<vmem>>, vector<1x128x128xbf16>
    %170 = vector.shape_cast %169 : vector<1x128x128xbf16> to vector<128x128xbf16>
    %cst_130 = arith.constant dense<0.000000e+00> : vector<64x128xf32>
    %171 = tpu.matmul %168, %170, %cst_130 {dimension_numbers = #tpu.dot_dimension_numbers<[1], [0], [0], [1], [0, 0, 1, 1], [], []>} : vector<64x128xbf16>, vector<128x128xbf16>, vector<64x128xf32> -> vector<64x128xf32>
    %172 = arith.addf %163, %171 : vector<64x128xf32>
    %c1_i32_131 = arith.constant 1 : i32
    %173 = arith.addi %0, %c1_i32_131 : i32
    %c2_132 = arith.constant 2 : index
    %174 = arith.index_cast %173 : i32 to index
    %c2_133 = arith.constant 2 : index
    %c0_134 = arith.constant 0 : index
    %175 = vector.load %arg2[%c2_132, %174, %c2_133, %c0_134] : memref<4x10x10x128xbf16, #tpu.memory_space<vmem>>, vector<1x8x8x128xbf16>
    %176 = vector.shape_cast %175 : vector<1x8x8x128xbf16> to vector<8x8x128xbf16>
    %177 = vector.shape_cast %176 : vector<8x8x128xbf16> to vector<64x128xbf16>
    %c19 = arith.constant 19 : index
    %c0_135 = arith.constant 0 : index
    %c0_136 = arith.constant 0 : index
    %178 = vector.load %arg3[%c19, %c0_135, %c0_136] : memref<25x128x128xbf16, #tpu.memory_space<vmem>>, vector<1x128x128xbf16>
    %179 = vector.shape_cast %178 : vector<1x128x128xbf16> to vector<128x128xbf16>
    %cst_137 = arith.constant dense<0.000000e+00> : vector<64x128xf32>
    %180 = tpu.matmul %177, %179, %cst_137 {dimension_numbers = #tpu.dot_dimension_numbers<[1], [0], [0], [1], [0, 0, 1, 1], [], []>} : vector<64x128xbf16>, vector<128x128xbf16>, vector<64x128xf32> -> vector<64x128xf32>
    %181 = arith.addf %172, %180 : vector<64x128xf32>
    %c2_i32 = arith.constant 2 : i32
    %182 = arith.addi %0, %c2_i32 : i32
    %c0_138 = arith.constant 0 : index
    %183 = arith.index_cast %182 : i32 to index
    %c0_139 = arith.constant 0 : index
    %c0_140 = arith.constant 0 : index
    %184 = vector.load %arg2[%c0_138, %183, %c0_139, %c0_140] : memref<4x10x10x128xbf16, #tpu.memory_space<vmem>>, vector<1x8x8x128xbf16>
    %185 = vector.shape_cast %184 : vector<1x8x8x128xbf16> to vector<8x8x128xbf16>
    %186 = vector.shape_cast %185 : vector<8x8x128xbf16> to vector<64x128xbf16>
    %c20 = arith.constant 20 : index
    %c0_141 = arith.constant 0 : index
    %c0_142 = arith.constant 0 : index
    %187 = vector.load %arg3[%c20, %c0_141, %c0_142] : memref<25x128x128xbf16, #tpu.memory_space<vmem>>, vector<1x128x128xbf16>
    %188 = vector.shape_cast %187 : vector<1x128x128xbf16> to vector<128x128xbf16>
    %cst_143 = arith.constant dense<0.000000e+00> : vector<64x128xf32>
    %189 = tpu.matmul %186, %188, %cst_143 {dimension_numbers = #tpu.dot_dimension_numbers<[1], [0], [0], [1], [0, 0, 1, 1], [], []>} : vector<64x128xbf16>, vector<128x128xbf16>, vector<64x128xf32> -> vector<64x128xf32>
    %190 = arith.addf %181, %189 : vector<64x128xf32>
    %c2_i32_144 = arith.constant 2 : i32
    %191 = arith.addi %0, %c2_i32_144 : i32
    %c1_145 = arith.constant 1 : index
    %192 = arith.index_cast %191 : i32 to index
    %c0_146 = arith.constant 0 : index
    %c0_147 = arith.constant 0 : index
    %193 = vector.load %arg2[%c1_145, %192, %c0_146, %c0_147] : memref<4x10x10x128xbf16, #tpu.memory_space<vmem>>, vector<1x8x8x128xbf16>
    %194 = vector.shape_cast %193 : vector<1x8x8x128xbf16> to vector<8x8x128xbf16>
    %195 = vector.shape_cast %194 : vector<8x8x128xbf16> to vector<64x128xbf16>
    %c21 = arith.constant 21 : index
    %c0_148 = arith.constant 0 : index
    %c0_149 = arith.constant 0 : index
    %196 = vector.load %arg3[%c21, %c0_148, %c0_149] : memref<25x128x128xbf16, #tpu.memory_space<vmem>>, vector<1x128x128xbf16>
    %197 = vector.shape_cast %196 : vector<1x128x128xbf16> to vector<128x128xbf16>
    %cst_150 = arith.constant dense<0.000000e+00> : vector<64x128xf32>
    %198 = tpu.matmul %195, %197, %cst_150 {dimension_numbers = #tpu.dot_dimension_numbers<[1], [0], [0], [1], [0, 0, 1, 1], [], []>} : vector<64x128xbf16>, vector<128x128xbf16>, vector<64x128xf32> -> vector<64x128xf32>
    %199 = arith.addf %190, %198 : vector<64x128xf32>
    %c2_i32_151 = arith.constant 2 : i32
    %200 = arith.addi %0, %c2_i32_151 : i32
    %c0_152 = arith.constant 0 : index
    %201 = arith.index_cast %200 : i32 to index
    %c1_153 = arith.constant 1 : index
    %c0_154 = arith.constant 0 : index
    %202 = vector.load %arg2[%c0_152, %201, %c1_153, %c0_154] : memref<4x10x10x128xbf16, #tpu.memory_space<vmem>>, vector<1x8x8x128xbf16>
    %203 = vector.shape_cast %202 : vector<1x8x8x128xbf16> to vector<8x8x128xbf16>
    %204 = vector.shape_cast %203 : vector<8x8x128xbf16> to vector<64x128xbf16>
    %c22 = arith.constant 22 : index
    %c0_155 = arith.constant 0 : index
    %c0_156 = arith.constant 0 : index
    %205 = vector.load %arg3[%c22, %c0_155, %c0_156] : memref<25x128x128xbf16, #tpu.memory_space<vmem>>, vector<1x128x128xbf16>
    %206 = vector.shape_cast %205 : vector<1x128x128xbf16> to vector<128x128xbf16>
    %cst_157 = arith.constant dense<0.000000e+00> : vector<64x128xf32>
    %207 = tpu.matmul %204, %206, %cst_157 {dimension_numbers = #tpu.dot_dimension_numbers<[1], [0], [0], [1], [0, 0, 1, 1], [], []>} : vector<64x128xbf16>, vector<128x128xbf16>, vector<64x128xf32> -> vector<64x128xf32>
    %208 = arith.addf %199, %207 : vector<64x128xf32>
    %c2_i32_158 = arith.constant 2 : i32
    %209 = arith.addi %0, %c2_i32_158 : i32
    %c1_159 = arith.constant 1 : index
    %210 = arith.index_cast %209 : i32 to index
    %c1_160 = arith.constant 1 : index
    %c0_161 = arith.constant 0 : index
    %211 = vector.load %arg2[%c1_159, %210, %c1_160, %c0_161] : memref<4x10x10x128xbf16, #tpu.memory_space<vmem>>, vector<1x8x8x128xbf16>
    %212 = vector.shape_cast %211 : vector<1x8x8x128xbf16> to vector<8x8x128xbf16>
    %213 = vector.shape_cast %212 : vector<8x8x128xbf16> to vector<64x128xbf16>
    %c23 = arith.constant 23 : index
    %c0_162 = arith.constant 0 : index
    %c0_163 = arith.constant 0 : index
    %214 = vector.load %arg3[%c23, %c0_162, %c0_163] : memref<25x128x128xbf16, #tpu.memory_space<vmem>>, vector<1x128x128xbf16>
    %215 = vector.shape_cast %214 : vector<1x128x128xbf16> to vector<128x128xbf16>
    %cst_164 = arith.constant dense<0.000000e+00> : vector<64x128xf32>
    %216 = tpu.matmul %213, %215, %cst_164 {dimension_numbers = #tpu.dot_dimension_numbers<[1], [0], [0], [1], [0, 0, 1, 1], [], []>} : vector<64x128xbf16>, vector<128x128xbf16>, vector<64x128xf32> -> vector<64x128xf32>
    %217 = arith.addf %208, %216 : vector<64x128xf32>
    %c2_i32_165 = arith.constant 2 : i32
    %218 = arith.addi %0, %c2_i32_165 : i32
    %c0_166 = arith.constant 0 : index
    %219 = arith.index_cast %218 : i32 to index
    %c2_167 = arith.constant 2 : index
    %c0_168 = arith.constant 0 : index
    %220 = vector.load %arg2[%c0_166, %219, %c2_167, %c0_168] : memref<4x10x10x128xbf16, #tpu.memory_space<vmem>>, vector<1x8x8x128xbf16>
    %221 = vector.shape_cast %220 : vector<1x8x8x128xbf16> to vector<8x8x128xbf16>
    %222 = vector.shape_cast %221 : vector<8x8x128xbf16> to vector<64x128xbf16>
    %c24 = arith.constant 24 : index
    %c0_169 = arith.constant 0 : index
    %c0_170 = arith.constant 0 : index
    %223 = vector.load %arg3[%c24, %c0_169, %c0_170] : memref<25x128x128xbf16, #tpu.memory_space<vmem>>, vector<1x128x128xbf16>
    %224 = vector.shape_cast %223 : vector<1x128x128xbf16> to vector<128x128xbf16>
    %cst_171 = arith.constant dense<0.000000e+00> : vector<64x128xf32>
    %225 = tpu.matmul %222, %224, %cst_171 {dimension_numbers = #tpu.dot_dimension_numbers<[1], [0], [0], [1], [0, 0, 1, 1], [], []>} : vector<64x128xbf16>, vector<128x128xbf16>, vector<64x128xf32> -> vector<64x128xf32>
    %226 = arith.addf %217, %225 : vector<64x128xf32>
    %227 = vector.shape_cast %226 : vector<64x128xf32> to vector<1x64x128xf32>
    %c0_172 = arith.constant 0 : index
    %c0_173 = arith.constant 0 : index
    %c0_174 = arith.constant 0 : index
    %228 = vector.load %arg4[%c0_172, %c0_173, %c0_174] : memref<1x64x128xf32, #tpu.memory_space<vmem>>, vector<1x64x128xf32>
    tpu.vector_store %arg4[%c0_172, %c0_173, %c0_174], %227 {strides = array<i32>} : memref<1x64x128xf32, #tpu.memory_space<vmem>>, vector<1x64x128xf32>,
    %cst_175 = arith.constant dense<0.000000e+00> : vector<128xf32>
    %229 = vector.multi_reduction <add>, %226, %cst_175 [0] : vector<64x128xf32> to vector<128xf32>
    %230 = vector.shape_cast %229 : vector<128xf32> to vector<1x128xf32>
    %231 = arith.mulf %226, %226 : vector<64x128xf32>
    %cst_176 = arith.constant dense<0.000000e+00> : vector<128xf32>
    %232 = vector.multi_reduction <add>, %231, %cst_176 [0] : vector<64x128xf32> to vector<128xf32>
    %233 = vector.shape_cast %232 : vector<128xf32> to vector<1x128xf32>
    %234 = tpu.concatenate %230, %233 in 0 : vector<1x128xf32>, vector<1x128xf32> -> vector<2x128xf32>
    %235 = vector.shape_cast %234 : vector<2x128xf32> to vector<1x2x128xf32>
    %c0_177 = arith.constant 0 : index
    %c0_178 = arith.constant 0 : index
    %c0_179 = arith.constant 0 : index
    %236 = vector.load %arg5[%c0_177, %c0_178, %c0_179] : memref<1x2x128xf32, #tpu.memory_space<vmem>>, vector<1x2x128xf32>
    tpu.vector_store %arg5[%c0_177, %c0_178, %c0_179], %235 {strides = array<i32>} : memref<1x2x128xf32, #tpu.memory_space<vmem>>, vector<1x2x128xf32>,
    return
  }
  func.func @transform_0(%arg0: i32, %arg1: i32) -> (i32, i32, i32, i32) {
    %c0_i32 = arith.constant 0 : i32
    %c0_i32_0 = arith.constant 0 : i32
    %c0_i32_1 = arith.constant 0 : i32
    %c0_i32_2 = arith.constant 0 : i32
    return %arg0, %c0_i32, %c0_i32_0, %c0_i32_1 : i32, i32, i32, i32
  }
  func.func @transform_1(%arg0: i32, %arg1: i32) -> (i32, i32, i32) {
    %c0_i32 = arith.constant 0 : i32
    %c0_i32_0 = arith.constant 0 : i32
    %c0_i32_1 = arith.constant 0 : i32
    %c0_i32_2 = arith.constant 0 : i32
    return %c0_i32, %c0_i32_0, %c0_i32_1 : i32, i32, i32
  }
  func.func @transform_2(%arg0: i32, %arg1: i32) -> (i32, i32, i32) {
    %c0_i32 = arith.constant 0 : i32
    %c0_i32_0 = arith.constant 0 : i32
    return %arg0, %arg1, %c0_i32 : i32, i32, i32
  }
  func.func @transform_3(%arg0: i32, %arg1: i32) -> (i32, i32, i32) {
    %c1_i32 = arith.constant 1 : i32
    %0 = arith.muli %arg0, %c1_i32 : i32
    %1 = arith.addi %0, %arg1 : i32
    %c0_i32 = arith.constant 0 : i32
    %c0_i32_0 = arith.constant 0 : i32
    %c0_i32_1 = arith.constant 0 : i32
    return %1, %c0_i32, %c0_i32_0 : i32, i32, i32
  }
}

module attributes {stable_mosaic.version = 11 : i64} {
  func.func @_bn_relu_kernel(%arg0: i32, %arg1: i32, %arg2: memref<1x64x128xf32, #tpu.memory_space<vmem>>, %arg3: memref<2x128xf32, #tpu.memory_space<vmem>>, %arg4: memref<1x64x128xbf16, #tpu.memory_space<vmem>>) attributes {dimension_semantics = [#tpu.dimension_semantics<parallel>, #tpu.dimension_semantics<parallel>], iteration_bounds = array<i64: 2, 1>, scalar_prefetch = 0 : i64, scratch_operands = 0 : i64, tpu.core_type = #tpu.core_type<tc>, window_params = [{transform_indices = @transform_0, window_bounds = array<i64: 1, 64, 128>}, {pipeline_mode = #tpu.pipeline_mode<synchronous>, transform_indices = @transform_1, window_bounds = array<i64: 2, 128>}, {transform_indices = @transform_2, window_bounds = array<i64: 1, 64, 128>}]} {
    %c0 = arith.constant 0 : index
    %c0_0 = arith.constant 0 : index
    %0 = vector.load %arg3[%c0, %c0_0] : memref<2x128xf32, #tpu.memory_space<vmem>>, vector<1x128xf32>
    %1 = vector.shape_cast %0 : vector<1x128xf32> to vector<1x1x128xf32>
    %c1 = arith.constant 1 : index
    %c0_1 = arith.constant 0 : index
    %2 = vector.load %arg3[%c1, %c0_1] : memref<2x128xf32, #tpu.memory_space<vmem>>, vector<1x128xf32>
    %3 = vector.shape_cast %2 : vector<1x128xf32> to vector<1x1x128xf32>
    %c0_2 = arith.constant 0 : index
    %c0_3 = arith.constant 0 : index
    %c0_4 = arith.constant 0 : index
    %4 = vector.load %arg2[%c0_2, %c0_3, %c0_4] : memref<1x64x128xf32, #tpu.memory_space<vmem>>, vector<1x64x128xf32>
    %5 = vector.broadcast %1 : vector<1x1x128xf32> to vector<1x64x128xf32>
    %6 = arith.mulf %4, %5 : vector<1x64x128xf32>
    %7 = vector.broadcast %3 : vector<1x1x128xf32> to vector<1x64x128xf32>
    %8 = arith.addf %6, %7 : vector<1x64x128xf32>
    %cst = arith.constant 0.000000e+00 : f32
    %9 = vector.broadcast %cst : f32 to vector<1x64x128xf32>
    %10 = arith.maximumf %8, %9 : vector<1x64x128xf32>
    %11 = arith.truncf %10 : vector<1x64x128xf32> to vector<1x64x128xbf16>
    %c0_5 = arith.constant 0 : index
    %c0_6 = arith.constant 0 : index
    %c0_7 = arith.constant 0 : index
    %12 = vector.load %arg4[%c0_5, %c0_6, %c0_7] : memref<1x64x128xbf16, #tpu.memory_space<vmem>>, vector<1x64x128xbf16>
    tpu.vector_store %arg4[%c0_5, %c0_6, %c0_7], %11 {strides = array<i32>} : memref<1x64x128xbf16, #tpu.memory_space<vmem>>, vector<1x64x128xbf16>,
    return
  }
  func.func @transform_0(%arg0: i32, %arg1: i32) -> (i32, i32, i32) {
    %c0_i32 = arith.constant 0 : i32
    %c0_i32_0 = arith.constant 0 : i32
    return %arg0, %arg1, %c0_i32 : i32, i32, i32
  }
  func.func @transform_1(%arg0: i32, %arg1: i32) -> (i32, i32) {
    %c0_i32 = arith.constant 0 : i32
    %c0_i32_0 = arith.constant 0 : i32
    %c0_i32_1 = arith.constant 0 : i32
    return %c0_i32, %c0_i32_0 : i32, i32
  }
  func.func @transform_2(%arg0: i32, %arg1: i32) -> (i32, i32, i32) {
    %c0_i32 = arith.constant 0 : i32
    %c0_i32_0 = arith.constant 0 : i32
    return %arg0, %arg1, %c0_i32 : i32, i32, i32
  }
}

module attributes {stable_mosaic.version = 11 : i64} {
  func.func @_bn_relu_kernel(%arg0: i32, %arg1: i32, %arg2: memref<1x16x128xf32, #tpu.memory_space<vmem>>, %arg3: memref<2x128xf32, #tpu.memory_space<vmem>>, %arg4: memref<1x16x128xbf16, #tpu.memory_space<vmem>>) attributes {dimension_semantics = [#tpu.dimension_semantics<parallel>, #tpu.dimension_semantics<parallel>], iteration_bounds = array<i64: 2, 1>, scalar_prefetch = 0 : i64, scratch_operands = 0 : i64, tpu.core_type = #tpu.core_type<tc>, window_params = [{transform_indices = @transform_0, window_bounds = array<i64: 1, 16, 128>}, {pipeline_mode = #tpu.pipeline_mode<synchronous>, transform_indices = @transform_1, window_bounds = array<i64: 2, 128>}, {transform_indices = @transform_2, window_bounds = array<i64: 1, 16, 128>}]} {
    %c0 = arith.constant 0 : index
    %c0_0 = arith.constant 0 : index
    %0 = vector.load %arg3[%c0, %c0_0] : memref<2x128xf32, #tpu.memory_space<vmem>>, vector<1x128xf32>
    %1 = vector.shape_cast %0 : vector<1x128xf32> to vector<1x1x128xf32>
    %c1 = arith.constant 1 : index
    %c0_1 = arith.constant 0 : index
    %2 = vector.load %arg3[%c1, %c0_1] : memref<2x128xf32, #tpu.memory_space<vmem>>, vector<1x128xf32>
    %3 = vector.shape_cast %2 : vector<1x128xf32> to vector<1x1x128xf32>
    %c0_2 = arith.constant 0 : index
    %c0_3 = arith.constant 0 : index
    %c0_4 = arith.constant 0 : index
    %4 = vector.load %arg2[%c0_2, %c0_3, %c0_4] : memref<1x16x128xf32, #tpu.memory_space<vmem>>, vector<1x16x128xf32>
    %5 = vector.broadcast %1 : vector<1x1x128xf32> to vector<1x16x128xf32>
    %6 = arith.mulf %4, %5 : vector<1x16x128xf32>
    %7 = vector.broadcast %3 : vector<1x1x128xf32> to vector<1x16x128xf32>
    %8 = arith.addf %6, %7 : vector<1x16x128xf32>
    %cst = arith.constant 0.000000e+00 : f32
    %9 = vector.broadcast %cst : f32 to vector<1x16x128xf32>
    %10 = arith.maximumf %8, %9 : vector<1x16x128xf32>
    %11 = arith.truncf %10 : vector<1x16x128xf32> to vector<1x16x128xbf16>
    %c0_5 = arith.constant 0 : index
    %c0_6 = arith.constant 0 : index
    %c0_7 = arith.constant 0 : index
    %12 = vector.load %arg4[%c0_5, %c0_6, %c0_7] : memref<1x16x128xbf16, #tpu.memory_space<vmem>>, vector<1x16x128xbf16>
    tpu.vector_store %arg4[%c0_5, %c0_6, %c0_7], %11 {strides = array<i32>} : memref<1x16x128xbf16, #tpu.memory_space<vmem>>, vector<1x16x128xbf16>,
    return
  }
  func.func @transform_0(%arg0: i32, %arg1: i32) -> (i32, i32, i32) {
    %c0_i32 = arith.constant 0 : i32
    %c0_i32_0 = arith.constant 0 : i32
    return %arg0, %arg1, %c0_i32 : i32, i32, i32
  }
  func.func @transform_1(%arg0: i32, %arg1: i32) -> (i32, i32) {
    %c0_i32 = arith.constant 0 : i32
    %c0_i32_0 = arith.constant 0 : i32
    %c0_i32_1 = arith.constant 0 : i32
    return %c0_i32, %c0_i32_0 : i32, i32
  }
  func.func @transform_2(%arg0: i32, %arg1: i32) -> (i32, i32, i32) {
    %c0_i32 = arith.constant 0 : i32
    %c0_i32_0 = arith.constant 0 : i32
    return %arg0, %arg1, %c0_i32 : i32, i32, i32
  }
}

module attributes {stable_mosaic.version = 11 : i64} {
  func.func @_conv_gemm_stats_kernel(%arg0: i32, %arg1: i32, %arg2: memref<4x6x6x128xbf16, #tpu.memory_space<vmem>>, %arg3: memref<25x128x128xbf16, #tpu.memory_space<vmem>>, %arg4: memref<1x16x128xf32, #tpu.memory_space<vmem>>, %arg5: memref<1x2x128xf32, #tpu.memory_space<vmem>>) attributes {dimension_semantics = [#tpu.dimension_semantics<parallel>, #tpu.dimension_semantics<parallel>], iteration_bounds = array<i64: 2, 1>, scalar_prefetch = 0 : i64, scratch_operands = 0 : i64, tpu.core_type = #tpu.core_type<tc>, window_params = [{transform_indices = @transform_0, window_bounds = array<i64: 4, 6, 6, 128>}, {pipeline_mode = #tpu.pipeline_mode<synchronous>, transform_indices = @transform_1, window_bounds = array<i64: 25, 128, 128>}, {transform_indices = @transform_2, window_bounds = array<i64: 1, 16, 128>}, {transform_indices = @transform_3, window_bounds = array<i64: 1, 2, 128>}]} {
    %c4_i32 = arith.constant 4 : i32
    %0 = arith.muli %arg1, %c4_i32 : i32
    %cst = arith.constant 0.000000e+00 : f32
    %1 = vector.broadcast %cst : f32 to vector<16x128xf32>
    %c0_i32 = arith.constant 0 : i32
    %2 = arith.addi %0, %c0_i32 : i32
    %c0 = arith.constant 0 : index
    %3 = arith.index_cast %2 : i32 to index
    %c0_0 = arith.constant 0 : index
    %c0_1 = arith.constant 0 : index
    %4 = vector.load %arg2[%c0, %3, %c0_0, %c0_1] : memref<4x6x6x128xbf16, #tpu.memory_space<vmem>>, vector<1x4x4x128xbf16>
    %5 = vector.shape_cast %4 : vector<1x4x4x128xbf16> to vector<4x4x128xbf16>
    %6 = vector.shape_cast %5 : vector<4x4x128xbf16> to vector<16x128xbf16>
    %c0_2 = arith.constant 0 : index
    %c0_3 = arith.constant 0 : index
    %c0_4 = arith.constant 0 : index
    %7 = vector.load %arg3[%c0_2, %c0_3, %c0_4] : memref<25x128x128xbf16, #tpu.memory_space<vmem>>, vector<1x128x128xbf16>
    %8 = vector.shape_cast %7 : vector<1x128x128xbf16> to vector<128x128xbf16>
    %cst_5 = arith.constant dense<0.000000e+00> : vector<16x128xf32>
    %9 = tpu.matmul %6, %8, %cst_5 {dimension_numbers = #tpu.dot_dimension_numbers<[1], [0], [0], [1], [0, 0, 1, 1], [], []>} : vector<16x128xbf16>, vector<128x128xbf16>, vector<16x128xf32> -> vector<16x128xf32>
    %10 = arith.addf %1, %9 : vector<16x128xf32>
    %c0_i32_6 = arith.constant 0 : i32
    %11 = arith.addi %0, %c0_i32_6 : i32
    %c1 = arith.constant 1 : index
    %12 = arith.index_cast %11 : i32 to index
    %c0_7 = arith.constant 0 : index
    %c0_8 = arith.constant 0 : index
    %13 = vector.load %arg2[%c1, %12, %c0_7, %c0_8] : memref<4x6x6x128xbf16, #tpu.memory_space<vmem>>, vector<1x4x4x128xbf16>
    %14 = vector.shape_cast %13 : vector<1x4x4x128xbf16> to vector<4x4x128xbf16>
    %15 = vector.shape_cast %14 : vector<4x4x128xbf16> to vector<16x128xbf16>
    %c1_9 = arith.constant 1 : index
    %c0_10 = arith.constant 0 : index
    %c0_11 = arith.constant 0 : index
    %16 = vector.load %arg3[%c1_9, %c0_10, %c0_11] : memref<25x128x128xbf16, #tpu.memory_space<vmem>>, vector<1x128x128xbf16>
    %17 = vector.shape_cast %16 : vector<1x128x128xbf16> to vector<128x128xbf16>
    %cst_12 = arith.constant dense<0.000000e+00> : vector<16x128xf32>
    %18 = tpu.matmul %15, %17, %cst_12 {dimension_numbers = #tpu.dot_dimension_numbers<[1], [0], [0], [1], [0, 0, 1, 1], [], []>} : vector<16x128xbf16>, vector<128x128xbf16>, vector<16x128xf32> -> vector<16x128xf32>
    %19 = arith.addf %10, %18 : vector<16x128xf32>
    %c0_i32_13 = arith.constant 0 : i32
    %20 = arith.addi %0, %c0_i32_13 : i32
    %c0_14 = arith.constant 0 : index
    %21 = arith.index_cast %20 : i32 to index
    %c1_15 = arith.constant 1 : index
    %c0_16 = arith.constant 0 : index
    %22 = vector.load %arg2[%c0_14, %21, %c1_15, %c0_16] : memref<4x6x6x128xbf16, #tpu.memory_space<vmem>>, vector<1x4x4x128xbf16>
    %23 = vector.shape_cast %22 : vector<1x4x4x128xbf16> to vector<4x4x128xbf16>
    %24 = vector.shape_cast %23 : vector<4x4x128xbf16> to vector<16x128xbf16>
    %c2 = arith.constant 2 : index
    %c0_17 = arith.constant 0 : index
    %c0_18 = arith.constant 0 : index
    %25 = vector.load %arg3[%c2, %c0_17, %c0_18] : memref<25x128x128xbf16, #tpu.memory_space<vmem>>, vector<1x128x128xbf16>
    %26 = vector.shape_cast %25 : vector<1x128x128xbf16> to vector<128x128xbf16>
    %cst_19 = arith.constant dense<0.000000e+00> : vector<16x128xf32>
    %27 = tpu.matmul %24, %26, %cst_19 {dimension_numbers = #tpu.dot_dimension_numbers<[1], [0], [0], [1], [0, 0, 1, 1], [], []>} : vector<16x128xbf16>, vector<128x128xbf16>, vector<16x128xf32> -> vector<16x128xf32>
    %28 = arith.addf %19, %27 : vector<16x128xf32>
    %c0_i32_20 = arith.constant 0 : i32
    %29 = arith.addi %0, %c0_i32_20 : i32
    %c1_21 = arith.constant 1 : index
    %30 = arith.index_cast %29 : i32 to index
    %c1_22 = arith.constant 1 : index
    %c0_23 = arith.constant 0 : index
    %31 = vector.load %arg2[%c1_21, %30, %c1_22, %c0_23] : memref<4x6x6x128xbf16, #tpu.memory_space<vmem>>, vector<1x4x4x128xbf16>
    %32 = vector.shape_cast %31 : vector<1x4x4x128xbf16> to vector<4x4x128xbf16>
    %33 = vector.shape_cast %32 : vector<4x4x128xbf16> to vector<16x128xbf16>
    %c3 = arith.constant 3 : index
    %c0_24 = arith.constant 0 : index
    %c0_25 = arith.constant 0 : index
    %34 = vector.load %arg3[%c3, %c0_24, %c0_25] : memref<25x128x128xbf16, #tpu.memory_space<vmem>>, vector<1x128x128xbf16>
    %35 = vector.shape_cast %34 : vector<1x128x128xbf16> to vector<128x128xbf16>
    %cst_26 = arith.constant dense<0.000000e+00> : vector<16x128xf32>
    %36 = tpu.matmul %33, %35, %cst_26 {dimension_numbers = #tpu.dot_dimension_numbers<[1], [0], [0], [1], [0, 0, 1, 1], [], []>} : vector<16x128xbf16>, vector<128x128xbf16>, vector<16x128xf32> -> vector<16x128xf32>
    %37 = arith.addf %28, %36 : vector<16x128xf32>
    %c0_i32_27 = arith.constant 0 : i32
    %38 = arith.addi %0, %c0_i32_27 : i32
    %c0_28 = arith.constant 0 : index
    %39 = arith.index_cast %38 : i32 to index
    %c2_29 = arith.constant 2 : index
    %c0_30 = arith.constant 0 : index
    %40 = vector.load %arg2[%c0_28, %39, %c2_29, %c0_30] : memref<4x6x6x128xbf16, #tpu.memory_space<vmem>>, vector<1x4x4x128xbf16>
    %41 = vector.shape_cast %40 : vector<1x4x4x128xbf16> to vector<4x4x128xbf16>
    %42 = vector.shape_cast %41 : vector<4x4x128xbf16> to vector<16x128xbf16>
    %c4 = arith.constant 4 : index
    %c0_31 = arith.constant 0 : index
    %c0_32 = arith.constant 0 : index
    %43 = vector.load %arg3[%c4, %c0_31, %c0_32] : memref<25x128x128xbf16, #tpu.memory_space<vmem>>, vector<1x128x128xbf16>
    %44 = vector.shape_cast %43 : vector<1x128x128xbf16> to vector<128x128xbf16>
    %cst_33 = arith.constant dense<0.000000e+00> : vector<16x128xf32>
    %45 = tpu.matmul %42, %44, %cst_33 {dimension_numbers = #tpu.dot_dimension_numbers<[1], [0], [0], [1], [0, 0, 1, 1], [], []>} : vector<16x128xbf16>, vector<128x128xbf16>, vector<16x128xf32> -> vector<16x128xf32>
    %46 = arith.addf %37, %45 : vector<16x128xf32>
    %c0_i32_34 = arith.constant 0 : i32
    %47 = arith.addi %0, %c0_i32_34 : i32
    %c2_35 = arith.constant 2 : index
    %48 = arith.index_cast %47 : i32 to index
    %c0_36 = arith.constant 0 : index
    %c0_37 = arith.constant 0 : index
    %49 = vector.load %arg2[%c2_35, %48, %c0_36, %c0_37] : memref<4x6x6x128xbf16, #tpu.memory_space<vmem>>, vector<1x4x4x128xbf16>
    %50 = vector.shape_cast %49 : vector<1x4x4x128xbf16> to vector<4x4x128xbf16>
    %51 = vector.shape_cast %50 : vector<4x4x128xbf16> to vector<16x128xbf16>
    %c5 = arith.constant 5 : index
    %c0_38 = arith.constant 0 : index
    %c0_39 = arith.constant 0 : index
    %52 = vector.load %arg3[%c5, %c0_38, %c0_39] : memref<25x128x128xbf16, #tpu.memory_space<vmem>>, vector<1x128x128xbf16>
    %53 = vector.shape_cast %52 : vector<1x128x128xbf16> to vector<128x128xbf16>
    %cst_40 = arith.constant dense<0.000000e+00> : vector<16x128xf32>
    %54 = tpu.matmul %51, %53, %cst_40 {dimension_numbers = #tpu.dot_dimension_numbers<[1], [0], [0], [1], [0, 0, 1, 1], [], []>} : vector<16x128xbf16>, vector<128x128xbf16>, vector<16x128xf32> -> vector<16x128xf32>
    %55 = arith.addf %46, %54 : vector<16x128xf32>
    %c0_i32_41 = arith.constant 0 : i32
    %56 = arith.addi %0, %c0_i32_41 : i32
    %c3_42 = arith.constant 3 : index
    %57 = arith.index_cast %56 : i32 to index
    %c0_43 = arith.constant 0 : index
    %c0_44 = arith.constant 0 : index
    %58 = vector.load %arg2[%c3_42, %57, %c0_43, %c0_44] : memref<4x6x6x128xbf16, #tpu.memory_space<vmem>>, vector<1x4x4x128xbf16>
    %59 = vector.shape_cast %58 : vector<1x4x4x128xbf16> to vector<4x4x128xbf16>
    %60 = vector.shape_cast %59 : vector<4x4x128xbf16> to vector<16x128xbf16>
    %c6 = arith.constant 6 : index
    %c0_45 = arith.constant 0 : index
    %c0_46 = arith.constant 0 : index
    %61 = vector.load %arg3[%c6, %c0_45, %c0_46] : memref<25x128x128xbf16, #tpu.memory_space<vmem>>, vector<1x128x128xbf16>
    %62 = vector.shape_cast %61 : vector<1x128x128xbf16> to vector<128x128xbf16>
    %cst_47 = arith.constant dense<0.000000e+00> : vector<16x128xf32>
    %63 = tpu.matmul %60, %62, %cst_47 {dimension_numbers = #tpu.dot_dimension_numbers<[1], [0], [0], [1], [0, 0, 1, 1], [], []>} : vector<16x128xbf16>, vector<128x128xbf16>, vector<16x128xf32> -> vector<16x128xf32>
    %64 = arith.addf %55, %63 : vector<16x128xf32>
    %c0_i32_48 = arith.constant 0 : i32
    %65 = arith.addi %0, %c0_i32_48 : i32
    %c2_49 = arith.constant 2 : index
    %66 = arith.index_cast %65 : i32 to index
    %c1_50 = arith.constant 1 : index
    %c0_51 = arith.constant 0 : index
    %67 = vector.load %arg2[%c2_49, %66, %c1_50, %c0_51] : memref<4x6x6x128xbf16, #tpu.memory_space<vmem>>, vector<1x4x4x128xbf16>
    %68 = vector.shape_cast %67 : vector<1x4x4x128xbf16> to vector<4x4x128xbf16>
    %69 = vector.shape_cast %68 : vector<4x4x128xbf16> to vector<16x128xbf16>
    %c7 = arith.constant 7 : index
    %c0_52 = arith.constant 0 : index
    %c0_53 = arith.constant 0 : index
    %70 = vector.load %arg3[%c7, %c0_52, %c0_53] : memref<25x128x128xbf16, #tpu.memory_space<vmem>>, vector<1x128x128xbf16>
    %71 = vector.shape_cast %70 : vector<1x128x128xbf16> to vector<128x128xbf16>
    %cst_54 = arith.constant dense<0.000000e+00> : vector<16x128xf32>
    %72 = tpu.matmul %69, %71, %cst_54 {dimension_numbers = #tpu.dot_dimension_numbers<[1], [0], [0], [1], [0, 0, 1, 1], [], []>} : vector<16x128xbf16>, vector<128x128xbf16>, vector<16x128xf32> -> vector<16x128xf32>
    %73 = arith.addf %64, %72 : vector<16x128xf32>
    %c0_i32_55 = arith.constant 0 : i32
    %74 = arith.addi %0, %c0_i32_55 : i32
    %c3_56 = arith.constant 3 : index
    %75 = arith.index_cast %74 : i32 to index
    %c1_57 = arith.constant 1 : index
    %c0_58 = arith.constant 0 : index
    %76 = vector.load %arg2[%c3_56, %75, %c1_57, %c0_58] : memref<4x6x6x128xbf16, #tpu.memory_space<vmem>>, vector<1x4x4x128xbf16>
    %77 = vector.shape_cast %76 : vector<1x4x4x128xbf16> to vector<4x4x128xbf16>
    %78 = vector.shape_cast %77 : vector<4x4x128xbf16> to vector<16x128xbf16>
    %c8 = arith.constant 8 : index
    %c0_59 = arith.constant 0 : index
    %c0_60 = arith.constant 0 : index
    %79 = vector.load %arg3[%c8, %c0_59, %c0_60] : memref<25x128x128xbf16, #tpu.memory_space<vmem>>, vector<1x128x128xbf16>
    %80 = vector.shape_cast %79 : vector<1x128x128xbf16> to vector<128x128xbf16>
    %cst_61 = arith.constant dense<0.000000e+00> : vector<16x128xf32>
    %81 = tpu.matmul %78, %80, %cst_61 {dimension_numbers = #tpu.dot_dimension_numbers<[1], [0], [0], [1], [0, 0, 1, 1], [], []>} : vector<16x128xbf16>, vector<128x128xbf16>, vector<16x128xf32> -> vector<16x128xf32>
    %82 = arith.addf %73, %81 : vector<16x128xf32>
    %c0_i32_62 = arith.constant 0 : i32
    %83 = arith.addi %0, %c0_i32_62 : i32
    %c2_63 = arith.constant 2 : index
    %84 = arith.index_cast %83 : i32 to index
    %c2_64 = arith.constant 2 : index
    %c0_65 = arith.constant 0 : index
    %85 = vector.load %arg2[%c2_63, %84, %c2_64, %c0_65] : memref<4x6x6x128xbf16, #tpu.memory_space<vmem>>, vector<1x4x4x128xbf16>
    %86 = vector.shape_cast %85 : vector<1x4x4x128xbf16> to vector<4x4x128xbf16>
    %87 = vector.shape_cast %86 : vector<4x4x128xbf16> to vector<16x128xbf16>
    %c9 = arith.constant 9 : index
    %c0_66 = arith.constant 0 : index
    %c0_67 = arith.constant 0 : index
    %88 = vector.load %arg3[%c9, %c0_66, %c0_67] : memref<25x128x128xbf16, #tpu.memory_space<vmem>>, vector<1x128x128xbf16>
    %89 = vector.shape_cast %88 : vector<1x128x128xbf16> to vector<128x128xbf16>
    %cst_68 = arith.constant dense<0.000000e+00> : vector<16x128xf32>
    %90 = tpu.matmul %87, %89, %cst_68 {dimension_numbers = #tpu.dot_dimension_numbers<[1], [0], [0], [1], [0, 0, 1, 1], [], []>} : vector<16x128xbf16>, vector<128x128xbf16>, vector<16x128xf32> -> vector<16x128xf32>
    %91 = arith.addf %82, %90 : vector<16x128xf32>
    %c1_i32 = arith.constant 1 : i32
    %92 = arith.addi %0, %c1_i32 : i32
    %c0_69 = arith.constant 0 : index
    %93 = arith.index_cast %92 : i32 to index
    %c0_70 = arith.constant 0 : index
    %c0_71 = arith.constant 0 : index
    %94 = vector.load %arg2[%c0_69, %93, %c0_70, %c0_71] : memref<4x6x6x128xbf16, #tpu.memory_space<vmem>>, vector<1x4x4x128xbf16>
    %95 = vector.shape_cast %94 : vector<1x4x4x128xbf16> to vector<4x4x128xbf16>
    %96 = vector.shape_cast %95 : vector<4x4x128xbf16> to vector<16x128xbf16>
    %c10 = arith.constant 10 : index
    %c0_72 = arith.constant 0 : index
    %c0_73 = arith.constant 0 : index
    %97 = vector.load %arg3[%c10, %c0_72, %c0_73] : memref<25x128x128xbf16, #tpu.memory_space<vmem>>, vector<1x128x128xbf16>
    %98 = vector.shape_cast %97 : vector<1x128x128xbf16> to vector<128x128xbf16>
    %cst_74 = arith.constant dense<0.000000e+00> : vector<16x128xf32>
    %99 = tpu.matmul %96, %98, %cst_74 {dimension_numbers = #tpu.dot_dimension_numbers<[1], [0], [0], [1], [0, 0, 1, 1], [], []>} : vector<16x128xbf16>, vector<128x128xbf16>, vector<16x128xf32> -> vector<16x128xf32>
    %100 = arith.addf %91, %99 : vector<16x128xf32>
    %c1_i32_75 = arith.constant 1 : i32
    %101 = arith.addi %0, %c1_i32_75 : i32
    %c1_76 = arith.constant 1 : index
    %102 = arith.index_cast %101 : i32 to index
    %c0_77 = arith.constant 0 : index
    %c0_78 = arith.constant 0 : index
    %103 = vector.load %arg2[%c1_76, %102, %c0_77, %c0_78] : memref<4x6x6x128xbf16, #tpu.memory_space<vmem>>, vector<1x4x4x128xbf16>
    %104 = vector.shape_cast %103 : vector<1x4x4x128xbf16> to vector<4x4x128xbf16>
    %105 = vector.shape_cast %104 : vector<4x4x128xbf16> to vector<16x128xbf16>
    %c11 = arith.constant 11 : index
    %c0_79 = arith.constant 0 : index
    %c0_80 = arith.constant 0 : index
    %106 = vector.load %arg3[%c11, %c0_79, %c0_80] : memref<25x128x128xbf16, #tpu.memory_space<vmem>>, vector<1x128x128xbf16>
    %107 = vector.shape_cast %106 : vector<1x128x128xbf16> to vector<128x128xbf16>
    %cst_81 = arith.constant dense<0.000000e+00> : vector<16x128xf32>
    %108 = tpu.matmul %105, %107, %cst_81 {dimension_numbers = #tpu.dot_dimension_numbers<[1], [0], [0], [1], [0, 0, 1, 1], [], []>} : vector<16x128xbf16>, vector<128x128xbf16>, vector<16x128xf32> -> vector<16x128xf32>
    %109 = arith.addf %100, %108 : vector<16x128xf32>
    %c1_i32_82 = arith.constant 1 : i32
    %110 = arith.addi %0, %c1_i32_82 : i32
    %c0_83 = arith.constant 0 : index
    %111 = arith.index_cast %110 : i32 to index
    %c1_84 = arith.constant 1 : index
    %c0_85 = arith.constant 0 : index
    %112 = vector.load %arg2[%c0_83, %111, %c1_84, %c0_85] : memref<4x6x6x128xbf16, #tpu.memory_space<vmem>>, vector<1x4x4x128xbf16>
    %113 = vector.shape_cast %112 : vector<1x4x4x128xbf16> to vector<4x4x128xbf16>
    %114 = vector.shape_cast %113 : vector<4x4x128xbf16> to vector<16x128xbf16>
    %c12 = arith.constant 12 : index
    %c0_86 = arith.constant 0 : index
    %c0_87 = arith.constant 0 : index
    %115 = vector.load %arg3[%c12, %c0_86, %c0_87] : memref<25x128x128xbf16, #tpu.memory_space<vmem>>, vector<1x128x128xbf16>
    %116 = vector.shape_cast %115 : vector<1x128x128xbf16> to vector<128x128xbf16>
    %cst_88 = arith.constant dense<0.000000e+00> : vector<16x128xf32>
    %117 = tpu.matmul %114, %116, %cst_88 {dimension_numbers = #tpu.dot_dimension_numbers<[1], [0], [0], [1], [0, 0, 1, 1], [], []>} : vector<16x128xbf16>, vector<128x128xbf16>, vector<16x128xf32> -> vector<16x128xf32>
    %118 = arith.addf %109, %117 : vector<16x128xf32>
    %c1_i32_89 = arith.constant 1 : i32
    %119 = arith.addi %0, %c1_i32_89 : i32
    %c1_90 = arith.constant 1 : index
    %120 = arith.index_cast %119 : i32 to index
    %c1_91 = arith.constant 1 : index
    %c0_92 = arith.constant 0 : index
    %121 = vector.load %arg2[%c1_90, %120, %c1_91, %c0_92] : memref<4x6x6x128xbf16, #tpu.memory_space<vmem>>, vector<1x4x4x128xbf16>
    %122 = vector.shape_cast %121 : vector<1x4x4x128xbf16> to vector<4x4x128xbf16>
    %123 = vector.shape_cast %122 : vector<4x4x128xbf16> to vector<16x128xbf16>
    %c13 = arith.constant 13 : index
    %c0_93 = arith.constant 0 : index
    %c0_94 = arith.constant 0 : index
    %124 = vector.load %arg3[%c13, %c0_93, %c0_94] : memref<25x128x128xbf16, #tpu.memory_space<vmem>>, vector<1x128x128xbf16>
    %125 = vector.shape_cast %124 : vector<1x128x128xbf16> to vector<128x128xbf16>
    %cst_95 = arith.constant dense<0.000000e+00> : vector<16x128xf32>
    %126 = tpu.matmul %123, %125, %cst_95 {dimension_numbers = #tpu.dot_dimension_numbers<[1], [0], [0], [1], [0, 0, 1, 1], [], []>} : vector<16x128xbf16>, vector<128x128xbf16>, vector<16x128xf32> -> vector<16x128xf32>
    %127 = arith.addf %118, %126 : vector<16x128xf32>
    %c1_i32_96 = arith.constant 1 : i32
    %128 = arith.addi %0, %c1_i32_96 : i32
    %c0_97 = arith.constant 0 : index
    %129 = arith.index_cast %128 : i32 to index
    %c2_98 = arith.constant 2 : index
    %c0_99 = arith.constant 0 : index
    %130 = vector.load %arg2[%c0_97, %129, %c2_98, %c0_99] : memref<4x6x6x128xbf16, #tpu.memory_space<vmem>>, vector<1x4x4x128xbf16>
    %131 = vector.shape_cast %130 : vector<1x4x4x128xbf16> to vector<4x4x128xbf16>
    %132 = vector.shape_cast %131 : vector<4x4x128xbf16> to vector<16x128xbf16>
    %c14 = arith.constant 14 : index
    %c0_100 = arith.constant 0 : index
    %c0_101 = arith.constant 0 : index
    %133 = vector.load %arg3[%c14, %c0_100, %c0_101] : memref<25x128x128xbf16, #tpu.memory_space<vmem>>, vector<1x128x128xbf16>
    %134 = vector.shape_cast %133 : vector<1x128x128xbf16> to vector<128x128xbf16>
    %cst_102 = arith.constant dense<0.000000e+00> : vector<16x128xf32>
    %135 = tpu.matmul %132, %134, %cst_102 {dimension_numbers = #tpu.dot_dimension_numbers<[1], [0], [0], [1], [0, 0, 1, 1], [], []>} : vector<16x128xbf16>, vector<128x128xbf16>, vector<16x128xf32> -> vector<16x128xf32>
    %136 = arith.addf %127, %135 : vector<16x128xf32>
    %c1_i32_103 = arith.constant 1 : i32
    %137 = arith.addi %0, %c1_i32_103 : i32
    %c2_104 = arith.constant 2 : index
    %138 = arith.index_cast %137 : i32 to index
    %c0_105 = arith.constant 0 : index
    %c0_106 = arith.constant 0 : index
    %139 = vector.load %arg2[%c2_104, %138, %c0_105, %c0_106] : memref<4x6x6x128xbf16, #tpu.memory_space<vmem>>, vector<1x4x4x128xbf16>
    %140 = vector.shape_cast %139 : vector<1x4x4x128xbf16> to vector<4x4x128xbf16>
    %141 = vector.shape_cast %140 : vector<4x4x128xbf16> to vector<16x128xbf16>
    %c15 = arith.constant 15 : index
    %c0_107 = arith.constant 0 : index
    %c0_108 = arith.constant 0 : index
    %142 = vector.load %arg3[%c15, %c0_107, %c0_108] : memref<25x128x128xbf16, #tpu.memory_space<vmem>>, vector<1x128x128xbf16>
    %143 = vector.shape_cast %142 : vector<1x128x128xbf16> to vector<128x128xbf16>
    %cst_109 = arith.constant dense<0.000000e+00> : vector<16x128xf32>
    %144 = tpu.matmul %141, %143, %cst_109 {dimension_numbers = #tpu.dot_dimension_numbers<[1], [0], [0], [1], [0, 0, 1, 1], [], []>} : vector<16x128xbf16>, vector<128x128xbf16>, vector<16x128xf32> -> vector<16x128xf32>
    %145 = arith.addf %136, %144 : vector<16x128xf32>
    %c1_i32_110 = arith.constant 1 : i32
    %146 = arith.addi %0, %c1_i32_110 : i32
    %c3_111 = arith.constant 3 : index
    %147 = arith.index_cast %146 : i32 to index
    %c0_112 = arith.constant 0 : index
    %c0_113 = arith.constant 0 : index
    %148 = vector.load %arg2[%c3_111, %147, %c0_112, %c0_113] : memref<4x6x6x128xbf16, #tpu.memory_space<vmem>>, vector<1x4x4x128xbf16>
    %149 = vector.shape_cast %148 : vector<1x4x4x128xbf16> to vector<4x4x128xbf16>
    %150 = vector.shape_cast %149 : vector<4x4x128xbf16> to vector<16x128xbf16>
    %c16 = arith.constant 16 : index
    %c0_114 = arith.constant 0 : index
    %c0_115 = arith.constant 0 : index
    %151 = vector.load %arg3[%c16, %c0_114, %c0_115] : memref<25x128x128xbf16, #tpu.memory_space<vmem>>, vector<1x128x128xbf16>
    %152 = vector.shape_cast %151 : vector<1x128x128xbf16> to vector<128x128xbf16>
    %cst_116 = arith.constant dense<0.000000e+00> : vector<16x128xf32>
    %153 = tpu.matmul %150, %152, %cst_116 {dimension_numbers = #tpu.dot_dimension_numbers<[1], [0], [0], [1], [0, 0, 1, 1], [], []>} : vector<16x128xbf16>, vector<128x128xbf16>, vector<16x128xf32> -> vector<16x128xf32>
    %154 = arith.addf %145, %153 : vector<16x128xf32>
    %c1_i32_117 = arith.constant 1 : i32
    %155 = arith.addi %0, %c1_i32_117 : i32
    %c2_118 = arith.constant 2 : index
    %156 = arith.index_cast %155 : i32 to index
    %c1_119 = arith.constant 1 : index
    %c0_120 = arith.constant 0 : index
    %157 = vector.load %arg2[%c2_118, %156, %c1_119, %c0_120] : memref<4x6x6x128xbf16, #tpu.memory_space<vmem>>, vector<1x4x4x128xbf16>
    %158 = vector.shape_cast %157 : vector<1x4x4x128xbf16> to vector<4x4x128xbf16>
    %159 = vector.shape_cast %158 : vector<4x4x128xbf16> to vector<16x128xbf16>
    %c17 = arith.constant 17 : index
    %c0_121 = arith.constant 0 : index
    %c0_122 = arith.constant 0 : index
    %160 = vector.load %arg3[%c17, %c0_121, %c0_122] : memref<25x128x128xbf16, #tpu.memory_space<vmem>>, vector<1x128x128xbf16>
    %161 = vector.shape_cast %160 : vector<1x128x128xbf16> to vector<128x128xbf16>
    %cst_123 = arith.constant dense<0.000000e+00> : vector<16x128xf32>
    %162 = tpu.matmul %159, %161, %cst_123 {dimension_numbers = #tpu.dot_dimension_numbers<[1], [0], [0], [1], [0, 0, 1, 1], [], []>} : vector<16x128xbf16>, vector<128x128xbf16>, vector<16x128xf32> -> vector<16x128xf32>
    %163 = arith.addf %154, %162 : vector<16x128xf32>
    %c1_i32_124 = arith.constant 1 : i32
    %164 = arith.addi %0, %c1_i32_124 : i32
    %c3_125 = arith.constant 3 : index
    %165 = arith.index_cast %164 : i32 to index
    %c1_126 = arith.constant 1 : index
    %c0_127 = arith.constant 0 : index
    %166 = vector.load %arg2[%c3_125, %165, %c1_126, %c0_127] : memref<4x6x6x128xbf16, #tpu.memory_space<vmem>>, vector<1x4x4x128xbf16>
    %167 = vector.shape_cast %166 : vector<1x4x4x128xbf16> to vector<4x4x128xbf16>
    %168 = vector.shape_cast %167 : vector<4x4x128xbf16> to vector<16x128xbf16>
    %c18 = arith.constant 18 : index
    %c0_128 = arith.constant 0 : index
    %c0_129 = arith.constant 0 : index
    %169 = vector.load %arg3[%c18, %c0_128, %c0_129] : memref<25x128x128xbf16, #tpu.memory_space<vmem>>, vector<1x128x128xbf16>
    %170 = vector.shape_cast %169 : vector<1x128x128xbf16> to vector<128x128xbf16>
    %cst_130 = arith.constant dense<0.000000e+00> : vector<16x128xf32>
    %171 = tpu.matmul %168, %170, %cst_130 {dimension_numbers = #tpu.dot_dimension_numbers<[1], [0], [0], [1], [0, 0, 1, 1], [], []>} : vector<16x128xbf16>, vector<128x128xbf16>, vector<16x128xf32> -> vector<16x128xf32>
    %172 = arith.addf %163, %171 : vector<16x128xf32>
    %c1_i32_131 = arith.constant 1 : i32
    %173 = arith.addi %0, %c1_i32_131 : i32
    %c2_132 = arith.constant 2 : index
    %174 = arith.index_cast %173 : i32 to index
    %c2_133 = arith.constant 2 : index
    %c0_134 = arith.constant 0 : index
    %175 = vector.load %arg2[%c2_132, %174, %c2_133, %c0_134] : memref<4x6x6x128xbf16, #tpu.memory_space<vmem>>, vector<1x4x4x128xbf16>
    %176 = vector.shape_cast %175 : vector<1x4x4x128xbf16> to vector<4x4x128xbf16>
    %177 = vector.shape_cast %176 : vector<4x4x128xbf16> to vector<16x128xbf16>
    %c19 = arith.constant 19 : index
    %c0_135 = arith.constant 0 : index
    %c0_136 = arith.constant 0 : index
    %178 = vector.load %arg3[%c19, %c0_135, %c0_136] : memref<25x128x128xbf16, #tpu.memory_space<vmem>>, vector<1x128x128xbf16>
    %179 = vector.shape_cast %178 : vector<1x128x128xbf16> to vector<128x128xbf16>
    %cst_137 = arith.constant dense<0.000000e+00> : vector<16x128xf32>
    %180 = tpu.matmul %177, %179, %cst_137 {dimension_numbers = #tpu.dot_dimension_numbers<[1], [0], [0], [1], [0, 0, 1, 1], [], []>} : vector<16x128xbf16>, vector<128x128xbf16>, vector<16x128xf32> -> vector<16x128xf32>
    %181 = arith.addf %172, %180 : vector<16x128xf32>
    %c2_i32 = arith.constant 2 : i32
    %182 = arith.addi %0, %c2_i32 : i32
    %c0_138 = arith.constant 0 : index
    %183 = arith.index_cast %182 : i32 to index
    %c0_139 = arith.constant 0 : index
    %c0_140 = arith.constant 0 : index
    %184 = vector.load %arg2[%c0_138, %183, %c0_139, %c0_140] : memref<4x6x6x128xbf16, #tpu.memory_space<vmem>>, vector<1x4x4x128xbf16>
    %185 = vector.shape_cast %184 : vector<1x4x4x128xbf16> to vector<4x4x128xbf16>
    %186 = vector.shape_cast %185 : vector<4x4x128xbf16> to vector<16x128xbf16>
    %c20 = arith.constant 20 : index
    %c0_141 = arith.constant 0 : index
    %c0_142 = arith.constant 0 : index
    %187 = vector.load %arg3[%c20, %c0_141, %c0_142] : memref<25x128x128xbf16, #tpu.memory_space<vmem>>, vector<1x128x128xbf16>
    %188 = vector.shape_cast %187 : vector<1x128x128xbf16> to vector<128x128xbf16>
    %cst_143 = arith.constant dense<0.000000e+00> : vector<16x128xf32>
    %189 = tpu.matmul %186, %188, %cst_143 {dimension_numbers = #tpu.dot_dimension_numbers<[1], [0], [0], [1], [0, 0, 1, 1], [], []>} : vector<16x128xbf16>, vector<128x128xbf16>, vector<16x128xf32> -> vector<16x128xf32>
    %190 = arith.addf %181, %189 : vector<16x128xf32>
    %c2_i32_144 = arith.constant 2 : i32
    %191 = arith.addi %0, %c2_i32_144 : i32
    %c1_145 = arith.constant 1 : index
    %192 = arith.index_cast %191 : i32 to index
    %c0_146 = arith.constant 0 : index
    %c0_147 = arith.constant 0 : index
    %193 = vector.load %arg2[%c1_145, %192, %c0_146, %c0_147] : memref<4x6x6x128xbf16, #tpu.memory_space<vmem>>, vector<1x4x4x128xbf16>
    %194 = vector.shape_cast %193 : vector<1x4x4x128xbf16> to vector<4x4x128xbf16>
    %195 = vector.shape_cast %194 : vector<4x4x128xbf16> to vector<16x128xbf16>
    %c21 = arith.constant 21 : index
    %c0_148 = arith.constant 0 : index
    %c0_149 = arith.constant 0 : index
    %196 = vector.load %arg3[%c21, %c0_148, %c0_149] : memref<25x128x128xbf16, #tpu.memory_space<vmem>>, vector<1x128x128xbf16>
    %197 = vector.shape_cast %196 : vector<1x128x128xbf16> to vector<128x128xbf16>
    %cst_150 = arith.constant dense<0.000000e+00> : vector<16x128xf32>
    %198 = tpu.matmul %195, %197, %cst_150 {dimension_numbers = #tpu.dot_dimension_numbers<[1], [0], [0], [1], [0, 0, 1, 1], [], []>} : vector<16x128xbf16>, vector<128x128xbf16>, vector<16x128xf32> -> vector<16x128xf32>
    %199 = arith.addf %190, %198 : vector<16x128xf32>
    %c2_i32_151 = arith.constant 2 : i32
    %200 = arith.addi %0, %c2_i32_151 : i32
    %c0_152 = arith.constant 0 : index
    %201 = arith.index_cast %200 : i32 to index
    %c1_153 = arith.constant 1 : index
    %c0_154 = arith.constant 0 : index
    %202 = vector.load %arg2[%c0_152, %201, %c1_153, %c0_154] : memref<4x6x6x128xbf16, #tpu.memory_space<vmem>>, vector<1x4x4x128xbf16>
    %203 = vector.shape_cast %202 : vector<1x4x4x128xbf16> to vector<4x4x128xbf16>
    %204 = vector.shape_cast %203 : vector<4x4x128xbf16> to vector<16x128xbf16>
    %c22 = arith.constant 22 : index
    %c0_155 = arith.constant 0 : index
    %c0_156 = arith.constant 0 : index
    %205 = vector.load %arg3[%c22, %c0_155, %c0_156] : memref<25x128x128xbf16, #tpu.memory_space<vmem>>, vector<1x128x128xbf16>
    %206 = vector.shape_cast %205 : vector<1x128x128xbf16> to vector<128x128xbf16>
    %cst_157 = arith.constant dense<0.000000e+00> : vector<16x128xf32>
    %207 = tpu.matmul %204, %206, %cst_157 {dimension_numbers = #tpu.dot_dimension_numbers<[1], [0], [0], [1], [0, 0, 1, 1], [], []>} : vector<16x128xbf16>, vector<128x128xbf16>, vector<16x128xf32> -> vector<16x128xf32>
    %208 = arith.addf %199, %207 : vector<16x128xf32>
    %c2_i32_158 = arith.constant 2 : i32
    %209 = arith.addi %0, %c2_i32_158 : i32
    %c1_159 = arith.constant 1 : index
    %210 = arith.index_cast %209 : i32 to index
    %c1_160 = arith.constant 1 : index
    %c0_161 = arith.constant 0 : index
    %211 = vector.load %arg2[%c1_159, %210, %c1_160, %c0_161] : memref<4x6x6x128xbf16, #tpu.memory_space<vmem>>, vector<1x4x4x128xbf16>
    %212 = vector.shape_cast %211 : vector<1x4x4x128xbf16> to vector<4x4x128xbf16>
    %213 = vector.shape_cast %212 : vector<4x4x128xbf16> to vector<16x128xbf16>
    %c23 = arith.constant 23 : index
    %c0_162 = arith.constant 0 : index
    %c0_163 = arith.constant 0 : index
    %214 = vector.load %arg3[%c23, %c0_162, %c0_163] : memref<25x128x128xbf16, #tpu.memory_space<vmem>>, vector<1x128x128xbf16>
    %215 = vector.shape_cast %214 : vector<1x128x128xbf16> to vector<128x128xbf16>
    %cst_164 = arith.constant dense<0.000000e+00> : vector<16x128xf32>
    %216 = tpu.matmul %213, %215, %cst_164 {dimension_numbers = #tpu.dot_dimension_numbers<[1], [0], [0], [1], [0, 0, 1, 1], [], []>} : vector<16x128xbf16>, vector<128x128xbf16>, vector<16x128xf32> -> vector<16x128xf32>
    %217 = arith.addf %208, %216 : vector<16x128xf32>
    %c2_i32_165 = arith.constant 2 : i32
    %218 = arith.addi %0, %c2_i32_165 : i32
    %c0_166 = arith.constant 0 : index
    %219 = arith.index_cast %218 : i32 to index
    %c2_167 = arith.constant 2 : index
    %c0_168 = arith.constant 0 : index
    %220 = vector.load %arg2[%c0_166, %219, %c2_167, %c0_168] : memref<4x6x6x128xbf16, #tpu.memory_space<vmem>>, vector<1x4x4x128xbf16>
    %221 = vector.shape_cast %220 : vector<1x4x4x128xbf16> to vector<4x4x128xbf16>
    %222 = vector.shape_cast %221 : vector<4x4x128xbf16> to vector<16x128xbf16>
    %c24 = arith.constant 24 : index
    %c0_169 = arith.constant 0 : index
    %c0_170 = arith.constant 0 : index
    %223 = vector.load %arg3[%c24, %c0_169, %c0_170] : memref<25x128x128xbf16, #tpu.memory_space<vmem>>, vector<1x128x128xbf16>
    %224 = vector.shape_cast %223 : vector<1x128x128xbf16> to vector<128x128xbf16>
    %cst_171 = arith.constant dense<0.000000e+00> : vector<16x128xf32>
    %225 = tpu.matmul %222, %224, %cst_171 {dimension_numbers = #tpu.dot_dimension_numbers<[1], [0], [0], [1], [0, 0, 1, 1], [], []>} : vector<16x128xbf16>, vector<128x128xbf16>, vector<16x128xf32> -> vector<16x128xf32>
    %226 = arith.addf %217, %225 : vector<16x128xf32>
    %227 = vector.shape_cast %226 : vector<16x128xf32> to vector<1x16x128xf32>
    %c0_172 = arith.constant 0 : index
    %c0_173 = arith.constant 0 : index
    %c0_174 = arith.constant 0 : index
    %228 = vector.load %arg4[%c0_172, %c0_173, %c0_174] : memref<1x16x128xf32, #tpu.memory_space<vmem>>, vector<1x16x128xf32>
    tpu.vector_store %arg4[%c0_172, %c0_173, %c0_174], %227 {strides = array<i32>} : memref<1x16x128xf32, #tpu.memory_space<vmem>>, vector<1x16x128xf32>,
    %cst_175 = arith.constant dense<0.000000e+00> : vector<128xf32>
    %229 = vector.multi_reduction <add>, %226, %cst_175 [0] : vector<16x128xf32> to vector<128xf32>
    %230 = vector.shape_cast %229 : vector<128xf32> to vector<1x128xf32>
    %231 = arith.mulf %226, %226 : vector<16x128xf32>
    %cst_176 = arith.constant dense<0.000000e+00> : vector<128xf32>
    %232 = vector.multi_reduction <add>, %231, %cst_176 [0] : vector<16x128xf32> to vector<128xf32>
    %233 = vector.shape_cast %232 : vector<128xf32> to vector<1x128xf32>
    %234 = tpu.concatenate %230, %233 in 0 : vector<1x128xf32>, vector<1x128xf32> -> vector<2x128xf32>
    %235 = vector.shape_cast %234 : vector<2x128xf32> to vector<1x2x128xf32>
    %c0_177 = arith.constant 0 : index
    %c0_178 = arith.constant 0 : index
    %c0_179 = arith.constant 0 : index
    %236 = vector.load %arg5[%c0_177, %c0_178, %c0_179] : memref<1x2x128xf32, #tpu.memory_space<vmem>>, vector<1x2x128xf32>
    tpu.vector_store %arg5[%c0_177, %c0_178, %c0_179], %235 {strides = array<i32>} : memref<1x2x128xf32, #tpu.memory_space<vmem>>, vector<1x2x128xf32>,
    return
  }
  func.func @transform_0(%arg0: i32, %arg1: i32) -> (i32, i32, i32, i32) {
    %c0_i32 = arith.constant 0 : i32
    %c0_i32_0 = arith.constant 0 : i32
    %c0_i32_1 = arith.constant 0 : i32
    %c0_i32_2 = arith.constant 0 : i32
    return %arg0, %c0_i32, %c0_i32_0, %c0_i32_1 : i32, i32, i32, i32
  }
  func.func @transform_1(%arg0: i32, %arg1: i32) -> (i32, i32, i32) {
    %c0_i32 = arith.constant 0 : i32
    %c0_i32_0 = arith.constant 0 : i32
    %c0_i32_1 = arith.constant 0 : i32
    %c0_i32_2 = arith.constant 0 : i32
    return %c0_i32, %c0_i32_0, %c0_i32_1 : i32, i32, i32
  }
  func.func @transform_2(%arg0: i32, %arg1: i32) -> (i32, i32, i32) {
    %c0_i32 = arith.constant 0 : i32
    %c0_i32_0 = arith.constant 0 : i32
    return %arg0, %arg1, %c0_i32 : i32, i32, i32
  }
  func.func @transform_3(%arg0: i32, %arg1: i32) -> (i32, i32, i32) {
    %c1_i32 = arith.constant 1 : i32
    %0 = arith.muli %arg0, %c1_i32 : i32
    %1 = arith.addi %0, %arg1 : i32
    %c0_i32 = arith.constant 0 : i32
    %c0_i32_0 = arith.constant 0 : i32
    %c0_i32_1 = arith.constant 0 : i32
    return %1, %c0_i32, %c0_i32_0 : i32, i32, i32
  }
}

module attributes {stable_mosaic.version = 11 : i64} {
  func.func @_bn_relu_kernel(%arg0: i32, %arg1: i32, %arg2: memref<1x4x128xf32, #tpu.memory_space<vmem>>, %arg3: memref<2x128xf32, #tpu.memory_space<vmem>>, %arg4: memref<1x4x128xbf16, #tpu.memory_space<vmem>>) attributes {dimension_semantics = [#tpu.dimension_semantics<parallel>, #tpu.dimension_semantics<parallel>], iteration_bounds = array<i64: 2, 1>, scalar_prefetch = 0 : i64, scratch_operands = 0 : i64, tpu.core_type = #tpu.core_type<tc>, window_params = [{transform_indices = @transform_0, window_bounds = array<i64: 1, 4, 128>}, {pipeline_mode = #tpu.pipeline_mode<synchronous>, transform_indices = @transform_1, window_bounds = array<i64: 2, 128>}, {transform_indices = @transform_2, window_bounds = array<i64: 1, 4, 128>}]} {
    %c0 = arith.constant 0 : index
    %c0_0 = arith.constant 0 : index
    %0 = vector.load %arg3[%c0, %c0_0] : memref<2x128xf32, #tpu.memory_space<vmem>>, vector<1x128xf32>
    %1 = vector.shape_cast %0 : vector<1x128xf32> to vector<1x1x128xf32>
    %c1 = arith.constant 1 : index
    %c0_1 = arith.constant 0 : index
    %2 = vector.load %arg3[%c1, %c0_1] : memref<2x128xf32, #tpu.memory_space<vmem>>, vector<1x128xf32>
    %3 = vector.shape_cast %2 : vector<1x128xf32> to vector<1x1x128xf32>
    %c0_2 = arith.constant 0 : index
    %c0_3 = arith.constant 0 : index
    %c0_4 = arith.constant 0 : index
    %4 = vector.load %arg2[%c0_2, %c0_3, %c0_4] : memref<1x4x128xf32, #tpu.memory_space<vmem>>, vector<1x4x128xf32>
    %5 = vector.broadcast %1 : vector<1x1x128xf32> to vector<1x4x128xf32>
    %6 = arith.mulf %4, %5 : vector<1x4x128xf32>
    %7 = vector.broadcast %3 : vector<1x1x128xf32> to vector<1x4x128xf32>
    %8 = arith.addf %6, %7 : vector<1x4x128xf32>
    %cst = arith.constant 0.000000e+00 : f32
    %9 = vector.broadcast %cst : f32 to vector<1x4x128xf32>
    %10 = arith.maximumf %8, %9 : vector<1x4x128xf32>
    %11 = arith.truncf %10 : vector<1x4x128xf32> to vector<1x4x128xbf16>
    %c0_5 = arith.constant 0 : index
    %c0_6 = arith.constant 0 : index
    %c0_7 = arith.constant 0 : index
    %12 = vector.load %arg4[%c0_5, %c0_6, %c0_7] : memref<1x4x128xbf16, #tpu.memory_space<vmem>>, vector<1x4x128xbf16>
    tpu.vector_store %arg4[%c0_5, %c0_6, %c0_7], %11 {strides = array<i32>} : memref<1x4x128xbf16, #tpu.memory_space<vmem>>, vector<1x4x128xbf16>,
    return
  }
  func.func @transform_0(%arg0: i32, %arg1: i32) -> (i32, i32, i32) {
    %c0_i32 = arith.constant 0 : i32
    %c0_i32_0 = arith.constant 0 : i32
    return %arg0, %arg1, %c0_i32 : i32, i32, i32
  }
  func.func @transform_1(%arg0: i32, %arg1: i32) -> (i32, i32) {
    %c0_i32 = arith.constant 0 : i32
    %c0_i32_0 = arith.constant 0 : i32
    %c0_i32_1 = arith.constant 0 : i32
    return %c0_i32, %c0_i32_0 : i32, i32
  }
  func.func @transform_2(%arg0: i32, %arg1: i32) -> (i32, i32, i32) {
    %c0_i32 = arith.constant 0 : i32
    %c0_i32_0 = arith.constant 0 : i32
    return %arg0, %arg1, %c0_i32 : i32, i32, i32
  }
}

module attributes {stable_mosaic.version = 11 : i64} {
  func.func @_conv_gemm_stats_kernel(%arg0: i32, %arg1: i32, %arg2: memref<4x4x4x128xbf16, #tpu.memory_space<vmem>>, %arg3: memref<25x128x128xbf16, #tpu.memory_space<vmem>>, %arg4: memref<1x4x128xf32, #tpu.memory_space<vmem>>, %arg5: memref<1x2x128xf32, #tpu.memory_space<vmem>>) attributes {dimension_semantics = [#tpu.dimension_semantics<parallel>, #tpu.dimension_semantics<parallel>], iteration_bounds = array<i64: 2, 1>, scalar_prefetch = 0 : i64, scratch_operands = 0 : i64, tpu.core_type = #tpu.core_type<tc>, window_params = [{transform_indices = @transform_0, window_bounds = array<i64: 4, 4, 4, 128>}, {pipeline_mode = #tpu.pipeline_mode<synchronous>, transform_indices = @transform_1, window_bounds = array<i64: 25, 128, 128>}, {transform_indices = @transform_2, window_bounds = array<i64: 1, 4, 128>}, {transform_indices = @transform_3, window_bounds = array<i64: 1, 2, 128>}]} {
    %c2_i32 = arith.constant 2 : i32
    %0 = arith.muli %arg1, %c2_i32 : i32
    %cst = arith.constant 0.000000e+00 : f32
    %1 = vector.broadcast %cst : f32 to vector<4x128xf32>
    %c0_i32 = arith.constant 0 : i32
    %2 = arith.addi %0, %c0_i32 : i32
    %c0 = arith.constant 0 : index
    %3 = arith.index_cast %2 : i32 to index
    %c0_0 = arith.constant 0 : index
    %c0_1 = arith.constant 0 : index
    %4 = vector.load %arg2[%c0, %3, %c0_0, %c0_1] : memref<4x4x4x128xbf16, #tpu.memory_space<vmem>>, vector<1x2x2x128xbf16>
    %5 = vector.shape_cast %4 : vector<1x2x2x128xbf16> to vector<2x2x128xbf16>
    %6 = vector.shape_cast %5 : vector<2x2x128xbf16> to vector<4x128xbf16>
    %c0_2 = arith.constant 0 : index
    %c0_3 = arith.constant 0 : index
    %c0_4 = arith.constant 0 : index
    %7 = vector.load %arg3[%c0_2, %c0_3, %c0_4] : memref<25x128x128xbf16, #tpu.memory_space<vmem>>, vector<1x128x128xbf16>
    %8 = vector.shape_cast %7 : vector<1x128x128xbf16> to vector<128x128xbf16>
    %cst_5 = arith.constant dense<0.000000e+00> : vector<4x128xf32>
    %9 = tpu.matmul %6, %8, %cst_5 {dimension_numbers = #tpu.dot_dimension_numbers<[1], [0], [0], [1], [0, 0, 1, 1], [], []>} : vector<4x128xbf16>, vector<128x128xbf16>, vector<4x128xf32> -> vector<4x128xf32>
    %10 = arith.addf %1, %9 : vector<4x128xf32>
    %c0_i32_6 = arith.constant 0 : i32
    %11 = arith.addi %0, %c0_i32_6 : i32
    %c1 = arith.constant 1 : index
    %12 = arith.index_cast %11 : i32 to index
    %c0_7 = arith.constant 0 : index
    %c0_8 = arith.constant 0 : index
    %13 = vector.load %arg2[%c1, %12, %c0_7, %c0_8] : memref<4x4x4x128xbf16, #tpu.memory_space<vmem>>, vector<1x2x2x128xbf16>
    %14 = vector.shape_cast %13 : vector<1x2x2x128xbf16> to vector<2x2x128xbf16>
    %15 = vector.shape_cast %14 : vector<2x2x128xbf16> to vector<4x128xbf16>
    %c1_9 = arith.constant 1 : index
    %c0_10 = arith.constant 0 : index
    %c0_11 = arith.constant 0 : index
    %16 = vector.load %arg3[%c1_9, %c0_10, %c0_11] : memref<25x128x128xbf16, #tpu.memory_space<vmem>>, vector<1x128x128xbf16>
    %17 = vector.shape_cast %16 : vector<1x128x128xbf16> to vector<128x128xbf16>
    %cst_12 = arith.constant dense<0.000000e+00> : vector<4x128xf32>
    %18 = tpu.matmul %15, %17, %cst_12 {dimension_numbers = #tpu.dot_dimension_numbers<[1], [0], [0], [1], [0, 0, 1, 1], [], []>} : vector<4x128xbf16>, vector<128x128xbf16>, vector<4x128xf32> -> vector<4x128xf32>
    %19 = arith.addf %10, %18 : vector<4x128xf32>
    %c0_i32_13 = arith.constant 0 : i32
    %20 = arith.addi %0, %c0_i32_13 : i32
    %c0_14 = arith.constant 0 : index
    %21 = arith.index_cast %20 : i32 to index
    %c1_15 = arith.constant 1 : index
    %c0_16 = arith.constant 0 : index
    %22 = vector.load %arg2[%c0_14, %21, %c1_15, %c0_16] : memref<4x4x4x128xbf16, #tpu.memory_space<vmem>>, vector<1x2x2x128xbf16>
    %23 = vector.shape_cast %22 : vector<1x2x2x128xbf16> to vector<2x2x128xbf16>
    %24 = vector.shape_cast %23 : vector<2x2x128xbf16> to vector<4x128xbf16>
    %c2 = arith.constant 2 : index
    %c0_17 = arith.constant 0 : index
    %c0_18 = arith.constant 0 : index
    %25 = vector.load %arg3[%c2, %c0_17, %c0_18] : memref<25x128x128xbf16, #tpu.memory_space<vmem>>, vector<1x128x128xbf16>
    %26 = vector.shape_cast %25 : vector<1x128x128xbf16> to vector<128x128xbf16>
    %cst_19 = arith.constant dense<0.000000e+00> : vector<4x128xf32>
    %27 = tpu.matmul %24, %26, %cst_19 {dimension_numbers = #tpu.dot_dimension_numbers<[1], [0], [0], [1], [0, 0, 1, 1], [], []>} : vector<4x128xbf16>, vector<128x128xbf16>, vector<4x128xf32> -> vector<4x128xf32>
    %28 = arith.addf %19, %27 : vector<4x128xf32>
    %c0_i32_20 = arith.constant 0 : i32
    %29 = arith.addi %0, %c0_i32_20 : i32
    %c1_21 = arith.constant 1 : index
    %30 = arith.index_cast %29 : i32 to index
    %c1_22 = arith.constant 1 : index
    %c0_23 = arith.constant 0 : index
    %31 = vector.load %arg2[%c1_21, %30, %c1_22, %c0_23] : memref<4x4x4x128xbf16, #tpu.memory_space<vmem>>, vector<1x2x2x128xbf16>
    %32 = vector.shape_cast %31 : vector<1x2x2x128xbf16> to vector<2x2x128xbf16>
    %33 = vector.shape_cast %32 : vector<2x2x128xbf16> to vector<4x128xbf16>
    %c3 = arith.constant 3 : index
    %c0_24 = arith.constant 0 : index
    %c0_25 = arith.constant 0 : index
    %34 = vector.load %arg3[%c3, %c0_24, %c0_25] : memref<25x128x128xbf16, #tpu.memory_space<vmem>>, vector<1x128x128xbf16>
    %35 = vector.shape_cast %34 : vector<1x128x128xbf16> to vector<128x128xbf16>
    %cst_26 = arith.constant dense<0.000000e+00> : vector<4x128xf32>
    %36 = tpu.matmul %33, %35, %cst_26 {dimension_numbers = #tpu.dot_dimension_numbers<[1], [0], [0], [1], [0, 0, 1, 1], [], []>} : vector<4x128xbf16>, vector<128x128xbf16>, vector<4x128xf32> -> vector<4x128xf32>
    %37 = arith.addf %28, %36 : vector<4x128xf32>
    %c0_i32_27 = arith.constant 0 : i32
    %38 = arith.addi %0, %c0_i32_27 : i32
    %c0_28 = arith.constant 0 : index
    %39 = arith.index_cast %38 : i32 to index
    %c2_29 = arith.constant 2 : index
    %c0_30 = arith.constant 0 : index
    %40 = vector.load %arg2[%c0_28, %39, %c2_29, %c0_30] : memref<4x4x4x128xbf16, #tpu.memory_space<vmem>>, vector<1x2x2x128xbf16>
    %41 = vector.shape_cast %40 : vector<1x2x2x128xbf16> to vector<2x2x128xbf16>
    %42 = vector.shape_cast %41 : vector<2x2x128xbf16> to vector<4x128xbf16>
    %c4 = arith.constant 4 : index
    %c0_31 = arith.constant 0 : index
    %c0_32 = arith.constant 0 : index
    %43 = vector.load %arg3[%c4, %c0_31, %c0_32] : memref<25x128x128xbf16, #tpu.memory_space<vmem>>, vector<1x128x128xbf16>
    %44 = vector.shape_cast %43 : vector<1x128x128xbf16> to vector<128x128xbf16>
    %cst_33 = arith.constant dense<0.000000e+00> : vector<4x128xf32>
    %45 = tpu.matmul %42, %44, %cst_33 {dimension_numbers = #tpu.dot_dimension_numbers<[1], [0], [0], [1], [0, 0, 1, 1], [], []>} : vector<4x128xbf16>, vector<128x128xbf16>, vector<4x128xf32> -> vector<4x128xf32>
    %46 = arith.addf %37, %45 : vector<4x128xf32>
    %c0_i32_34 = arith.constant 0 : i32
    %47 = arith.addi %0, %c0_i32_34 : i32
    %c2_35 = arith.constant 2 : index
    %48 = arith.index_cast %47 : i32 to index
    %c0_36 = arith.constant 0 : index
    %c0_37 = arith.constant 0 : index
    %49 = vector.load %arg2[%c2_35, %48, %c0_36, %c0_37] : memref<4x4x4x128xbf16, #tpu.memory_space<vmem>>, vector<1x2x2x128xbf16>
    %50 = vector.shape_cast %49 : vector<1x2x2x128xbf16> to vector<2x2x128xbf16>
    %51 = vector.shape_cast %50 : vector<2x2x128xbf16> to vector<4x128xbf16>
    %c5 = arith.constant 5 : index
    %c0_38 = arith.constant 0 : index
    %c0_39 = arith.constant 0 : index
    %52 = vector.load %arg3[%c5, %c0_38, %c0_39] : memref<25x128x128xbf16, #tpu.memory_space<vmem>>, vector<1x128x128xbf16>
    %53 = vector.shape_cast %52 : vector<1x128x128xbf16> to vector<128x128xbf16>
    %cst_40 = arith.constant dense<0.000000e+00> : vector<4x128xf32>
    %54 = tpu.matmul %51, %53, %cst_40 {dimension_numbers = #tpu.dot_dimension_numbers<[1], [0], [0], [1], [0, 0, 1, 1], [], []>} : vector<4x128xbf16>, vector<128x128xbf16>, vector<4x128xf32> -> vector<4x128xf32>
    %55 = arith.addf %46, %54 : vector<4x128xf32>
    %c0_i32_41 = arith.constant 0 : i32
    %56 = arith.addi %0, %c0_i32_41 : i32
    %c3_42 = arith.constant 3 : index
    %57 = arith.index_cast %56 : i32 to index
    %c0_43 = arith.constant 0 : index
    %c0_44 = arith.constant 0 : index
    %58 = vector.load %arg2[%c3_42, %57, %c0_43, %c0_44] : memref<4x4x4x128xbf16, #tpu.memory_space<vmem>>, vector<1x2x2x128xbf16>
    %59 = vector.shape_cast %58 : vector<1x2x2x128xbf16> to vector<2x2x128xbf16>
    %60 = vector.shape_cast %59 : vector<2x2x128xbf16> to vector<4x128xbf16>
    %c6 = arith.constant 6 : index
    %c0_45 = arith.constant 0 : index
    %c0_46 = arith.constant 0 : index
    %61 = vector.load %arg3[%c6, %c0_45, %c0_46] : memref<25x128x128xbf16, #tpu.memory_space<vmem>>, vector<1x128x128xbf16>
    %62 = vector.shape_cast %61 : vector<1x128x128xbf16> to vector<128x128xbf16>
    %cst_47 = arith.constant dense<0.000000e+00> : vector<4x128xf32>
    %63 = tpu.matmul %60, %62, %cst_47 {dimension_numbers = #tpu.dot_dimension_numbers<[1], [0], [0], [1], [0, 0, 1, 1], [], []>} : vector<4x128xbf16>, vector<128x128xbf16>, vector<4x128xf32> -> vector<4x128xf32>
    %64 = arith.addf %55, %63 : vector<4x128xf32>
    %c0_i32_48 = arith.constant 0 : i32
    %65 = arith.addi %0, %c0_i32_48 : i32
    %c2_49 = arith.constant 2 : index
    %66 = arith.index_cast %65 : i32 to index
    %c1_50 = arith.constant 1 : index
    %c0_51 = arith.constant 0 : index
    %67 = vector.load %arg2[%c2_49, %66, %c1_50, %c0_51] : memref<4x4x4x128xbf16, #tpu.memory_space<vmem>>, vector<1x2x2x128xbf16>
    %68 = vector.shape_cast %67 : vector<1x2x2x128xbf16> to vector<2x2x128xbf16>
    %69 = vector.shape_cast %68 : vector<2x2x128xbf16> to vector<4x128xbf16>
    %c7 = arith.constant 7 : index
    %c0_52 = arith.constant 0 : index
    %c0_53 = arith.constant 0 : index
    %70 = vector.load %arg3[%c7, %c0_52, %c0_53] : memref<25x128x128xbf16, #tpu.memory_space<vmem>>, vector<1x128x128xbf16>
    %71 = vector.shape_cast %70 : vector<1x128x128xbf16> to vector<128x128xbf16>
    %cst_54 = arith.constant dense<0.000000e+00> : vector<4x128xf32>
    %72 = tpu.matmul %69, %71, %cst_54 {dimension_numbers = #tpu.dot_dimension_numbers<[1], [0], [0], [1], [0, 0, 1, 1], [], []>} : vector<4x128xbf16>, vector<128x128xbf16>, vector<4x128xf32> -> vector<4x128xf32>
    %73 = arith.addf %64, %72 : vector<4x128xf32>
    %c0_i32_55 = arith.constant 0 : i32
    %74 = arith.addi %0, %c0_i32_55 : i32
    %c3_56 = arith.constant 3 : index
    %75 = arith.index_cast %74 : i32 to index
    %c1_57 = arith.constant 1 : index
    %c0_58 = arith.constant 0 : index
    %76 = vector.load %arg2[%c3_56, %75, %c1_57, %c0_58] : memref<4x4x4x128xbf16, #tpu.memory_space<vmem>>, vector<1x2x2x128xbf16>
    %77 = vector.shape_cast %76 : vector<1x2x2x128xbf16> to vector<2x2x128xbf16>
    %78 = vector.shape_cast %77 : vector<2x2x128xbf16> to vector<4x128xbf16>
    %c8 = arith.constant 8 : index
    %c0_59 = arith.constant 0 : index
    %c0_60 = arith.constant 0 : index
    %79 = vector.load %arg3[%c8, %c0_59, %c0_60] : memref<25x128x128xbf16, #tpu.memory_space<vmem>>, vector<1x128x128xbf16>
    %80 = vector.shape_cast %79 : vector<1x128x128xbf16> to vector<128x128xbf16>
    %cst_61 = arith.constant dense<0.000000e+00> : vector<4x128xf32>
    %81 = tpu.matmul %78, %80, %cst_61 {dimension_numbers = #tpu.dot_dimension_numbers<[1], [0], [0], [1], [0, 0, 1, 1], [], []>} : vector<4x128xbf16>, vector<128x128xbf16>, vector<4x128xf32> -> vector<4x128xf32>
    %82 = arith.addf %73, %81 : vector<4x128xf32>
    %c0_i32_62 = arith.constant 0 : i32
    %83 = arith.addi %0, %c0_i32_62 : i32
    %c2_63 = arith.constant 2 : index
    %84 = arith.index_cast %83 : i32 to index
    %c2_64 = arith.constant 2 : index
    %c0_65 = arith.constant 0 : index
    %85 = vector.load %arg2[%c2_63, %84, %c2_64, %c0_65] : memref<4x4x4x128xbf16, #tpu.memory_space<vmem>>, vector<1x2x2x128xbf16>
    %86 = vector.shape_cast %85 : vector<1x2x2x128xbf16> to vector<2x2x128xbf16>
    %87 = vector.shape_cast %86 : vector<2x2x128xbf16> to vector<4x128xbf16>
    %c9 = arith.constant 9 : index
    %c0_66 = arith.constant 0 : index
    %c0_67 = arith.constant 0 : index
    %88 = vector.load %arg3[%c9, %c0_66, %c0_67] : memref<25x128x128xbf16, #tpu.memory_space<vmem>>, vector<1x128x128xbf16>
    %89 = vector.shape_cast %88 : vector<1x128x128xbf16> to vector<128x128xbf16>
    %cst_68 = arith.constant dense<0.000000e+00> : vector<4x128xf32>
    %90 = tpu.matmul %87, %89, %cst_68 {dimension_numbers = #tpu.dot_dimension_numbers<[1], [0], [0], [1], [0, 0, 1, 1], [], []>} : vector<4x128xbf16>, vector<128x128xbf16>, vector<4x128xf32> -> vector<4x128xf32>
    %91 = arith.addf %82, %90 : vector<4x128xf32>
    %c1_i32 = arith.constant 1 : i32
    %92 = arith.addi %0, %c1_i32 : i32
    %c0_69 = arith.constant 0 : index
    %93 = arith.index_cast %92 : i32 to index
    %c0_70 = arith.constant 0 : index
    %c0_71 = arith.constant 0 : index
    %94 = vector.load %arg2[%c0_69, %93, %c0_70, %c0_71] : memref<4x4x4x128xbf16, #tpu.memory_space<vmem>>, vector<1x2x2x128xbf16>
    %95 = vector.shape_cast %94 : vector<1x2x2x128xbf16> to vector<2x2x128xbf16>
    %96 = vector.shape_cast %95 : vector<2x2x128xbf16> to vector<4x128xbf16>
    %c10 = arith.constant 10 : index
    %c0_72 = arith.constant 0 : index
    %c0_73 = arith.constant 0 : index
    %97 = vector.load %arg3[%c10, %c0_72, %c0_73] : memref<25x128x128xbf16, #tpu.memory_space<vmem>>, vector<1x128x128xbf16>
    %98 = vector.shape_cast %97 : vector<1x128x128xbf16> to vector<128x128xbf16>
    %cst_74 = arith.constant dense<0.000000e+00> : vector<4x128xf32>
    %99 = tpu.matmul %96, %98, %cst_74 {dimension_numbers = #tpu.dot_dimension_numbers<[1], [0], [0], [1], [0, 0, 1, 1], [], []>} : vector<4x128xbf16>, vector<128x128xbf16>, vector<4x128xf32> -> vector<4x128xf32>
    %100 = arith.addf %91, %99 : vector<4x128xf32>
    %c1_i32_75 = arith.constant 1 : i32
    %101 = arith.addi %0, %c1_i32_75 : i32
    %c1_76 = arith.constant 1 : index
    %102 = arith.index_cast %101 : i32 to index
    %c0_77 = arith.constant 0 : index
    %c0_78 = arith.constant 0 : index
    %103 = vector.load %arg2[%c1_76, %102, %c0_77, %c0_78] : memref<4x4x4x128xbf16, #tpu.memory_space<vmem>>, vector<1x2x2x128xbf16>
    %104 = vector.shape_cast %103 : vector<1x2x2x128xbf16> to vector<2x2x128xbf16>
    %105 = vector.shape_cast %104 : vector<2x2x128xbf16> to vector<4x128xbf16>
    %c11 = arith.constant 11 : index
    %c0_79 = arith.constant 0 : index
    %c0_80 = arith.constant 0 : index
    %106 = vector.load %arg3[%c11, %c0_79, %c0_80] : memref<25x128x128xbf16, #tpu.memory_space<vmem>>, vector<1x128x128xbf16>
    %107 = vector.shape_cast %106 : vector<1x128x128xbf16> to vector<128x128xbf16>
    %cst_81 = arith.constant dense<0.000000e+00> : vector<4x128xf32>
    %108 = tpu.matmul %105, %107, %cst_81 {dimension_numbers = #tpu.dot_dimension_numbers<[1], [0], [0], [1], [0, 0, 1, 1], [], []>} : vector<4x128xbf16>, vector<128x128xbf16>, vector<4x128xf32> -> vector<4x128xf32>
    %109 = arith.addf %100, %108 : vector<4x128xf32>
    %c1_i32_82 = arith.constant 1 : i32
    %110 = arith.addi %0, %c1_i32_82 : i32
    %c0_83 = arith.constant 0 : index
    %111 = arith.index_cast %110 : i32 to index
    %c1_84 = arith.constant 1 : index
    %c0_85 = arith.constant 0 : index
    %112 = vector.load %arg2[%c0_83, %111, %c1_84, %c0_85] : memref<4x4x4x128xbf16, #tpu.memory_space<vmem>>, vector<1x2x2x128xbf16>
    %113 = vector.shape_cast %112 : vector<1x2x2x128xbf16> to vector<2x2x128xbf16>
    %114 = vector.shape_cast %113 : vector<2x2x128xbf16> to vector<4x128xbf16>
    %c12 = arith.constant 12 : index
    %c0_86 = arith.constant 0 : index
    %c0_87 = arith.constant 0 : index
    %115 = vector.load %arg3[%c12, %c0_86, %c0_87] : memref<25x128x128xbf16, #tpu.memory_space<vmem>>, vector<1x128x128xbf16>
    %116 = vector.shape_cast %115 : vector<1x128x128xbf16> to vector<128x128xbf16>
    %cst_88 = arith.constant dense<0.000000e+00> : vector<4x128xf32>
    %117 = tpu.matmul %114, %116, %cst_88 {dimension_numbers = #tpu.dot_dimension_numbers<[1], [0], [0], [1], [0, 0, 1, 1], [], []>} : vector<4x128xbf16>, vector<128x128xbf16>, vector<4x128xf32> -> vector<4x128xf32>
    %118 = arith.addf %109, %117 : vector<4x128xf32>
    %c1_i32_89 = arith.constant 1 : i32
    %119 = arith.addi %0, %c1_i32_89 : i32
    %c1_90 = arith.constant 1 : index
    %120 = arith.index_cast %119 : i32 to index
    %c1_91 = arith.constant 1 : index
    %c0_92 = arith.constant 0 : index
    %121 = vector.load %arg2[%c1_90, %120, %c1_91, %c0_92] : memref<4x4x4x128xbf16, #tpu.memory_space<vmem>>, vector<1x2x2x128xbf16>
    %122 = vector.shape_cast %121 : vector<1x2x2x128xbf16> to vector<2x2x128xbf16>
    %123 = vector.shape_cast %122 : vector<2x2x128xbf16> to vector<4x128xbf16>
    %c13 = arith.constant 13 : index
    %c0_93 = arith.constant 0 : index
    %c0_94 = arith.constant 0 : index
    %124 = vector.load %arg3[%c13, %c0_93, %c0_94] : memref<25x128x128xbf16, #tpu.memory_space<vmem>>, vector<1x128x128xbf16>
    %125 = vector.shape_cast %124 : vector<1x128x128xbf16> to vector<128x128xbf16>
    %cst_95 = arith.constant dense<0.000000e+00> : vector<4x128xf32>
    %126 = tpu.matmul %123, %125, %cst_95 {dimension_numbers = #tpu.dot_dimension_numbers<[1], [0], [0], [1], [0, 0, 1, 1], [], []>} : vector<4x128xbf16>, vector<128x128xbf16>, vector<4x128xf32> -> vector<4x128xf32>
    %127 = arith.addf %118, %126 : vector<4x128xf32>
    %c1_i32_96 = arith.constant 1 : i32
    %128 = arith.addi %0, %c1_i32_96 : i32
    %c0_97 = arith.constant 0 : index
    %129 = arith.index_cast %128 : i32 to index
    %c2_98 = arith.constant 2 : index
    %c0_99 = arith.constant 0 : index
    %130 = vector.load %arg2[%c0_97, %129, %c2_98, %c0_99] : memref<4x4x4x128xbf16, #tpu.memory_space<vmem>>, vector<1x2x2x128xbf16>
    %131 = vector.shape_cast %130 : vector<1x2x2x128xbf16> to vector<2x2x128xbf16>
    %132 = vector.shape_cast %131 : vector<2x2x128xbf16> to vector<4x128xbf16>
    %c14 = arith.constant 14 : index
    %c0_100 = arith.constant 0 : index
    %c0_101 = arith.constant 0 : index
    %133 = vector.load %arg3[%c14, %c0_100, %c0_101] : memref<25x128x128xbf16, #tpu.memory_space<vmem>>, vector<1x128x128xbf16>
    %134 = vector.shape_cast %133 : vector<1x128x128xbf16> to vector<128x128xbf16>
    %cst_102 = arith.constant dense<0.000000e+00> : vector<4x128xf32>
    %135 = tpu.matmul %132, %134, %cst_102 {dimension_numbers = #tpu.dot_dimension_numbers<[1], [0], [0], [1], [0, 0, 1, 1], [], []>} : vector<4x128xbf16>, vector<128x128xbf16>, vector<4x128xf32> -> vector<4x128xf32>
    %136 = arith.addf %127, %135 : vector<4x128xf32>
    %c1_i32_103 = arith.constant 1 : i32
    %137 = arith.addi %0, %c1_i32_103 : i32
    %c2_104 = arith.constant 2 : index
    %138 = arith.index_cast %137 : i32 to index
    %c0_105 = arith.constant 0 : index
    %c0_106 = arith.constant 0 : index
    %139 = vector.load %arg2[%c2_104, %138, %c0_105, %c0_106] : memref<4x4x4x128xbf16, #tpu.memory_space<vmem>>, vector<1x2x2x128xbf16>
    %140 = vector.shape_cast %139 : vector<1x2x2x128xbf16> to vector<2x2x128xbf16>
    %141 = vector.shape_cast %140 : vector<2x2x128xbf16> to vector<4x128xbf16>
    %c15 = arith.constant 15 : index
    %c0_107 = arith.constant 0 : index
    %c0_108 = arith.constant 0 : index
    %142 = vector.load %arg3[%c15, %c0_107, %c0_108] : memref<25x128x128xbf16, #tpu.memory_space<vmem>>, vector<1x128x128xbf16>
    %143 = vector.shape_cast %142 : vector<1x128x128xbf16> to vector<128x128xbf16>
    %cst_109 = arith.constant dense<0.000000e+00> : vector<4x128xf32>
    %144 = tpu.matmul %141, %143, %cst_109 {dimension_numbers = #tpu.dot_dimension_numbers<[1], [0], [0], [1], [0, 0, 1, 1], [], []>} : vector<4x128xbf16>, vector<128x128xbf16>, vector<4x128xf32> -> vector<4x128xf32>
    %145 = arith.addf %136, %144 : vector<4x128xf32>
    %c1_i32_110 = arith.constant 1 : i32
    %146 = arith.addi %0, %c1_i32_110 : i32
    %c3_111 = arith.constant 3 : index
    %147 = arith.index_cast %146 : i32 to index
    %c0_112 = arith.constant 0 : index
    %c0_113 = arith.constant 0 : index
    %148 = vector.load %arg2[%c3_111, %147, %c0_112, %c0_113] : memref<4x4x4x128xbf16, #tpu.memory_space<vmem>>, vector<1x2x2x128xbf16>
    %149 = vector.shape_cast %148 : vector<1x2x2x128xbf16> to vector<2x2x128xbf16>
    %150 = vector.shape_cast %149 : vector<2x2x128xbf16> to vector<4x128xbf16>
    %c16 = arith.constant 16 : index
    %c0_114 = arith.constant 0 : index
    %c0_115 = arith.constant 0 : index
    %151 = vector.load %arg3[%c16, %c0_114, %c0_115] : memref<25x128x128xbf16, #tpu.memory_space<vmem>>, vector<1x128x128xbf16>
    %152 = vector.shape_cast %151 : vector<1x128x128xbf16> to vector<128x128xbf16>
    %cst_116 = arith.constant dense<0.000000e+00> : vector<4x128xf32>
    %153 = tpu.matmul %150, %152, %cst_116 {dimension_numbers = #tpu.dot_dimension_numbers<[1], [0], [0], [1], [0, 0, 1, 1], [], []>} : vector<4x128xbf16>, vector<128x128xbf16>, vector<4x128xf32> -> vector<4x128xf32>
    %154 = arith.addf %145, %153 : vector<4x128xf32>
    %c1_i32_117 = arith.constant 1 : i32
    %155 = arith.addi %0, %c1_i32_117 : i32
    %c2_118 = arith.constant 2 : index
    %156 = arith.index_cast %155 : i32 to index
    %c1_119 = arith.constant 1 : index
    %c0_120 = arith.constant 0 : index
    %157 = vector.load %arg2[%c2_118, %156, %c1_119, %c0_120] : memref<4x4x4x128xbf16, #tpu.memory_space<vmem>>, vector<1x2x2x128xbf16>
    %158 = vector.shape_cast %157 : vector<1x2x2x128xbf16> to vector<2x2x128xbf16>
    %159 = vector.shape_cast %158 : vector<2x2x128xbf16> to vector<4x128xbf16>
    %c17 = arith.constant 17 : index
    %c0_121 = arith.constant 0 : index
    %c0_122 = arith.constant 0 : index
    %160 = vector.load %arg3[%c17, %c0_121, %c0_122] : memref<25x128x128xbf16, #tpu.memory_space<vmem>>, vector<1x128x128xbf16>
    %161 = vector.shape_cast %160 : vector<1x128x128xbf16> to vector<128x128xbf16>
    %cst_123 = arith.constant dense<0.000000e+00> : vector<4x128xf32>
    %162 = tpu.matmul %159, %161, %cst_123 {dimension_numbers = #tpu.dot_dimension_numbers<[1], [0], [0], [1], [0, 0, 1, 1], [], []>} : vector<4x128xbf16>, vector<128x128xbf16>, vector<4x128xf32> -> vector<4x128xf32>
    %163 = arith.addf %154, %162 : vector<4x128xf32>
    %c1_i32_124 = arith.constant 1 : i32
    %164 = arith.addi %0, %c1_i32_124 : i32
    %c3_125 = arith.constant 3 : index
    %165 = arith.index_cast %164 : i32 to index
    %c1_126 = arith.constant 1 : index
    %c0_127 = arith.constant 0 : index
    %166 = vector.load %arg2[%c3_125, %165, %c1_126, %c0_127] : memref<4x4x4x128xbf16, #tpu.memory_space<vmem>>, vector<1x2x2x128xbf16>
    %167 = vector.shape_cast %166 : vector<1x2x2x128xbf16> to vector<2x2x128xbf16>
    %168 = vector.shape_cast %167 : vector<2x2x128xbf16> to vector<4x128xbf16>
    %c18 = arith.constant 18 : index
    %c0_128 = arith.constant 0 : index
    %c0_129 = arith.constant 0 : index
    %169 = vector.load %arg3[%c18, %c0_128, %c0_129] : memref<25x128x128xbf16, #tpu.memory_space<vmem>>, vector<1x128x128xbf16>
    %170 = vector.shape_cast %169 : vector<1x128x128xbf16> to vector<128x128xbf16>
    %cst_130 = arith.constant dense<0.000000e+00> : vector<4x128xf32>
    %171 = tpu.matmul %168, %170, %cst_130 {dimension_numbers = #tpu.dot_dimension_numbers<[1], [0], [0], [1], [0, 0, 1, 1], [], []>} : vector<4x128xbf16>, vector<128x128xbf16>, vector<4x128xf32> -> vector<4x128xf32>
    %172 = arith.addf %163, %171 : vector<4x128xf32>
    %c1_i32_131 = arith.constant 1 : i32
    %173 = arith.addi %0, %c1_i32_131 : i32
    %c2_132 = arith.constant 2 : index
    %174 = arith.index_cast %173 : i32 to index
    %c2_133 = arith.constant 2 : index
    %c0_134 = arith.constant 0 : index
    %175 = vector.load %arg2[%c2_132, %174, %c2_133, %c0_134] : memref<4x4x4x128xbf16, #tpu.memory_space<vmem>>, vector<1x2x2x128xbf16>
    %176 = vector.shape_cast %175 : vector<1x2x2x128xbf16> to vector<2x2x128xbf16>
    %177 = vector.shape_cast %176 : vector<2x2x128xbf16> to vector<4x128xbf16>
    %c19 = arith.constant 19 : index
    %c0_135 = arith.constant 0 : index
    %c0_136 = arith.constant 0 : index
    %178 = vector.load %arg3[%c19, %c0_135, %c0_136] : memref<25x128x128xbf16, #tpu.memory_space<vmem>>, vector<1x128x128xbf16>
    %179 = vector.shape_cast %178 : vector<1x128x128xbf16> to vector<128x128xbf16>
    %cst_137 = arith.constant dense<0.000000e+00> : vector<4x128xf32>
    %180 = tpu.matmul %177, %179, %cst_137 {dimension_numbers = #tpu.dot_dimension_numbers<[1], [0], [0], [1], [0, 0, 1, 1], [], []>} : vector<4x128xbf16>, vector<128x128xbf16>, vector<4x128xf32> -> vector<4x128xf32>
    %181 = arith.addf %172, %180 : vector<4x128xf32>
    %c2_i32_138 = arith.constant 2 : i32
    %182 = arith.addi %0, %c2_i32_138 : i32
    %c0_139 = arith.constant 0 : index
    %183 = arith.index_cast %182 : i32 to index
    %c0_140 = arith.constant 0 : index
    %c0_141 = arith.constant 0 : index
    %184 = vector.load %arg2[%c0_139, %183, %c0_140, %c0_141] : memref<4x4x4x128xbf16, #tpu.memory_space<vmem>>, vector<1x2x2x128xbf16>
    %185 = vector.shape_cast %184 : vector<1x2x2x128xbf16> to vector<2x2x128xbf16>
    %186 = vector.shape_cast %185 : vector<2x2x128xbf16> to vector<4x128xbf16>
    %c20 = arith.constant 20 : index
    %c0_142 = arith.constant 0 : index
    %c0_143 = arith.constant 0 : index
    %187 = vector.load %arg3[%c20, %c0_142, %c0_143] : memref<25x128x128xbf16, #tpu.memory_space<vmem>>, vector<1x128x128xbf16>
    %188 = vector.shape_cast %187 : vector<1x128x128xbf16> to vector<128x128xbf16>
    %cst_144 = arith.constant dense<0.000000e+00> : vector<4x128xf32>
    %189 = tpu.matmul %186, %188, %cst_144 {dimension_numbers = #tpu.dot_dimension_numbers<[1], [0], [0], [1], [0, 0, 1, 1], [], []>} : vector<4x128xbf16>, vector<128x128xbf16>, vector<4x128xf32> -> vector<4x128xf32>
    %190 = arith.addf %181, %189 : vector<4x128xf32>
    %c2_i32_145 = arith.constant 2 : i32
    %191 = arith.addi %0, %c2_i32_145 : i32
    %c1_146 = arith.constant 1 : index
    %192 = arith.index_cast %191 : i32 to index
    %c0_147 = arith.constant 0 : index
    %c0_148 = arith.constant 0 : index
    %193 = vector.load %arg2[%c1_146, %192, %c0_147, %c0_148] : memref<4x4x4x128xbf16, #tpu.memory_space<vmem>>, vector<1x2x2x128xbf16>
    %194 = vector.shape_cast %193 : vector<1x2x2x128xbf16> to vector<2x2x128xbf16>
    %195 = vector.shape_cast %194 : vector<2x2x128xbf16> to vector<4x128xbf16>
    %c21 = arith.constant 21 : index
    %c0_149 = arith.constant 0 : index
    %c0_150 = arith.constant 0 : index
    %196 = vector.load %arg3[%c21, %c0_149, %c0_150] : memref<25x128x128xbf16, #tpu.memory_space<vmem>>, vector<1x128x128xbf16>
    %197 = vector.shape_cast %196 : vector<1x128x128xbf16> to vector<128x128xbf16>
    %cst_151 = arith.constant dense<0.000000e+00> : vector<4x128xf32>
    %198 = tpu.matmul %195, %197, %cst_151 {dimension_numbers = #tpu.dot_dimension_numbers<[1], [0], [0], [1], [0, 0, 1, 1], [], []>} : vector<4x128xbf16>, vector<128x128xbf16>, vector<4x128xf32> -> vector<4x128xf32>
    %199 = arith.addf %190, %198 : vector<4x128xf32>
    %c2_i32_152 = arith.constant 2 : i32
    %200 = arith.addi %0, %c2_i32_152 : i32
    %c0_153 = arith.constant 0 : index
    %201 = arith.index_cast %200 : i32 to index
    %c1_154 = arith.constant 1 : index
    %c0_155 = arith.constant 0 : index
    %202 = vector.load %arg2[%c0_153, %201, %c1_154, %c0_155] : memref<4x4x4x128xbf16, #tpu.memory_space<vmem>>, vector<1x2x2x128xbf16>
    %203 = vector.shape_cast %202 : vector<1x2x2x128xbf16> to vector<2x2x128xbf16>
    %204 = vector.shape_cast %203 : vector<2x2x128xbf16> to vector<4x128xbf16>
    %c22 = arith.constant 22 : index
    %c0_156 = arith.constant 0 : index
    %c0_157 = arith.constant 0 : index
    %205 = vector.load %arg3[%c22, %c0_156, %c0_157] : memref<25x128x128xbf16, #tpu.memory_space<vmem>>, vector<1x128x128xbf16>
    %206 = vector.shape_cast %205 : vector<1x128x128xbf16> to vector<128x128xbf16>
    %cst_158 = arith.constant dense<0.000000e+00> : vector<4x128xf32>
    %207 = tpu.matmul %204, %206, %cst_158 {dimension_numbers = #tpu.dot_dimension_numbers<[1], [0], [0], [1], [0, 0, 1, 1], [], []>} : vector<4x128xbf16>, vector<128x128xbf16>, vector<4x128xf32> -> vector<4x128xf32>
    %208 = arith.addf %199, %207 : vector<4x128xf32>
    %c2_i32_159 = arith.constant 2 : i32
    %209 = arith.addi %0, %c2_i32_159 : i32
    %c1_160 = arith.constant 1 : index
    %210 = arith.index_cast %209 : i32 to index
    %c1_161 = arith.constant 1 : index
    %c0_162 = arith.constant 0 : index
    %211 = vector.load %arg2[%c1_160, %210, %c1_161, %c0_162] : memref<4x4x4x128xbf16, #tpu.memory_space<vmem>>, vector<1x2x2x128xbf16>
    %212 = vector.shape_cast %211 : vector<1x2x2x128xbf16> to vector<2x2x128xbf16>
    %213 = vector.shape_cast %212 : vector<2x2x128xbf16> to vector<4x128xbf16>
    %c23 = arith.constant 23 : index
    %c0_163 = arith.constant 0 : index
    %c0_164 = arith.constant 0 : index
    %214 = vector.load %arg3[%c23, %c0_163, %c0_164] : memref<25x128x128xbf16, #tpu.memory_space<vmem>>, vector<1x128x128xbf16>
    %215 = vector.shape_cast %214 : vector<1x128x128xbf16> to vector<128x128xbf16>
    %cst_165 = arith.constant dense<0.000000e+00> : vector<4x128xf32>
    %216 = tpu.matmul %213, %215, %cst_165 {dimension_numbers = #tpu.dot_dimension_numbers<[1], [0], [0], [1], [0, 0, 1, 1], [], []>} : vector<4x128xbf16>, vector<128x128xbf16>, vector<4x128xf32> -> vector<4x128xf32>
    %217 = arith.addf %208, %216 : vector<4x128xf32>
    %c2_i32_166 = arith.constant 2 : i32
    %218 = arith.addi %0, %c2_i32_166 : i32
    %c0_167 = arith.constant 0 : index
    %219 = arith.index_cast %218 : i32 to index
    %c2_168 = arith.constant 2 : index
    %c0_169 = arith.constant 0 : index
    %220 = vector.load %arg2[%c0_167, %219, %c2_168, %c0_169] : memref<4x4x4x128xbf16, #tpu.memory_space<vmem>>, vector<1x2x2x128xbf16>
    %221 = vector.shape_cast %220 : vector<1x2x2x128xbf16> to vector<2x2x128xbf16>
    %222 = vector.shape_cast %221 : vector<2x2x128xbf16> to vector<4x128xbf16>
    %c24 = arith.constant 24 : index
    %c0_170 = arith.constant 0 : index
    %c0_171 = arith.constant 0 : index
    %223 = vector.load %arg3[%c24, %c0_170, %c0_171] : memref<25x128x128xbf16, #tpu.memory_space<vmem>>, vector<1x128x128xbf16>
    %224 = vector.shape_cast %223 : vector<1x128x128xbf16> to vector<128x128xbf16>
    %cst_172 = arith.constant dense<0.000000e+00> : vector<4x128xf32>
    %225 = tpu.matmul %222, %224, %cst_172 {dimension_numbers = #tpu.dot_dimension_numbers<[1], [0], [0], [1], [0, 0, 1, 1], [], []>} : vector<4x128xbf16>, vector<128x128xbf16>, vector<4x128xf32> -> vector<4x128xf32>
    %226 = arith.addf %217, %225 : vector<4x128xf32>
    %227 = vector.shape_cast %226 : vector<4x128xf32> to vector<1x4x128xf32>
    %c0_173 = arith.constant 0 : index
    %c0_174 = arith.constant 0 : index
    %c0_175 = arith.constant 0 : index
    %228 = vector.load %arg4[%c0_173, %c0_174, %c0_175] : memref<1x4x128xf32, #tpu.memory_space<vmem>>, vector<1x4x128xf32>
    tpu.vector_store %arg4[%c0_173, %c0_174, %c0_175], %227 {strides = array<i32>} : memref<1x4x128xf32, #tpu.memory_space<vmem>>, vector<1x4x128xf32>,
    %cst_176 = arith.constant dense<0.000000e+00> : vector<128xf32>
    %229 = vector.multi_reduction <add>, %226, %cst_176 [0] : vector<4x128xf32> to vector<128xf32>
    %230 = vector.shape_cast %229 : vector<128xf32> to vector<1x128xf32>
    %231 = arith.mulf %226, %226 : vector<4x128xf32>
    %cst_177 = arith.constant dense<0.000000e+00> : vector<128xf32>
    %232 = vector.multi_reduction <add>, %231, %cst_177 [0] : vector<4x128xf32> to vector<128xf32>
    %233 = vector.shape_cast %232 : vector<128xf32> to vector<1x128xf32>
    %234 = tpu.concatenate %230, %233 in 0 : vector<1x128xf32>, vector<1x128xf32> -> vector<2x128xf32>
    %235 = vector.shape_cast %234 : vector<2x128xf32> to vector<1x2x128xf32>
    %c0_178 = arith.constant 0 : index
    %c0_179 = arith.constant 0 : index
    %c0_180 = arith.constant 0 : index
    %236 = vector.load %arg5[%c0_178, %c0_179, %c0_180] : memref<1x2x128xf32, #tpu.memory_space<vmem>>, vector<1x2x128xf32>
    tpu.vector_store %arg5[%c0_178, %c0_179, %c0_180], %235 {strides = array<i32>} : memref<1x2x128xf32, #tpu.memory_space<vmem>>, vector<1x2x128xf32>,
    return
  }
  func.func @transform_0(%arg0: i32, %arg1: i32) -> (i32, i32, i32, i32) {
    %c0_i32 = arith.constant 0 : i32
    %c0_i32_0 = arith.constant 0 : i32
    %c0_i32_1 = arith.constant 0 : i32
    %c0_i32_2 = arith.constant 0 : i32
    return %arg0, %c0_i32, %c0_i32_0, %c0_i32_1 : i32, i32, i32, i32
  }
  func.func @transform_1(%arg0: i32, %arg1: i32) -> (i32, i32, i32) {
    %c0_i32 = arith.constant 0 : i32
    %c0_i32_0 = arith.constant 0 : i32
    %c0_i32_1 = arith.constant 0 : i32
    %c0_i32_2 = arith.constant 0 : i32
    return %c0_i32, %c0_i32_0, %c0_i32_1 : i32, i32, i32
  }
  func.func @transform_2(%arg0: i32, %arg1: i32) -> (i32, i32, i32) {
    %c0_i32 = arith.constant 0 : i32
    %c0_i32_0 = arith.constant 0 : i32
    return %arg0, %arg1, %c0_i32 : i32, i32, i32
  }
  func.func @transform_3(%arg0: i32, %arg1: i32) -> (i32, i32, i32) {
    %c1_i32 = arith.constant 1 : i32
    %0 = arith.muli %arg0, %c1_i32 : i32
    %1 = arith.addi %0, %arg1 : i32
    %c0_i32 = arith.constant 0 : i32
    %c0_i32_0 = arith.constant 0 : i32
    %c0_i32_1 = arith.constant 0 : i32
    return %1, %c0_i32, %c0_i32_0 : i32, i32, i32
  }
}

module attributes {stable_mosaic.version = 11 : i64} {
  func.func @_fc_stack_kernel(%arg0: i32, %arg1: memref<2x512xbf16, #tpu.memory_space<vmem>>, %arg2: memref<512x128xbf16, #tpu.memory_space<vmem>>, %arg3: memref<1x128xf32, #tpu.memory_space<vmem>>, %arg4: memref<128x128xbf16, #tpu.memory_space<vmem>>, %arg5: memref<1x128xf32, #tpu.memory_space<vmem>>, %arg6: memref<128x128xbf16, #tpu.memory_space<vmem>>, %arg7: memref<1x128xf32, #tpu.memory_space<vmem>>, %arg8: memref<2x128xf32, #tpu.memory_space<vmem>>) attributes {dimension_semantics = [#tpu.dimension_semantics<parallel>], iteration_bounds = array<i64: 1>, scalar_prefetch = 0 : i64, scratch_operands = 0 : i64, tpu.core_type = #tpu.core_type<tc>, window_params = [{transform_indices = @transform_0, window_bounds = array<i64: 2, 512>}, {pipeline_mode = #tpu.pipeline_mode<synchronous>, transform_indices = @transform_1, window_bounds = array<i64: 512, 128>}, {pipeline_mode = #tpu.pipeline_mode<synchronous>, transform_indices = @transform_2, window_bounds = array<i64: 1, 128>}, {pipeline_mode = #tpu.pipeline_mode<synchronous>, transform_indices = @transform_3, window_bounds = array<i64: 128, 128>}, {pipeline_mode = #tpu.pipeline_mode<synchronous>, transform_indices = @transform_4, window_bounds = array<i64: 1, 128>}, {pipeline_mode = #tpu.pipeline_mode<synchronous>, transform_indices = @transform_5, window_bounds = array<i64: 128, 128>}, {pipeline_mode = #tpu.pipeline_mode<synchronous>, transform_indices = @transform_6, window_bounds = array<i64: 1, 128>}, {transform_indices = @transform_7, window_bounds = array<i64: 2, 128>}]} {
    %c0 = arith.constant 0 : index
    %c0_0 = arith.constant 0 : index
    %0 = vector.load %arg1[%c0, %c0_0] : memref<2x512xbf16, #tpu.memory_space<vmem>>, vector<2x512xbf16>
    %c0_1 = arith.constant 0 : index
    %c0_2 = arith.constant 0 : index
    %1 = vector.load %arg2[%c0_1, %c0_2] : memref<512x128xbf16, #tpu.memory_space<vmem>>, vector<512x128xbf16>
    %cst = arith.constant dense<0.000000e+00> : vector<2x128xf32>
    %2 = tpu.matmul %0, %1, %cst {dimension_numbers = #tpu.dot_dimension_numbers<[1], [0], [0], [1], [0, 0, 1, 1], [], []>} : vector<2x512xbf16>, vector<512x128xbf16>, vector<2x128xf32> -> vector<2x128xf32>
    %c0_3 = arith.constant 0 : index
    %c0_4 = arith.constant 0 : index
    %3 = vector.load %arg3[%c0_3, %c0_4] : memref<1x128xf32, #tpu.memory_space<vmem>>, vector<1x128xf32>
    %4 = vector.broadcast %3 : vector<1x128xf32> to vector<2x128xf32>
    %5 = arith.addf %2, %4 : vector<2x128xf32>
    %cst_5 = arith.constant 0.000000e+00 : f32
    %6 = vector.broadcast %cst_5 : f32 to vector<2x128xf32>
    %7 = arith.maximumf %5, %6 : vector<2x128xf32>
    %8 = arith.truncf %7 : vector<2x128xf32> to vector<2x128xbf16>
    %c0_6 = arith.constant 0 : index
    %c0_7 = arith.constant 0 : index
    %9 = vector.load %arg4[%c0_6, %c0_7] : memref<128x128xbf16, #tpu.memory_space<vmem>>, vector<128x128xbf16>
    %cst_8 = arith.constant dense<0.000000e+00> : vector<2x128xf32>
    %10 = tpu.matmul %8, %9, %cst_8 {dimension_numbers = #tpu.dot_dimension_numbers<[1], [0], [0], [1], [0, 0, 1, 1], [], []>} : vector<2x128xbf16>, vector<128x128xbf16>, vector<2x128xf32> -> vector<2x128xf32>
    %c0_9 = arith.constant 0 : index
    %c0_10 = arith.constant 0 : index
    %11 = vector.load %arg5[%c0_9, %c0_10] : memref<1x128xf32, #tpu.memory_space<vmem>>, vector<1x128xf32>
    %12 = vector.broadcast %11 : vector<1x128xf32> to vector<2x128xf32>
    %13 = arith.addf %10, %12 : vector<2x128xf32>
    %cst_11 = arith.constant 0.000000e+00 : f32
    %14 = vector.broadcast %cst_11 : f32 to vector<2x128xf32>
    %15 = arith.maximumf %13, %14 : vector<2x128xf32>
    %16 = arith.truncf %15 : vector<2x128xf32> to vector<2x128xbf16>
    %c0_12 = arith.constant 0 : index
    %c0_13 = arith.constant 0 : index
    %17 = vector.load %arg6[%c0_12, %c0_13] : memref<128x128xbf16, #tpu.memory_space<vmem>>, vector<128x128xbf16>
    %cst_14 = arith.constant dense<0.000000e+00> : vector<2x128xf32>
    %18 = tpu.matmul %16, %17, %cst_14 {dimension_numbers = #tpu.dot_dimension_numbers<[1], [0], [0], [1], [0, 0, 1, 1], [], []>} : vector<2x128xbf16>, vector<128x128xbf16>, vector<2x128xf32> -> vector<2x128xf32>
    %c0_15 = arith.constant 0 : index
    %c0_16 = arith.constant 0 : index
    %19 = vector.load %arg7[%c0_15, %c0_16] : memref<1x128xf32, #tpu.memory_space<vmem>>, vector<1x128xf32>
    %20 = vector.broadcast %19 : vector<1x128xf32> to vector<2x128xf32>
    %21 = arith.addf %18, %20 : vector<2x128xf32>
    %cst_17 = arith.constant 0.000000e+00 : f32
    %22 = vector.broadcast %cst_17 : f32 to vector<2x128xf32>
    %23 = arith.maximumf %21, %22 : vector<2x128xf32>
    %c0_18 = arith.constant 0 : index
    %c0_19 = arith.constant 0 : index
    %24 = vector.load %arg8[%c0_18, %c0_19] : memref<2x128xf32, #tpu.memory_space<vmem>>, vector<2x128xf32>
    tpu.vector_store %arg8[%c0_18, %c0_19], %23 {strides = array<i32>} : memref<2x128xf32, #tpu.memory_space<vmem>>, vector<2x128xf32>,
    return
  }
  func.func @transform_0(%arg0: i32) -> (i32, i32) {
    %c0_i32 = arith.constant 0 : i32
    %c0_i32_0 = arith.constant 0 : i32
    return %arg0, %c0_i32 : i32, i32
  }
  func.func @transform_1(%arg0: i32) -> (i32, i32) {
    %c0_i32 = arith.constant 0 : i32
    %c0_i32_0 = arith.constant 0 : i32
    %c0_i32_1 = arith.constant 0 : i32
    return %c0_i32, %c0_i32_0 : i32, i32
  }
  func.func @transform_2(%arg0: i32) -> (i32, i32) {
    %c0_i32 = arith.constant 0 : i32
    %c0_i32_0 = arith.constant 0 : i32
    %c0_i32_1 = arith.constant 0 : i32
    return %c0_i32, %c0_i32_0 : i32, i32
  }
  func.func @transform_3(%arg0: i32) -> (i32, i32) {
    %c0_i32 = arith.constant 0 : i32
    %c0_i32_0 = arith.constant 0 : i32
    %c0_i32_1 = arith.constant 0 : i32
    return %c0_i32, %c0_i32_0 : i32, i32
  }
  func.func @transform_4(%arg0: i32) -> (i32, i32) {
    %c0_i32 = arith.constant 0 : i32
    %c0_i32_0 = arith.constant 0 : i32
    %c0_i32_1 = arith.constant 0 : i32
    return %c0_i32, %c0_i32_0 : i32, i32
  }
  func.func @transform_5(%arg0: i32) -> (i32, i32) {
    %c0_i32 = arith.constant 0 : i32
    %c0_i32_0 = arith.constant 0 : i32
    %c0_i32_1 = arith.constant 0 : i32
    return %c0_i32, %c0_i32_0 : i32, i32
  }
  func.func @transform_6(%arg0: i32) -> (i32, i32) {
    %c0_i32 = arith.constant 0 : i32
    %c0_i32_0 = arith.constant 0 : i32
    %c0_i32_1 = arith.constant 0 : i32
    return %c0_i32, %c0_i32_0 : i32, i32
  }
  func.func @transform_7(%arg0: i32) -> (i32, i32) {
    %c0_i32 = arith.constant 0 : i32
    %c0_i32_0 = arith.constant 0 : i32
    return %arg0, %c0_i32 : i32, i32
  }
}

</mosaic_0001>

<bundles_post_ra>
// kernel: encoder_forward.8
= control target key start
LH: loop header
LB: loop body
LE: loop exit
PB: predicated region body
PF: predicated region fallthrough
CT: control target
= control target key end

     0   :  { %s469_s9 = smov 0   ;;  %s471_s10 = smov 0   ;;  %s512_s0 = inlined_call_operand.vmem [shape: f32[2,64,128], index: 0, kind: input, shape index: {}]   ;;  %s513_s1 = inlined_call_operand.vmem [shape: f32[2,128], index: 1, kind: input, shape index: {}]   ;;  %s514_s2 = inlined_call_operand.vmem [shape: bf16[2,64,128], index: 2, kind: output, shape index: {}]  }
   0x1   :  { %s473_s11 = smov 0  }
   0x2 LB: > { %s24_s12 = sadd.s32 1, %s448_s10  ;;  %p356_p0 = scmp.ge.s32.totalorder %s452_s11, 1  ;;  %s452_s11 = sphi %s473_s11, %s12_s11   ;;  %s448_s10 = sphi %s471_s10, %s516_s10   ;;  %s444_s9 = sphi %s469_s9, %s515_s9  }
   0x3   : > { %p26_p1 = scmp.ge.s32.totalorder %s24_s12, 2  ;;  %p133_p2 = scmp.lt.s32.totalorder %s452_s11, 3 }
   0x5   : > { %s518_s12 = smov (%p26_p1, %s24_s12), 0  ;;  %p134_p3 = pnand %p356_p0, %p133_p2 }
   0x6   : > { %p164_p4 = scmp.lt.s32.totalorder (!%p134_p3), %s444_s9, 1  ;;  %v361_v0 = vld [vmem:[%s513_s1] ss:$0 sm:$0xff] (!%p134_p3)  ;;  %v362_v1 = vld [vmem:[%s513_s1 + $0x1] ss:$0 sm:$0xff] (!%p134_p3) }
   0x7   : > { %137 = sbr.rel (%p134_p3) target bundleno = 30 (0x1e), region = 28 }
   0xe   : > { %s520_s9 = smov (!%p164_p4, %s444_s9), 1 }
   0xf   : > { %s373_s13 = sshll.u32 %s520_s9, 6  ;;  %s374_s21 = sshll.u32 %s520_s9, 5 }
  0x10   : > { %s171_s18 = scalar_lea.vmem %s512_s0, %s373_s13  ;;  %s181_s24 = scalar_lea.vmem %s514_s2, %s374_s21 }
  0x11   : > { %v185_v2 = vld [vmem:[%s171_s18] sm:$0xff]  ;;  %v186_v3 = vld [vmem:[%s171_s18 + $0x8] sm:$0xff]  ;;  %v187_v4 = vld [vmem:[%s171_s18 + $0x10] sm:$0xff] }
  0x12   : > { %v197_v5 = vmul.f32 %v361_v0, %v185_v2  ;;  %v198_v6 = vmul.f32 %v361_v0, %v186_v3  ;;  %v188_v7 = vld [vmem:[%s171_s18 + $0x18] sm:$0xff]  ;;  %v199_v8 = vmul.f32 %v361_v0, %v187_v4  ;;  %v189_v9 = vld [vmem:[%s171_s18 + $0x20] sm:$0xff]  ;;  %v190_v10 = vld [vmem:[%s171_s18 + $0x28] sm:$0xff] }
  0x13   : > { %v200_v11 = vmul.f32 %v361_v0, %v188_v7  ;;  %v201_v12 = vmul.f32 %v361_v0, %v189_v9  ;;  %v202_v13 = vmul.f32 %v361_v0, %v190_v10  ;;  %v191_v14 = vld [vmem:[%s171_s18 + $0x30] sm:$0xff]  ;;  %v192_v15 = vld [vmem:[%s171_s18 + $0x38] sm:$0xff] }
  0x14   : > { %v209_v16 = vadd.f32 %v362_v1, %v197_v5  ;;  %v210_v17 = vadd.f32 %v362_v1, %v198_v6  ;;  %v211_v18 = vadd.f32 %v362_v1, %v199_v8  ;;  %v203_v19 = vmul.f32 %v361_v0, %v191_v14 }
  0x15   : > { %v212_v20 = vadd.f32 %v362_v1, %v200_v11  ;;  %v213_v21 = vadd.f32 %v362_v1, %v201_v12  ;;  %v214_v22 = vadd.f32 %v362_v1, %v202_v13  ;;  %v204_v23 = vmul.f32 %v361_v0, %v192_v15 }
  0x16   : > { %v217_v24 = vmax.f32 %v209_v16, 0.0  ;;  %v218_v25 = vmax.f32 %v210_v17, 0.0  ;;  %v219_v26 = vmax.f32 %v211_v18, 0.0  ;;  %v215_v27 = vadd.f32 %v362_v1, %v203_v19 }
  0x17   : > { %v220_v28 = vmax.f32 %v212_v20, 0.0  ;;  %v221_v29 = vmax.f32 %v213_v21, 0.0  ;;  %v222_v30 = vmax.f32 %v214_v22, 0.0  ;;  %v216_v31 = vadd.f32 %v362_v1, %v204_v23 }
  0x18   : > { %v386_v32 = vpack.c.bf16 %v218_v25, %v217_v24  ;;  %v223_v33 = vmax.f32 %v215_v27, 0.0 }
  0x19   : > { %v391_v34 = vpack.c.bf16 %v220_v28, %v219_v26  ;;  %v396_v35 = vpack.c.bf16 %v222_v30, %v221_v29  ;;  %v224_v36 = vmax.f32 %v216_v31, 0.0 }
  0x1a   : > { %387 = vst [vmem:[%s181_s24] sm:$0xff] %v386_v32  }
  0x1b   : > { %403 = vst [vmem:[%s181_s24 + $0x8] sm:$0xff] %v391_v34   ;;  %404 = vst [vmem:[%s181_s24 + $0x10] sm:$0xff] %v396_v35   ;;  %v401_v37 = vpack.c.bf16 %v224_v36, %v223_v33 }
  0x1d   : > { %405 = vst [vmem:[%s181_s24 + $0x18] sm:$0xff] %v401_v37  }
  0x1e PF: > { %s12_s11 = sadd.s32 1, %s452_s11   ;;  %s515_s9 = smov %s448_s10 }
  0x1f   : > { %p9_p5 = scmp.ge.s32.totalorder %s12_s11, 4   ;;  %s516_s10 = smov %s518_s12 }
  0x21   :  { %11 = sbr.rel (!%p9_p5) target bundleno = 2 (0x2), region = 58 }

// kernel: encoder_forward.10
= control target key start
LH: loop header
LB: loop body
LE: loop exit
PB: predicated region body
PF: predicated region fallthrough
CT: control target
= control target key end

     0   :  { %s385_s9 = smov 0   ;;  %s387_s10 = smov 0   ;;  %s421_s0 = inlined_call_operand.vmem [shape: f32[2,16,128], index: 0, kind: input, shape index: {}]   ;;  %s422_s1 = inlined_call_operand.vmem [shape: f32[2,128], index: 1, kind: input, shape index: {}]   ;;  %s423_s2 = inlined_call_operand.vmem [shape: bf16[2,16,128], index: 2, kind: output, shape index: {}]  }
   0x1   :  { %s389_s11 = smov 0  }
   0x2 LB: > { %s24_s12 = sadd.s32 1, %s364_s10  ;;  %p302_p0 = scmp.ge.s32.totalorder %s368_s11, 1  ;;  %s368_s11 = sphi %s389_s11, %s12_s11   ;;  %s364_s10 = sphi %s387_s10, %s425_s10   ;;  %s360_s9 = sphi %s385_s9, %s424_s9  }
   0x3   : > { %p26_p1 = scmp.ge.s32.totalorder %s24_s12, 2  ;;  %p133_p2 = scmp.lt.s32.totalorder %s368_s11, 3 }
   0x5   : > { %s427_s12 = smov (%p26_p1, %s24_s12), 0  ;;  %p134_p3 = pnand %p302_p0, %p133_p2 }
   0x6   : > { %p164_p4 = scmp.lt.s32.totalorder (!%p134_p3), %s360_s9, 1  ;;  %v307_v0 = vld [vmem:[%s422_s1] ss:$0 sm:$0xff] (!%p134_p3)  ;;  %v308_v1 = vld [vmem:[%s422_s1 + $0x1] ss:$0 sm:$0xff] (!%p134_p3) }
   0x7   : > { %137 = sbr.rel (%p134_p3) target bundleno = 27 (0x1b), region = 28 }
   0xe   : > { %s429_s9 = smov (!%p164_p4, %s360_s9), 1 }
   0xf   : > { %s313_s13 = sshll.u32 %s429_s9, 4  ;;  %s314_s21 = sshll.u32 %s429_s9, 3 }
  0x10   : > { %s171_s18 = scalar_lea.vmem %s421_s0, %s313_s13  ;;  %s181_s24 = scalar_lea.vmem %s423_s2, %s314_s21 }
  0x11   : > { %v185_v2 = vld [vmem:[%s171_s18] sm:$0xff]  ;;  %v186_v3 = vld [vmem:[%s171_s18 + $0x8] sm:$0xff] }
  0x12   : > { %v191_v4 = vmul.f32 %v307_v0, %v185_v2  ;;  %v192_v5 = vmul.f32 %v307_v0, %v186_v3 }
  0x14   : > { %v197_v6 = vadd.f32 %v308_v1, %v191_v4  ;;  %v198_v7 = vadd.f32 %v308_v1, %v192_v5 }
  0x16   : > { %v199_v8 = vmax.f32 %v197_v6, 0.0  ;;  %v200_v9 = vmax.f32 %v198_v7, 0.0 }
  0x18   : > { %v320_v10 = vpack.c.bf16 %v200_v9, %v199_v8 }
  0x1a   : > { %321 = vst [vmem:[%s181_s24] sm:$0xff] %v320_v10  }
  0x1b PF: > { %s12_s11 = sadd.s32 1, %s368_s11   ;;  %s424_s9 = smov %s364_s10 }
  0x1c   : > { %p9_p5 = scmp.ge.s32.totalorder %s12_s11, 4   ;;  %s425_s10 = smov %s427_s12 }
  0x1e   :  { %11 = sbr.rel (!%p9_p5) target bundleno = 2 (0x2), region = 58 }

// kernel: encoder_forward.12
= control target key start
LH: loop header
LB: loop body
LE: loop exit
PB: predicated region body
PF: predicated region fallthrough
CT: control target
= control target key end

     0   :  { %s334_s9 = smov 0   ;;  %s336_s10 = smov 0   ;;  %s361_s0 = inlined_call_operand.vmem [shape: f32[2,4,128], index: 0, kind: input, shape index: {}]   ;;  %s362_s1 = inlined_call_operand.vmem [shape: f32[2,128], index: 1, kind: input, shape index: {}]   ;;  %s363_s2 = inlined_call_operand.vmem [shape: bf16[2,4,128], index: 2, kind: output, shape index: {}]  }
   0x1   :  { %s338_s11 = smov 0  }
   0x2 LB: > { %s24_s12 = sadd.s32 1, %s313_s10  ;;  %p264_p0 = scmp.ge.s32.totalorder %s317_s11, 1  ;;  %s317_s11 = sphi %s338_s11, %s12_s11   ;;  %s313_s10 = sphi %s336_s10, %s365_s10   ;;  %s309_s9 = sphi %s334_s9, %s364_s9  }
   0x3   : > { %p26_p1 = scmp.ge.s32.totalorder %s24_s12, 2  ;;  %p130_p2 = scmp.lt.s32.totalorder %s317_s11, 3 }
   0x5   : > { %s367_s12 = smov (%p26_p1, %s24_s12), 0  ;;  %p131_p3 = pnand %p264_p0, %p130_p2 }
   0x6   : > { %p156_p4 = scmp.lt.s32.totalorder (!%p131_p3), %s309_s9, 1  ;;  %v267_v0 = vld [vmem:[%s362_s1] ss:$0 sm:$0xff] (!%p131_p3)  ;;  %v268_v1 = vld [vmem:[%s362_s1 + $0x1] ss:$0 sm:$0xff] (!%p131_p3) }
   0x7   : > { %134 = sbr.rel (%p131_p3) target bundleno = 27 (0x1b), region = 28 }
   0xe   : > { %s369_s9 = smov (!%p156_p4, %s309_s9), 1 }
   0xf   : > { %s265_s13 = sshll.u32 %s369_s9, 2  ;;  %s266_s21 = sshll.u32 %s369_s9, 1 }
  0x10   : > { %s162_s18 = scalar_lea.vmem %s361_s0, %s265_s13  ;;  %s169_s24 = scalar_lea.vmem %s363_s2, %s266_s21 }
  0x11   : > { %v172_v2 = vld [vmem:[%s162_s18] sm:$0xf] }
  0x12   : > { %v177_v3 = vmul.f32 %v267_v0, %v172_v2 }
  0x14   : > { %v182_v4 = vadd.f32 %v268_v1, %v177_v3 }
  0x16   : > { %v183_v5 = vmax.f32 %v182_v4, 0.0 }
  0x18   : > { %v184_v6 = vpack.c.bf16 %v183_v5, %v183_v5 }
  0x1a   : > { %185 = vst [vmem:[%s169_s24] sm:$0x3] %v184_v6 }
  0x1b PF: > { %s12_s11 = sadd.s32 1, %s317_s11   ;;  %s364_s9 = smov %s313_s10 }
  0x1c   : > { %p9_p5 = scmp.ge.s32.totalorder %s12_s11, 4   ;;  %s365_s10 = smov %s367_s12 }
  0x1e   :  { %11 = sbr.rel (!%p9_p5) target bundleno = 2 (0x2), region = 58 }

// kernel: encoder_forward.13
= control target key start
LH: loop header
LB: loop body
LE: loop exit
PB: predicated region body
PF: predicated region fallthrough
CT: control target
= control target key end

     0   :  { %v112_v30 = vlaneseq  ;;  %v873_v34 = vmov 1966171168   ;;  %v874_v37 = vmov 0.0   ;;  %s1103_s0 = inlined_call_operand.vmem [shape: bf16[2,512], index: 0, kind: input, shape index: {}]   ;;  %s1104_s1 = inlined_call_operand.vmem [shape: bf16[512,128], index: 1, kind: input, shape index: {}]   ;;  %s1105_s2 = inlined_call_operand.vmem [shape: f32[1,128], index: 2, kind: input, shape index: {}]   ;;  %s1106_s3 = inlined_call_operand.vmem [shape: bf16[128,128], index: 3, kind: input, shape index: {}]   ;;  %s1107_s4 = inlined_call_operand.vmem [shape: f32[1,128], index: 4, kind: input, shape index: {}]   ;;  %s1108_s5 = inlined_call_operand.vmem [shape: bf16[128,128], index: 5, kind: input, shape index: {}]   ;;  %s1109_s6 = inlined_call_operand.vmem [shape: f32[1,128], index: 6, kind: input, shape index: {}]   ;;  %s1110_s7 = inlined_call_operand.hbm [shape: f32[2,128], index: 7, kind: output, shape index: {}]  }
   0x1   :  { %v801_v0 = vld [vmem:[%s1104_s1 + $0x40] sm:$0xff]   ;;  %v805_v4 = vld [vmem:[%s1104_s1 + $0x48] sm:$0xff]   ;;  %v809_v8 = vld [vmem:[%s1104_s1 + $0x50] sm:$0xff]   ;;  %v110_v35 = vunpack.c.l.s4 %v873_v34 }
   0x2   :  { %v802_v1 = vld [vmem:[%s1104_s1 + $0xc0] sm:$0xff]   ;;  %695 = vmatprep.subr.bf16.mxu0 %v801_v0  ;;  %v806_v5 = vld [vmem:[%s1104_s1 + $0xc8] sm:$0xff]   ;;  %v810_v9 = vld [vmem:[%s1104_s1 + $0xd0] sm:$0xff]   ;;  %v113_v36 = vshrl.u32 %v112_v30, 7 }
   0x3   :  { %v803_v2 = vld [vmem:[%s1104_s1] sm:$0xff]   ;;  %717 = vmatprep.subr.bf16.mxu1 %v802_v1  ;;  %v807_v6 = vld [vmem:[%s1104_s1 + $0x8] sm:$0xff]   ;;  %v811_v10 = vld [vmem:[%s1104_s1 + $0x10] sm:$0xff]   ;;  %v111_v39 = vunpack.c.0.s8 %v110_v35 }
   0x4   :  { %v804_v3 = vld [vmem:[%s1104_s1 + $0x80] sm:$0xff]   ;;  %696 = vmatpush3.bf16.msra.mxu0 %v803_v2  ;;  %v808_v7 = vld [vmem:[%s1104_s1 + $0x88] sm:$0xff]   ;;  %v812_v11 = vld [vmem:[%s1104_s1 + $0x90] sm:$0xff]  }
   0x5   :  { %718 = vmatpush3.bf16.msra.mxu1 %v804_v3  ;;  %697 = vmatprep.subr.bf16.mxu0 %v805_v4  ;;  %v813_v12 = vld [vmem:[%s1104_s1 + $0x58] sm:$0xff]   ;;  %v817_v16 = vld [vmem:[%s1104_s1 + $0x60] sm:$0xff]   ;;  %v821_v20 = vld [vmem:[%s1104_s1 + $0x68] sm:$0xff]   ;;  %v114_v40 = vsub.s32 %v111_v39, %v113_v36 }
   0x6   :  { %719 = vmatprep.subr.bf16.mxu1 %v806_v5  ;;  %v814_v13 = vld [vmem:[%s1104_s1 + $0xd8] sm:$0xff]   ;;  %v818_v17 = vld [vmem:[%s1104_s1 + $0xe0] sm:$0xff]   ;;  %v822_v21 = vld [vmem:[%s1104_s1 + $0xe8] sm:$0xff]  }
   0x7   :  { %v815_v14 = vld [vmem:[%s1104_s1 + $0x18] sm:$0xff]   ;;  %v819_v18 = vld [vmem:[%s1104_s1 + $0x20] sm:$0xff]   ;;  %v823_v22 = vld [vmem:[%s1104_s1 + $0x28] sm:$0xff]  }
   0x8   :  { %698 = vmatpush3.bf16.msra.mxu0 %v807_v6  ;;  %v816_v15 = vld [vmem:[%s1104_s1 + $0x98] sm:$0xff]   ;;  %v820_v19 = vld [vmem:[%s1104_s1 + $0xa0] sm:$0xff]   ;;  %v824_v23 = vld [vmem:[%s1104_s1 + $0xa8] sm:$0xff]  }
   0x9   :  { %720 = vmatpush3.bf16.msra.mxu1 %v808_v7  ;;  %699 = vmatprep.subr.bf16.mxu0 %v809_v8  ;;  %v825_v24 = vld [vmem:[%s1104_s1 + $0x70] sm:$0xff]   ;;  %v829_v28 = vld [vmem:[%s1104_s1 + $0x78] sm:$0xff]   ;;  %v644_v33 = vld.sshfl [vmem:[%s1103_s0] sm:$0x33 pattern:$0x75316420] }
   0xa   :  { %721 = vmatprep.subr.bf16.mxu1 %v810_v9  ;;  %v826_v25 = vld [vmem:[%s1104_s1 + $0xf0] sm:$0xff]   ;;  %v830_v29 = vld [vmem:[%s1104_s1 + $0xf8] sm:$0xff]   ;;  %v108_v38 = vcombine.high %v644_v33, %v644_v33  ;;  %v833_v41 = vld [vmem:[%s1106_s3] sm:$0xff]   ;;  %v115_v43 = vrot.slane %v644_v33, %v114_v40 }
   0xb   :  { %v827_v26 = vld [vmem:[%s1104_s1 + $0x30] sm:$0xff]   ;;  %v831_v31 = vld [vmem:[%s1104_s1 + $0x38] sm:$0xff]   ;;  %v834_v46 = vld [vmem:[%s1106_s3 + $0x8] sm:$0xff]  }
   0xc   :  { %700 = vmatpush3.bf16.msra.mxu0 %v811_v10  ;;  %v828_v27 = vld [vmem:[%s1104_s1 + $0xb0] sm:$0xff]   ;;  %v832_v32 = vld [vmem:[%s1104_s1 + $0xb8] sm:$0xff]   ;;  %v122_v42 = vrot.slane %v108_v38, %v114_v40  ;;  %v123_v45 = vcombine.high %v115_v43, %v115_v43 }
   0xd   :  { %722 = vmatpush3.bf16.msra.mxu1 %v812_v11  ;;  %701 = vmatprep.subr.bf16.mxu0 %v813_v12 }
   0xe   :  { %723 = vmatprep.subr.bf16.mxu1 %v814_v13  ;;  %353 = vmatprep.mubr.bf16.mxu0 %v122_v42  ;;  %v124_v44 = vcombine.high %v122_v42, %v122_v42 }
  0x10   :  { %702 = vmatpush3.bf16.msra.mxu0 %v815_v14  ;;  %393 = vmatprep.mubr.bf16.mxu1 %v124_v44 }
  0x11   :  { %724 = vmatpush3.bf16.msra.mxu1 %v816_v15  ;;  %703 = vmatprep.subr.bf16.mxu0 %v817_v16 }
  0x12   :  { %725 = vmatprep.subr.bf16.mxu1 %v818_v17 }
  0x14   :  { %704 = vmatpush3.bf16.msra.mxu0 %v819_v18 }
  0x15   :  { %726 = vmatpush3.bf16.msra.mxu1 %v820_v19  ;;  %705 = vmatprep.subr.bf16.mxu0 %v821_v20 }
  0x16   :  { %727 = vmatprep.subr.bf16.mxu1 %v822_v21 }
  0x18   :  { %706 = vmatpush3.bf16.msra.mxu0 %v823_v22 }
  0x19   :  { %728 = vmatpush3.bf16.msra.mxu1 %v824_v23  ;;  %707 = vmatprep.subr.bf16.mxu0 %v825_v24 }
  0x1a   :  { %729 = vmatprep.subr.bf16.mxu1 %v826_v25 }
  0x1c   :  { %708 = vmatpush3.bf16.msra.mxu0 %v827_v26 }
  0x1d   :  { %730 = vmatpush3.bf16.msra.mxu1 %v828_v27  ;;  %709 = vmatprep.subr.bf16.mxu0 %v829_v28 }
  0x1e   :  { %731 = vmatprep.subr.bf16.mxu1 %v830_v29 }
  0x20   :  { %710 = vmatpush3.bf16.msra.mxu0 %v831_v31 }
  0x21   :  { %732 = vmatpush3.bf16.msra.mxu1 %v832_v32  ;;  %757 = vmatprep.subr.bf16.mxu0 %v874_v37 }
  0x22   :  { %777 = vmatprep.subr.bf16.mxu1 %v874_v37 }
  0x23   :  { %354 = vmatmul.mubr.bf16.vlgmr.msra.gmra.mrb[0].mxu0 %v115_v43 }
  0x24   :  { %758 = vmatpush3.bf16.msra.mxu0 %v833_v41  ;;  %394 = vmatmul.mubr.bf16.vlgmr.msra.gmra.mrb[0].mxu1 %v123_v45 }
  0x25   :  { %759 = vmatprep.subr.bf16.mxu0 %v874_v37 }
  0x26   :  { %12 = vsyncpa [#allocation3], 0  ;;  %v835_v47 = vld [vmem:[%s1106_s3 + $0x10] sm:$0xff]   ;;  %v836_v48 = vld [vmem:[%s1106_s3 + $0x18] sm:$0xff]   ;;  %vm875_vm0 = vmmov 0   ;;  %s876_s30 = smov [#allocation2]  }
  0x27   :  { %v837_v49 = vld [vmem:[%s1106_s3 + $0x20] sm:$0xff]   ;;  %v838_v50 = vld [vmem:[%s1106_s3 + $0x28] sm:$0xff]   ;;  %v839_v51 = vld [vmem:[%s1106_s3 + $0x30] sm:$0xff]   ;;  %773 = vmatprep.mubr.msk.bf16.mxu0 %vm875_vm0, %v874_v37  ;;  %793 = vmatprep.mubr.msk.bf16.mxu1 %vm875_vm0, %v874_v37 }
  0x28   :  { %760 = vmatpush3.bf16.msra.mxu0 %v834_v46  ;;  %v840_v52 = vld [vmem:[%s1106_s3 + $0x38] sm:$0xff]   ;;  %v841_v53 = vld [vmem:[%s1108_s5] sm:$0xff]   ;;  %v842_v54 = vld [vmem:[%s1108_s5 + $0x8] sm:$0xff]  }
  0x29   :  { %761 = vmatprep.subr.bf16.mxu0 %v874_v37  ;;  %778 = vmatpush3.bf16.msra.mxu1 %v841_v53  ;;  %v843_v55 = vld [vmem:[%s1108_s5 + $0x10] sm:$0xff]   ;;  %v844_v56 = vld [vmem:[%s1108_s5 + $0x18] sm:$0xff]   ;;  %v845_v57 = vld [vmem:[%s1108_s5 + $0x20] sm:$0xff]  }
  0x2a   :  { %779 = vmatprep.subr.bf16.mxu1 %v874_v37  ;;  %v846_v58 = vld [vmem:[%s1108_s5 + $0x28] sm:$0xff]   ;;  %v643_v60 = vld [vmem:[%s1105_s2] ss:$0 sm:$0xff]  ;;  %v847_v10 = vld [vmem:[%s1108_s5 + $0x30] sm:$0xff]  }
  0x2b   :  { %v848_v11 = vld [vmem:[%s1108_s5 + $0x38] sm:$0xff]   ;;  %v677_v12 = vld [vmem:[%s1107_s4] ss:$0 sm:$0xff]  ;;  %s635_s5 = sshll.u32 %s876_s30, 4  ;;  %s636_s5 = int_to_ptr.vmem [resolvable:$true] %s635_s5 }
  0x2c   :  { %762 = vmatpush3.bf16.msra.mxu0 %v835_v47  ;;  %v686_v20 = vld [vmem:[%s1109_s6] ss:$0 sm:$0xff]  ;;  %s849_s4 = scalar_lea.vmem %s636_s5, 32  ;;  %p854_p1 = scmp.lt.s32.totalorder %s636_s5, %s636_s5 }
  0x2d   :  { %763 = vmatprep.subr.bf16.mxu0 %v874_v37  ;;  %780 = vmatpush3.bf16.msra.mxu1 %v842_v54  ;;  %p850_p0 = scmp.ne.s32.totalorder %s636_s5, %s849_s4  ;;  %p855_p2 = scmp.lt.s32.totalorder %s849_s4, %s849_s4 }
  0x2e   :  { %781 = vmatprep.subr.bf16.mxu1 %v874_v37 }
  0x2f   :  { %p856_p3 = por %p855_p2, %p854_p1 }
  0x30   :  { %764 = vmatpush3.bf16.msra.mxu0 %v836_v48 }
  0x31   :  { %765 = vmatprep.subr.bf16.mxu0 %v874_v37  ;;  %782 = vmatpush3.bf16.msra.mxu1 %v843_v55  ;;  %p857_p4 = pnand %p856_p3, %p850_p0 }
  0x32   :  { %783 = vmatprep.subr.bf16.mxu1 %v874_v37 }
  0x34   :  { %766 = vmatpush3.bf16.msra.mxu0 %v837_v49 }
  0x35   :  { %767 = vmatprep.subr.bf16.mxu0 %v874_v37  ;;  %784 = vmatpush3.bf16.msra.mxu1 %v844_v56 }
  0x36   :  { %785 = vmatprep.subr.bf16.mxu1 %v874_v37 }
  0x38   :  { %768 = vmatpush3.bf16.msra.mxu0 %v838_v50 }
  0x39   :  { %769 = vmatprep.subr.bf16.mxu0 %v874_v37  ;;  %786 = vmatpush3.bf16.msra.mxu1 %v845_v57 }
  0x3a   :  { %787 = vmatprep.subr.bf16.mxu1 %v874_v37 }
  0x3c   :  { %770 = vmatpush3.bf16.msra.mxu0 %v839_v51 }
  0x3d   :  { %771 = vmatprep.subr.bf16.mxu0 %v874_v37  ;;  %788 = vmatpush3.bf16.msra.mxu1 %v846_v58 }
  0x3e   :  { %789 = vmatprep.subr.bf16.mxu1 %v874_v37 }
  0x40   :  { %772 = vmatpush3.bf16.msra.mxu0 %v840_v52 }
  0x41   :  { %790 = vmatpush3.bf16.msra.mxu1 %v847_v10 }
  0x42   :  { %791 = vmatprep.subr.bf16.mxu1 %v874_v37 }
  0x45   :  { %792 = vmatpush3.bf16.msra.mxu1 %v848_v11 }
  0xf6   :  { %v711_v59 = vpop.f32.mrb[0].mxu0 }
  0xf7   :  { %v712_v61 = vpop.f32.mrb[1].mxu0  ;;  %v733_v62 = vpop.f32.mrb[0].mxu1 }
  0xf8   :  { %v713_v63 = vadd.f32 %v712_v61, %v711_v59  ;;  %v714_v0 = vpop.f32.mrb[2].mxu0  ;;  %v734_v1 = vpop.f32.mrb[1].mxu1 }
  0xf9   :  { %v715_v2 = vpop.f32.mrb[3].mxu0  ;;  %v735_v4 = vadd.f32 %v734_v1, %v733_v62  ;;  %v736_v5 = vpop.f32.mrb[2].mxu1 }
  0xfa   :  { %v356_v3 = vadd.f32 %v713_v63, %v643_v60  ;;  %v737_v6 = vpop.f32.mrb[3].mxu1 }
  0xfc   :  { %v396_v7 = vadd.f32 %v735_v4, %v356_v3 }
  0xfe   :  { %v401_v8 = vmax.f32 %v396_v7, 0.0 }
 0x100   :  { %v402_v9 = vpack.c.bf16 %v401_v8, %v401_v8 }
 0x102   :  { %774 = vmatmul.mubr.bf16.vlgmr.msra.gmra.mrb[4].mxu0 %v402_v9 }
 0x1d5   :  { %v508_v13 = vpop.f32.mrb[4].mxu0 }
 0x1d6   :  { %v509_v14 = vadd.f32 %v677_v12, %v508_v13  ;;  %v775_v15 = vpop.f32.mrb[5].mxu0 }
 0x1d7   :  { %v511_v16 = vpop.f32.mrb[6].mxu0 }
 0x1d8   :  { %v514_v17 = vmax.f32 %v509_v14, 0.0  ;;  %v776_v18 = vpop.f32.mrb[7].mxu0 }
 0x1da   :  { %v515_v19 = vpack.c.bf16 %v514_v17, %v514_v17 }
 0x1dc   :  { %794 = vmatmul.mubr.bf16.vlgmr.msra.gmra.mrb[4].mxu1 %v515_v19 }
 0x2af   :  { %v621_v21 = vpop.f32.mrb[4].mxu1 }
 0x2b0   :  { %v622_v22 = vadd.f32 %v686_v20, %v621_v21  ;;  %v795_v23 = vpop.f32.mrb[5].mxu1 }
 0x2b1   :  { %v624_v24 = vpop.f32.mrb[6].mxu1 }
 0x2b2   :  { %v627_v25 = vmax.f32 %v622_v22, 0.0  ;;  %v796_v26 = vpop.f32.mrb[7].mxu1 }
 0x2b4   :  { %628 = vst [vmem:[#allocation2] sm:$0x3] %v627_v25 }
 0x2b5   :  { %860 = shalt.err (!%p857_p4)
}
 0x2b6   :  { %s861_s6 = scalar_lea.hbm %s1110_s7, 32 }
 0x2b7   :  { %p862_p5 = scmp.ne.s32.totalorder %s1110_s7, %s861_s6  ;;  %p865_p6 = scmp.lt.u32.totalorder %s861_s6, %s1110_s7 }
 0x2b9   :  { %p867_p7 = pnand %p865_p6, %p862_p5 }
 0x2bb   :  { %870 = shalt.err (!%p867_p7)
}
 0x2bc   :  { %638 = dma.vmem_to_hbm [thread:$0]  %s636_s5, 32, %s1110_s7, [#allocation3]  }
 0x2bd   :  { %871 = dma.done.wait [#allocation3], 32  }
 0x2be   :  { %872 = vsyncadd [#allocation3], 4294967264 }
 0x2bf   :  { %642 = vsyncpa [#allocation3], 1 }

// kernel: encoder_forward.7
= control target key start
LH: loop header
LB: loop body
LE: loop exit
PB: predicated region body
PF: predicated region fallthrough
CT: control target
= control target key end

     0   :  { %s8412_s12 = smov 0   ;;  %s8414_s13 = smov 0   ;;  %s9748_s0 = inlined_call_operand.vmem [shape: bf16[8,10,10,128], index: 0, kind: input, shape index: {}]   ;;  %s9749_s1 = inlined_call_operand.vmem [shape: bf16[25,128,128], index: 1, kind: input, shape index: {}]   ;;  %s9750_s2 = inlined_call_operand.vmem [shape: f32[2,64,128], index: 2, kind: output, shape index: {0}]   ;;  %s9751_s3 = inlined_call_operand.vmem [shape: f32[2,2,128], index: 3, kind: output, shape index: {1}]  }
   0x1   :  { %s8416_s14 = smov 0  }
   0x2 LB: > { %s26_s15 = sadd.s32 1, %s8386_s13  ;;  %p6014_p0 = scmp.ge.s32.totalorder %s8390_s14, 1  ;;  %s8390_s14 = sphi %s8416_s14, %s14_s14   ;;  %s8386_s13 = sphi %s8414_s13, %s9757_s13   ;;  %s8382_s12 = sphi %s8412_s12, %s9756_s12  }
   0x3   : > { %p28_p1 = scmp.ge.s32.totalorder %s26_s15, 2  ;;  %p158_p2 = scmp.lt.s32.totalorder %s8390_s14, 3 }
   0x5   : > { %s9759_s15 = smov (%p28_p1, %s26_s15), 0  ;;  %p159_p3 = pnand %p6014_p0, %p158_p2 }
   0x6   : > { %v8128_v0 = vld [vmem:[%s9749_s1 + $0x40] sm:$0xff] (!%p159_p3)   ;;  %s6015_s18 = sshll.u32 (!%p159_p3), %s8382_s12, 2  ;;  %v8130_v2 = vld [vmem:[%s9749_s1 + $0x48] sm:$0xff] (!%p159_p3)   ;;  %v8132_v4 = vld [vmem:[%s9749_s1 + $0x50] sm:$0xff] (!%p159_p3)   ;;  %vm562_vm0 = vsmask.f32 (!%p159_p3), 3328 }
   0x7   : > { %162 = sbr.rel (%p159_p3) target bundleno = 672 (0x2a0), region = 28  ;;  %v8129_v1 = vld [vmem:[%s9749_s1 + $0x300] sm:$0xff] (!%p159_p3)   ;;  %7295 = vmatprep.subr.bf16.mxu1 (!%p159_p3), %v8128_v0  ;;  %v8131_v3 = vld [vmem:[%s9749_s1 + $0x308] sm:$0xff] (!%p159_p3)   ;;  %p193_p4 = scmp.lt.s32.totalorder (!%p159_p3), %s6015_s18, 7  ;;  %v8133_v5 = vld [vmem:[%s9749_s1 + $0x310] sm:$0xff] (!%p159_p3)   ;;  %vm1137_vm3 = vcmask (!%p159_p3), 1042432  }
   0x8   : > { %7583 = vmatprep.subr.bf16.mxu0 (!%p159_p3), %v8129_v1  ;;  %7296 = vmatpush3.bf16.msra.mxu1 (!%p159_p3), %v8128_v0  ;;  %v8134_v6 = vld [vmem:[%s9749_s1 + $0x58] sm:$0xff] (!%p159_p3)   ;;  %v8136_v8 = vld [vmem:[%s9749_s1 + $0x60] sm:$0xff] (!%p159_p3)   ;;  %v8138_v10 = vld [vmem:[%s9749_s1 + $0x68] sm:$0xff] (!%p159_p3)   ;;  %vm563_vm1 = vsmask.f32 (!%p159_p3), 7440  ;;  %vm1138_vm4 = vcmask (!%p159_p3), 1046532  }
   0x9   : > { %7584 = vmatpush3.bf16.msra.mxu0 (!%p159_p3), %v8129_v1  ;;  %7297 = vmatprep.subr.bf16.mxu1 (!%p159_p3), %v8130_v2  ;;  %v8135_v7 = vld [vmem:[%s9749_s1 + $0x318] sm:$0xff] (!%p159_p3)   ;;  %v8137_v9 = vld [vmem:[%s9749_s1 + $0x320] sm:$0xff] (!%p159_p3)   ;;  %v8139_v12 = vld [vmem:[%s9749_s1 + $0x328] sm:$0xff] (!%p159_p3)   ;;  %p200_p5 = scmp.lt.s32.totalorder (!%p159_p3), %s8382_s12, 1  ;;  %vm5850_vm6 = vcmask (!%p159_p3), 1040384  }
   0xa   : > { %7585 = vmatprep.subr.bf16.mxu0 (!%p159_p3), %v8131_v3  ;;  %v8140_v18 = vld [vmem:[%s9749_s1 + $0x70] sm:$0xff] (!%p159_p3)   ;;  %v8142_v27 = vld [vmem:[%s9749_s1 + $0x78] sm:$0xff] (!%p159_p3)   ;;  %vm8499_vm2 = vmor (!%p159_p3), %vm562_vm0, %vm563_vm1 }
   0xb   : > { %v8141_v23 = vld [vmem:[%s9749_s1 + $0x330] sm:$0xff] (!%p159_p3)   ;;  %v8143_v30 = vld [vmem:[%s9749_s1 + $0x338] sm:$0xff] (!%p159_p3)   ;;  %v8145_v50 = vld [vmem:[%s9749_s1] sm:$0xff] (!%p159_p3)  }
   0xc   : > { %7298 = vmatpush3.bf16.msra.mxu1 (!%p159_p3), %v8130_v2  ;;  %v8146_v55 = vld [vmem:[%s9749_s1 + $0x340] sm:$0xff] (!%p159_p3)   ;;  %v8148_v63 = vld [vmem:[%s9749_s1 + $0x8] sm:$0xff] (!%p159_p3)   ;;  %vm8687_vm5 = vmor (!%p159_p3), %vm1137_vm3, %vm1138_vm4 }
   0xd   : > { %7586 = vmatpush3.bf16.msra.mxu0 (!%p159_p3), %v8131_v3  ;;  %7299 = vmatprep.subr.bf16.mxu1 (!%p159_p3), %v8132_v4  ;;  %v8149_v3 = vld [vmem:[%s9749_s1 + $0x348] sm:$0xff] (!%p159_p3)  }
   0xe   : > { %s9761_s18 = smov (!%p193_p4, %s6015_s18), 7  ;;  %7587 = vmatprep.subr.bf16.mxu0 %v8133_v5  ;;  %s9763_s12 = smov (!%p200_p5, %s8382_s12), 1 }
   0xf   : > { %s8103_s6 = smul.u32 80, %s9761_s18  ;;  %s6019_s27 = sshll.u32 %s9763_s12, 1 }
  0x10   : > { %7300 = vmatpush3.bf16.msra.mxu1 %v8132_v4  ;;  %s213_s30 = scalar_lea.vmem %s9751_s3, %s6019_s27 }
  0x11   : > { %7588 = vmatpush3.bf16.msra.mxu0 %v8133_v5  ;;  %7301 = vmatprep.subr.bf16.mxu1 %v8134_v6  ;;  %s8469_s18 = scalar_lea.vmem %s9748_s0, %s8103_s6  ;;  %v8150_v5 = vld [vmem:[%s9749_s1 + $0x10] sm:$0xff]  }
  0x12   : > { %7589 = vmatprep.subr.bf16.mxu0 %v8135_v7  ;;  %v8144_v11 = vld [vmem:[%s8469_s18 + $0x50] ss:$8 sps:$4 sm:$0xff]   ;;  %v6452_v13 = vld [vmem:[%s8469_s18 + $0x8] sm:$0xf]  ;;  %v8477_v14 = vld [vmem:[%s8469_s18 + $0xc] sm:$0x1] }
  0x13   : > { %7311 = vmatprep.mubr.bf16.mxu1 %v8144_v11  ;;  %v6454_v15 = vld [vmem:[%s8469_s18 + $0x10] sm:$0xf]  ;;  %v2810_v16 = vshrl.u32 %v6452_v13, 16  ;;  %v2813_v17 = vshll.u32 %v6452_v13, 16  ;;  %v8484_v19 = vld [vmem:[%s8469_s18 + $0x14] sm:$0x1] }
  0x14   : > { %7302 = vmatpush3.bf16.msra.mxu1 %v8134_v6  ;;  %v2819_v20 = vshll.u32 %v8477_v14, 16  ;;  %v2824_v21 = vshrl.u32 %v6454_v15, 16  ;;  %v2827_v22 = vshll.u32 %v6454_v15, 16  ;;  %v2833_v26 = vshll.u32 %v8484_v19, 16  ;;  %v6456_v36 = vld [vmem:[%s8469_s18 + $0x18] sm:$0xf] }
  0x15   : > { %7590 = vmatpush3.bf16.msra.mxu0 %v8135_v7  ;;  %7303 = vmatprep.subr.bf16.mxu1 %v8136_v8  ;;  %v2812_v24 = vrot.slane %v2810_v16, 4  ;;  %v2815_v25 = vrot.slane %v2813_v17, 5  ;;  %v8505_v37 = vld [vmem:[%s8469_s18 + $0x1c] sm:$0x1]  ;;  %v6458_v39 = vld [vmem:[%s8469_s18 + $0x20] sm:$0xf] }
  0x16   : > { %7591 = vmatprep.subr.bf16.mxu0 %v8137_v9  ;;  %v2826_v28 = vrot.slane %v2824_v21, 4  ;;  %v2829_v29 = vrot.slane %v2827_v22, 5  ;;  %v2821_v32 = vrot.slane %v2819_v20, 5  ;;  %v2835_v35 = vrot.slane %v2833_v26, 5  ;;  %v8509_v40 = vld [vmem:[%s8469_s18 + $0x24] sm:$0x1] }
  0x17   : > { %v2816_v31 = vor.u32 %v2815_v25, %v2812_v24  ;;  %v2838_v41 = vshrl.u32 %v6456_v36, 16  ;;  %v2841_v43 = vshll.u32 %v6456_v36, 16  ;;  %v2847_v44 = vshll.u32 %v8505_v37, 16  ;;  %v8147_v56 = vld [vmem:[%s8469_s18 + $0x60] ss:$8 sps:$4 sm:$0xff]   ;;  %v8151_v6 = vld [vmem:[%s9749_s1 + $0x350] sm:$0xff]  }
  0x18   : > { %7304 = vmatpush3.bf16.msra.mxu1 %v8136_v8  ;;  %v2830_v34 = vor.u32 %v2829_v29, %v2826_v28  ;;  %v2852_v45 = vshrl.u32 %v6458_v39, 16  ;;  %v2855_v48 = vshll.u32 %v6458_v39, 16  ;;  %v2861_v49 = vshll.u32 %v8509_v40, 16  ;;  %v8158_v7 = vld [vmem:[%s8469_s18 + $0x70] ss:$8 sps:$4 sm:$0xff]   ;;  %v8154_v22 = vld [vmem:[%s9749_s1 + $0x20] sm:$0xff]  }
  0x19   : > { %7592 = vmatpush3.bf16.msra.mxu0 %v8137_v9  ;;  %7305 = vmatprep.subr.bf16.mxu1 %v8138_v10  ;;  %v2817_v38 = vrot.slane %v2816_v31, 4  ;;  %v2840_v47 = vrot.slane %v2838_v41, 4  ;;  %v2843_v52 = vrot.slane %v2841_v43, 5  ;;  %v2849_v59 = vrot.slane %v2847_v44, 5  ;;  %v8152_v8 = vld [vmem:[%s9749_s1 + $0x18] sm:$0xff]  }
  0x1a   : > { %7593 = vmatprep.subr.bf16.mxu0 %v8139_v12  ;;  %v2831_v42 = vrot.slane %v2830_v34, 4  ;;  %v2854_v53 = vrot.slane %v2852_v45, 4  ;;  %v2857_v57 = vrot.slane %v2855_v48, 5  ;;  %v2863_v60 = vrot.slane %v2861_v49, 5  ;;  %v6460_v9 = vld [vmem:[%s8469_s18 + $0x28] sm:$0xf] }
  0x1b   : > { %v2822_v46 = vsel %vm8499_vm2, %v2817_v38, %v2821_v32  ;;  %v2844_v58 = vor.u32 %v2843_v52, %v2840_v47  ;;  %v6462_v11 = vld [vmem:[%s8469_s18 + $0x30] sm:$0xf]  ;;  %v2866_v13 = vshrl.u32 %v6460_v9, 16  ;;  %v2869_v15 = vshll.u32 %v6460_v9, 16  ;;  %v8153_v21 = vld [vmem:[%s9749_s1 + $0x358] sm:$0xff]   ;;  %v8155_v38 = vld [vmem:[%s9749_s1 + $0x360] sm:$0xff]  }
  0x1c   : > { %7306 = vmatpush3.bf16.msra.mxu1 %v8138_v10  ;;  %v2836_v51 = vsel %vm8499_vm2, %v2831_v42, %v2835_v35  ;;  %v2858_v61 = vor.u32 %v2857_v57, %v2854_v53  ;;  %v8546_v10 = vld [vmem:[%s8469_s18 + $0x2c] sm:$0x1]  ;;  %v2880_v17 = vshrl.u32 %v6462_v11, 16  ;;  %v6464_v31 = vld [vmem:[%s8469_s18 + $0x38] sm:$0xf] }
  0x1d   : > { %7594 = vmatpush3.bf16.msra.mxu0 %v8139_v12  ;;  %7307 = vmatprep.subr.bf16.mxu1 %v8140_v18  ;;  %v6484_v54 = vcombine.low %v2822_v46, %v2836_v51  ;;  %v2845_v62 = vrot.slane %v2844_v58, 4  ;;  %v8550_v12 = vld [vmem:[%s8469_s18 + $0x34] sm:$0x1]  ;;  %v2875_v16 = vshll.u32 %v8546_v10, 16  ;;  %v2871_v24 = vrot.slane %v2869_v15, 5  ;;  %v8156_v48 = vld [vmem:[%s9749_s1 + $0x28] sm:$0xff]  }
  0x1e   : > { %7595 = vmatprep.subr.bf16.mxu0 %v8141_v23  ;;  %v2859_v0 = vrot.slane %v2858_v61, 4  ;;  %v2889_v20 = vshll.u32 %v8550_v12, 16  ;;  %v2882_v26 = vrot.slane %v2880_v17, 4  ;;  %v8563_v34 = vld [vmem:[%s8469_s18 + $0x3c] sm:$0x1]  ;;  %v2894_v41 = vshrl.u32 %v6464_v31, 16 }
  0x1f   : > { %7599 = vmatprep.mubr.bf16.mxu0 %v6484_v54  ;;  %v2850_v1 = vsel %vm8499_vm2, %v2845_v62, %v2849_v59  ;;  %v2877_v25 = vrot.slane %v2875_v16, 5  ;;  %v6466_v35 = vld [vmem:[%s8469_s18 + $0x40] sm:$0xf]  ;;  %v8567_v36 = vld [vmem:[%s8469_s18 + $0x44] sm:$0x1]  ;;  %v2897_v42 = vshll.u32 %v6464_v31, 16 }
  0x20   : > { %7308 = vmatpush3.bf16.msra.mxu1 %v8140_v18  ;;  %v2864_v2 = vsel %vm8499_vm2, %v2859_v0, %v2863_v60  ;;  %v2883_v18 = vshll.u32 %v6462_v11, 16  ;;  %v2891_v28 = vrot.slane %v2889_v20, 5  ;;  %v2903_v43 = vshll.u32 %v8563_v34, 16  ;;  %v8157_v57 = vld [vmem:[%s9749_s1 + $0x368] sm:$0xff]   ;;  %v8159_v58 = vld [vmem:[%s9749_s1 + $0x30] sm:$0xff]  }
  0x21   : > { %7596 = vmatpush3.bf16.msra.mxu0 %v8141_v23  ;;  %7309 = vmatprep.subr.bf16.mxu1 %v8142_v27  ;;  %v6485_v4 = vcombine.low %v2850_v1, %v2864_v2  ;;  %v2868_v23 = vrot.slane %v2866_v13, 4  ;;  %v2908_v45 = vshrl.u32 %v6466_v35, 16  ;;  %v2911_v46 = vshll.u32 %v6466_v35, 16  ;;  %v8164_v61 = vld [vmem:[%s8469_s18] ss:$8 sps:$4 sm:$0xff]   ;;  %v8160_v16 = vld [vmem:[%s9749_s1 + $0x370] sm:$0xff]  }
  0x22   : > { %7597 = vmatprep.subr.bf16.mxu0 %v8143_v30  ;;  %v2917_v47 = vshll.u32 %v8567_v36, 16  ;;  %v2899_v51 = vrot.slane %v2897_v42, 5  ;;  %v2905_v52 = vrot.slane %v2903_v43, 5  ;;  %v6497_v1 = vld [vmem:[%s8469_s18 + $0x5c] sm:$0x1] }
  0x23   : > { %v2872_v29 = vor.u32 %v2871_v24, %v2868_v23  ;;  %v2910_v54 = vrot.slane %v2908_v45, 4  ;;  %v6498_v2 = vld [vmem:[%s8469_s18 + $0x60] sm:$0xf]  ;;  %v6503_v35 = vld [vmem:[%s8469_s18 + $0x74] sm:$0x1] }
  0x24   : > { %7310 = vmatpush3.bf16.msra.mxu1 %v8142_v27  ;;  %v2885_v27 = vrot.slane %v2883_v18, 5  ;;  %v3109_v13 = vshll.u32 %v6498_v2, 16 }
  0x25   : > { %7598 = vmatpush3.bf16.msra.mxu0 %v8143_v30  ;;  %7319 = vmatprep.subr.bf16.mxu1 %v8145_v50  ;;  %v8161_v30 = vld [vmem:[%s8469_s18 + $0x80] ss:$8 sps:$4 sm:$0xff]   ;;  %v2873_v39 = vrot.slane %v2872_v29, 4  ;;  %v8163_v29 = vld [vmem:[%s9749_s1 + $0x378] sm:$0xff]  }
  0x26   : > { %7607 = vmatprep.subr.bf16.mxu0 %v8146_v55  ;;  %v2886_v32 = vor.u32 %v2885_v27, %v2882_v26  ;;  %v3111_v23 = vrot.slane %v3109_v13, 5  ;;  %v6500_v27 = vld [vmem:[%s8469_s18 + $0x68] sm:$0xf]  ;;  %v6505_v13 = vld [vmem:[%s8469_s18 + $0x7c] sm:$0x1] }
  0x27   : > { %7312 = vmatmul.mubr.bf16.vlgmr.msra.gmra.mrb[0].mxu1 %v8147_v56  ;;  %v2878_v49 = vsel %vm8499_vm2, %v2873_v39, %v2877_v25  ;;  %v2919_v56 = vrot.slane %v2917_v47, 5  ;;  %v3123_v39 = vshll.u32 %v6500_v27, 16 }
  0x28   : > { %7320 = vmatpush3.bf16.msra.mxu1 %v8145_v50  ;;  %7600 = vmatmul.mubr.bf16.vlgmr.msra.gmra.mrb[0].mxu0 %v6485_v4  ;;  %v2887_v44 = vrot.slane %v2886_v32, 4  ;;  %v2896_v50 = vrot.slane %v2894_v41, 4  ;;  %v6502_v32 = vld [vmem:[%s8469_s18 + $0x70] sm:$0xf] }
  0x29   : > { %7321 = vmatprep.subr.bf16.mxu1 %v8148_v63  ;;  %7608 = vmatpush3.bf16.msra.mxu0 %v8146_v55  ;;  %v2913_v55 = vrot.slane %v2911_v46, 5  ;;  %v3134_v43 = vshrl.u32 %v6502_v32, 16  ;;  %v3125_v47 = vrot.slane %v3123_v39, 5  ;;  %v8175_v39 = vld [vmem:[%s9749_s1 + $0x3a0] sm:$0xff]  }
  0x2a   : > { %7609 = vmatprep.subr.bf16.mxu0 %v8149_v3  ;;  %7315 = vmatprep.mubr.bf16.mxu1 %v8158_v7  ;;  %v2892_v53 = vsel %vm8499_vm2, %v2887_v44, %v2891_v28  ;;  %v2900_v60 = vor.u32 %v2899_v51, %v2896_v50  ;;  %v3101_v7 = vshll.u32 %v6497_v1, 16  ;;  %v6501_v28 = vld [vmem:[%s8469_s18 + $0x6c] sm:$0x1]  ;;  %v3137_v44 = vshll.u32 %v6502_v32, 16  ;;  %v8167_v50 = vld [vmem:[%s8469_s18 + $0x10] ss:$8 sps:$4 sm:$0xff]  }
  0x2b   : > { %v6486_v59 = vcombine.low %v2878_v49, %v2892_v53  ;;  %v2914_v62 = vor.u32 %v2913_v55, %v2910_v54  ;;  %v3129_v42 = vshll.u32 %v6501_v28, 16  ;;  %v3136_v51 = vrot.slane %v3134_v43, 4  ;;  %v8166_v54 = vld [vmem:[%s9749_s1 + $0x380] sm:$0xff]   ;;  %v8169_v1 = vld [vmem:[%s9749_s1 + $0x388] sm:$0xff]  }
  0x2c   : > { %7322 = vmatpush3.bf16.msra.mxu1 %v8148_v63  ;;  %v6496_v63 = vld [vmem:[%s8469_s18 + $0x58] sm:$0xf]  ;;  %v2901_v0 = vrot.slane %v2900_v60, 4  ;;  %v3103_v25 = vrot.slane %v3101_v7, 5  ;;  %v8178_v7 = vld [vmem:[%s8469_s18 + $0x20] ss:$8 sps:$4 sm:$0xff]  }
  0x2d   : > { %7323 = vmatprep.subr.bf16.mxu1 %v8150_v5  ;;  %7610 = vmatpush3.bf16.msra.mxu0 %v8149_v3  ;;  %v3092_v3 = vshrl.u32 %v6496_v63, 16  ;;  %v2915_v4 = vrot.slane %v2914_v62, 4  ;;  %v6509_v43 = vld [vmem:[%s8469_s18 + $0x8c] sm:$0x1] }
  0x2e   : > { %7611 = vmatprep.subr.bf16.mxu0 %v8151_v6  ;;  %7603 = vmatprep.mubr.bf16.mxu0 %v6486_v59  ;;  %v2906_v9 = vsel %vm8499_vm2, %v2901_v0, %v2905_v52  ;;  %v3139_v52 = vrot.slane %v3137_v44, 5  ;;  %v6510_v44 = vld [vmem:[%s8469_s18 + $0x90] sm:$0xf] }
  0x2f   : > { %7316 = vmatmul.mubr.bf16.gmra.mrb[4].mxu1 %v8161_v30  ;;  %v3094_v11 = vrot.slane %v3092_v3, 4  ;;  %v2920_v17 = vsel %vm8499_vm2, %v2915_v4, %v2919_v56  ;;  %v8165_v30 = vld [vmem:[%s9749_s1 + $0x80] sm:$0xff]   ;;  %v3131_v56 = vrot.slane %v3129_v42, 5  ;;  %v8170_v3 = vld [vmem:[%s9749_s1 + $0x90] sm:$0xff]   ;;  %v3383_v4 = vrot.slane %v8477_v14, 5 }
  0x30   : > { %7324 = vmatpush3.bf16.msra.mxu1 %v8150_v5  ;;  %7335 = vmatprep.mubr.bf16.mxu1 %v8164_v61  ;;  %v6499_v5 = vld [vmem:[%s8469_s18 + $0x64] sm:$0x1]  ;;  %v3140_v59 = vor.u32 %v3139_v52, %v3136_v51  ;;  %v8168_v61 = vld [vmem:[%s9749_s1 + $0x88] sm:$0xff]   ;;  %v3190_v51 = vshrl.u32 %v6510_v44, 16  ;;  %v3193_v52 = vshll.u32 %v6510_v44, 16 }
  0x31   : > { %7325 = vmatprep.subr.bf16.mxu1 %v8152_v8  ;;  %7612 = vmatpush3.bf16.msra.mxu0 %v8151_v6  ;;  %v3095_v6 = vshll.u32 %v6496_v63, 16  ;;  %v3115_v15 = vshll.u32 %v6499_v5, 16  ;;  %v3387_v5 = vrot.slane %v8484_v19, 5 }
  0x32   : > { %7613 = vmatprep.subr.bf16.mxu0 %v8153_v21  ;;  %v3141_v62 = vrot.slane %v3140_v59, 4 }
  0x33   : > { %v3097_v18 = vrot.slane %v3095_v6, 5  ;;  %v3117_v26 = vrot.slane %v3115_v15, 5  ;;  %v8171_v6 = vld [vmem:[%s9749_s1 + $0x390] sm:$0xff]   ;;  %v6506_v15 = vld [vmem:[%s8469_s18 + $0x80] sm:$0xf] }
  0x34   : > { %7326 = vmatpush3.bf16.msra.mxu1 %v8152_v8  ;;  %v3106_v8 = vshrl.u32 %v6498_v2, 16 }
  0x35   : > { %7327 = vmatprep.subr.bf16.mxu1 %v8154_v22  ;;  %7614 = vmatpush3.bf16.msra.mxu0 %v8153_v21  ;;  %v6487_v21 = vcombine.low %v2906_v9, %v2920_v17  ;;  %v3098_v24 = vor.u32 %v3097_v18, %v3094_v11  ;;  %v8172_v9 = vld [vmem:[%s9749_s1 + $0x98] sm:$0xff]  }
  0x36   : > { %7615 = vmatprep.subr.bf16.mxu0 %v8155_v38  ;;  %v3108_v20 = vrot.slane %v3106_v8, 4  ;;  %v3391_v8 = vrot.slane %v8505_v37, 5  ;;  %v6504_v11 = vld [vmem:[%s8469_s18 + $0x78] sm:$0xf] }
  0x37   : > { %7604 = vmatmul.mubr.bf16.gmra.mrb[4].mxu0 %v6487_v21  ;;  %v3099_v41 = vrot.slane %v3098_v24, 4  ;;  %v3148_v17 = vshrl.u32 %v6504_v11, 16  ;;  %v3151_v18 = vshll.u32 %v6504_v11, 16  ;;  %v3162_v21 = vshrl.u32 %v6506_v15, 16  ;;  %v8173_v24 = vld [vmem:[%s9749_s1 + $0x398] sm:$0xff]  }
  0x38   : > { %7328 = vmatpush3.bf16.msra.mxu1 %v8154_v22  ;;  %v8162_v22 = vld [vmem:[%s9749_s1 + $0x38] sm:$0xff]   ;;  %v3112_v31 = vor.u32 %v3111_v23, %v3108_v20  ;;  %v3157_v20 = vshll.u32 %v6505_v13, 16 }
  0x39   : > { %7329 = vmatprep.subr.bf16.mxu1 %v8156_v48  ;;  %7616 = vmatpush3.bf16.msra.mxu0 %v8155_v38  ;;  %v3120_v38 = vshrl.u32 %v6500_v27, 16  ;;  %v3104_v49 = vsel %vm8499_vm2, %v3099_v41, %v3103_v25  ;;  %v8174_v25 = vld [vmem:[%s9749_s1 + $0xa0] sm:$0xff]   ;;  %v3153_v27 = vrot.slane %v3151_v18, 5  ;;  %v8176_v41 = vld [vmem:[%s9749_s1 + $0xa8] sm:$0xff]  }
  0x3a   : > { %7617 = vmatprep.subr.bf16.mxu0 %v8157_v57  ;;  %v3113_v45 = vrot.slane %v3112_v31, 4  ;;  %v3159_v28 = vrot.slane %v3157_v20, 5 }
  0x3b   : > { %v3122_v46 = vrot.slane %v3120_v38, 4  ;;  %v6508_v38 = vld [vmem:[%s8469_s18 + $0x88] sm:$0xf] }
  0x3c   : > { %7330 = vmatpush3.bf16.msra.mxu1 %v8156_v48  ;;  %v3143_v48 = vshll.u32 %v6503_v35, 16  ;;  %v3118_v53 = vsel %vm8499_vm2, %v3113_v45, %v3117_v26  ;;  %v3150_v26 = vrot.slane %v3148_v17, 4  ;;  %v8181_v35 = vld [vmem:[%s8469_s18 + $0x30] ss:$8 sps:$4 sm:$0xff]   ;;  %v6511_v45 = vld [vmem:[%s8469_s18 + $0x94] sm:$0x1] }
  0x3d   : > { %7331 = vmatprep.subr.bf16.mxu1 %v8159_v58  ;;  %7618 = vmatpush3.bf16.msra.mxu0 %v8157_v57  ;;  %v3126_v55 = vor.u32 %v3125_v47, %v3122_v46  ;;  %v3176_v47 = vshrl.u32 %v6508_v38, 16 }
  0x3e   : > { %7619 = vmatprep.subr.bf16.mxu0 %v8160_v16  ;;  %v3145_v57 = vrot.slane %v3143_v48, 5  ;;  %v3154_v32 = vor.u32 %v3153_v27, %v3150_v26  ;;  %v3179_v48 = vshll.u32 %v6508_v38, 16  ;;  %v8180_v26 = vld [vmem:[%s9749_s1 + $0x3b0] sm:$0xff]  }
  0x3f   : > { %v3127_v60 = vrot.slane %v3126_v55, 4  ;;  %v3178_v55 = vrot.slane %v3176_v47, 4 }
  0x40   : > { %7332 = vmatpush3.bf16.msra.mxu1 %v8159_v58  ;;  %v6528_v58 = vcombine.low %v3104_v49, %v3118_v53  ;;  %v3146_v0 = vsel %vm8499_vm2, %v3141_v62, %v3145_v57  ;;  %v3155_v46 = vrot.slane %v3154_v32, 4  ;;  %v3185_v49 = vshll.u32 %v6509_v43, 16 }
  0x41   : > { %7333 = vmatprep.subr.bf16.mxu1 %v8162_v22  ;;  %7620 = vmatpush3.bf16.msra.mxu0 %v8160_v16  ;;  %v3132_v63 = vsel %vm8499_vm2, %v3127_v60, %v3131_v56  ;;  %v6507_v16 = vld [vmem:[%s8469_s18 + $0x84] sm:$0x1]  ;;  %v3199_v53 = vshll.u32 %v6511_v45, 16  ;;  %v3181_v56 = vrot.slane %v3179_v48, 5  ;;  %v3192_v60 = vrot.slane %v3190_v51, 4 }
  0x42   : > { %7621 = vmatprep.subr.bf16.mxu0 %v8163_v29  ;;  %7623 = vmatprep.mubr.bf16.mxu0 %v6528_v58  ;;  %v6529_v2 = vcombine.low %v3132_v63, %v3146_v0  ;;  %v3171_v23 = vshll.u32 %v6507_v16, 16  ;;  %v3187_v57 = vrot.slane %v3185_v49, 5  ;;  %v8177_v58 = vld [vmem:[%s9749_s1 + $0x3a8] sm:$0xff]   ;;  %v8709_v49 = vld [vmem:[%s8469_s18 + $0x14] sm:$0x1] }
  0x43   : > { %v3201_v62 = vrot.slane %v3199_v53, 5  ;;  %v3182_v0 = vor.u32 %v3181_v56, %v3178_v55  ;;  %v603_v55 = vshll.u32 %v8709_v49, 16 }
  0x44   : > { %7334 = vmatpush3.bf16.msra.mxu1 %v8162_v22  ;;  %v3165_v22 = vshll.u32 %v6506_v15, 16  ;;  %v3173_v31 = vrot.slane %v3171_v23, 5 }
  0x45   : > { %7343 = vmatprep.subr.bf16.mxu1 %v8165_v30  ;;  %7622 = vmatpush3.bf16.msra.mxu0 %v8163_v29  ;;  %v3164_v29 = vrot.slane %v3162_v21, 4  ;;  %v3183_v16 = vrot.slane %v3182_v0, 4  ;;  %v3395_v21 = vrot.slane %v8509_v40, 5  ;;  %v8186_v40 = vld [vmem:[%s9749_s1 + $0xc8] sm:$0xff]  }
  0x46   : > { %7631 = vmatprep.subr.bf16.mxu0 %v8166_v54 }
  0x47   : > { %7336 = vmatmul.mubr.bf16.vlgmr.msra.gmra.mrb[0].mxu1 %v8167_v50  ;;  %v3188_v27 = vsel %vm8499_vm2, %v3183_v16, %v3187_v57  ;;  %v8185_v16 = vld [vmem:[%s9749_s1 + $0x3c0] sm:$0xff]  }
  0x48   : > { %7344 = vmatpush3.bf16.msra.mxu1 %v8165_v30  ;;  %7624 = vmatmul.mubr.bf16.vlgmr.msra.gmra.mrb[0].mxu0 %v6529_v2  ;;  %v3167_v30 = vrot.slane %v3165_v22, 5  ;;  %v8673_v2 = vld [vmem:[%s8469_s18 + $0x4] sm:$0x1] }
  0x49   : > { %7345 = vmatprep.subr.bf16.mxu1 %v8168_v61  ;;  %7632 = vmatpush3.bf16.msra.mxu0 %v8166_v54  ;;  %v3160_v54 = vsel %vm8499_vm2, %v3155_v46, %v3159_v28  ;;  %v575_v15 = vshll.u32 %v8673_v2, 16  ;;  %v8182_v28 = vld [vmem:[%s9749_s1 + $0xb8] sm:$0xff]   ;;  %v550_v46 = vld [vmem:[%s8469_s18 + $0x10] sm:$0xf] }
  0x4a   : > { %7633 = vmatprep.subr.bf16.mxu0 %v8169_v1  ;;  %7339 = vmatprep.mubr.bf16.mxu1 %v8178_v7  ;;  %v3168_v42 = vor.u32 %v3167_v30, %v3164_v29  ;;  %v594_v51 = vshrl.u32 %v550_v46, 16 }
  0x4b   : > { %v577_v38 = vrot.slane %v575_v15, 5 }
  0x4c   : > { %7346 = vmatpush3.bf16.msra.mxu1 %v8168_v61  ;;  %v3169_v50 = vrot.slane %v3168_v42, 4  ;;  %v3195_v61 = vrot.slane %v3193_v52, 5  ;;  %v8183_v52 = vld [vmem:[%s9749_s1 + $0x3b8] sm:$0xff]  }
  0x4d   : > { %7347 = vmatprep.subr.bf16.mxu1 %v8170_v3  ;;  %7634 = vmatpush3.bf16.msra.mxu0 %v8169_v1  ;;  %v546_v1 = vld [vmem:[%s8469_s18] sm:$0xf] }
  0x4e   : > { %7635 = vmatprep.subr.bf16.mxu0 %v8171_v6  ;;  %v3174_v59 = vsel %vm8499_vm2, %v3169_v50, %v3173_v31  ;;  %v3196_v7 = vor.u32 %v3195_v61, %v3192_v60  ;;  %v566_v11 = vshrl.u32 %v546_v1, 16  ;;  %v569_v13 = vshll.u32 %v546_v1, 16  ;;  %v6540_v31 = vld [vmem:[%s8469_s18 + $0x8] sm:$0xe]  ;;  %v552_v50 = vld [vmem:[%s8469_s18 + $0x18] sm:$0xf] }
  0x4f   : > { %7340 = vmatmul.mubr.bf16.gmra.mrb[4].mxu1 %v8181_v35  ;;  %v6530_v63 = vcombine.low %v3160_v54, %v3174_v59  ;;  %v8720_v54 = vld [vmem:[%s8469_s18 + $0x1c] sm:$0x1]  ;;  %v608_v59 = vshrl.u32 %v552_v50, 16  ;;  %v6542_v60 = vld [vmem:[%s8469_s18 + $0x18] sm:$0xe]  ;;  %v611_v0 = vshll.u32 %v552_v50, 16 }
  0x50   : > { %7348 = vmatpush3.bf16.msra.mxu1 %v8170_v3  ;;  %v548_v3 = vld [vmem:[%s8469_s18 + $0x8] sm:$0xf]  ;;  %v3197_v22 = vrot.slane %v3196_v7, 4  ;;  %v568_v23 = vrot.slane %v566_v11, 4  ;;  %v6543_v61 = vld [vmem:[%s8469_s18 + $0x20] sm:$0xe] }
  0x51   : > { %7349 = vmatprep.subr.bf16.mxu1 %v8172_v9  ;;  %7636 = vmatpush3.bf16.msra.mxu0 %v8171_v6  ;;  %v8179_v6 = vld [vmem:[%s9749_s1 + $0xb0] sm:$0xff]   ;;  %v580_v17 = vshrl.u32 %v548_v3, 16  ;;  %v583_v18 = vshll.u32 %v548_v3, 16  ;;  %v610_v3 = vrot.slane %v608_v59, 4  ;;  %v6550_v7 = vrot.slane %v6542_v60, 9 }
  0x52   : > { %7637 = vmatprep.subr.bf16.mxu0 %v8173_v24  ;;  %7627 = vmatprep.mubr.bf16.mxu0 %v6530_v63  ;;  %v3202_v32 = vsel %vm8499_vm2, %v3197_v22, %v3201_v62  ;;  %v605_v63 = vrot.slane %v603_v55, 5  ;;  %v6551_v15 = vrot.slane %v6543_v61, 9  ;;  %v558_v61 = vld [vmem:[%s8469_s18 + $0x30] sm:$0xf] }
  0x53   : > { %v582_v29 = vrot.slane %v580_v17, 4  ;;  %v585_v30 = vrot.slane %v583_v18, 5  ;;  %v6531_v42 = vcombine.low %v3188_v27, %v3202_v32  ;;  %v3392_v17 = vsel %vm8687_vm5, %v6550_v7, %v3391_v8  ;;  %v556_v32 = vld [vmem:[%s8469_s18 + $0x28] sm:$0xf] }
  0x54   : > { %7350 = vmatpush3.bf16.msra.mxu1 %v8172_v9  ;;  %v8680_v9 = vld [vmem:[%s8469_s18 + $0xc] sm:$0x1]  ;;  %v3399_v18 = vrot.slane %v8546_v10, 5 }
  0x55   : > { %7351 = vmatprep.subr.bf16.mxu1 %v8174_v25  ;;  %7638 = vmatpush3.bf16.msra.mxu0 %v8173_v24  ;;  %v589_v20 = vshll.u32 %v8680_v9, 16  ;;  %v571_v24 = vrot.slane %v569_v13, 5  ;;  %v586_v43 = vor.u32 %v585_v30, %v582_v29  ;;  %v613_v13 = vrot.slane %v611_v0, 5  ;;  %v8187_v10 = vld [vmem:[%s9749_s1 + $0x3c8] sm:$0xff]   ;;  %v554_v29 = vld [vmem:[%s8469_s18 + $0x20] sm:$0xf] }
  0x56   : > { %7639 = vmatprep.subr.bf16.mxu0 %v8175_v39  ;;  %7628 = vmatmul.mubr.bf16.gmra.mrb[4].mxu0 %v6531_v42  ;;  %v3403_v30 = vrot.slane %v8550_v12, 5  ;;  %v636_v42 = vshrl.u32 %v556_v32, 16  ;;  %v3407_v12 = vrot.slane %v8563_v34, 5 }
  0x57   : > { %v572_v35 = vor.u32 %v571_v24, %v568_v23  ;;  %v591_v44 = vrot.slane %v589_v20, 5  ;;  %v587_v53 = vrot.slane %v586_v43, 4  ;;  %v614_v22 = vor.u32 %v613_v13, %v610_v3 }
  0x58   : > { %7352 = vmatpush3.bf16.msra.mxu1 %v8174_v25  ;;  %v3396_v24 = vsel %vm8687_vm5, %v6551_v15, %v3395_v21  ;;  %v639_v43 = vshll.u32 %v556_v32, 16  ;;  %v638_v50 = vrot.slane %v636_v42, 4  ;;  %v650_v3 = vshrl.u32 %v558_v61, 16 }
  0x59   : > { %7353 = vmatprep.subr.bf16.mxu1 %v8176_v41  ;;  %7640 = vmatpush3.bf16.msra.mxu0 %v8175_v39  ;;  %v6541_v39 = vld [vmem:[%s8469_s18 + $0x10] sm:$0xe]  ;;  %v573_v47 = vrot.slane %v572_v35, 4  ;;  %v592_v19 = vsel %vm8499_vm2, %v587_v53, %v591_v44  ;;  %v615_v8 = vrot.slane %v614_v22, 4  ;;  %v8765_v35 = vld [vmem:[%s8469_s18 + $0x2c] sm:$0x1] }
  0x5a   : > { %7641 = vmatprep.subr.bf16.mxu0 %v8177_v58  ;;  %v6549_v45 = vrot.slane %v6541_v39, 9  ;;  %v625_v39 = vshll.u32 %v554_v29, 16  ;;  %v645_v44 = vshll.u32 %v8765_v35, 16 }
  0x5b   : > { %v578_v56 = vsel %vm8499_vm2, %v573_v47, %v577_v38  ;;  %v622_v38 = vshrl.u32 %v554_v29, 16 }
  0x5c   : > { %7354 = vmatpush3.bf16.msra.mxu1 %v8176_v41  ;;  %v6548_v41 = vrot.slane %v6540_v31, 9  ;;  %v3388_v14 = vsel %vm8687_vm5, %v6549_v45, %v3387_v5  ;;  %v8184_v5 = vld [vmem:[%s9749_s1 + $0xc0] sm:$0xff]   ;;  %v6084_v1 = vcombine.low %v578_v56, %v592_v19  ;;  %v3411_v45 = vrot.slane %v8567_v36, 5  ;;  %v8783_v19 = vld [vmem:[%s8469_s18 + $0x34] sm:$0x1] }
  0x5d   : > { %7355 = vmatprep.subr.bf16.mxu1 %v8179_v6  ;;  %7642 = vmatpush3.bf16.msra.mxu0 %v8177_v58  ;;  %v596_v58 = vrot.slane %v594_v51, 4  ;;  %v8761_v31 = vld [vmem:[%s8469_s18 + $0x24] sm:$0x1]  ;;  %v624_v47 = vrot.slane %v622_v38, 4  ;;  %v6544_v51 = vld [vmem:[%s8469_s18 + $0x28] sm:$0xe] }
  0x5e   : > { %v3384_v48 = vsel %vm8687_vm5, %v6548_v41, %v3383_v4  ;;  %v597_v4 = vshll.u32 %v550_v46, 16  ;;  %7643 = vmatprep.subr.bf16.mxu0 %v8180_v26  ;;  %7359 = vmatprep.mubr.bf16.mxu1 %v6084_v1  ;;  %v631_v41 = vshll.u32 %v8761_v31, 16  ;;  %v8188_v46 = vld [vmem:[%s9749_s1 + $0xd0] sm:$0xff]   ;;  %v6552_v55 = vrot.slane %v6544_v51, 9  ;;  %v8792_v1 = vld [vmem:[%s8469_s18 + $0x3c] sm:$0x1] }
  0x5f   : > { %v6572_v57 = vcombine.low %v3384_v48, %v3388_v14  ;;  %v627_v48 = vrot.slane %v625_v39, 5  ;;  %v641_v14 = vrot.slane %v639_v43, 5  ;;  %v659_v13 = vshll.u32 %v8783_v19, 16  ;;  %v6096_v39 = vld [vmem:[%s8469_s18 + $0x50] sm:$0xf] }
  0x60   : > { %7356 = vmatpush3.bf16.msra.mxu1 %v8179_v6  ;;  %v599_v62 = vrot.slane %v597_v4, 5  ;;  %v617_v6 = vshll.u32 %v8720_v54, 16  ;;  %v633_v53 = vrot.slane %v631_v41, 5  ;;  %v6545_v4 = vld [vmem:[%s8469_s18 + $0x30] sm:$0xe]  ;;  %v3400_v60 = vsel %vm8687_vm5, %v6552_v55, %v3399_v18 }
  0x61   : > { %7357 = vmatprep.subr.bf16.mxu1 %v8182_v28  ;;  %7647 = vmatprep.mubr.bf16.mxu0 %v6572_v57  ;;  %v628_v56 = vor.u32 %v627_v48, %v624_v47  ;;  %v647_v57 = vrot.slane %v645_v44, 5  ;;  %v642_v59 = vor.u32 %v641_v14, %v638_v50  ;;  %v6097_v44 = vld [vmem:[%s8469_s18 + $0x54] sm:$0x1]  ;;  %v848_v47 = vshrl.u32 %v6096_v39, 16  ;;  %v8194_v48 = vld [vmem:[%s9749_s1 + $0xe8] sm:$0xff]  }
  0x62   : > { %7644 = vmatpush3.bf16.msra.mxu0 %v8180_v26  ;;  %v600_v11 = vor.u32 %v599_v62, %v596_v58  ;;  %v619_v23 = vrot.slane %v617_v6, 5  ;;  %v6573_v26 = vcombine.low %v3392_v17, %v3396_v24  ;;  %v6553_v58 = vrot.slane %v6545_v4, 9  ;;  %v8190_v62 = vld [vmem:[%s9749_s1 + $0xd8] sm:$0xff]   ;;  %v8193_v17 = vld [vmem:[%s9749_s1 + $0x3e0] sm:$0xff]   ;;  %v8196_v36 = vld [vmem:[%s9749_s1 + $0xf0] sm:$0xff]  }
  0x63   : > { %7645 = vmatprep.subr.bf16.mxu0 %v8183_v52  ;;  %v653_v6 = vshll.u32 %v558_v61, 16  ;;  %v643_v7 = vrot.slane %v642_v59, 4  ;;  %v6547_v24 = vld [vmem:[%s8469_s18 + $0x40] sm:$0xe]  ;;  %v6099_v51 = vld [vmem:[%s8469_s18 + $0x5c] sm:$0x1] }
  0x64   : > { %7358 = vmatpush3.bf16.msra.mxu1 %v8182_v28  ;;  %v601_v20 = vrot.slane %v600_v11, 4  ;;  %v620_v21 = vsel %vm8499_vm2, %v615_v8, %v619_v23  ;;  %v8189_v28 = vld [vmem:[%s9749_s1 + $0x3d0] sm:$0xff]   ;;  %v3404_v0 = vsel %vm8687_vm5, %v6553_v58, %v3403_v30  ;;  %v661_v8 = vrot.slane %v659_v13, 5 }
  0x65   : > { %7367 = vmatprep.subr.bf16.mxu1 %v8184_v5  ;;  %v6574_v11 = vcombine.low %v3400_v60, %v3404_v0  ;;  %v655_v22 = vrot.slane %v653_v6, 5  ;;  %v6555_v38 = vrot.slane %v6547_v24, 9  ;;  %v850_v55 = vrot.slane %v848_v47, 4  ;;  %v8201_v61 = vld [vmem:[%s8469_s18 + $0xa8] ss:$8 sps:$4 sm:$0xff]  }
  0x66   : > { %7646 = vmatpush3.bf16.msra.mxu0 %v8183_v52  ;;  %v606_v37 = vsel %vm8499_vm2, %v601_v20, %v605_v63  ;;  %v8191_v52 = vld [vmem:[%s9749_s1 + $0x3d8] sm:$0xff]   ;;  %v629_v63 = vrot.slane %v628_v56, 4  ;;  %v652_v20 = vrot.slane %v650_v3, 4  ;;  %v871_v60 = vshll.u32 %v6099_v51, 16 }
  0x67   : > { %7655 = vmatprep.subr.bf16.mxu0 %v8185_v16  ;;  %v6085_v27 = vcombine.low %v606_v37, %v620_v21  ;;  %v648_v37 = vsel %vm8499_vm2, %v643_v7, %v647_v57  ;;  %v8195_v21 = vld [vmem:[%s9749_s1 + $0x3e8] sm:$0xff]   ;;  %v3412_v50 = vsel %vm8687_vm5, %v6555_v38, %v3411_v45  ;;  %v8197_v45 = vld [vmem:[%s9749_s1 + $0x3f0] sm:$0xff]   ;;  %v8199_v3 = vld [vmem:[%s9749_s1 + $0x3f8] sm:$0xff]  }
  0x68   : > { %v634_v18 = vsel %vm8499_vm2, %v629_v63, %v633_v53  ;;  %v857_v53 = vshll.u32 %v6097_v44, 16  ;;  %v873_v6 = vrot.slane %v871_v60, 5  ;;  %v6100_v7 = vld [vmem:[%s8469_s18 + $0x60] sm:$0xf] }
  0x69   : > { %7648 = vmatmul.mubr.bf16.vlgmr.msra.gmra.mrb[0].mxu0 %v6573_v26  ;;  %7360 = vmatmul.mubr.bf16.vlgmr.msra.gmra.mrb[0].mxu1 %v6085_v27  ;;  %v8192_v26 = vld [vmem:[%s9749_s1 + $0xe0] sm:$0xff]   ;;  %v6086_v27 = vcombine.low %v634_v18, %v648_v37  ;;  %v876_v18 = vshrl.u32 %v6100_v7, 16 }
  0x6a   : > { %7656 = vmatpush3.bf16.msra.mxu0 %v8185_v16  ;;  %7368 = vmatpush3.bf16.msra.mxu1 %v8184_v5  ;;  %v560_v5 = vld [vmem:[%s8469_s18 + $0x38] sm:$0xf]  ;;  %v859_v63 = vrot.slane %v857_v53, 5  ;;  %v8204_v53 = vld [vmem:[%s9749_s1 + $0x108] sm:$0xff]  }
  0x6b   : > { %7657 = vmatprep.subr.bf16.mxu0 %v8187_v10  ;;  %7369 = vmatprep.subr.bf16.mxu1 %v8186_v40  ;;  %v664_v15 = vshrl.u32 %v560_v5, 16  ;;  %v6546_v16 = vld [vmem:[%s8469_s18 + $0x38] sm:$0xe]  ;;  %v667_v23 = vshll.u32 %v560_v5, 16 }
  0x6c   : > { %7651 = vmatprep.mubr.bf16.mxu0 %v6574_v11  ;;  %v6554_v30 = vrot.slane %v6546_v16, 9  ;;  %7363 = vmatprep.mubr.bf16.mxu1 %v6086_v27  ;;  %v6101_v11 = vld [vmem:[%s8469_s18 + $0x64] sm:$0x1]  ;;  %v6102_v16 = vld [vmem:[%s8469_s18 + $0x68] sm:$0xf] }
  0x6d   : > { %v669_v29 = vrot.slane %v667_v23, 5  ;;  %v890_v23 = vshrl.u32 %v6102_v16, 16  ;;  %v893_v24 = vshll.u32 %v6102_v16, 16  ;;  %v8203_v44 = vld [vmem:[%s8469_s18 + $0xb8] ss:$8 sps:$4 sm:$0xff]  }
  0x6e   : > { %7658 = vmatpush3.bf16.msra.mxu0 %v8187_v10  ;;  %7370 = vmatpush3.bf16.msra.mxu1 %v8186_v40  ;;  %v666_v10 = vrot.slane %v664_v15, 4  ;;  %v673_v40 = vshll.u32 %v8792_v1, 16  ;;  %v3408_v43 = vsel %vm8687_vm5, %v6554_v30, %v3407_v12  ;;  %v8215_v16 = vld [vmem:[%s8469_s18 + $0xc8] ss:$8 sps:$4 sm:$0xff]  }
  0x6f   : > { %7659 = vmatprep.subr.bf16.mxu0 %v8189_v28  ;;  %7371 = vmatprep.subr.bf16.mxu1 %v8188_v46  ;;  %v6575_v4 = vcombine.low %v3408_v43, %v3412_v50 }
  0x70   : > { %v675_v32 = vrot.slane %v673_v40, 5  ;;  %v670_v42 = vor.u32 %v669_v29, %v666_v10  ;;  %v8198_v40 = vld [vmem:[%s9749_s1 + $0xf8] sm:$0xff]   ;;  %v895_v29 = vrot.slane %v893_v24, 5  ;;  %v6111_v24 = vld [vmem:[%s8469_s18 + $0x8c] sm:$0x1] }
  0x71   : > { %7652 = vmatmul.mubr.bf16.gmra.mrb[4].mxu0 %v6575_v4  ;;  %v6104_v4 = vld [vmem:[%s8469_s18 + $0x70] sm:$0xf] }
  0x72   : > { %7660 = vmatpush3.bf16.msra.mxu0 %v8189_v28  ;;  %7372 = vmatpush3.bf16.msra.mxu1 %v8188_v46  ;;  %v656_v28 = vor.u32 %v655_v22, %v652_v20  ;;  %v6098_v46 = vld [vmem:[%s8469_s18 + $0x58] sm:$0xf]  ;;  %v671_v14 = vrot.slane %v670_v42, 4  ;;  %v879_v20 = vshll.u32 %v6100_v7, 16  ;;  %v885_v22 = vshll.u32 %v6101_v11, 16 }
  0x73   : > { %7661 = vmatprep.subr.bf16.mxu0 %v8191_v52  ;;  %7373 = vmatprep.subr.bf16.mxu1 %v8190_v62  ;;  %v862_v34 = vshrl.u32 %v6098_v46, 16  ;;  %v865_v58 = vshll.u32 %v6098_v46, 16 }
  0x74   : > { %v657_v41 = vrot.slane %v656_v28, 4  ;;  %v676_v59 = vsel %vm8499_vm2, %v671_v14, %v675_v32  ;;  %7671 = vmatprep.mubr.bf16.mxu0 %v8201_v61  ;;  %v881_v27 = vrot.slane %v879_v20, 5  ;;  %v892_v28 = vrot.slane %v890_v23, 4  ;;  %v6109_v20 = vld [vmem:[%s8469_s18 + $0x84] sm:$0x1] }
  0x75   : > { %v864_v57 = vrot.slane %v862_v34, 4  ;;  %v867_v0 = vrot.slane %v865_v58, 5  ;;  %v887_v32 = vrot.slane %v885_v22, 5  ;;  %v1142_v34 = vrot.slane %v8673_v2, 5  ;;  %v6110_v22 = vld [vmem:[%s8469_s18 + $0x88] sm:$0xf] }
  0x76   : > { %7662 = vmatpush3.bf16.msra.mxu0 %v8191_v52  ;;  %7374 = vmatpush3.bf16.msra.mxu1 %v8190_v62  ;;  %v851_v52 = vshll.u32 %v6096_v39, 16  ;;  %v662_v12 = vsel %vm8499_vm2, %v657_v41, %v661_v8  ;;  %v878_v8 = vrot.slane %v876_v18, 4  ;;  %v8200_v41 = vld [vmem:[%s9749_s1 + $0x100] sm:$0xff]   ;;  %v896_v43 = vor.u32 %v895_v29, %v892_v28  ;;  %v8216_v2 = vld [vmem:[%s9749_s1 + $0x430] sm:$0xff]  }
  0x77   : > { %7663 = vmatprep.subr.bf16.mxu0 %v8193_v17  ;;  %7375 = vmatprep.subr.bf16.mxu1 %v8192_v26  ;;  %v6087_v5 = vcombine.low %v662_v12, %v676_v59  ;;  %v868_v15 = vor.u32 %v867_v0, %v864_v57  ;;  %v8207_v12 = vld [vmem:[%s9749_s1 + $0x410] sm:$0xff]   ;;  %v1146_v14 = vrot.slane %v8680_v9, 5  ;;  %v6107_v57 = vld [vmem:[%s8469_s18 + $0x7c] sm:$0x1]  ;;  %v904_v58 = vshrl.u32 %v6104_v4, 16  ;;  %v8211_v28 = vld [vmem:[%s9749_s1 + $0x420] sm:$0xff]  }
  0x78   : > { %v853_v56 = vrot.slane %v851_v52, 5  ;;  %v882_v42 = vor.u32 %v881_v27, %v878_v8  ;;  %v897_v47 = vrot.slane %v896_v43, 4  ;;  %v927_v61 = vshll.u32 %v6107_v57, 16  ;;  %v6108_v18 = vld [vmem:[%s8469_s18 + $0x80] sm:$0xf] }
  0x79   : > { %7364 = vmatmul.mubr.bf16.gmra.mrb[4].mxu1 %v6087_v5  ;;  %v869_v37 = vrot.slane %v868_v15, 4  ;;  %v8206_v5 = vld [vmem:[%s9749_s1 + $0x110] sm:$0xff]   ;;  %v941_v8 = vshll.u32 %v6109_v20, 16  ;;  %v955_v27 = vshll.u32 %v6111_v24, 16  ;;  %v8225_v20 = vld [vmem:[%s9749_s1 + $0x448] sm:$0xff]  }
  0x7a   : > { %7664 = vmatpush3.bf16.msra.mxu0 %v8193_v17  ;;  %7376 = vmatpush3.bf16.msra.mxu1 %v8192_v26  ;;  %v854_v62 = vor.u32 %v853_v56, %v850_v55  ;;  %v6103_v17 = vld [vmem:[%s8469_s18 + $0x6c] sm:$0x1]  ;;  %v883_v46 = vrot.slane %v882_v42, 4  ;;  %v6105_v55 = vld [vmem:[%s8469_s18 + $0x74] sm:$0x1]  ;;  %v929_v11 = vrot.slane %v927_v61, 5 }
  0x7b   : > { %7665 = vmatprep.subr.bf16.mxu0 %v8195_v21  ;;  %7377 = vmatprep.subr.bf16.mxu1 %v8194_v48  ;;  %v899_v10 = vshll.u32 %v6103_v17, 16  ;;  %v874_v30 = vsel %vm8499_vm2, %v869_v37, %v873_v6  ;;  %v6106_v56 = vld [vmem:[%s8469_s18 + $0x78] sm:$0xf]  ;;  %v935_v37 = vshll.u32 %v6108_v18, 16  ;;  %v8224_v24 = vld [vmem:[%s9749_s1 + $0x148] sm:$0xff]  }
  0x7c   : > { %v855_v13 = vrot.slane %v854_v62, 4  ;;  %v888_v50 = vsel %vm8499_vm2, %v883_v46, %v887_v32  ;;  %v918_v59 = vshrl.u32 %v6106_v56, 16  ;;  %v921_v60 = vshll.u32 %v6106_v56, 16  ;;  %v8209_v62 = vld [vmem:[%s9749_s1 + $0x418] sm:$0xff]  }
  0x7d   : > { %v901_v38 = vrot.slane %v899_v10, 5  ;;  %v937_v32 = vrot.slane %v935_v37, 5  ;;  %v8217_v46 = vld [vmem:[%s8469_s18 + $0xd8] ss:$8 sps:$4 sm:$0xff]  }
  0x7e   : > { %7666 = vmatpush3.bf16.msra.mxu0 %v8195_v21  ;;  %7378 = vmatpush3.bf16.msra.mxu1 %v8194_v48  ;;  %v860_v26 = vsel %vm8499_vm2, %v855_v13, %v859_v63  ;;  %v8202_v21 = vld [vmem:[%s9749_s1 + $0x400] sm:$0xff]   ;;  %v8205_v48 = vld [vmem:[%s9749_s1 + $0x408] sm:$0xff]   ;;  %v906_v63 = vrot.slane %v904_v58, 4  ;;  %v920_v6 = vrot.slane %v918_v59, 4  ;;  %v923_v7 = vrot.slane %v921_v60, 5  ;;  %v8208_v13 = vld [vmem:[%s9749_s1 + $0x118] sm:$0xff]  }
  0x7f   : > { %7667 = vmatprep.subr.bf16.mxu0 %v8197_v45  ;;  %7379 = vmatprep.subr.bf16.mxu1 %v8196_v36  ;;  %v6128_v39 = vcombine.low %v860_v26, %v874_v30  ;;  %v902_v51 = vsel %vm8499_vm2, %v897_v47, %v901_v38  ;;  %v932_v26 = vshrl.u32 %v6108_v18, 16  ;;  %v943_v38 = vrot.slane %v941_v8, 5  ;;  %v8221_v60 = vld [vmem:[%s8469_s18 + $0xf8] ss:$8 sps:$4 sm:$0xff]  }
  0x80   : > { %v6129_v52 = vcombine.low %v888_v50, %v902_v51  ;;  %v924_v17 = vor.u32 %v923_v7, %v920_v6  ;;  %v1113_v51 = vld [vmem:[%s8469_s18] sm:$0xe]  ;;  %v1150_v58 = vrot.slane %v8709_v49, 5  ;;  %v1162_v18 = vrot.slane %v8765_v35, 5 }
  0x81   : > { %7383 = vmatprep.mubr.bf16.mxu1 %v6128_v39  ;;  %v934_v30 = vrot.slane %v932_v26, 4  ;;  %v8210_v39 = vld [vmem:[%s9749_s1 + $0x120] sm:$0xff]   ;;  %v1170_v35 = vrot.slane %v8792_v1, 5 }
  0x82   : > { %7668 = vmatpush3.bf16.msra.mxu0 %v8197_v45  ;;  %7380 = vmatpush3.bf16.msra.mxu1 %v8196_v36  ;;  %v907_v36 = vshll.u32 %v6104_v4, 16  ;;  %v913_v45 = vshll.u32 %v6105_v55, 16  ;;  %v925_v10 = vrot.slane %v924_v17, 4  ;;  %v6140_v55 = vrot.slane %v1113_v51, 9 }
  0x83   : > { %7669 = vmatprep.subr.bf16.mxu0 %v8199_v3  ;;  %7381 = vmatprep.subr.bf16.mxu1 %v8198_v40  ;;  %v1158_v17 = vrot.slane %v8761_v31, 5  ;;  %v1166_v31 = vrot.slane %v8783_v19, 5  ;;  %v1120_v19 = vld [vmem:[%s8469_s18 + $0x38] sm:$0xe] }
  0x84   : > { %v909_v0 = vrot.slane %v907_v36, 5 }
  0x86   : > { %7670 = vmatpush3.bf16.msra.mxu0 %v8199_v3  ;;  %7382 = vmatpush3.bf16.msra.mxu1 %v8198_v40  ;;  %v915_v3 = vrot.slane %v913_v45, 5  ;;  %v910_v15 = vor.u32 %v909_v0, %v906_v63  ;;  %v946_v40 = vshrl.u32 %v6110_v22, 16  ;;  %v1143_v45 = vsel %vm8687_vm5, %v6140_v55, %v1142_v34 }
  0x87   : > { %7679 = vmatprep.subr.bf16.mxu0 %v8202_v21  ;;  %7391 = vmatprep.subr.bf16.mxu1 %v8200_v41  ;;  %v1154_v0 = vrot.slane %v8720_v54, 5  ;;  %v8219_v54 = vld [vmem:[%s9749_s1 + $0x438] sm:$0xff]  }
  0x88   : > { %v911_v23 = vrot.slane %v910_v15, 4  ;;  %v948_v42 = vrot.slane %v946_v40, 4  ;;  %v8222_v15 = vld [vmem:[%s9749_s1 + $0x440] sm:$0xff]  }
  0x89   : > { %7672 = vmatmul.mubr.bf16.vlgmr.msra.gmra.mrb[0].mxu0 %v8203_v44  ;;  %7384 = vmatmul.mubr.bf16.vlgmr.msra.gmra.mrb[0].mxu1 %v6129_v52  ;;  %v957_v44 = vrot.slane %v955_v27, 5  ;;  %v1114_v52 = vld [vmem:[%s8469_s18 + $0x8] sm:$0xe]  ;;  %v8235_v40 = vld [vmem:[%s8469_s18 + $0x118] ss:$8 sps:$4 sm:$0xff]  }
  0x8a   : > { %7680 = vmatpush3.bf16.msra.mxu0 %v8202_v21  ;;  %7392 = vmatpush3.bf16.msra.mxu1 %v8200_v41  ;;  %v949_v21 = vshll.u32 %v6110_v22, 16  ;;  %v916_v29 = vsel %vm8499_vm2, %v911_v23, %v915_v3  ;;  %v930_v41 = vsel %vm8499_vm2, %v925_v10, %v929_v11  ;;  %v6141_v56 = vrot.slane %v1114_v52, 9  ;;  %v8218_v11 = vld [vmem:[%s9749_s1 + $0x138] sm:$0xff]   ;;  %v1117_v22 = vld [vmem:[%s8469_s18 + $0x20] sm:$0xe] }
  0x8b   : > { %7681 = vmatprep.subr.bf16.mxu0 %v8205_v48  ;;  %7393 = vmatprep.subr.bf16.mxu1 %v8204_v53  ;;  %v6130_v47 = vcombine.low %v916_v29, %v930_v41  ;;  %v1118_v23 = vld [vmem:[%s8469_s18 + $0x28] sm:$0xe]  ;;  %v6144_v26 = vrot.slane %v1117_v22, 9  ;;  %v6147_v29 = vrot.slane %v1120_v19, 9  ;;  %v8228_v41 = vld [vmem:[%s9749_s1 + $0x158] sm:$0xff]  }
  0x8c   : > { %7675 = vmatprep.mubr.bf16.mxu0 %v8215_v16  ;;  %v951_v43 = vrot.slane %v949_v21, 5  ;;  %v1147_v59 = vsel %vm8687_vm5, %v6141_v56, %v1146_v14  ;;  %v8214_v14 = vld [vmem:[%s9749_s1 + $0x130] sm:$0xff]   ;;  %v6145_v37 = vrot.slane %v1118_v23, 9  ;;  %v8231_v56 = vld [vmem:[%s9749_s1 + $0x460] sm:$0xff]  }
  0x8d   : > { %7387 = vmatprep.mubr.bf16.mxu1 %v6130_v47  ;;  %v6164_v49 = vcombine.low %v1143_v45, %v1147_v59  ;;  %v8223_v16 = vld [vmem:[%s8469_s18 + $0x108] ss:$8 sps:$4 sm:$0xff]   ;;  %v1159_v8 = vsel %vm8687_vm5, %v6144_v26, %v1158_v17  ;;  %v8989_v47 = vld [vmem:[%s8469_s18 + $0xac] sm:$0x1] }
  0x8e   : > { %7682 = vmatpush3.bf16.msra.mxu0 %v8205_v48  ;;  %7394 = vmatpush3.bf16.msra.mxu1 %v8204_v53  ;;  %v938_v48 = vor.u32 %v937_v32, %v934_v30  ;;  %v952_v50 = vor.u32 %v951_v43, %v948_v42  ;;  %v8212_v53 = vld [vmem:[%s9749_s1 + $0x128] sm:$0xff]   ;;  %v1163_v10 = vsel %vm8687_vm5, %v6145_v37, %v1162_v18  ;;  %v8227_v21 = vld [vmem:[%s9749_s1 + $0x450] sm:$0xff]   ;;  %v8229_v42 = vld [vmem:[%s9749_s1 + $0x458] sm:$0xff]  }
  0x8f   : > { %7683 = vmatprep.subr.bf16.mxu0 %v8207_v12  ;;  %7395 = vmatprep.subr.bf16.mxu1 %v8206_v5  ;;  %v6166_v27 = vcombine.low %v1159_v8, %v1163_v10  ;;  %v8226_v30 = vld [vmem:[%s9749_s1 + $0x150] sm:$0xff]  }
  0x90   : > { %v939_v4 = vrot.slane %v938_v48, 4  ;;  %v953_v57 = vrot.slane %v952_v50, 4  ;;  %v6658_v48 = vld [vmem:[%s8469_s18 + $0xb0] sm:$0xf]  ;;  %v8993_v50 = vld [vmem:[%s8469_s18 + $0xb4] sm:$0x1] }
  0x91   : > { %7676 = vmatmul.mubr.bf16.gmra.mrb[4].mxu0 %v8217_v46  ;;  %v6656_v46 = vld [vmem:[%s8469_s18 + $0xa8] sm:$0xf]  ;;  %v3953_v55 = vshll.u32 %v8993_v50, 16 }
  0x92   : > { %7684 = vmatpush3.bf16.msra.mxu0 %v8207_v12  ;;  %7396 = vmatpush3.bf16.msra.mxu1 %v8206_v5  ;;  %v8213_v12 = vld [vmem:[%s9749_s1 + $0x428] sm:$0xff]   ;;  %v944_v36 = vsel %vm8499_vm2, %v939_v4, %v943_v38  ;;  %v958_v61 = vsel %vm8499_vm2, %v953_v57, %v957_v44  ;;  %v1115_v5 = vld [vmem:[%s8469_s18 + $0x10] sm:$0xe]  ;;  %v1171_v38 = vsel %vm8687_vm5, %v6147_v29, %v1170_v35  ;;  %v3930_v51 = vshrl.u32 %v6656_v46, 16  ;;  %v8242_v29 = vld [vmem:[%s9749_s1 + $0x480] sm:$0xff]  }
  0x93   : > { %7685 = vmatprep.subr.bf16.mxu0 %v8209_v62  ;;  %7397 = vmatprep.subr.bf16.mxu1 %v8208_v13  ;;  %v6131_v63 = vcombine.low %v944_v36, %v958_v61  ;;  %v6142_v34 = vrot.slane %v1115_v5, 9  ;;  %v8240_v44 = vld [vmem:[%s8469_s18 + $0xa0] ss:$8 sps:$4 sm:$0xff]   ;;  %v3933_v52 = vshll.u32 %v6656_v46, 16  ;;  %v3947_v4 = vshll.u32 %v6658_v48, 16 }
  0x94   : > { %7695 = vmatprep.mubr.bf16.mxu0 %v8221_v60  ;;  %v3932_v57 = vrot.slane %v3930_v51, 4  ;;  %v8230_v36 = vld [vmem:[%s9749_s1 + $0x160] sm:$0xff]   ;;  %v6660_v5 = vld [vmem:[%s8469_s18 + $0xb8] sm:$0xf] }
  0x95   : > { %7388 = vmatmul.mubr.bf16.gmra.mrb[4].mxu1 %v6131_v63  ;;  %v1151_v3 = vsel %vm8687_vm5, %v6142_v34, %v1150_v58  ;;  %v3935_v58 = vrot.slane %v3933_v52, 5  ;;  %v3949_v59 = vrot.slane %v3947_v4, 5  ;;  %v6662_v63 = vld [vmem:[%s8469_s18 + $0xc0] sm:$0xf]  ;;  %v9009_v34 = vld [vmem:[%s8469_s18 + $0xc4] sm:$0x1] }
  0x96   : > { %7686 = vmatpush3.bf16.msra.mxu0 %v8209_v62  ;;  %7398 = vmatpush3.bf16.msra.mxu1 %v8208_v13  ;;  %v1116_v62 = vld [vmem:[%s8469_s18 + $0x18] sm:$0xe]  ;;  %v8220_v13 = vld [vmem:[%s9749_s1 + $0x140] sm:$0xff]   ;;  %v3981_v18 = vshll.u32 %v9009_v34, 16 }
  0x97   : > { %7687 = vmatprep.subr.bf16.mxu0 %v8211_v28  ;;  %7399 = vmatprep.subr.bf16.mxu1 %v8210_v39  ;;  %v6143_v9 = vrot.slane %v1116_v62, 9  ;;  %v3936_v60 = vor.u32 %v3935_v58, %v3932_v57  ;;  %v8244_v58 = vld [vmem:[%s9749_s1 + $0x188] sm:$0xff]  }
  0x98   : > { %7407 = vmatprep.mubr.bf16.mxu1 %v6164_v49  ;;  %v3955_v49 = vrot.slane %v3953_v55, 5  ;;  %v3983_v10 = vrot.slane %v3981_v18, 5 }
  0x99   : > { %v1155_v6 = vsel %vm8687_vm5, %v6143_v9, %v1154_v0  ;;  %v8233_v9 = vld [vmem:[%s9749_s1 + $0x468] sm:$0xff]   ;;  %v3937_v0 = vrot.slane %v3936_v60, 4 }
  0x9a   : > { %7688 = vmatpush3.bf16.msra.mxu0 %v8211_v28  ;;  %7400 = vmatpush3.bf16.msra.mxu1 %v8210_v39  ;;  %v6165_v7 = vcombine.low %v1151_v3, %v1155_v6  ;;  %v1119_v28 = vld [vmem:[%s8469_s18 + $0x30] sm:$0xe]  ;;  %v3961_v3 = vshll.u32 %v6660_v5, 16 }
  0x9b   : > { %7689 = vmatprep.subr.bf16.mxu0 %v8213_v12  ;;  %7401 = vmatprep.subr.bf16.mxu1 %v8212_v53  ;;  %v6146_v1 = vrot.slane %v1119_v28, 9  ;;  %v8237_v39 = vld [vmem:[%s8469_s18 + $0x128] ss:$8 sps:$4 sm:$0xff]   ;;  %v8238_v28 = vld [vmem:[%s9749_s1 + $0x178] sm:$0xff]  }
  0x9c   : > { %v3963_v17 = vrot.slane %v3961_v3, 5 }
  0x9d   : > { %v1167_v32 = vsel %vm8687_vm5, %v6146_v1, %v1166_v31  ;;  %v8234_v31 = vld [vmem:[%s9749_s1 + $0x170] sm:$0xff]  }
  0x9e   : > { %7690 = vmatpush3.bf16.msra.mxu0 %v8213_v12  ;;  %7402 = vmatpush3.bf16.msra.mxu1 %v8212_v53  ;;  %v6167_v43 = vcombine.low %v1167_v32, %v1171_v38  ;;  %v3939_v53 = vshll.u32 %v8989_v47, 16  ;;  %v3944_v12 = vshrl.u32 %v6658_v48, 16  ;;  %v6664_v32 = vld [vmem:[%s8469_s18 + $0xc8] sm:$0xf]  ;;  %v8243_v38 = vld [vmem:[%s8469_s18 + $0xb0] ss:$8 sps:$4 sm:$0xff]  }
  0x9f   : > { %7691 = vmatprep.subr.bf16.mxu0 %v8216_v2  ;;  %7403 = vmatprep.subr.bf16.mxu1 %v8214_v14  ;;  %v3986_v46 = vshrl.u32 %v6664_v32, 16  ;;  %v3989_v48 = vshll.u32 %v6664_v32, 16 }
  0xa0   : > { %v3946_v45 = vrot.slane %v3944_v12, 4  ;;  %v3941_v61 = vrot.slane %v3939_v53, 5  ;;  %v8254_v53 = vld [vmem:[%s8469_s18 + $0xc0] ss:$8 sps:$4 sm:$0xff]  }
  0xa1   : > { %v3988_v55 = vrot.slane %v3986_v46, 4 }
  0xa2   : > { %7692 = vmatpush3.bf16.msra.mxu0 %v8216_v2  ;;  %7404 = vmatpush3.bf16.msra.mxu1 %v8214_v14  ;;  %v3950_v62 = vor.u32 %v3949_v59, %v3946_v45  ;;  %v9005_v2 = vld [vmem:[%s8469_s18 + $0xbc] sm:$0x1]  ;;  %v3958_v14 = vshrl.u32 %v6660_v5, 16  ;;  %v6670_v5 = vld [vmem:[%s8469_s18 + $0xe0] sm:$0xf] }
  0xa3   : > { %7693 = vmatprep.subr.bf16.mxu0 %v8219_v54  ;;  %7405 = vmatprep.subr.bf16.mxu1 %v8218_v11 }
  0xa4   : > { %v3951_v6 = vrot.slane %v3950_v62, 4  ;;  %v8246_v62 = vld [vmem:[%s9749_s1 + $0x190] sm:$0xff]  }
  0xa6   : > { %7694 = vmatpush3.bf16.msra.mxu0 %v8219_v54  ;;  %7406 = vmatpush3.bf16.msra.mxu1 %v8218_v11  ;;  %v3972_v54 = vshrl.u32 %v6662_v63, 16  ;;  %v3975_v11 = vshll.u32 %v6662_v63, 16  ;;  %v3956_v22 = vsel %vm8499_vm2, %v3951_v6, %v3955_v49  ;;  %v9065_v49 = vld [vmem:[%s8469_s18 + $0xdc] sm:$0x1]  ;;  %v8247_v63 = vld [vmem:[%s9749_s1 + $0x490] sm:$0xff]  }
  0xa7   : > { %7703 = vmatprep.subr.bf16.mxu0 %v8222_v15  ;;  %7415 = vmatprep.subr.bf16.mxu1 %v8220_v13  ;;  %v4023_v6 = vshll.u32 %v9065_v49, 16 }
  0xa8   : > { %v3974_v23 = vrot.slane %v3972_v54, 4  ;;  %v4028_v54 = vshrl.u32 %v6670_v5, 16 }
  0xa9   : > { %7696 = vmatmul.mubr.bf16.vlgmr.msra.gmra.mrb[0].mxu0 %v8223_v16  ;;  %7408 = vmatmul.mubr.bf16.vlgmr.msra.gmra.mrb[0].mxu1 %v6165_v7  ;;  %v3967_v7 = vshll.u32 %v9005_v2, 16  ;;  %v3960_v16 = vrot.slane %v3958_v14, 4 }
  0xaa   : > { %7704 = vmatpush3.bf16.msra.mxu0 %v8222_v15  ;;  %7416 = vmatpush3.bf16.msra.mxu1 %v8220_v13  ;;  %v8232_v13 = vld [vmem:[%s9749_s1 + $0x168] sm:$0xff]   ;;  %v3942_v15 = vsel %vm8499_vm2, %v3937_v0, %v3941_v61  ;;  %v6668_v61 = vld [vmem:[%s8469_s18 + $0xd8] sm:$0xf]  ;;  %v9075_v0 = vld [vmem:[%s8469_s18 + $0xe4] sm:$0x1] }
  0xab   : > { %7705 = vmatprep.subr.bf16.mxu0 %v8225_v20  ;;  %7411 = vmatprep.mubr.bf16.mxu1 %v6166_v27  ;;  %v6688_v26 = vcombine.low %v3942_v15, %v3956_v22  ;;  %v3964_v37 = vor.u32 %v3963_v17, %v3960_v16  ;;  %v3969_v8 = vrot.slane %v3967_v7, 5  ;;  %v8239_v27 = vld [vmem:[%s9749_s1 + $0x478] sm:$0xff]   ;;  %v4014_v14 = vshrl.u32 %v6668_v61, 16 }
  0xac   : > { %7417 = vmatprep.subr.bf16.mxu1 %v8224_v24  ;;  %7699 = vmatprep.mubr.bf16.mxu0 %v8235_v40  ;;  %v4017_v3 = vshll.u32 %v6668_v61, 16  ;;  %v8257_v16 = vld [vmem:[%s8469_s18 + $0xd0] ss:$8 sps:$4 sm:$0xff]   ;;  %v6705_v61 = vld [vmem:[%s8469_s18 + $0x10c] sm:$0x1] }
  0xad   : > { %v3965_v40 = vrot.slane %v3964_v37, 4  ;;  %v4016_v17 = vrot.slane %v4014_v14, 4  ;;  %v8249_v22 = vld [vmem:[%s9749_s1 + $0x498] sm:$0xff]  }
  0xae   : > { %7706 = vmatpush3.bf16.msra.mxu0 %v8225_v20  ;;  %7418 = vmatpush3.bf16.msra.mxu1 %v8224_v24  ;;  %v8236_v20 = vld [vmem:[%s9749_s1 + $0x470] sm:$0xff]   ;;  %v3977_v24 = vrot.slane %v3975_v11, 5  ;;  %v4031_v11 = vshll.u32 %v6670_v5, 16  ;;  %v4019_v18 = vrot.slane %v4017_v3, 5  ;;  %v4249_v3 = vshll.u32 %v6705_v61, 16 }
  0xaf   : > { %7707 = vmatprep.subr.bf16.mxu0 %v8227_v21  ;;  %7419 = vmatprep.subr.bf16.mxu1 %v8226_v30  ;;  %v3970_v19 = vsel %vm8499_vm2, %v3965_v40, %v3969_v8  ;;  %v8260_v40 = vld [vmem:[%s8469_s18 + $0xf0] ss:$8 sps:$4 sm:$0xff]  }
  0xb0   : > { %v3978_v35 = vor.u32 %v3977_v24, %v3974_v23  ;;  %v4030_v24 = vrot.slane %v4028_v54, 4  ;;  %v6706_v5 = vld [vmem:[%s8469_s18 + $0x110] sm:$0xf] }
  0xb1   : > { %7700 = vmatmul.mubr.bf16.gmra.mrb[4].mxu0 %v8237_v39  ;;  %7412 = vmatmul.mubr.bf16.gmra.mrb[4].mxu1 %v6167_v43  ;;  %v6666_v43 = vld [vmem:[%s8469_s18 + $0xd0] sm:$0xf]  ;;  %v4254_v54 = vshrl.u32 %v6706_v5, 16 }
  0xb2   : > { %7708 = vmatpush3.bf16.msra.mxu0 %v8227_v21  ;;  %7420 = vmatpush3.bf16.msra.mxu1 %v8226_v30  ;;  %v3979_v21 = vrot.slane %v3978_v35, 4  ;;  %v8241_v30 = vld [vmem:[%s9749_s1 + $0x180] sm:$0xff]   ;;  %v4000_v52 = vshrl.u32 %v6666_v43, 16  ;;  %v4003_v12 = vshll.u32 %v6666_v43, 16  ;;  %v4020_v35 = vor.u32 %v4019_v18, %v4016_v17  ;;  %v8255_v18 = vld [vmem:[%s9749_s1 + $0x1b0] sm:$0xff]  }
  0xb3   : > { %7709 = vmatprep.subr.bf16.mxu0 %v8229_v42  ;;  %7431 = vmatprep.mubr.bf16.mxu1 %v8240_v44  ;;  %v9055_v44 = vld [vmem:[%s8469_s18 + $0xd4] sm:$0x1] }
  0xb4   : > { %7421 = vmatprep.subr.bf16.mxu1 %v8228_v41  ;;  %7719 = vmatprep.mubr.bf16.mxu0 %v6688_v26  ;;  %v3984_v1 = vsel %vm8499_vm2, %v3979_v21, %v3983_v10  ;;  %v4009_v4 = vshll.u32 %v9055_v44, 16  ;;  %v4002_v57 = vrot.slane %v4000_v52, 4  ;;  %v4005_v45 = vrot.slane %v4003_v12, 5  ;;  %v8248_v21 = vld [vmem:[%s9749_s1 + $0x198] sm:$0xff]   ;;  %v8250_v12 = vld [vmem:[%s9749_s1 + $0x1a0] sm:$0xff]  }
  0xb5   : > { %v6689_v39 = vcombine.low %v3970_v19, %v3984_v1  ;;  %v4033_v26 = vrot.slane %v4031_v11, 5  ;;  %v6701_v19 = vld [vmem:[%s8469_s18 + $0xfc] sm:$0x1]  ;;  %v4257_v11 = vshll.u32 %v6706_v5, 16 }
  0xb6   : > { %7710 = vmatpush3.bf16.msra.mxu0 %v8229_v42  ;;  %7422 = vmatpush3.bf16.msra.mxu1 %v8228_v41  ;;  %v8245_v41 = vld [vmem:[%s9749_s1 + $0x488] sm:$0xff]   ;;  %v4011_v59 = vrot.slane %v4009_v4, 5  ;;  %v4221_v43 = vshll.u32 %v6701_v19, 16 }
  0xb7   : > { %7711 = vmatprep.subr.bf16.mxu0 %v8231_v56  ;;  %7423 = vmatprep.subr.bf16.mxu1 %v8230_v36  ;;  %v9051_v42 = vld [vmem:[%s8469_s18 + $0xcc] sm:$0x1]  ;;  %v4034_v10 = vor.u32 %v4033_v26, %v4030_v24  ;;  %v4256_v24 = vrot.slane %v4254_v54, 4  ;;  %v4259_v26 = vrot.slane %v4257_v11, 5  ;;  %v6714_v54 = vld [vmem:[%s8469_s18 + $0x130] sm:$0xf] }
  0xb8   : > { %v3995_v51 = vshll.u32 %v9051_v42, 16  ;;  %v6715_v11 = vld [vmem:[%s8469_s18 + $0x134] sm:$0x1] }
  0xb9   : > { %v4035_v1 = vrot.slane %v4034_v10, 4 }
  0xba   : > { %7712 = vmatpush3.bf16.msra.mxu0 %v8231_v56  ;;  %7424 = vmatpush3.bf16.msra.mxu1 %v8230_v36  ;;  %v3991_v56 = vrot.slane %v3989_v48, 5  ;;  %v3997_v36 = vrot.slane %v3995_v51, 5 }
  0xbb   : > { %7713 = vmatprep.subr.bf16.mxu0 %v8233_v9  ;;  %7425 = vmatprep.subr.bf16.mxu1 %v8232_v13 }
  0xbc   : > { %v3992_v60 = vor.u32 %v3991_v56, %v3988_v55 }
  0xbe   : > { %7714 = vmatpush3.bf16.msra.mxu0 %v8233_v9  ;;  %7426 = vmatpush3.bf16.msra.mxu1 %v8232_v13  ;;  %v4006_v9 = vor.u32 %v4005_v45, %v4002_v57  ;;  %v3993_v7 = vrot.slane %v3992_v60, 4  ;;  %v4037_v13 = vshll.u32 %v9075_v0, 16  ;;  %v8253_v57 = vld [vmem:[%s9749_s1 + $0x4a8] sm:$0xff]  }
  0xbf   : > { %7715 = vmatprep.subr.bf16.mxu0 %v8236_v20  ;;  %7427 = vmatprep.subr.bf16.mxu1 %v8234_v31  ;;  %v6704_v60 = vld [vmem:[%s8469_s18 + $0x108] sm:$0xf] }
  0xc0   : > { %v4007_v15 = vrot.slane %v4006_v9, 4  ;;  %v3998_v23 = vsel %vm8499_vm2, %v3993_v7, %v3997_v36  ;;  %v4039_v37 = vrot.slane %v4037_v13, 5  ;;  %v4240_v9 = vshrl.u32 %v6704_v60, 16 }
  0xc1   : > { %v4243_v14 = vshll.u32 %v6704_v60, 16  ;;  %v8267_v60 = vld [vmem:[%s9749_s1 + $0x4d0] sm:$0xff]  }
  0xc2   : > { %7716 = vmatpush3.bf16.msra.mxu0 %v8236_v20  ;;  %7428 = vmatpush3.bf16.msra.mxu1 %v8234_v31  ;;  %v4025_v20 = vrot.slane %v4023_v6, 5  ;;  %v4012_v31 = vsel %vm8499_vm2, %v4007_v15, %v4011_v59  ;;  %v4040_v48 = vsel %vm8499_vm2, %v4035_v1, %v4039_v37  ;;  %v8252_v6 = vld [vmem:[%s9749_s1 + $0x1a8] sm:$0xff]   ;;  %v4242_v15 = vrot.slane %v4240_v9, 4 }
  0xc3   : > { %7717 = vmatprep.subr.bf16.mxu0 %v8239_v27  ;;  %7429 = vmatprep.subr.bf16.mxu1 %v8238_v28  ;;  %v6690_v8 = vcombine.low %v3998_v23, %v4012_v31  ;;  %v4251_v23 = vrot.slane %v4249_v3, 5  ;;  %v8266_v3 = vld [vmem:[%s9749_s1 + $0x1d0] sm:$0xff]  }
  0xc6   : > { %7718 = vmatpush3.bf16.msra.mxu0 %v8239_v27  ;;  %7430 = vmatpush3.bf16.msra.mxu1 %v8238_v28  ;;  %v4021_v27 = vrot.slane %v4020_v35, 4  ;;  %v6700_v28 = vld [vmem:[%s8469_s18 + $0xf8] sm:$0xf] }
  0xc7   : > { %7727 = vmatprep.subr.bf16.mxu0 %v8242_v29  ;;  %7439 = vmatprep.subr.bf16.mxu1 %v8241_v30  ;;  %v4212_v32 = vshrl.u32 %v6700_v28, 16 }
  0xc9   : > { %7720 = vmatmul.mubr.bf16.vlgmr.msra.gmra.mrb[0].mxu0 %v6689_v39  ;;  %7432 = vmatmul.mubr.bf16.vlgmr.msra.gmra.mrb[0].mxu1 %v8243_v38  ;;  %v8251_v38 = vld [vmem:[%s9749_s1 + $0x4a0] sm:$0xff]   ;;  %v4026_v39 = vsel %vm8499_vm2, %v4021_v27, %v4025_v20  ;;  %v4214_v51 = vrot.slane %v4212_v32, 4  ;;  %v8256_v20 = vld [vmem:[%s9749_s1 + $0x4b0] sm:$0xff]  }
  0xca   : > { %7728 = vmatpush3.bf16.msra.mxu0 %v8242_v29  ;;  %7440 = vmatpush3.bf16.msra.mxu1 %v8241_v30  ;;  %v6702_v29 = vld [vmem:[%s8469_s18 + $0x100] sm:$0xf]  ;;  %v6703_v30 = vld [vmem:[%s8469_s18 + $0x104] sm:$0x1]  ;;  %v6691_v4 = vcombine.low %v4026_v39, %v4040_v48  ;;  %v6709_v48 = vld [vmem:[%s8469_s18 + $0x11c] sm:$0x1] }
  0xcb   : > { %7729 = vmatprep.subr.bf16.mxu0 %v8245_v41  ;;  %7435 = vmatprep.mubr.bf16.mxu1 %v8254_v53  ;;  %v4226_v46 = vshrl.u32 %v6702_v29, 16  ;;  %v4229_v52 = vshll.u32 %v6702_v29, 16  ;;  %v4235_v53 = vshll.u32 %v6703_v30, 16  ;;  %v8262_v29 = vld [vmem:[%s9749_s1 + $0x4c0] sm:$0xff]   ;;  %v4503_v30 = vrot.slane %v8989_v47, 5 }
  0xcc   : > { %7441 = vmatprep.subr.bf16.mxu1 %v8244_v58  ;;  %7723 = vmatprep.mubr.bf16.mxu0 %v6690_v8  ;;  %v4260_v8 = vor.u32 %v4259_v26, %v4256_v24  ;;  %v8261_v32 = vld [vmem:[%s9749_s1 + $0x1c0] sm:$0xff]   ;;  %v4319_v24 = vshll.u32 %v6715_v11, 16 }
  0xcd   : > { %v4228_v56 = vrot.slane %v4226_v46, 4  ;;  %v4231_v36 = vrot.slane %v4229_v52, 5  ;;  %v4237_v45 = vrot.slane %v4235_v53, 5  ;;  %v8263_v39 = vld [vmem:[%s8469_s18 + $0x100] ss:$8 sps:$4 sm:$0xff]  }
  0xce   : > { %7730 = vmatpush3.bf16.msra.mxu0 %v8245_v41  ;;  %7442 = vmatpush3.bf16.msra.mxu1 %v8244_v58  ;;  %v4215_v41 = vshll.u32 %v6700_v28, 16  ;;  %v4223_v58 = vrot.slane %v4221_v43, 5  ;;  %v4261_v27 = vrot.slane %v4260_v8, 4  ;;  %v8258_v28 = vld [vmem:[%s9749_s1 + $0x1b8] sm:$0xff]   ;;  %v8265_v43 = vld [vmem:[%s9749_s1 + $0x4c8] sm:$0xff]  }
  0xcf   : > { %7731 = vmatprep.subr.bf16.mxu0 %v8247_v63  ;;  %7443 = vmatprep.subr.bf16.mxu1 %v8246_v62  ;;  %v6708_v46 = vld [vmem:[%s8469_s18 + $0x118] sm:$0xf]  ;;  %v6711_v52 = vld [vmem:[%s8469_s18 + $0x124] sm:$0x1] }
  0xd0   : > { %v4217_v55 = vrot.slane %v4215_v41, 5  ;;  %v4268_v53 = vshrl.u32 %v6708_v46, 16  ;;  %v8269_v8 = vld [vmem:[%s9749_s1 + $0x4d8] sm:$0xff]  }
  0xd1   : > { %7436 = vmatmul.mubr.bf16.gmra.mrb[4].mxu1 %v8257_v16  ;;  %7724 = vmatmul.mubr.bf16.gmra.mrb[4].mxu0 %v6691_v4  ;;  %v4245_v16 = vrot.slane %v4243_v14, 5  ;;  %v4277_v4 = vshll.u32 %v6709_v48, 16  ;;  %v6712_v14 = vld [vmem:[%s8469_s18 + $0x128] sm:$0xf] }
  0xd2   : > { %7732 = vmatpush3.bf16.msra.mxu0 %v8247_v63  ;;  %7444 = vmatpush3.bf16.msra.mxu1 %v8246_v62  ;;  %v4218_v59 = vor.u32 %v4217_v55, %v4214_v51  ;;  %v4232_v62 = vor.u32 %v4231_v36, %v4228_v56  ;;  %v6707_v63 = vld [vmem:[%s8469_s18 + $0x114] sm:$0x1]  ;;  %v6710_v51 = vld [vmem:[%s8469_s18 + $0x120] sm:$0xf]  ;;  %v4270_v36 = vrot.slane %v4268_v53, 4 }
  0xd3   : > { %7733 = vmatprep.subr.bf16.mxu0 %v8249_v22  ;;  %7455 = vmatprep.mubr.bf16.mxu1 %v8260_v40  ;;  %v4263_v17 = vshll.u32 %v6707_v63, 16  ;;  %v4246_v31 = vor.u32 %v4245_v16, %v4242_v15  ;;  %v4282_v55 = vshrl.u32 %v6710_v51, 16  ;;  %v4285_v56 = vshll.u32 %v6710_v51, 16 }
  0xd4   : > { %7445 = vmatprep.subr.bf16.mxu1 %v8248_v21  ;;  %v4219_v7 = vrot.slane %v4218_v59, 4  ;;  %v4233_v13 = vrot.slane %v4232_v62, 4  ;;  %v8264_v59 = vld [vmem:[%s9749_s1 + $0x1c8] sm:$0xff]   ;;  %v4279_v63 = vrot.slane %v4277_v4, 5  ;;  %v4296_v15 = vshrl.u32 %v6712_v14, 16 }
  0xd5   : > { %v4247_v10 = vrot.slane %v4246_v31, 4  ;;  %v4265_v40 = vrot.slane %v4263_v17, 5  ;;  %v4284_v61 = vrot.slane %v4282_v55, 4  ;;  %v4287_v5 = vrot.slane %v4285_v56, 5  ;;  %v8271_v55 = vld [vmem:[%s9749_s1 + $0x4e0] sm:$0xff]  }
  0xd6   : > { %7734 = vmatpush3.bf16.msra.mxu0 %v8249_v22  ;;  %7446 = vmatpush3.bf16.msra.mxu1 %v8248_v21  ;;  %v4224_v22 = vsel %vm8499_vm2, %v4219_v7, %v4223_v58  ;;  %v4238_v37 = vsel %vm8499_vm2, %v4233_v13, %v4237_v45  ;;  %v8259_v21 = vld [vmem:[%s9749_s1 + $0x4b8] sm:$0xff]   ;;  %v6713_v7 = vld [vmem:[%s8469_s18 + $0x12c] sm:$0x1]  ;;  %v4299_v16 = vshll.u32 %v6712_v14, 16 }
  0xd7   : > { %7735 = vmatprep.subr.bf16.mxu0 %v8251_v38  ;;  %7447 = vmatprep.subr.bf16.mxu1 %v8250_v12  ;;  %v6732_v35 = vcombine.low %v4224_v22, %v4238_v37  ;;  %v4252_v19 = vsel %vm8499_vm2, %v4247_v10, %v4251_v23  ;;  %v4266_v1 = vsel %vm8499_vm2, %v4261_v27, %v4265_v40  ;;  %v8274_v58 = vld [vmem:[%s8469_s18 + $0x110] ss:$8 sps:$4 sm:$0xff]   ;;  %v4305_v17 = vshll.u32 %v6713_v7, 16 }
  0xd8   : > { %v6733_v41 = vcombine.low %v4252_v19, %v4266_v1  ;;  %v4310_v22 = vshrl.u32 %v6714_v54, 16  ;;  %v4313_v23 = vshll.u32 %v6714_v54, 16  ;;  %v4298_v37 = vrot.slane %v4296_v15, 4  ;;  %v6248_v1 = vld [vmem:[%s8469_s18 + $0xa0] sm:$0xf] }
  0xd9   : > { %7743 = vmatprep.mubr.bf16.mxu0 %v6732_v35  ;;  %v4301_v31 = vrot.slane %v4299_v16, 5  ;;  %v4307_v35 = vrot.slane %v4305_v17, 5  ;;  %v4321_v27 = vrot.slane %v4319_v24, 5  ;;  %v1692_v48 = vshll.u32 %v6248_v1, 16  ;;  %v9208_v17 = vld [vmem:[%s8469_s18 + $0xb4] sm:$0x1] }
  0xda   : > { %7736 = vmatpush3.bf16.msra.mxu0 %v8251_v38  ;;  %7448 = vmatpush3.bf16.msra.mxu1 %v8250_v12  ;;  %v4507_v38 = vrot.slane %v8993_v50, 5  ;;  %v4271_v12 = vshll.u32 %v6708_v46, 16  ;;  %v4312_v40 = vrot.slane %v4310_v22, 4  ;;  %v1689_v46 = vshrl.u32 %v6248_v1, 16  ;;  %v8272_v22 = vld [vmem:[%s9749_s1 + $0x1e8] sm:$0xff]  }
  0xdb   : > { %7737 = vmatprep.subr.bf16.mxu0 %v8253_v57  ;;  %7449 = vmatprep.subr.bf16.mxu1 %v8252_v6  ;;  %v4302_v19 = vor.u32 %v4301_v31, %v4298_v37  ;;  %v9219_v24 = vld [vmem:[%s8469_s18 + $0xbc] sm:$0x1] }
  0xdc   : > { %v4273_v45 = vrot.slane %v4271_v12, 5 }
  0xde   : > { %7738 = vmatpush3.bf16.msra.mxu0 %v8253_v57  ;;  %7450 = vmatpush3.bf16.msra.mxu1 %v8252_v6  ;;  %v4291_v57 = vshll.u32 %v6711_v52, 16  ;;  %v4274_v62 = vor.u32 %v4273_v45, %v4270_v36  ;;  %v4288_v6 = vor.u32 %v4287_v5, %v4284_v61  ;;  %v4303_v52 = vrot.slane %v4302_v19, 4  ;;  %v8270_v36 = vld [vmem:[%s9749_s1 + $0x1e0] sm:$0xff]   ;;  %v6744_v61 = vld [vmem:[%s8469_s18 + $0xa8] sm:$0xe] }
  0xdf   : > { %7739 = vmatprep.subr.bf16.mxu0 %v8256_v20  ;;  %7451 = vmatprep.subr.bf16.mxu1 %v8255_v18  ;;  %v4511_v5 = vrot.slane %v9005_v2, 5 }
  0xe0   : > { %v4293_v9 = vrot.slane %v4291_v57, 5  ;;  %v4275_v13 = vrot.slane %v4274_v62, 4  ;;  %v1691_v57 = vrot.slane %v1689_v46, 4  ;;  %v4308_v45 = vsel %vm8499_vm2, %v4303_v52, %v4307_v35  ;;  %v8273_v62 = vld [vmem:[%s9749_s1 + $0x4e8] sm:$0xff]  }
  0xe2   : > { %7740 = vmatpush3.bf16.msra.mxu0 %v8256_v20  ;;  %7452 = vmatpush3.bf16.msra.mxu1 %v8255_v18  ;;  %v4289_v18 = vrot.slane %v4288_v6, 4  ;;  %v8277_v20 = vld [vmem:[%s8469_s18 + $0x120] ss:$8 sps:$4 sm:$0xff]   ;;  %v4280_v26 = vsel %vm8499_vm2, %v4275_v13, %v4279_v63  ;;  %v6752_v6 = vrot.slane %v6744_v61, 9  ;;  %v6252_v13 = vld [vmem:[%s8469_s18 + $0xb0] sm:$0xf] }
  0xe3   : > { %7741 = vmatprep.subr.bf16.mxu0 %v8259_v21  ;;  %7453 = vmatprep.subr.bf16.mxu1 %v8258_v28  ;;  %v4523_v61 = vrot.slane %v9055_v44, 5 }
  0xe4   : > { %v4294_v10 = vsel %vm8499_vm2, %v4289_v18, %v4293_v9  ;;  %v4504_v16 = vsel %vm8687_vm5, %v6752_v6, %v4503_v30  ;;  %v6254_v18 = vld [vmem:[%s8469_s18 + $0xb8] sm:$0xf]  ;;  %v1720_v30 = vshll.u32 %v6252_v13, 16 }
  0xe6   : > { %7742 = vmatpush3.bf16.msra.mxu0 %v8259_v21  ;;  %7454 = vmatpush3.bf16.msra.mxu1 %v8258_v28  ;;  %v4315_v21 = vrot.slane %v4313_v23, 5  ;;  %v6734_v28 = vcombine.low %v4280_v26, %v4294_v10  ;;  %v4515_v26 = vrot.slane %v9009_v34, 5  ;;  %v6746_v10 = vld [vmem:[%s8469_s18 + $0xb8] sm:$0xe]  ;;  %v8275_v34 = vld [vmem:[%s9749_s1 + $0x1f0] sm:$0xff]  }
  0xe7   : > { %7751 = vmatprep.subr.bf16.mxu0 %v8262_v29  ;;  %7463 = vmatprep.subr.bf16.mxu1 %v8261_v32 }
  0xe9   : > { %7744 = vmatmul.mubr.bf16.vlgmr.msra.gmra.mrb[0].mxu0 %v6733_v41  ;;  %7456 = vmatmul.mubr.bf16.vlgmr.msra.gmra.mrb[0].mxu1 %v8263_v39  ;;  %v8268_v39 = vld [vmem:[%s9749_s1 + $0x1d8] sm:$0xff]   ;;  %v4316_v41 = vor.u32 %v4315_v21, %v4312_v40  ;;  %v6747_v40 = vld [vmem:[%s8469_s18 + $0xc0] sm:$0xe]  ;;  %v1722_v21 = vrot.slane %v1720_v30, 5 }
  0xea   : > { %7752 = vmatpush3.bf16.msra.mxu0 %v8262_v29  ;;  %7464 = vmatpush3.bf16.msra.mxu1 %v8261_v32  ;;  %v9175_v29 = vld [vmem:[%s8469_s18 + $0xa4] sm:$0x1]  ;;  %v6250_v32 = vld [vmem:[%s8469_s18 + $0xa8] sm:$0xf] }
  0xeb   : > { %7753 = vmatprep.subr.bf16.mxu0 %v8265_v43  ;;  %7459 = vmatprep.mubr.bf16.mxu1 %v8274_v58  ;;  %v1698_v51 = vshll.u32 %v9175_v29, 16  ;;  %v1703_v53 = vshrl.u32 %v6250_v32, 16  ;;  %v1706_v12 = vshll.u32 %v6250_v32, 16  ;;  %v4317_v56 = vrot.slane %v4316_v41, 4 }
  0xec   : > { %7465 = vmatprep.subr.bf16.mxu1 %v8264_v59  ;;  %7747 = vmatprep.mubr.bf16.mxu0 %v6734_v28  ;;  %v1694_v58 = vrot.slane %v1692_v48, 5  ;;  %v8276_v28 = vld [vmem:[%s9749_s1 + $0x4f0] sm:$0xff]   ;;  %v1740_v32 = vshll.u32 %v9219_v24, 16  ;;  %v6755_v48 = vrot.slane %v6747_v40, 9 }
  0xed   : > { %v4322_v63 = vsel %vm8499_vm2, %v4317_v56, %v4321_v27  ;;  %v1700_v14 = vrot.slane %v1698_v51, 5  ;;  %v1734_v27 = vshll.u32 %v6254_v18, 16  ;;  %v8279_v51 = vld [vmem:[%s9749_s1 + $0x4f8] sm:$0xff]  }
  0xee   : > { %7754 = vmatpush3.bf16.msra.mxu0 %v8265_v43  ;;  %7466 = vmatpush3.bf16.msra.mxu1 %v8264_v59  ;;  %v9182_v43 = vld [vmem:[%s8469_s18 + $0xac] sm:$0x1]  ;;  %v1705_v59 = vrot.slane %v1703_v53, 4  ;;  %v1695_v9 = vor.u32 %v1694_v58, %v1691_v57  ;;  %v6735_v7 = vcombine.low %v4308_v45, %v4322_v63  ;;  %v4519_v53 = vrot.slane %v9051_v42, 5  ;;  %v8278_v57 = vld [vmem:[%s9749_s1 + $0x1f8] sm:$0xff]   ;;  %v8280_v45 = vld [vmem:[%s9749_s1 + $0x200] sm:$0xff]  }
  0xef   : > { %7755 = vmatprep.subr.bf16.mxu0 %v8267_v60  ;;  %7467 = vmatprep.subr.bf16.mxu1 %v8266_v3  ;;  %v1712_v4 = vshll.u32 %v9182_v43, 16  ;;  %v1736_v46 = vrot.slane %v1734_v27, 5  ;;  %v4516_v56 = vsel %vm8687_vm5, %v6755_v48, %v4515_v26  ;;  %v9260_v63 = vld [vmem:[%s8469_s18 + $0xc4] sm:$0x1]  ;;  %v6262_v27 = vld [vmem:[%s8469_s18 + $0xd8] sm:$0xf] }
  0xf0   : > { %v1696_v15 = vrot.slane %v1695_v9, 4  ;;  %v6258_v9 = vld [vmem:[%s8469_s18 + $0xc8] sm:$0xf] }
  0xf1   : > { %7460 = vmatmul.mubr.bf16.gmra.mrb[4].mxu1 %v8277_v20  ;;  %v1714_v11 = vrot.slane %v1712_v4, 5  ;;  %v1717_v20 = vshrl.u32 %v6252_v13, 16  ;;  %7748 = vmatmul.mubr.bf16.gmra.mrb[4].mxu0 %v6735_v7  ;;  %v1754_v7 = vshll.u32 %v9260_v63, 16  ;;  %v1762_v44 = vshll.u32 %v6258_v9, 16 }
  0xf2   : > { %7756 = vmatpush3.bf16.msra.mxu0 %v8267_v60  ;;  %7468 = vmatpush3.bf16.msra.mxu1 %v8266_v3  ;;  %v1708_v60 = vrot.slane %v1706_v12, 5  ;;  %v6745_v3 = vld [vmem:[%s8469_s18 + $0xb0] sm:$0xe]  ;;  %v1701_v37 = vsel %vm8499_vm2, %v1696_v15, %v1700_v14  ;;  %v9264_v14 = vld [vmem:[%s8469_s18 + $0xcc] sm:$0x1]  ;;  %v4531_v13 = vrot.slane %v9075_v0, 5 }
  0xf3   : > { %7757 = vmatprep.subr.bf16.mxu0 %v8269_v8  ;;  %7469 = vmatprep.subr.bf16.mxu1 %v8268_v39  ;;  %v6753_v2 = vrot.slane %v6745_v3, 9  ;;  %v1719_v35 = vrot.slane %v1717_v20, 4  ;;  %v1756_v30 = vrot.slane %v1754_v7, 5  ;;  %v1764_v26 = vrot.slane %v1762_v44, 5  ;;  %v6292_v7 = vld [vmem:[%s8469_s18 + $0xf0] sm:$0xf] }
  0xf4   : > { %v1709_v54 = vor.u32 %v1708_v60, %v1705_v59  ;;  %v8281_v59 = vld [vmem:[%s9749_s1 + $0x500] sm:$0xff]  }
  0xf5   : > { %v4508_v47 = vsel %vm8687_vm5, %v6753_v2, %v4507_v38  ;;  %v1726_v38 = vshll.u32 %v9208_v17, 16  ;;  %v1723_v41 = vor.u32 %v1722_v21, %v1719_v35  ;;  %v6256_v60 = vld [vmem:[%s8469_s18 + $0xc0] sm:$0xf]  ;;  %v4527_v2 = vrot.slane %v9065_v49, 5  ;;  %v6260_v21 = vld [vmem:[%s8469_s18 + $0xd0] sm:$0xf] }
  0xf6   : > { %7758 = vmatpush3.bf16.msra.mxu0 %v8269_v8  ;;  %7470 = vmatpush3.bf16.msra.mxu1 %v8268_v39  ;;  %v1710_v23 = vrot.slane %v1709_v54, 4  ;;  %v6776_v31 = vcombine.low %v4504_v16, %v4508_v47  ;;  %v1731_v8 = vshrl.u32 %v6254_v18, 16  ;;  %v6754_v39 = vrot.slane %v6746_v10, 9  ;;  %v8283_v16 = vld [vmem:[%s9749_s1 + $0x508] sm:$0xff]   ;;  %v8288_v0 = vld [vmem:[%s9749_s1 + $0x220] sm:$0xff]  }
  0xf7   : > { %7759 = vmatprep.subr.bf16.mxu0 %v8271_v55  ;;  %7471 = vmatprep.subr.bf16.mxu1 %v8270_v36  ;;  %v1728_v12 = vrot.slane %v1726_v38, 5  ;;  %v1745_v3 = vshrl.u32 %v6256_v60, 16  ;;  %v1748_v6 = vshll.u32 %v6256_v60, 16  ;;  %v1759_v54 = vshrl.u32 %v6258_v9, 16  ;;  %v8282_v47 = vld [vmem:[%s9749_s1 + $0x208] sm:$0xff]   ;;  %v8286_v60 = vld [vmem:[%s9749_s1 + $0x218] sm:$0xff]  }
  0xf8   : > { %v1715_v50 = vsel %vm8499_vm2, %v1710_v23, %v1714_v11  ;;  %7767 = vmatprep.mubr.bf16.mxu0 %v6776_v31  ;;  %v1733_v1 = vrot.slane %v1731_v8, 4  ;;  %v4512_v52 = vsel %vm8687_vm5, %v6754_v39, %v4511_v5  ;;  %v1768_v11 = vshll.u32 %v9264_v14, 16  ;;  %v6748_v23 = vld [vmem:[%s8469_s18 + $0xc8] sm:$0xe]  ;;  %v9282_v38 = vld [vmem:[%s8469_s18 + $0xd4] sm:$0x1] }
  0xf9   : > { %v6280_v19 = vcombine.low %v1701_v37, %v1715_v50  ;;  %v6777_v58 = vcombine.low %v4512_v52, %v4516_v56  ;;  %v1747_v18 = vrot.slane %v1745_v3, 4  ;;  %v1750_v20 = vrot.slane %v1748_v6, 5  ;;  %v6749_v37 = vld [vmem:[%s8469_s18 + $0xd0] sm:$0xe]  ;;  %v6750_v52 = vld [vmem:[%s8469_s18 + $0xd8] sm:$0xe] }
  0xfa   : > { %7760 = vmatpush3.bf16.msra.mxu0 %v8271_v55  ;;  %7472 = vmatpush3.bf16.msra.mxu1 %v8270_v36  ;;  %v1737_v4 = vor.u32 %v1736_v46, %v1733_v1  ;;  %v1742_v55 = vrot.slane %v1740_v32, 5  ;;  %v1724_v36 = vrot.slane %v1723_v41, 4  ;;  %v6756_v31 = vrot.slane %v6748_v23, 9  ;;  %v9291_v1 = vld [vmem:[%s8469_s18 + $0xdc] sm:$0x1] }
  0xfb   : > { %7761 = vmatprep.subr.bf16.mxu0 %v8273_v62  ;;  %7473 = vmatprep.subr.bf16.mxu1 %v8272_v22  ;;  %v1751_v35 = vor.u32 %v1750_v20, %v1747_v18  ;;  %v1770_v8 = vrot.slane %v1768_v11, 5  ;;  %v6757_v10 = vrot.slane %v6749_v37, 9  ;;  %v1773_v32 = vshrl.u32 %v6260_v21, 16  ;;  %v8289_v20 = vld [vmem:[%s9749_s1 + $0x520] sm:$0xff]   ;;  %v6295_v23 = vld [vmem:[%s8469_s18 + $0xfc] sm:$0x1] }
  0xfc   : > { %7479 = vmatprep.mubr.bf16.mxu1 %v6280_v19  ;;  %v1738_v42 = vrot.slane %v1737_v4, 4  ;;  %v1729_v5 = vsel %vm8499_vm2, %v1724_v36, %v1728_v12  ;;  %v4520_v50 = vsel %vm8687_vm5, %v6756_v31, %v4519_v53  ;;  %v1776_v39 = vshll.u32 %v6260_v21, 16  ;;  %v8284_v53 = vld [vmem:[%s9749_s1 + $0x210] sm:$0xff]  }
  0xfd   : > { %v4524_v19 = vsel %vm8687_vm5, %v6757_v10, %v4523_v61  ;;  %v1782_v48 = vshll.u32 %v9282_v38, 16  ;;  %v1775_v4 = vrot.slane %v1773_v32, 4  ;;  %v1790_v56 = vshll.u32 %v6262_v27, 16  ;;  %v8291_v32 = vld [vmem:[%s9749_s1 + $0x528] sm:$0xff]  }
  0xfe   : > { %7762 = vmatpush3.bf16.msra.mxu0 %v8273_v62  ;;  %7474 = vmatpush3.bf16.msra.mxu1 %v8272_v22  ;;  %v1743_v62 = vsel %vm8499_vm2, %v1738_v42, %v1742_v55  ;;  %v1761_v22 = vrot.slane %v1759_v54, 4  ;;  %v6778_v46 = vcombine.low %v4520_v50, %v4524_v19  ;;  %v1778_v55 = vrot.slane %v1776_v39, 5  ;;  %v8297_v50 = vld [vmem:[%s8469_s18 + $0x10] ss:$8 sps:$4 sm:$0xff]   ;;  %v8290_v19 = vld [vmem:[%s9749_s1 + $0x228] sm:$0xff]  }
  0xff   : > { %7763 = vmatprep.subr.bf16.mxu0 %v8276_v28  ;;  %7475 = vmatprep.subr.bf16.mxu1 %v8275_v34  ;;  %v6281_v15 = vcombine.low %v1729_v5, %v1743_v62  ;;  %v1784_v42 = vrot.slane %v1782_v48, 5  ;;  %v1792_v62 = vrot.slane %v1790_v56, 5  ;;  %v6758_v9 = vrot.slane %v6750_v52, 9  ;;  %v6298_v52 = vld [vmem:[%s8469_s18 + $0x108] sm:$0xf] }
 0x100   : > { %v1765_v40 = vor.u32 %v1764_v26, %v1761_v22  ;;  %v1779_v5 = vor.u32 %v1778_v55, %v1775_v4  ;;  %v1971_v18 = vshrl.u32 %v6292_v7, 16  ;;  %v2013_v56 = vshrl.u32 %v6298_v52, 16 }
 0x101   : > { %v4528_v11 = vsel %vm8687_vm5, %v6758_v9, %v4527_v2 }
 0x102   : > { %7764 = vmatpush3.bf16.msra.mxu0 %v8276_v28  ;;  %7476 = vmatpush3.bf16.msra.mxu1 %v8275_v34  ;;  %v8285_v34 = vld [vmem:[%s9749_s1 + $0x510] sm:$0xff]   ;;  %v1752_v28 = vrot.slane %v1751_v35, 4  ;;  %v1766_v41 = vrot.slane %v1765_v40, 4  ;;  %v1780_v54 = vrot.slane %v1779_v5, 4  ;;  %v1973_v31 = vrot.slane %v1971_v18, 4 }
 0x103   : > { %7765 = vmatprep.subr.bf16.mxu0 %v8279_v51  ;;  %7477 = vmatprep.subr.bf16.mxu1 %v8278_v57  ;;  %v1994_v40 = vshll.u32 %v6295_v23, 16  ;;  %v2015_v5 = vrot.slane %v2013_v56, 4  ;;  %v8298_v23 = vld [vmem:[%s9749_s1 + $0x540] sm:$0xff]  }
 0x104   : > { %v1757_v12 = vsel %vm8499_vm2, %v1752_v28, %v1756_v30  ;;  %v1771_v36 = vsel %vm8499_vm2, %v1766_v41, %v1770_v8  ;;  %v1785_v2 = vsel %vm8499_vm2, %v1780_v54, %v1784_v42  ;;  %v6296_v41 = vld [vmem:[%s8469_s18 + $0x100] sm:$0xf] }
 0x105   : > { %v6282_v61 = vcombine.low %v1757_v12, %v1771_v36  ;;  %v1996_v39 = vrot.slane %v1994_v40, 5  ;;  %v1999_v12 = vshrl.u32 %v6296_v41, 16  ;;  %v2002_v4 = vshll.u32 %v6296_v41, 16 }
 0x106   : > { %7766 = vmatpush3.bf16.msra.mxu0 %v8279_v51  ;;  %7478 = vmatpush3.bf16.msra.mxu1 %v8278_v57  ;;  %v1787_v51 = vshrl.u32 %v6262_v27, 16  ;;  %v6751_v57 = vld [vmem:[%s8469_s18 + $0xe0] sm:$0xe] }
 0x107   : > { %7775 = vmatprep.subr.bf16.mxu0 %v8281_v59  ;;  %7487 = vmatprep.subr.bf16.mxu1 %v8280_v45  ;;  %v6759_v6 = vrot.slane %v6751_v57, 9  ;;  %v2016_v57 = vshll.u32 %v6298_v52, 16  ;;  %v2001_v42 = vrot.slane %v1999_v12, 4  ;;  %v8311_v52 = vld [vmem:[%s8469_s18 + $0x30] ss:$8 sps:$4 sm:$0xff]  }
 0x108   : > { %v6304_v12 = vld [vmem:[%s8469_s18 + $0x120] sm:$0xf] }
 0x109   : > { %7768 = vmatmul.mubr.bf16.vlgmr.msra.gmra.mrb[0].mxu0 %v6777_v58  ;;  %7480 = vmatmul.mubr.bf16.vlgmr.msra.gmra.mrb[0].mxu1 %v6281_v15  ;;  %v8287_v58 = vld [vmem:[%s9749_s1 + $0x518] sm:$0xff]   ;;  %v6293_v15 = vld [vmem:[%s8469_s18 + $0xf4] sm:$0x1]  ;;  %v4532_v22 = vsel %vm8687_vm5, %v6759_v6, %v4531_v13 }
 0x10a   : > { %7776 = vmatpush3.bf16.msra.mxu0 %v8281_v59  ;;  %7488 = vmatpush3.bf16.msra.mxu1 %v8280_v45  ;;  %v1789_v45 = vrot.slane %v1787_v51, 4  ;;  %v1796_v59 = vshll.u32 %v9291_v1, 16  ;;  %v1980_v30 = vshll.u32 %v6293_v15, 16  ;;  %v6779_v37 = vcombine.low %v4528_v11, %v4532_v22  ;;  %v8294_v15 = vld [vmem:[%s9749_s1 + $0x238] sm:$0xff]   ;;  %v8296_v22 = vld [vmem:[%s9749_s1 + $0x240] sm:$0xff]  }
 0x10b   : > { %7777 = vmatprep.subr.bf16.mxu0 %v8283_v16  ;;  %7489 = vmatprep.subr.bf16.mxu1 %v8282_v47 }
 0x10c   : > { %7771 = vmatprep.mubr.bf16.mxu0 %v6778_v46  ;;  %v1798_v3 = vrot.slane %v1796_v59, 5  ;;  %7483 = vmatprep.mubr.bf16.mxu1 %v6282_v61  ;;  %v1793_v44 = vor.u32 %v1792_v62, %v1789_v45  ;;  %v6297_v46 = vld [vmem:[%s8469_s18 + $0x104] sm:$0x1]  ;;  %v8292_v59 = vld [vmem:[%s9749_s1 + $0x230] sm:$0xff]   ;;  %v2004_v61 = vrot.slane %v2002_v4, 5  ;;  %v2018_v62 = vrot.slane %v2016_v57, 5 }
 0x10d   : > { %v2008_v55 = vshll.u32 %v6297_v46, 16  ;;  %v6305_v4 = vld [vmem:[%s8469_s18 + $0x124] sm:$0x1]  ;;  %v6307_v57 = vld [vmem:[%s8469_s18 + $0x12c] sm:$0x1] }
 0x10e   : > { %7778 = vmatpush3.bf16.msra.mxu0 %v8283_v16  ;;  %7490 = vmatpush3.bf16.msra.mxu1 %v8282_v47  ;;  %v6294_v16 = vld [vmem:[%s8469_s18 + $0xf8] sm:$0xf]  ;;  %v1974_v47 = vshll.u32 %v6292_v7, 16  ;;  %v1794_v26 = vrot.slane %v1793_v44, 4  ;;  %v2005_v44 = vor.u32 %v2004_v61, %v2001_v42  ;;  %v2019_v11 = vor.u32 %v2018_v62, %v2015_v5  ;;  %v8302_v5 = vld [vmem:[%s9749_s1 + $0x250] sm:$0xff]  }
 0x10f   : > { %7779 = vmatprep.subr.bf16.mxu0 %v8285_v34  ;;  %7491 = vmatprep.subr.bf16.mxu1 %v8284_v53  ;;  %v1985_v49 = vshrl.u32 %v6294_v16, 16  ;;  %v1988_v10 = vshll.u32 %v6294_v16, 16  ;;  %v8295_v7 = vld [vmem:[%s9749_s1 + $0x538] sm:$0xff]   ;;  %v2064_v42 = vshll.u32 %v6305_v4, 16  ;;  %v2078_v61 = vshll.u32 %v6307_v57, 16 }
 0x110   : > { %v1976_v35 = vrot.slane %v1974_v47, 5  ;;  %v1799_v13 = vsel %vm8499_vm2, %v1794_v26, %v1798_v3  ;;  %v2010_v3 = vrot.slane %v2008_v55, 5  ;;  %v2006_v16 = vrot.slane %v2005_v44, 4  ;;  %v6300_v26 = vld [vmem:[%s8469_s18 + $0x110] sm:$0xf] }
 0x111   : > { %v1987_v8 = vrot.slane %v1985_v49, 4  ;;  %7772 = vmatmul.mubr.bf16.gmra.mrb[4].mxu0 %v6779_v37  ;;  %v6283_v21 = vcombine.low %v1785_v2, %v1799_v13  ;;  %v1990_v28 = vrot.slane %v1988_v10, 5  ;;  %v2020_v18 = vrot.slane %v2019_v11, 4  ;;  %v8299_v49 = vld [vmem:[%s8469_s18 + $0x20] ss:$8 sps:$4 sm:$0xff]  }
 0x112   : > { %7780 = vmatpush3.bf16.msra.mxu0 %v8285_v34  ;;  %7492 = vmatpush3.bf16.msra.mxu1 %v8284_v53  ;;  %v1977_v27 = vor.u32 %v1976_v35, %v1973_v31  ;;  %v1982_v34 = vrot.slane %v1980_v30, 5  ;;  %v6299_v53 = vld [vmem:[%s8469_s18 + $0x10c] sm:$0x1]  ;;  %v2011_v47 = vsel %vm8499_vm2, %v2006_v16, %v2010_v3  ;;  %v2266_v2 = vrot.slane %v9182_v43, 5  ;;  %v6301_v37 = vld [vmem:[%s8469_s18 + $0x114] sm:$0x1] }
 0x113   : > { %7781 = vmatprep.subr.bf16.mxu0 %v8287_v58  ;;  %7493 = vmatprep.subr.bf16.mxu1 %v8286_v60  ;;  %v1991_v51 = vor.u32 %v1990_v28, %v1987_v8  ;;  %v2022_v45 = vshll.u32 %v6299_v53, 16  ;;  %v6302_v31 = vld [vmem:[%s8469_s18 + $0x118] sm:$0xf]  ;;  %v6303_v35 = vld [vmem:[%s8469_s18 + $0x11c] sm:$0x1]  ;;  %v2027_v8 = vshrl.u32 %v6300_v26, 16 }
 0x114   : > { %7791 = vmatprep.mubr.bf16.mxu0 %v8297_v50  ;;  %v1978_v48 = vrot.slane %v1977_v27, 4  ;;  %7484 = vmatmul.mubr.bf16.gmra.mrb[4].mxu1 %v6283_v21  ;;  %v2030_v10 = vshll.u32 %v6300_v26, 16  ;;  %v2041_v13 = vshrl.u32 %v6302_v31, 16  ;;  %v2044_v50 = vshll.u32 %v6302_v31, 16  ;;  %v8300_v27 = vld [vmem:[%s9749_s1 + $0x248] sm:$0xff]   ;;  %v8307_v26 = vld [vmem:[%s9749_s1 + $0x560] sm:$0xff]  }
 0x115   : > { %v1992_v36 = vrot.slane %v1991_v51, 4  ;;  %v2024_v6 = vrot.slane %v2022_v45, 5  ;;  %v2050_v21 = vshll.u32 %v6303_v35, 16  ;;  %v2029_v28 = vrot.slane %v2027_v8, 4  ;;  %v6306_v55 = vld [vmem:[%s8469_s18 + $0x128] sm:$0xf] }
 0x116   : > { %7782 = vmatpush3.bf16.msra.mxu0 %v8287_v58  ;;  %7494 = vmatpush3.bf16.msra.mxu1 %v8286_v60  ;;  %v1983_v58 = vsel %vm8499_vm2, %v1978_v48, %v1982_v34  ;;  %v8293_v60 = vld [vmem:[%s9749_s1 + $0x530] sm:$0xff]   ;;  %v8301_v34 = vld [vmem:[%s9749_s1 + $0x548] sm:$0xff]   ;;  %v2046_v41 = vrot.slane %v2044_v50, 5  ;;  %v2278_v4 = vrot.slane %v9260_v63, 5  ;;  %v6343_v63 = vld [vmem:[%s8469_s18 + $0xd8] sm:$0xe] }
 0x117   : > { %7783 = vmatprep.subr.bf16.mxu0 %v8289_v20  ;;  %7495 = vmatprep.subr.bf16.mxu1 %v8288_v0  ;;  %v1997_v9 = vsel %vm8499_vm2, %v1992_v36, %v1996_v39  ;;  %v2025_v30 = vsel %vm8499_vm2, %v2020_v18, %v2024_v6  ;;  %v2043_v39 = vrot.slane %v2041_v13, 4  ;;  %v2052_v46 = vrot.slane %v2050_v21, 5  ;;  %v8303_v48 = vld [vmem:[%s9749_s1 + $0x550] sm:$0xff]   ;;  %v8313_v16 = vld [vmem:[%s8469_s18 + $0x40] ss:$8 sps:$4 sm:$0xff]   ;;  %v8304_v18 = vld [vmem:[%s9749_s1 + $0x258] sm:$0xff]  }
 0x118   : > { %v6324_v54 = vcombine.low %v1983_v58, %v1997_v9  ;;  %v6325_v40 = vcombine.low %v2011_v47, %v2025_v30  ;;  %v2055_v58 = vshrl.u32 %v6304_v12, 16  ;;  %v2058_v36 = vshll.u32 %v6304_v12, 16  ;;  %v6336_v30 = vld [vmem:[%s8469_s18 + $0xa0] sm:$0xe]  ;;  %v6341_v12 = vld [vmem:[%s8469_s18 + $0xc8] sm:$0xe] }
 0x119   : > { %v2047_v53 = vor.u32 %v2046_v41, %v2043_v39  ;;  %v2066_v6 = vrot.slane %v2064_v42, 5  ;;  %v6344_v31 = vrot.slane %v6336_v30, 9  ;;  %v8317_v50 = vld [vmem:[%s8469_s18 + $0x60] ss:$8 sps:$4 sm:$0xff]   ;;  %v6349_v57 = vrot.slane %v6341_v12, 9 }
 0x11a   : > { %7784 = vmatpush3.bf16.msra.mxu0 %v8289_v20  ;;  %7496 = vmatpush3.bf16.msra.mxu1 %v8288_v0  ;;  %v2262_v20 = vrot.slane %v9175_v29, 5  ;;  %v2036_v0 = vshll.u32 %v6301_v37, 16  ;;  %v2057_v9 = vrot.slane %v2055_v58, 4  ;;  %v2060_v3 = vrot.slane %v2058_v36, 5  ;;  %v8306_v29 = vld [vmem:[%s9749_s1 + $0x260] sm:$0xff]  }
 0x11b   : > { %7785 = vmatprep.subr.bf16.mxu0 %v8291_v32  ;;  %7497 = vmatprep.subr.bf16.mxu1 %v8290_v19  ;;  %v2048_v45 = vrot.slane %v2047_v53, 4  ;;  %v6340_v53 = vld [vmem:[%s8469_s18 + $0xc0] sm:$0xe]  ;;  %v8319_v42 = vld [vmem:[%s8469_s18 + $0x70] ss:$8 sps:$4 sm:$0xff]  }
 0x11c   : > { %7503 = vmatprep.mubr.bf16.mxu1 %v6324_v54  ;;  %v2263_v13 = vsel %vm8687_vm5, %v6344_v31, %v2262_v20  ;;  %v8316_v58 = vld [vmem:[%s9749_s1 + $0x280] sm:$0xff]  }
 0x11d   : > { %v2053_v54 = vsel %vm8499_vm2, %v2048_v45, %v2052_v46  ;;  %v8312_v46 = vld [vmem:[%s9749_s1 + $0x570] sm:$0xff]   ;;  %v8318_v36 = vld [vmem:[%s9749_s1 + $0x580] sm:$0xff]  }
 0x11e   : > { %7786 = vmatpush3.bf16.msra.mxu0 %v8291_v32  ;;  %7498 = vmatpush3.bf16.msra.mxu1 %v8290_v19  ;;  %v2032_v19 = vrot.slane %v2030_v10, 5  ;;  %v2038_v32 = vrot.slane %v2036_v0, 5  ;;  %v2270_v10 = vrot.slane %v9208_v17, 5  ;;  %v6342_v45 = vld [vmem:[%s8469_s18 + $0xd0] sm:$0xe] }
 0x11f   : > { %7787 = vmatprep.subr.bf16.mxu0 %v8293_v60  ;;  %7499 = vmatprep.subr.bf16.mxu1 %v8292_v59 }
 0x120   : > { %v2033_v51 = vor.u32 %v2032_v19, %v2029_v28  ;;  %v2274_v19 = vrot.slane %v9219_v24, 5  ;;  %v8308_v24 = vld [vmem:[%s9749_s1 + $0x268] sm:$0xff]  }
 0x122   : > { %7788 = vmatpush3.bf16.msra.mxu0 %v8293_v60  ;;  %7500 = vmatpush3.bf16.msra.mxu1 %v8292_v59  ;;  %v2034_v56 = vrot.slane %v2033_v51, 4  ;;  %v2069_v59 = vshrl.u32 %v6306_v55, 16  ;;  %v2072_v60 = vshll.u32 %v6306_v55, 16  ;;  %v8314_v51 = vld [vmem:[%s9749_s1 + $0x278] sm:$0xff]   ;;  %v2282_v55 = vrot.slane %v9264_v14, 5  ;;  %v8321_v14 = vld [vmem:[%s9749_s1 + $0x588] sm:$0xff]  }
 0x123   : > { %7789 = vmatprep.subr.bf16.mxu0 %v8295_v7  ;;  %7501 = vmatprep.subr.bf16.mxu1 %v8294_v15 }
 0x124   : > { %v2039_v62 = vsel %vm8499_vm2, %v2034_v56, %v2038_v32  ;;  %v2071_v44 = vrot.slane %v2069_v59, 4  ;;  %v2074_v11 = vrot.slane %v2072_v60, 5  ;;  %v6348_v56 = vrot.slane %v6340_v53, 9 }
 0x125   : > { %v2283_v60 = vsel %vm8687_vm5, %v6349_v57, %v2282_v55  ;;  %v8329_v57 = vld [vmem:[%s9749_s1 + $0x5a8] sm:$0xff]  }
 0x126   : > { %7790 = vmatpush3.bf16.msra.mxu0 %v8295_v7  ;;  %7502 = vmatpush3.bf16.msra.mxu1 %v8294_v15  ;;  %v8305_v7 = vld [vmem:[%s9749_s1 + $0x558] sm:$0xff]   ;;  %v2080_v15 = vrot.slane %v2078_v61, 5  ;;  %v2075_v47 = vor.u32 %v2074_v11, %v2071_v44  ;;  %v2279_v59 = vsel %vm8687_vm5, %v6348_v56, %v2278_v4  ;;  %v2286_v61 = vrot.slane %v9282_v38, 5  ;;  %v8323_v38 = vld [vmem:[%s9749_s1 + $0x590] sm:$0xff]  }
 0x127   : > { %7799 = vmatprep.subr.bf16.mxu0 %v8298_v23  ;;  %7511 = vmatprep.subr.bf16.mxu1 %v8296_v22  ;;  %v8322_v44 = vld [vmem:[%s9749_s1 + $0x290] sm:$0xff]  }
 0x128   : > { %v2076_v8 = vrot.slane %v2075_v47, 4 }
 0x129   : > { %7792 = vmatmul.mubr.bf16.vlgmr.msra.gmra.mrb[0].mxu0 %v8299_v49  ;;  %7504 = vmatmul.mubr.bf16.vlgmr.msra.gmra.mrb[0].mxu1 %v6325_v40  ;;  %v6337_v49 = vld [vmem:[%s8469_s18 + $0xa8] sm:$0xe] }
 0x12a   : > { %7800 = vmatpush3.bf16.msra.mxu0 %v8298_v23  ;;  %7512 = vmatpush3.bf16.msra.mxu1 %v8296_v22  ;;  %v6326_v22 = vcombine.low %v2039_v62, %v2053_v54  ;;  %v2061_v23 = vor.u32 %v2060_v3, %v2057_v9  ;;  %v6345_v35 = vrot.slane %v6337_v49, 9  ;;  %v2081_v17 = vsel %vm8499_vm2, %v2076_v8, %v2080_v15  ;;  %v8331_v62 = vld [vmem:[%s8469_s18 + $0x80] ss:$8 sps:$4 sm:$0xff]   ;;  %v9482_v54 = vld [vmem:[%s8469_s18 + $0x14] sm:$0x1] }
 0x12b   : > { %7801 = vmatprep.subr.bf16.mxu0 %v8301_v34  ;;  %7795 = vmatprep.mubr.bf16.mxu0 %v8311_v52  ;;  %v8315_v52 = vld [vmem:[%s9749_s1 + $0x578] sm:$0xff]   ;;  %v6350_v9 = vrot.slane %v6342_v45, 9  ;;  %v6351_v3 = vrot.slane %v6343_v63, 9  ;;  %v5060_v47 = vshll.u32 %v9482_v54, 16  ;;  %v8328_v63 = vld [vmem:[%s9749_s1 + $0x2a8] sm:$0xff]  }
 0x12c   : > { %7513 = vmatprep.subr.bf16.mxu1 %v8300_v27  ;;  %7507 = vmatprep.mubr.bf16.mxu1 %v6326_v22  ;;  %v2062_v37 = vrot.slane %v2061_v23, 4  ;;  %v2267_v40 = vsel %vm8687_vm5, %v6345_v35, %v2266_v2  ;;  %v8309_v2 = vld [vmem:[%s9749_s1 + $0x568] sm:$0xff]  }
 0x12d   : > { %v6368_v21 = vcombine.low %v2263_v13, %v2267_v40  ;;  %v2287_v11 = vsel %vm8687_vm5, %v6350_v9, %v2286_v61  ;;  %v8335_v9 = vld [vmem:[%s9749_s1 + $0x5b8] sm:$0xff]  }
 0x12e   : > { %7802 = vmatpush3.bf16.msra.mxu0 %v8301_v34  ;;  %7514 = vmatpush3.bf16.msra.mxu1 %v8300_v27  ;;  %v2067_v0 = vsel %vm8499_vm2, %v2062_v37, %v2066_v6  ;;  %v6338_v27 = vld [vmem:[%s8469_s18 + $0xb0] sm:$0xe]  ;;  %v6339_v34 = vld [vmem:[%s8469_s18 + $0xb8] sm:$0xe]  ;;  %v6370_v6 = vcombine.low %v2279_v59, %v2283_v60 }
 0x12f   : > { %7803 = vmatprep.subr.bf16.mxu0 %v8303_v48  ;;  %7515 = vmatprep.subr.bf16.mxu1 %v8302_v5  ;;  %v6327_v28 = vcombine.low %v2067_v0, %v2081_v17  ;;  %v6346_v20 = vrot.slane %v6338_v27, 9  ;;  %v6347_v43 = vrot.slane %v6339_v34, 9  ;;  %v8333_v37 = vld [vmem:[%s8469_s18 + $0x90] ss:$8 sps:$4 sm:$0xff]   ;;  %v6864_v17 = vld [vmem:[%s8469_s18 + $0x20] sm:$0xf] }
 0x130   : > { %v8325_v0 = vld [vmem:[%s9749_s1 + $0x598] sm:$0xff]   ;;  %v8330_v59 = vld [vmem:[%s9749_s1 + $0x2b0] sm:$0xff]  }
 0x131   : > { %7796 = vmatmul.mubr.bf16.gmra.mrb[4].mxu0 %v8313_v16  ;;  %7508 = vmatmul.mubr.bf16.gmra.mrb[4].mxu1 %v6327_v28  ;;  %v2271_v32 = vsel %vm8687_vm5, %v6346_v20, %v2270_v10  ;;  %v2275_v39 = vsel %vm8687_vm5, %v6347_v43, %v2274_v19  ;;  %v6862_v16 = vld [vmem:[%s8469_s18 + $0x18] sm:$0xf]  ;;  %v5079_v43 = vshrl.u32 %v6864_v17, 16  ;;  %v5082_v19 = vshll.u32 %v6864_v17, 16  ;;  %v6874_v17 = vld [vmem:[%s8469_s18 + $0x48] sm:$0xf] }
 0x132   : > { %7804 = vmatpush3.bf16.msra.mxu0 %v8303_v48  ;;  %7516 = vmatpush3.bf16.msra.mxu1 %v8302_v5  ;;  %v6369_v41 = vcombine.low %v2271_v32, %v2275_v39  ;;  %v8310_v48 = vld [vmem:[%s9749_s1 + $0x270] sm:$0xff]   ;;  %v2290_v5 = vrot.slane %v9291_v1, 5  ;;  %v5065_v30 = vshrl.u32 %v6862_v16, 16  ;;  %v5068_v49 = vshll.u32 %v6862_v16, 16  ;;  %v8324_v28 = vld [vmem:[%s9749_s1 + $0x298] sm:$0xff]  }
 0x133   : > { %7805 = vmatprep.subr.bf16.mxu0 %v8305_v7  ;;  %7517 = vmatprep.subr.bf16.mxu1 %v8304_v18  ;;  %v6860_v1 = vld [vmem:[%s8469_s18 + $0x10] sm:$0xf]  ;;  %v9508_v32 = vld [vmem:[%s8469_s18 + $0x24] sm:$0x1]  ;;  %v5084_v12 = vrot.slane %v5082_v19, 5 }
 0x134   : > { %7815 = vmatprep.mubr.bf16.mxu0 %v8317_v50  ;;  %7527 = vmatprep.mubr.bf16.mxu1 %v6368_v21  ;;  %v2291_v15 = vsel %vm8687_vm5, %v6351_v3, %v2290_v5  ;;  %v5051_v22 = vshrl.u32 %v6860_v1, 16  ;;  %v5054_v23 = vshll.u32 %v6860_v1, 16  ;;  %v5067_v8 = vrot.slane %v5065_v30, 4  ;;  %v8336_v21 = vld [vmem:[%s8469_s18 + $0x8] ss:$8 sps:$4 sm:$0xff]   ;;  %v8334_v30 = vld [vmem:[%s9749_s1 + $0x2b8] sm:$0xff]  }
 0x135   : > { %v5070_v10 = vrot.slane %v5068_v49, 5  ;;  %v6371_v13 = vcombine.low %v2287_v11, %v2291_v15  ;;  %v5062_v50 = vrot.slane %v5060_v47, 5  ;;  %v6868_v3 = vld [vmem:[%s8469_s18 + $0x30] sm:$0xf] }
 0x136   : > { %7806 = vmatpush3.bf16.msra.mxu0 %v8305_v7  ;;  %7518 = vmatpush3.bf16.msra.mxu1 %v8304_v18  ;;  %v8320_v7 = vld [vmem:[%s9749_s1 + $0x288] sm:$0xff]   ;;  %v9493_v18 = vld [vmem:[%s8469_s18 + $0x1c] sm:$0x1]  ;;  %v5053_v31 = vrot.slane %v5051_v22, 4  ;;  %v5056_v35 = vrot.slane %v5054_v23, 5  ;;  %v5107_v1 = vshrl.u32 %v6868_v3, 16 }
 0x137   : > { %7807 = vmatprep.subr.bf16.mxu0 %v8307_v26  ;;  %7519 = vmatprep.subr.bf16.mxu1 %v8306_v29  ;;  %v5071_v27 = vor.u32 %v5070_v10, %v5067_v8 }
 0x138   : > { %v5057_v40 = vor.u32 %v5056_v35, %v5053_v31  ;;  %v5109_v49 = vrot.slane %v5107_v1, 4  ;;  %v8338_v31 = vld [vmem:[%s9749_s1 + $0x5c0] sm:$0xff]  }
 0x13a   : > { %7808 = vmatpush3.bf16.msra.mxu0 %v8307_v26  ;;  %7520 = vmatpush3.bf16.msra.mxu1 %v8306_v29  ;;  %v5074_v26 = vshll.u32 %v9493_v18, 16  ;;  %v6866_v29 = vld [vmem:[%s8469_s18 + $0x28] sm:$0xf]  ;;  %v5058_v20 = vrot.slane %v5057_v40, 4  ;;  %v6872_v40 = vld [vmem:[%s8469_s18 + $0x40] sm:$0xf] }
 0x13b   : > { %7809 = vmatprep.subr.bf16.mxu0 %v8309_v2  ;;  %7521 = vmatprep.subr.bf16.mxu1 %v8308_v24  ;;  %v5093_v39 = vshrl.u32 %v6866_v29, 16 }
 0x13c   : > { %v5076_v34 = vrot.slane %v5074_v26, 5 }
 0x13d   : > { %v5095_v4 = vrot.slane %v5093_v39, 4  ;;  %v5152_v39 = vshll.u32 %v6874_v17, 16 }
 0x13e   : > { %7810 = vmatpush3.bf16.msra.mxu0 %v8309_v2  ;;  %7522 = vmatpush3.bf16.msra.mxu1 %v8308_v24  ;;  %v5072_v2 = vrot.slane %v5071_v27, 4  ;;  %v8327_v24 = vld [vmem:[%s9749_s1 + $0x5a0] sm:$0xff]  }
 0x13f   : > { %7811 = vmatprep.subr.bf16.mxu0 %v8312_v46  ;;  %7523 = vmatprep.subr.bf16.mxu1 %v8310_v48 }
 0x140   : > { %v5077_v53 = vsel %vm8499_vm2, %v5072_v2, %v5076_v34  ;;  %v9569_v34 = vld [vmem:[%s8469_s18 + $0x4c] sm:$0x1]  ;;  %v5149_v2 = vshrl.u32 %v6874_v17, 16 }
 0x142   : > { %7812 = vmatpush3.bf16.msra.mxu0 %v8312_v46  ;;  %7524 = vmatpush3.bf16.msra.mxu1 %v8310_v48  ;;  %v5063_v46 = vsel %vm8499_vm2, %v5058_v20, %v5062_v50  ;;  %v9516_v48 = vld [vmem:[%s8469_s18 + $0x2c] sm:$0x1]  ;;  %v9562_v50 = vld [vmem:[%s8469_s18 + $0x44] sm:$0x1] }
 0x143   : > { %7813 = vmatprep.subr.bf16.mxu0 %v8315_v52  ;;  %7525 = vmatprep.subr.bf16.mxu1 %v8314_v51  ;;  %v6892_v56 = vcombine.low %v5063_v46, %v5077_v53  ;;  %v5144_v20 = vshll.u32 %v9562_v50, 16  ;;  %v8340_v53 = vld [vmem:[%s9749_s1 + $0x2c8] sm:$0xff]  }
 0x146   : > { %7814 = vmatpush3.bf16.msra.mxu0 %v8315_v52  ;;  %7526 = vmatpush3.bf16.msra.mxu1 %v8314_v51  ;;  %v5081_v51 = vrot.slane %v5079_v43, 4  ;;  %v8326_v52 = vld [vmem:[%s9749_s1 + $0x2a0] sm:$0xff]  }
 0x147   : > { %7823 = vmatprep.subr.bf16.mxu0 %v8318_v36  ;;  %7535 = vmatprep.subr.bf16.mxu1 %v8316_v58  ;;  %v8339_v43 = vld [vmem:[%s8469_s18 + $0x18] ss:$8 sps:$4 sm:$0xff]  }
 0x149   : > { %7816 = vmatmul.mubr.bf16.vlgmr.msra.gmra.mrb[0].mxu0 %v8319_v42  ;;  %7528 = vmatmul.mubr.bf16.vlgmr.msra.gmra.mrb[0].mxu1 %v6369_v41  ;;  %v5096_v41 = vshll.u32 %v6866_v29, 16  ;;  %v5085_v42 = vor.u32 %v5084_v12, %v5081_v51  ;;  %v5135_v29 = vshrl.u32 %v6872_v40, 16  ;;  %v8350_v12 = vld [vmem:[%s8469_s18 + $0x28] ss:$8 sps:$4 sm:$0xff]  }
 0x14a   : > { %7824 = vmatpush3.bf16.msra.mxu0 %v8318_v36  ;;  %7819 = vmatprep.mubr.bf16.mxu0 %v8331_v62  ;;  %v5102_v36 = vshll.u32 %v9516_v48, 16 }
 0x14b   : > { %7825 = vmatprep.subr.bf16.mxu0 %v8321_v14  ;;  %7536 = vmatpush3.bf16.msra.mxu1 %v8316_v58  ;;  %v5098_v55 = vrot.slane %v5096_v41, 5  ;;  %v5088_v58 = vshll.u32 %v9508_v32, 16  ;;  %v5086_v5 = vrot.slane %v5085_v42, 4  ;;  %v5158_v41 = vshll.u32 %v9569_v34, 16 }
 0x14c   : > { %7531 = vmatprep.mubr.bf16.mxu1 %v6370_v6  ;;  %7537 = vmatprep.subr.bf16.mxu1 %v8320_v7  ;;  %v5104_v61 = vrot.slane %v5102_v36, 5  ;;  %v9542_v6 = vld [vmem:[%s8469_s18 + $0x34] sm:$0x1]  ;;  %v5137_v51 = vrot.slane %v5135_v29, 4  ;;  %v5146_v36 = vrot.slane %v5144_v20, 5 }
 0x14d   : > { %v5099_v45 = vor.u32 %v5098_v55, %v5095_v4  ;;  %v5090_v60 = vrot.slane %v5088_v58, 5  ;;  %v5116_v11 = vshll.u32 %v9542_v6, 16  ;;  %v5151_v55 = vrot.slane %v5149_v2, 4 }
 0x14e   : > { %7826 = vmatpush3.bf16.msra.mxu0 %v8321_v14  ;;  %v8332_v14 = vld [vmem:[%s9749_s1 + $0x5b0] sm:$0xff]   ;;  %v5160_v42 = vrot.slane %v5158_v41, 5  ;;  %v8347_v41 = vld [vmem:[%s9749_s1 + $0x5e0] sm:$0xff]  }
 0x14f   : > { %7827 = vmatprep.subr.bf16.mxu0 %v8323_v38  ;;  %7538 = vmatpush3.bf16.msra.mxu1 %v8320_v7  ;;  %v5100_v62 = vrot.slane %v5099_v45, 4  ;;  %v6870_v7 = vld [vmem:[%s8469_s18 + $0x38] sm:$0xf]  ;;  %v5091_v16 = vsel %vm8499_vm2, %v5086_v5, %v5090_v60  ;;  %v5118_v35 = vrot.slane %v5116_v11, 5  ;;  %v6904_v60 = vld [vmem:[%s8469_s18 + $0x60] sm:$0xf] }
 0x150   : > { %7539 = vmatprep.subr.bf16.mxu1 %v8322_v44  ;;  %v5121_v15 = vshrl.u32 %v6870_v7, 16  ;;  %v5124_v23 = vshll.u32 %v6870_v7, 16  ;;  %v6905_v5 = vld [vmem:[%s8469_s18 + $0x64] sm:$0x1]  ;;  %v6907_v7 = vld [vmem:[%s8469_s18 + $0x6c] sm:$0x1] }
 0x151   : > { %7820 = vmatmul.mubr.bf16.gmra.mrb[4].mxu0 %v8333_v37  ;;  %7532 = vmatmul.mubr.bf16.gmra.mrb[4].mxu1 %v6371_v13  ;;  %v5105_v22 = vsel %vm8499_vm2, %v5100_v62, %v5104_v61  ;;  %v6906_v62 = vld [vmem:[%s8469_s18 + $0x68] sm:$0xf]  ;;  %v5336_v1 = vshll.u32 %v6904_v60, 16 }
 0x152   : > { %7828 = vmatpush3.bf16.msra.mxu0 %v8323_v38  ;;  %7551 = vmatprep.mubr.bf16.mxu1 %v8336_v21  ;;  %v9546_v38 = vld [vmem:[%s8469_s18 + $0x3c] sm:$0x1]  ;;  %v5123_v37 = vrot.slane %v5121_v15, 4  ;;  %v5126_v8 = vrot.slane %v5124_v23, 5  ;;  %v8337_v21 = vld [vmem:[%s9749_s1 + $0x2c0] sm:$0xff]   ;;  %v5347_v11 = vshrl.u32 %v6906_v62, 16 }
 0x153   : > { %7829 = vmatprep.subr.bf16.mxu0 %v8325_v0  ;;  %7540 = vmatpush3.bf16.msra.mxu1 %v8322_v44  ;;  %v5110_v44 = vshll.u32 %v6868_v3, 16  ;;  %v5130_v47 = vshll.u32 %v9546_v38, 16  ;;  %v8342_v15 = vld [vmem:[%s9749_s1 + $0x2d0] sm:$0xff]   ;;  %v5350_v23 = vshll.u32 %v6906_v62, 16 }
 0x154   : > { %7541 = vmatprep.subr.bf16.mxu1 %v8324_v28  ;;  %7839 = vmatprep.mubr.bf16.mxu0 %v6892_v56  ;;  %v5127_v27 = vor.u32 %v5126_v8, %v5123_v37  ;;  %v5154_v56 = vrot.slane %v5152_v39, 5  ;;  %v5349_v37 = vrot.slane %v5347_v11, 4  ;;  %v8356_v8 = vld [vmem:[%s8469_s18 + $0x58] ss:$8 sps:$4 sm:$0xff]  }
 0x155   : > { %v5112_v26 = vrot.slane %v5110_v44, 5  ;;  %v5132_v10 = vrot.slane %v5130_v47, 5  ;;  %v5342_v44 = vshll.u32 %v6905_v5, 16  ;;  %v5356_v47 = vshll.u32 %v6907_v7, 16  ;;  %v8348_v5 = vld [vmem:[%s9749_s1 + $0x2e8] sm:$0xff]  }
 0x156   : > { %7830 = vmatpush3.bf16.msra.mxu0 %v8325_v0  ;;  %v6893_v0 = vcombine.low %v5091_v16, %v5105_v22  ;;  %v5128_v46 = vrot.slane %v5127_v27, 4  ;;  %v6910_v27 = vld [vmem:[%s8469_s18 + $0x78] sm:$0xf] }
 0x157   : > { %7831 = vmatprep.subr.bf16.mxu0 %v8327_v24  ;;  %7542 = vmatpush3.bf16.msra.mxu1 %v8324_v28  ;;  %v5113_v13 = vor.u32 %v5112_v26, %v5109_v49  ;;  %v5138_v28 = vshll.u32 %v6872_v40, 16  ;;  %v5338_v26 = vrot.slane %v5336_v1, 5  ;;  %v5344_v40 = vrot.slane %v5342_v44, 5 }
 0x158   : > { %7543 = vmatprep.subr.bf16.mxu1 %v8326_v52  ;;  %v5358_v17 = vrot.slane %v5356_v47, 5  ;;  %v5375_v2 = vshrl.u32 %v6910_v27, 16  ;;  %v5378_v39 = vshll.u32 %v6910_v27, 16 }
 0x159   : > { %v5114_v19 = vrot.slane %v5113_v13, 4 }
 0x15a   : > { %7832 = vmatpush3.bf16.msra.mxu0 %v8327_v24  ;;  %v8341_v24 = vld [vmem:[%s9749_s1 + $0x5c8] sm:$0xff]  }
 0x15b   : > { %7833 = vmatprep.subr.bf16.mxu0 %v8329_v57  ;;  %7544 = vmatpush3.bf16.msra.mxu1 %v8326_v52  ;;  %v5140_v52 = vrot.slane %v5138_v28, 5  ;;  %v5119_v4 = vsel %vm8499_vm2, %v5114_v19, %v5118_v35  ;;  %v8345_v35 = vld [vmem:[%s9749_s1 + $0x5d8] sm:$0xff]  }
 0x15c   : > { %7545 = vmatprep.subr.bf16.mxu1 %v8328_v63  ;;  %v6911_v28 = vld [vmem:[%s8469_s18 + $0x7c] sm:$0x1] }
 0x15d   : > { %v5141_v58 = vor.u32 %v5140_v52, %v5137_v51 }
 0x15e   : > { %7834 = vmatpush3.bf16.msra.mxu0 %v8329_v57  ;;  %v5133_v57 = vsel %vm8499_vm2, %v5128_v46, %v5132_v10  ;;  %v5352_v10 = vrot.slane %v5350_v23, 5 }
 0x15f   : > { %7835 = vmatprep.subr.bf16.mxu0 %v8332_v14  ;;  %7546 = vmatpush3.bf16.msra.mxu1 %v8328_v63  ;;  %v6894_v45 = vcombine.low %v5119_v4, %v5133_v57  ;;  %v5155_v63 = vor.u32 %v5154_v56, %v5151_v55  ;;  %v5380_v4 = vrot.slane %v5378_v39, 5  ;;  %v8346_v55 = vld [vmem:[%s9749_s1 + $0x2e0] sm:$0xff]   ;;  %v5384_v57 = vshll.u32 %v6911_v28, 16  ;;  %v8354_v39 = vld [vmem:[%s9749_s1 + $0x2f8] sm:$0xff]  }
 0x160   : > { %7547 = vmatprep.subr.bf16.mxu1 %v8330_v59  ;;  %v5353_v29 = vor.u32 %v5352_v10, %v5349_v37  ;;  %v6917_v37 = vld [vmem:[%s8469_s18 + $0x94] sm:$0x1] }
 0x161   : > { %v5156_v61 = vrot.slane %v5155_v63, 4  ;;  %v6914_v63 = vld [vmem:[%s8469_s18 + $0x88] sm:$0xf]  ;;  %v5386_v23 = vrot.slane %v5384_v57, 5 }
 0x162   : > { %7836 = vmatpush3.bf16.msra.mxu0 %v8332_v14  ;;  %v8343_v14 = vld [vmem:[%s9749_s1 + $0x5d0] sm:$0xff]   ;;  %v5406_v7 = vshll.u32 %v6914_v63, 16 }
 0x163   : > { %7837 = vmatprep.subr.bf16.mxu0 %v8335_v9  ;;  %7548 = vmatpush3.bf16.msra.mxu1 %v8330_v59  ;;  %v5142_v59 = vrot.slane %v5141_v58, 4  ;;  %v5161_v16 = vsel %vm8499_vm2, %v5156_v61, %v5160_v42  ;;  %v6912_v42 = vld [vmem:[%s8469_s18 + $0x80] sm:$0xf] }
 0x164   : > { %7549 = vmatprep.subr.bf16.mxu1 %v8334_v30  ;;  %v5392_v61 = vshll.u32 %v6912_v42, 16 }
 0x165   : > { %v5147_v3 = vsel %vm8499_vm2, %v5142_v59, %v5146_v36  ;;  %v6915_v59 = vld [vmem:[%s8469_s18 + $0x8c] sm:$0x1] }
 0x166   : > { %7838 = vmatpush3.bf16.msra.mxu0 %v8335_v9  ;;  %v5333_v9 = vshrl.u32 %v6904_v60, 16  ;;  %v6895_v49 = vcombine.low %v5147_v3, %v5161_v16  ;;  %v5389_v60 = vshrl.u32 %v6912_v42, 16  ;;  %v5403_v3 = vshrl.u32 %v6914_v63, 16  ;;  %v8353_v16 = vld [vmem:[%s9749_s1 + $0x5f0] sm:$0xff]   ;;  %v6949_v63 = vld [vmem:[%s8469_s18 + $0x18] sm:$0xe] }
 0x167   : > { %7847 = vmatprep.subr.bf16.mxu0 %v8338_v31  ;;  %7550 = vmatpush3.bf16.msra.mxu1 %v8334_v30  ;;  %v8351_v30 = vld [vmem:[%s8469_s18 + $0x38] ss:$8 sps:$4 sm:$0xff]   ;;  %v5394_v44 = vrot.slane %v5392_v61, 5  ;;  %v5632_v42 = vrot.slane %v9508_v32, 5  ;;  %v6951_v32 = vld [vmem:[%s8469_s18 + $0x28] sm:$0xe] }
 0x168   : > { %7559 = vmatprep.subr.bf16.mxu1 %v8337_v21  ;;  %v5335_v22 = vrot.slane %v5333_v9, 4  ;;  %v5391_v1 = vrot.slane %v5389_v60, 4  ;;  %v5405_v47 = vrot.slane %v5403_v3, 4  ;;  %v6953_v3 = vld [vmem:[%s8469_s18 + $0x38] sm:$0xe] }
 0x169   : > { %7840 = vmatmul.mubr.bf16.vlgmr.msra.gmra.mrb[0].mxu0 %v6893_v0  ;;  %v6908_v0 = vld [vmem:[%s8469_s18 + $0x70] sm:$0xf] }
 0x16a   : > { %7848 = vmatpush3.bf16.msra.mxu0 %v8338_v31  ;;  %7552 = vmatmul.mubr.bf16.vlgmr.msra.gmra.mrb[0].mxu1 %v8339_v43  ;;  %v8344_v31 = vld [vmem:[%s9749_s1 + $0x2d8] sm:$0xff]   ;;  %v5339_v13 = vor.u32 %v5338_v26, %v5335_v22  ;;  %v5361_v20 = vshrl.u32 %v6908_v0, 16  ;;  %v5364_v43 = vshll.u32 %v6908_v0, 16  ;;  %v6916_v26 = vld [vmem:[%s8469_s18 + $0x90] sm:$0xf] }
 0x16b   : > { %7849 = vmatprep.subr.bf16.mxu0 %v8341_v24  ;;  %7560 = vmatpush3.bf16.msra.mxu1 %v8337_v21  ;;  %v6909_v21 = vld [vmem:[%s8469_s18 + $0x74] sm:$0x1]  ;;  %v6919_v0 = vld [vmem:[%s8469_s18 + $0x9c] sm:$0x1] }
 0x16c   : > { %7555 = vmatprep.mubr.bf16.mxu1 %v8350_v12  ;;  %7561 = vmatprep.subr.bf16.mxu1 %v8340_v53  ;;  %v5340_v19 = vrot.slane %v5339_v13, 4  ;;  %v5363_v46 = vrot.slane %v5361_v20, 4  ;;  %v5366_v51 = vrot.slane %v5364_v43, 5  ;;  %v5377_v12 = vrot.slane %v5375_v2, 4 }
 0x16d   : > { %7843 = vmatprep.mubr.bf16.mxu0 %v6894_v45  ;;  %v6913_v45 = vld [vmem:[%s8469_s18 + $0x84] sm:$0x1]  ;;  %v5417_v13 = vshrl.u32 %v6916_v26, 16  ;;  %v5426_v2 = vshll.u32 %v6917_v37, 16 }
 0x16e   : > { %7850 = vmatpush3.bf16.msra.mxu0 %v8341_v24  ;;  %v5354_v24 = vrot.slane %v5353_v29, 4  ;;  %v5345_v52 = vsel %vm8499_vm2, %v5340_v19, %v5344_v40  ;;  %v5367_v36 = vor.u32 %v5366_v51, %v5363_v46  ;;  %v5381_v9 = vor.u32 %v5380_v4, %v5377_v12 }
 0x16f   : > { %7851 = vmatprep.subr.bf16.mxu0 %v8343_v14  ;;  %7562 = vmatpush3.bf16.msra.mxu1 %v8340_v53  ;;  %v5370_v53 = vshll.u32 %v6909_v21, 16  ;;  %v5398_v11 = vshll.u32 %v6913_v45, 16  ;;  %v5420_v40 = vshll.u32 %v6916_v26, 16  ;;  %v5419_v43 = vrot.slane %v5417_v13, 4  ;;  %v6948_v45 = vld [vmem:[%s8469_s18 + $0x10] sm:$0xe] }
 0x170   : > { %7563 = vmatprep.subr.bf16.mxu1 %v8342_v15  ;;  %v5359_v56 = vsel %vm8499_vm2, %v5354_v24, %v5358_v17  ;;  %v5368_v22 = vrot.slane %v5367_v36, 4  ;;  %v8355_v17 = vld [vmem:[%s9749_s1 + $0x5f8] sm:$0xff]   ;;  %v5440_v51 = vshll.u32 %v6919_v0, 16  ;;  %v5628_v36 = vrot.slane %v9493_v18, 5 }
 0x171   : > { %7844 = vmatmul.mubr.bf16.gmra.mrb[4].mxu0 %v6895_v49  ;;  %v6936_v58 = vcombine.low %v5345_v52, %v5359_v56  ;;  %v9631_v62 = vrot.slane %v5370_v53, 5  ;;  %v5395_v49 = vor.u32 %v5394_v44, %v5391_v1  ;;  %v5400_v21 = vrot.slane %v5398_v11, 5  ;;  %v8358_v56 = vld [vmem:[%s9749_s1 + $0x600] sm:$0xff]   ;;  %v8357_v1 = vld [vmem:[%s8469_s18 + $0x68] ss:$8 sps:$4 sm:$0xff]  }
 0x172   : > { %7852 = vmatpush3.bf16.msra.mxu0 %v8343_v14  ;;  %7556 = vmatmul.mubr.bf16.gmra.mrb[4].mxu1 %v8351_v30  ;;  %v8349_v14 = vld [vmem:[%s9749_s1 + $0x5e8] sm:$0xff]   ;;  %v5408_v30 = vrot.slane %v5406_v7, 5  ;;  %v5422_v19 = vrot.slane %v5420_v40, 5  ;;  %v5442_v61 = vrot.slane %v5440_v51, 5  ;;  %v6957_v11 = vrot.slane %v6949_v63, 9 }
 0x173   : > { %7853 = vmatprep.subr.bf16.mxu0 %v8345_v35  ;;  %7564 = vmatpush3.bf16.msra.mxu1 %v8342_v15  ;;  %v5412_v15 = vshll.u32 %v6915_v59, 16  ;;  %v5396_v20 = vrot.slane %v5395_v49, 4  ;;  %v5373_v53 = vsel %vm8499_vm2, %v5368_v22, %v9631_v62  ;;  %v6950_v62 = vld [vmem:[%s8469_s18 + $0x20] sm:$0xe]  ;;  %v8359_v44 = vld [vmem:[%s9749_s1 + $0x608] sm:$0xff]   ;;  %v5640_v22 = vrot.slane %v9542_v6, 5 }
 0x174   : > { %7575 = vmatprep.mubr.bf16.mxu1 %v8356_v8  ;;  %7565 = vmatprep.subr.bf16.mxu1 %v8344_v31  ;;  %v5382_v8 = vrot.slane %v5381_v9, 4  ;;  %v5409_v10 = vor.u32 %v5408_v30, %v5405_v47  ;;  %v5423_v52 = vor.u32 %v5422_v19, %v5419_v43  ;;  %v6958_v7 = vrot.slane %v6950_v62, 9  ;;  %v8361_v40 = vld [vmem:[%s8469_s18 + $0x88] ss:$8 sps:$4 sm:$0xff]   ;;  %v8367_v19 = vld [vmem:[%s9749_s1 + $0x638] sm:$0xff]  }
 0x175   : > { %7863 = vmatprep.mubr.bf16.mxu0 %v6936_v58  ;;  %v5414_v27 = vrot.slane %v5412_v15, 5  ;;  %v5401_v57 = vsel %vm8499_vm2, %v5396_v20, %v5400_v21  ;;  %v6959_v15 = vrot.slane %v6951_v32, 9  ;;  %v6961_v30 = vrot.slane %v6953_v3, 9  ;;  %v6954_v20 = vld [vmem:[%s8469_s18 + $0x40] sm:$0xe] }
 0x176   : > { %7854 = vmatpush3.bf16.msra.mxu0 %v8345_v35  ;;  %v8352_v35 = vld [vmem:[%s9749_s1 + $0x2f0] sm:$0xff]   ;;  %v5387_v12 = vsel %vm8499_vm2, %v5382_v8, %v5386_v23  ;;  %v5424_v60 = vrot.slane %v5423_v52, 4  ;;  %v9679_v23 = vsel %vm8687_vm5, %v6958_v7, %v5632_v42  ;;  %v5644_v49 = vrot.slane %v9546_v38, 5  ;;  %v6955_v43 = vld [vmem:[%s8469_s18 + $0x48] sm:$0xe] }
 0x177   : > { %7855 = vmatprep.subr.bf16.mxu0 %v8347_v41  ;;  %7566 = vmatpush3.bf16.msra.mxu1 %v8344_v31  ;;  %v6918_v31 = vld [vmem:[%s8469_s18 + $0x98] sm:$0xf]  ;;  %v6937_v59 = vcombine.low %v5373_v53, %v5387_v12  ;;  %v8362_v38 = vld [vmem:[%s9749_s1 + $0x610] sm:$0xff]   ;;  %v5629_v8 = vsel %vm8687_vm5, %v6957_v11, %v5628_v36 }
 0x178   : > { %7567 = vmatprep.subr.bf16.mxu1 %v8346_v55  ;;  %v5431_v29 = vshrl.u32 %v6918_v31, 16  ;;  %v5434_v28 = vshll.u32 %v6918_v31, 16  ;;  %v5645_v0 = vsel %vm8687_vm5, %v6961_v30, %v5644_v49 }
 0x17a   : > { %7856 = vmatpush3.bf16.msra.mxu0 %v8347_v41  ;;  %v5410_v41 = vrot.slane %v5409_v10, 4  ;;  %v5433_v24 = vrot.slane %v5431_v29, 4  ;;  %v5436_v46 = vrot.slane %v5434_v28, 5  ;;  %v8365_v29 = vld [vmem:[%s9749_s1 + $0x628] sm:$0xff]   ;;  %v8366_v28 = vld [vmem:[%s9749_s1 + $0x630] sm:$0xff]  }
 0x17b   : > { %7857 = vmatprep.subr.bf16.mxu0 %v8349_v14  ;;  %7568 = vmatpush3.bf16.msra.mxu1 %v8346_v55  ;;  %v5624_v55 = vrot.slane %v9482_v54, 5  ;;  %v5428_v54 = vrot.slane %v5426_v2, 5  ;;  %v5648_v2 = vrot.slane %v9562_v50, 5 }
 0x17c   : > { %7569 = vmatprep.subr.bf16.mxu1 %v8348_v5  ;;  %v5437_v4 = vor.u32 %v5436_v46, %v5433_v24  ;;  %v5415_v58 = vsel %vm8499_vm2, %v5410_v41, %v5414_v27  ;;  %v8364_v27 = vld [vmem:[%s9749_s1 + $0x620] sm:$0xff]   ;;  %v6962_v41 = vrot.slane %v6954_v20, 9  ;;  %v6963_v24 = vrot.slane %v6955_v43, 9 }
 0x17d   : > { %v6938_v18 = vcombine.low %v5401_v57, %v5415_v58  ;;  %v5429_v37 = vsel %vm8499_vm2, %v5424_v60, %v5428_v54 }
 0x17e   : > { %7858 = vmatpush3.bf16.msra.mxu0 %v8349_v14  ;;  %v5636_v14 = vrot.slane %v9516_v48, 5  ;;  %v5438_v9 = vrot.slane %v5437_v4, 4  ;;  %v6956_v48 = vrot.slane %v6948_v45, 9  ;;  %v5649_v46 = vsel %vm8687_vm5, %v6962_v41, %v5648_v2 }
 0x17f   : > { %7859 = vmatprep.subr.bf16.mxu0 %v8353_v16  ;;  %7570 = vmatpush3.bf16.msra.mxu1 %v8348_v5  ;;  %v6952_v5 = vld [vmem:[%s8469_s18 + $0x30] sm:$0xe] }
 0x180   : > { %7571 = vmatprep.subr.bf16.mxu1 %v8352_v35  ;;  %v6960_v47 = vrot.slane %v6952_v5, 9  ;;  %v9684_v26 = vsel %vm8687_vm5, %v6959_v15, %v5636_v14  ;;  %v5443_v6 = vsel %vm8499_vm2, %v5438_v9, %v5442_v61 }
 0x181   : > { %v6981_v31 = vcombine.low %v9679_v23, %v9684_v26  ;;  %v6939_v33 = vcombine.low %v5429_v37, %v5443_v6 }
 0x182   : > { %7860 = vmatpush3.bf16.msra.mxu0 %v8353_v16  ;;  %v8360_v16 = vld [vmem:[%s8469_s18 + $0x78] ss:$8 sps:$4 sm:$0xff]   ;;  %v5641_v10 = vsel %vm8687_vm5, %v6960_v47, %v5640_v22  ;;  %s6994_s18 = sshll.u32 %s9763_s12, 6 }
 0x183   : > { %7861 = vmatprep.subr.bf16.mxu0 %v8355_v17  ;;  %7572 = vmatpush3.bf16.msra.mxu1 %v8352_v35  ;;  %v5625_v35 = vsel %vm8687_vm5, %v6956_v48, %v5624_v55  ;;  %v6982_v21 = vcombine.low %v5641_v10, %v5645_v0  ;;  %s207_s26 = scalar_lea.vmem %s9750_s2, %s6994_s18 }
 0x184   : > { %7573 = vmatprep.subr.bf16.mxu1 %v8354_v39  ;;  %v6980_v13 = vcombine.low %v5625_v35, %v5629_v8 }
 0x186   : > { %7862 = vmatpush3.bf16.msra.mxu0 %v8355_v17  ;;  %v8363_v17 = vld [vmem:[%s9749_s1 + $0x618] sm:$0xff]  }
 0x187   : > { %7871 = vmatprep.subr.bf16.mxu0 %v8358_v56  ;;  %7574 = vmatpush3.bf16.msra.mxu1 %v8354_v39  ;;  %v5652_v39 = vrot.slane %v9569_v34, 5 }
 0x188   : > { %7895 = vmatprep.subr.bf16.mxu1 %v8358_v56 }
 0x189   : > { %7864 = vmatmul.mubr.bf16.vlgmr.msra.gmra.mrb[0].mxu0 %v6937_v59  ;;  %v5653_v51 = vsel %vm8687_vm5, %v6963_v24, %v5652_v39 }
 0x18a   : > { %7872 = vmatpush3.bf16.msra.mxu0 %v8358_v56  ;;  %7867 = vmatprep.mubr.bf16.mxu0 %v6938_v18  ;;  %v6983_v52 = vcombine.low %v5649_v46, %v5653_v51 }
 0x18b   : > { %7576 = vmatmul.mubr.bf16.vlgmr.msra.gmra.mrb[0].mxu1 %v8357_v1  ;;  %7873 = vmatprep.subr.bf16.mxu0 %v8359_v44 }
 0x18c   : > { %7903 = vmatpush3.bf16.msra.mxu1 %v8358_v56  ;;  %7579 = vmatprep.mubr.bf16.mxu1 %v8360_v16 }
 0x18d   : > { %7896 = vmatprep.subr.bf16.mxu1 %v8359_v44 }
 0x18e   : > { %7874 = vmatpush3.bf16.msra.mxu0 %v8359_v44 }
 0x18f   : > { %7875 = vmatprep.subr.bf16.mxu0 %v8362_v38 }
 0x190   : > { %7904 = vmatpush3.bf16.msra.mxu1 %v8359_v44 }
 0x191   : > { %7868 = vmatmul.mubr.bf16.gmra.mrb[4].mxu0 %v6939_v33  ;;  %7897 = vmatprep.subr.bf16.mxu1 %v8362_v38 }
 0x192   : > { %7876 = vmatpush3.bf16.msra.mxu0 %v8362_v38  ;;  %7887 = vmatprep.mubr.bf16.mxu0 %v6980_v13 }
 0x193   : > { %7580 = vmatmul.mubr.bf16.gmra.mrb[4].mxu1 %v8361_v40  ;;  %7877 = vmatprep.subr.bf16.mxu0 %v8363_v17 }
 0x194   : > { %7905 = vmatpush3.bf16.msra.mxu1 %v8362_v38  ;;  %7891 = vmatprep.mubr.bf16.mxu1 %v6982_v21 }
 0x195   : > { %7898 = vmatprep.subr.bf16.mxu1 %v8363_v17 }
 0x196   : > { %7878 = vmatpush3.bf16.msra.mxu0 %v8363_v17 }
 0x197   : > { %7879 = vmatprep.subr.bf16.mxu0 %v8364_v27 }
 0x198   : > { %7906 = vmatpush3.bf16.msra.mxu1 %v8363_v17 }
 0x199   : > { %7899 = vmatprep.subr.bf16.mxu1 %v8364_v27 }
 0x19a   : > { %7880 = vmatpush3.bf16.msra.mxu0 %v8364_v27 }
 0x19b   : > { %7881 = vmatprep.subr.bf16.mxu0 %v8365_v29 }
 0x19c   : > { %7907 = vmatpush3.bf16.msra.mxu1 %v8364_v27 }
 0x19d   : > { %7900 = vmatprep.subr.bf16.mxu1 %v8365_v29 }
 0x19e   : > { %7882 = vmatpush3.bf16.msra.mxu0 %v8365_v29 }
 0x19f   : > { %7883 = vmatprep.subr.bf16.mxu0 %v8366_v28 }
 0x1a0   : > { %7908 = vmatpush3.bf16.msra.mxu1 %v8365_v29 }
 0x1a1   : > { %7901 = vmatprep.subr.bf16.mxu1 %v8366_v28 }
 0x1a2   : > { %7884 = vmatpush3.bf16.msra.mxu0 %v8366_v28 }
 0x1a3   : > { %7885 = vmatprep.subr.bf16.mxu0 %v8367_v19 }
 0x1a4   : > { %7909 = vmatpush3.bf16.msra.mxu1 %v8366_v28 }
 0x1a5   : > { %7902 = vmatprep.subr.bf16.mxu1 %v8367_v19 }
 0x1a6   : > { %7886 = vmatpush3.bf16.msra.mxu0 %v8367_v19 }
 0x1a8   : > { %7910 = vmatpush3.bf16.msra.mxu1 %v8367_v19 }
 0x1a9   : > { %7888 = vmatmul.mubr.bf16.vlgmr.msra.gmra.mrb[0].mxu0 %v6981_v31 }
 0x1ab   : > { %7892 = vmatmul.mubr.bf16.vlgmr.msra.gmra.mrb[8].mxu1 %v6983_v52 }
 0x25e   : > { %v7577_v50 = vpop.f32.mrb[0].mxu1 }
 0x25f   : > { %v2754_v34 = vpop.f32.mrb[1].mxu1 }
 0x260   : > { %v7578_v53 = vpop.f32.mrb[2].mxu1 }
 0x261   : > { %v2757_v12 = vpop.f32.mrb[3].mxu1 }
 0x264   : > { %v7869_v4 = vpop.f32.mrb[4].mxu0 }
 0x265   : > { %v5575_v55 = vpop.f32.mrb[5].mxu0 }
 0x266   : > { %v7581_v56 = vpop.f32.mrb[4].mxu1  ;;  %v7870_v57 = vpop.f32.mrb[6].mxu0 }
 0x267   : > { %v7915_v58 = vadd.f32 %v7869_v4, %v7581_v56  ;;  %v2770_v36 = vpop.f32.mrb[5].mxu1  ;;  %v5578_v25 = vpop.f32.mrb[7].mxu0 }
 0x268   : > { %v7917_v42 = vadd.f32 %v5575_v55, %v2770_v36  ;;  %v7582_v54 = vpop.f32.mrb[6].mxu1 }
 0x269   : > { %v7919_v45 = vadd.f32 %v7870_v57, %v7582_v54  ;;  %v2773_v63 = vpop.f32.mrb[7].mxu1 }
 0x26a   : > { %v7921_v14 = vadd.f32 %v5578_v25, %v2773_v63 }
 0x27c   : > { %v7889_v59 = vpop.f32.mrb[0].mxu0 }
 0x27d   : > { %v7911_v60 = vadd.f32 %v7889_v59, %v7577_v50  ;;  %v5769_v61 = vpop.f32.mrb[1].mxu0 }
 0x27e   : > { %v7893_v5 = vpop.f32.mrb[8].mxu1  ;;  %v7912_v62 = vadd.f32 %v5769_v61, %v2754_v34  ;;  %v7890_v18 = vpop.f32.mrb[2].mxu0 }
 0x27f   : > { %5810 = vst [vmem:[%s207_s26 + $0x10] sm:$0xff] %v7911_v60  ;;  %v7916_v9 = vadd.f32 %v7915_v58, %v7893_v5  ;;  %v5785_v3 = vpop.f32.mrb[9].mxu1  ;;  %v7913_v32 = vadd.f32 %v7890_v18, %v7578_v53  ;;  %v5772_v7 = vpop.f32.mrb[3].mxu0  ;;  %v5831_v30 = vmul.f32 %v7911_v60, %v7911_v60 }
 0x280   : > { %5808 = vst [vmem:[%s207_s26] sm:$0xff] %v7912_v62  ;;  %v7918_v1 = vadd.f32 %v7917_v42, %v5785_v3  ;;  %v7894_v44 = vpop.f32.mrb[10].mxu1  ;;  %v7914_v48 = vadd.f32 %v5772_v7, %v2757_v12  ;;  %v5829_v16 = vmul.f32 %v7912_v62, %v7912_v62 }
 0x281   : > { %5814 = vst [vmem:[%s207_s26 + $0x30] sm:$0xff] %v7916_v9  ;;  %5811 = vst [vmem:[%s207_s26 + $0x18] sm:$0xff] %v7913_v32  ;;  %v7920_v11 = vadd.f32 %v7919_v45, %v7894_v44  ;;  %v5788_v15 = vpop.f32.mrb[11].mxu1  ;;  %v5832_v37 = vmul.f32 %v7913_v32, %v7913_v32  ;;  %v5835_v13 = vmul.f32 %v7916_v9, %v7916_v9 }
 0x282   : > { %5812 = vst [vmem:[%s207_s26 + $0x20] sm:$0xff] %v7918_v1  ;;  %5809 = vst [vmem:[%s207_s26 + $0x8] sm:$0xff] %v7914_v48  ;;  %v5816_v22 = vadd.f32 %v7914_v48, %v7912_v62  ;;  %v5830_v23 = vmul.f32 %v7914_v48, %v7914_v48  ;;  %v7922_v47 = vadd.f32 %v7921_v14, %v5788_v15 }
 0x283   : > { %5815 = vst [vmem:[%s207_s26 + $0x38] sm:$0xff] %v7920_v11  ;;  %v5833_v38 = vmul.f32 %v7918_v1, %v7918_v1  ;;  %v5836_v21 = vmul.f32 %v7920_v11, %v7920_v11 }
 0x284   : > { %v5817_v49 = vadd.f32 %v7911_v60, %v5816_v22  ;;  %v5837_v26 = vadd.f32 %v5830_v23, %v5829_v16  ;;  %5813 = vst [vmem:[%s207_s26 + $0x28] sm:$0xff] %v7922_v47  ;;  %v5834_v10 = vmul.f32 %v7922_v47, %v7922_v47 }
 0x286   : > { %v5838_v6 = vadd.f32 %v5837_v26, %v5831_v30  ;;  %v5818_v31 = vadd.f32 %v7913_v32, %v5817_v49 }
 0x288   : > { %v5819_v35 = vadd.f32 %v7918_v1, %v5818_v31  ;;  %v5839_v8 = vadd.f32 %v5838_v6, %v5832_v37 }
 0x28a   : > { %v5820_v33 = vadd.f32 %v7922_v47, %v5819_v35  ;;  %v5840_v0 = vadd.f32 %v5839_v8, %v5833_v38 }
 0x28c   : > { %v5821_v40 = vadd.f32 %v7916_v9, %v5820_v33  ;;  %v5841_v17 = vadd.f32 %v5840_v0, %v5834_v10 }
 0x28e   : > { %v5822_v27 = vadd.f32 %v7920_v11, %v5821_v40  ;;  %v5842_v29 = vadd.f32 %v5841_v17, %v5835_v13 }
 0x290   : > { %v5823_v28 = vrot.slane %v5822_v27, 4  ;;  %v5843_v20 = vadd.f32 %v5842_v29, %v5836_v21 }
 0x292   : > { %v5824_v43 = vadd.f32 %v5823_v28, %v5822_v27  ;;  %v5844_v19 = vrot.slane %v5843_v20, 4 }
 0x294   : > { %v5825_v2 = vrot.slane %v5824_v43, 2  ;;  %v5845_v39 = vadd.f32 %v5844_v19, %v5843_v20 }
 0x296   : > { %v5826_v41 = vadd.f32 %v5825_v2, %v5824_v43  ;;  %v5846_v24 = vrot.slane %v5845_v39, 2 }
 0x298   : > { %v5827_v46 = vrot.slane %v5826_v41, 1  ;;  %v5847_v51 = vadd.f32 %v5846_v24, %v5845_v39 }
 0x29a   : > { %v5848_v52 = vrot.slane %v5847_v51, 1  ;;  %v5828_v50 = vadd.f32 %v5827_v46, %v5826_v41 }
 0x29c   : > { %v5849_v34 = vadd.f32 %v5848_v52, %v5847_v51 }
 0x29e   : > { %v5851_v53 = vsel %vm5850_vm6, %v5828_v50, %v5849_v34 }
 0x29f   : > { %5852 = vst [vmem:[%s213_s30] sm:$0x3] %v5851_v53 }
 0x2a0 PF: > { %s14_s14 = sadd.s32 1, %s8390_s14   ;;  %s9756_s12 = smov %s8386_s13 }
 0x2a1   : > { %p11_p6 = scmp.ge.s32.totalorder %s14_s14, 4   ;;  %s9757_s13 = smov %s9759_s15 }
 0x2a3   :  { %13 = sbr.rel (!%p11_p6) target bundleno = 2 (0x2), region = 104 }

// kernel: encoder_forward.9
= control target key start
LH: loop header
LB: loop body
LE: loop exit
PB: predicated region body
PF: predicated region fallthrough
CT: control target
= control target key end

     0   :  { %s6798_s12 = smov 0   ;;  %s6800_s13 = smov 0   ;;  %s7971_s0 = inlined_call_operand.vmem [shape: bf16[8,6,6,128], index: 0, kind: input, shape index: {}]   ;;  %s7972_s1 = inlined_call_operand.vmem [shape: bf16[25,128,128], index: 1, kind: input, shape index: {}]   ;;  %s7973_s2 = inlined_call_operand.vmem [shape: f32[2,16,128], index: 2, kind: output, shape index: {0}]   ;;  %s7974_s3 = inlined_call_operand.vmem [shape: f32[2,2,128], index: 3, kind: output, shape index: {1}]  }
   0x1   :  { %s6802_s14 = smov 0  }
   0x2 LB: > { %s26_s15 = sadd.s32 1, %s6769_s13  ;;  %p4903_p0 = scmp.ge.s32.totalorder %s6773_s14, 1  ;;  %s6773_s14 = sphi %s6802_s14, %s14_s14   ;;  %s6769_s13 = sphi %s6800_s13, %s7984_s13   ;;  %s6765_s12 = sphi %s6798_s12, %s7983_s12  }
   0x3   : > { %p28_p1 = scmp.ge.s32.totalorder %s26_s15, 2  ;;  %p158_p2 = scmp.lt.s32.totalorder %s6773_s14, 3 }
   0x5   : > { %s7986_s15 = smov (%p28_p1, %s26_s15), 0  ;;  %p159_p3 = pnand %p4903_p0, %p158_p2 }
   0x6   : > { %v6511_v0 = vld [vmem:[%s7972_s1 + $0x40] sm:$0xff] (!%p159_p3)   ;;  %v6775_v1 = vmov (!%p159_p3), 0.0   ;;  %v6513_v3 = vld [vmem:[%s7972_s1 + $0x48] sm:$0xff] (!%p159_p3)   ;;  %vm6776_vm0 = vmmov (!%p159_p3), 0   ;;  %s4904_s22 = sshll.u32 (!%p159_p3), %s6765_s12, 2  ;;  %v6515_v5 = vld [vmem:[%s7972_s1 + $0x50] sm:$0xff] (!%p159_p3)   ;;  %v272_v9 = vlaneseq (!%p159_p3) }
   0x7   : > { %162 = sbr.rel (%p159_p3) target bundleno = 662 (0x296), region = 28  ;;  %5889 = vmatprep.subr.bf16.mxu1 (!%p159_p3), %v6775_v1  ;;  %6129 = vmatprep.subr.bf16.mxu0 (!%p159_p3), %v6775_v1  ;;  %v6512_v2 = vld [vmem:[%s7972_s1 + $0x300] sm:$0xff] (!%p159_p3)   ;;  %v6514_v4 = vld [vmem:[%s7972_s1 + $0x308] sm:$0xff] (!%p159_p3)   ;;  %p193_p4 = scmp.lt.s32.totalorder (!%p159_p3), %s4904_s22, 7  ;;  %v6516_v6 = vld [vmem:[%s7972_s1 + $0x310] sm:$0xff] (!%p159_p3)   ;;  %vm976_vm8 = vcmask (!%p159_p3), 1040384  }
   0x8   : > { %5890 = vmatpush3.bf16.msra.mxu1 (!%p159_p3), %v6511_v0  ;;  %5905 = vmatprep.mubr.msk.bf16.mxu1 (!%p159_p3), %vm6776_vm0, %v6775_v1  ;;  %v6517_v7 = vld [vmem:[%s7972_s1 + $0x58] sm:$0xff] (!%p159_p3)   ;;  %v6519_v10 = vld [vmem:[%s7972_s1 + $0x60] sm:$0xff] (!%p159_p3)   ;;  %v6521_v12 = vld [vmem:[%s7972_s1 + $0x68] sm:$0xff] (!%p159_p3)   ;;  %v273_v14 = vshrl.u32 (!%p159_p3), %v272_v9, 7  ;;  %v6777_v17 = vmov (!%p159_p3), 1983009808  }
   0x9   : > { %6130 = vmatpush3.bf16.msra.mxu0 (!%p159_p3), %v6512_v2  ;;  %5891 = vmatprep.subr.bf16.mxu1 (!%p159_p3), %v6775_v1  ;;  %v6518_v8 = vld [vmem:[%s7972_s1 + $0x318] sm:$0xff] (!%p159_p3)   ;;  %v6520_v11 = vld [vmem:[%s7972_s1 + $0x320] sm:$0xff] (!%p159_p3)   ;;  %v6522_v13 = vld [vmem:[%s7972_s1 + $0x328] sm:$0xff] (!%p159_p3)   ;;  %v270_v18 = vunpack.c.l.s4 (!%p159_p3), %v6777_v17  ;;  %vm525_vm1 = vsmask.f32 (!%p159_p3), 1280  ;;  %vm977_vm9 = vcmask (!%p159_p3), 1042434  }
   0xa   : > { %6131 = vmatprep.subr.bf16.mxu0 (!%p159_p3), %v6775_v1  ;;  %6145 = vmatprep.mubr.msk.bf16.mxu0 (!%p159_p3), %vm6776_vm0, %v6775_v1  ;;  %vm526_vm2 = vsmask.f32 (!%p159_p3), 3336  ;;  %v6523_v19 = vld [vmem:[%s7972_s1 + $0x70] sm:$0xff] (!%p159_p3)   ;;  %vm528_vm3 = vsmask.f32 (!%p159_p3), 5392  ;;  %v6525_v40 = vld [vmem:[%s7972_s1 + $0x78] sm:$0xff] (!%p159_p3)   ;;  %vm978_vm10 = vmor (!%p159_p3), %vm976_vm8, %vm977_vm9 }
   0xb   : > { %vm530_vm4 = vsmask.f32 (!%p159_p3), 7448  ;;  %v6524_v20 = vld [vmem:[%s7972_s1 + $0x330] sm:$0xff] (!%p159_p3)   ;;  %v271_v21 = vunpack.c.0.s8 (!%p159_p3), %v270_v18  ;;  %vm6889_vm5 = vmor (!%p159_p3), %vm525_vm1, %vm526_vm2  ;;  %v6526_v45 = vld [vmem:[%s7972_s1 + $0x338] sm:$0xff] (!%p159_p3)   ;;  %vm979_vm11 = vcmask (!%p159_p3), 1044484   ;;  %vm981_vm13 = vcmask (!%p159_p3), 1046534  }
   0xc   : > { %5892 = vmatpush3.bf16.msra.mxu1 (!%p159_p3), %v6513_v3  ;;  %vm6903_vm6 = vmor (!%p159_p3), %vm6889_vm5, %vm528_vm3  ;;  %v6529_v59 = vld [vmem:[%s7972_s1] sm:$0xff] (!%p159_p3)   ;;  %p200_p5 = scmp.lt.s32.totalorder (!%p159_p3), %s6765_s12, 1 }
   0xd   : > { %6132 = vmatpush3.bf16.msra.mxu0 (!%p159_p3), %v6514_v4  ;;  %5893 = vmatprep.subr.bf16.mxu1 (!%p159_p3), %v6775_v1  ;;  %v6895_v28 = vsub.s32 (!%p159_p3), %v271_v21, %v273_v14  ;;  %vm6920_vm7 = vmor (!%p159_p3), %vm6903_vm6, %vm530_vm4  ;;  %v6530_v17 = vld [vmem:[%s7972_s1 + $0x340] sm:$0xff] (!%p159_p3)  }
   0xe   : > { %s7988_s22 = smov (!%p193_p4, %s4904_s22), 7  ;;  %6133 = vmatprep.subr.bf16.mxu0 %v6775_v1  ;;  %v6537_v21 = vld [vmem:[%s7972_s1 + $0x20] sm:$0xff]   ;;  %vm980_vm12 = vmor %vm978_vm10, %vm979_vm11  ;;  %s7990_s12 = smov (!%p200_p5, %s6765_s12), 1 }
   0xf   : > { %s6483_s6 = smul.u32 24, %s7988_s22  ;;  %vm7100_vm14 = vmor %vm980_vm12, %vm981_vm13  ;;  %s5663_s23 = sshll.u32 %s7990_s12, 4 }
  0x10   : > { %5894 = vmatpush3.bf16.msra.mxu1 %v6515_v5  ;;  %v6531_v5 = vld [vmem:[%s7972_s1 + $0x8] sm:$0xff]   ;;  %s207_s26 = scalar_lea.vmem %s7973_s2, %s5663_s23  ;;  %s4908_s27 = sshll.u32 %s7990_s12, 1 }
  0x11   : > { %6134 = vmatpush3.bf16.msra.mxu0 %v6516_v6  ;;  %5895 = vmatprep.subr.bf16.mxu1 %v6775_v1  ;;  %s6865_s17 = scalar_lea.vmem %s7971_s0, %s6483_s6  ;;  %s213_s30 = scalar_lea.vmem %s7974_s3, %s4908_s27 }
  0x12   : > { %6135 = vmatprep.subr.bf16.mxu0 %v6775_v1  ;;  %v6876_v15 = vld.sshfl [vmem:[%s6865_s17 + $0x18] sm:$0xf pattern:$0x76325410] }
  0x13   : > { %v6879_v16 = vld.sshfl [vmem:[%s6865_s17 + $0x20] sm:$0xf pattern:$0x76325410] }
  0x14   : > { %5896 = vmatpush3.bf16.msra.mxu1 %v6517_v7  ;;  %v5253_v22 = vld.sshfl [vmem:[%s6865_s17 + $0x4] sm:$0x13 pattern:$0x76325410]  ;;  %v283_v46 = vcombine.low %v6876_v15, %v6879_v16  ;;  %v6533_v15 = vld [vmem:[%s7972_s1 + $0x10] sm:$0xff]  }
  0x15   : > { %6136 = vmatpush3.bf16.msra.mxu0 %v6518_v8  ;;  %5897 = vmatprep.subr.bf16.mxu1 %v6775_v1  ;;  %v5254_v24 = vld.sshfl [vmem:[%s6865_s17 + $0x8] sm:$0x13 pattern:$0x76325410]  ;;  %v2314_v25 = vcombine.high %v5253_v22, %v5253_v22  ;;  %v2340_v26 = vshrl.u32 %v5253_v22, 16  ;;  %v2343_v27 = vshll.u32 %v5253_v22, 16 }
  0x16   : > { %6137 = vmatprep.subr.bf16.mxu0 %v6775_v1  ;;  %v5255_v29 = vld.sshfl [vmem:[%s6865_s17 + $0xc] sm:$0x13 pattern:$0x76325410]  ;;  %v2322_v30 = vcombine.high %v5254_v24, %v5254_v24  ;;  %v2354_v31 = vshrl.u32 %v5254_v24, 16  ;;  %v2357_v32 = vshll.u32 %v5254_v24, 16 }
  0x17   : > { %v5256_v33 = vld.sshfl [vmem:[%s6865_s17 + $0x10] sm:$0x13 pattern:$0x76325410]  ;;  %v2330_v34 = vcombine.high %v5255_v29, %v5255_v29  ;;  %v2342_v35 = vrot.slane %v2340_v26, 6  ;;  %v2345_v36 = vrot.slane %v2343_v27, 7 }
  0x18   : > { %5898 = vmatpush3.bf16.msra.mxu1 %v6519_v10  ;;  %v2338_v38 = vcombine.high %v5256_v33, %v5256_v33  ;;  %v2349_v39 = vshll.u32 %v2314_v25, 16  ;;  %v2356_v42 = vrot.slane %v2354_v31, 6  ;;  %v2359_v43 = vrot.slane %v2357_v32, 7 }
  0x19   : > { %6138 = vmatpush3.bf16.msra.mxu0 %v6520_v11  ;;  %5899 = vmatprep.subr.bf16.mxu1 %v6775_v1  ;;  %v2346_v41 = vor.u32 %v2345_v36, %v2342_v35  ;;  %v2363_v44 = vshll.u32 %v2322_v30, 16  ;;  %v2368_v48 = vshrl.u32 %v5255_v29, 16  ;;  %v2371_v49 = vshll.u32 %v5255_v29, 16 }
  0x1a   : > { %6139 = vmatprep.subr.bf16.mxu0 %v6775_v1  ;;  %v2351_v47 = vrot.slane %v2349_v39, 7  ;;  %v2360_v52 = vor.u32 %v2359_v43, %v2356_v42  ;;  %v2377_v54 = vshll.u32 %v2330_v34, 16  ;;  %v2382_v57 = vshrl.u32 %v5256_v33, 16  ;;  %v6534_v39 = vld [vmem:[%s7972_s1 + $0x350] sm:$0xff]  }
  0x1b   : > { %v2347_v51 = vrot.slane %v2346_v41, 2  ;;  %v2365_v53 = vrot.slane %v2363_v44, 7  ;;  %v2370_v55 = vrot.slane %v2368_v48, 6  ;;  %v2373_v56 = vrot.slane %v2371_v49, 7  ;;  %v6536_v49 = vld [vmem:[%s7972_s1 + $0x358] sm:$0xff]  }
  0x1c   : > { %5900 = vmatpush3.bf16.msra.mxu1 %v6521_v12  ;;  %v2385_v58 = vshll.u32 %v5256_v33, 16  ;;  %v2361_v60 = vrot.slane %v2360_v52, 2  ;;  %v2379_v61 = vrot.slane %v2377_v54, 7  ;;  %v2391_v62 = vshll.u32 %v2338_v38, 16 }
  0x1d   : > { %6140 = vmatpush3.bf16.msra.mxu0 %v6522_v13  ;;  %5901 = vmatprep.subr.bf16.mxu1 %v6775_v1  ;;  %v6930_v63 = vsel %vm6920_vm7, %v2347_v51, %v2351_v47  ;;  %v2374_v0 = vor.u32 %v2373_v56, %v2370_v55  ;;  %v2384_v2 = vrot.slane %v2382_v57, 6  ;;  %v5285_v22 = vld.sshfl [vmem:[%s6865_s17 + $0x1c] sm:$0x13 pattern:$0x76325410]  ;;  %v6541_v55 = vld [vmem:[%s7972_s1 + $0x30] sm:$0xff]  }
  0x1e   : > { %6141 = vmatprep.subr.bf16.mxu0 %v6775_v1  ;;  %v2387_v3 = vrot.slane %v2385_v58, 7  ;;  %v6935_v4 = vsel %vm6920_vm7, %v2361_v60, %v2365_v53  ;;  %v2393_v8 = vrot.slane %v2391_v62, 7  ;;  %v5286_v23 = vld.sshfl [vmem:[%s6865_s17 + $0x20] sm:$0x13 pattern:$0x76325410]  ;;  %v2536_v24 = vcombine.high %v5285_v22, %v5285_v22 }
  0x1f   : > { %v2375_v6 = vrot.slane %v2374_v0, 2  ;;  %v2412_v9 = vcombine.low %v6930_v63, %v6935_v4  ;;  %v2562_v25 = vshrl.u32 %v5285_v22, 16  ;;  %v2565_v26 = vshll.u32 %v5285_v22, 16  ;;  %v6549_v22 = vld [vmem:[%s7972_s1 + $0x88] sm:$0xff]  }
  0x20   : > { %5902 = vmatpush3.bf16.msra.mxu1 %v6523_v19  ;;  %v2388_v7 = vor.u32 %v2387_v3, %v2384_v2  ;;  %v6535_v19 = vld [vmem:[%s7972_s1 + $0x18] sm:$0xff]   ;;  %v5287_v27 = vld.sshfl [vmem:[%s6865_s17 + $0x24] sm:$0x13 pattern:$0x76325410]  ;;  %v2544_v29 = vcombine.high %v5286_v23, %v5286_v23  ;;  %v2576_v30 = vshrl.u32 %v5286_v23, 16 }
  0x21   : > { %6142 = vmatpush3.bf16.msra.mxu0 %v6524_v20  ;;  %5903 = vmatprep.subr.bf16.mxu1 %v6775_v1  ;;  %v6946_v10 = vsel %vm6920_vm7, %v2375_v6, %v2379_v61  ;;  %v2420_v14 = vrot.slane %v2412_v9, %v6895_v28  ;;  %v6532_v20 = vld [vmem:[%s7972_s1 + $0x348] sm:$0xff]   ;;  %v2579_v31 = vshll.u32 %v5286_v23, 16  ;;  %v2552_v33 = vcombine.high %v5287_v27, %v5287_v27  ;;  %v6538_v2 = vld [vmem:[%s7972_s1 + $0x360] sm:$0xff]   ;;  %v6543_v9 = vld [vmem:[%s7972_s1 + $0x38] sm:$0xff]  }
  0x22   : > { %6143 = vmatprep.subr.bf16.mxu0 %v6775_v1  ;;  %v2389_v11 = vrot.slane %v2388_v7, 2  ;;  %v5288_v32 = vld.sshfl [vmem:[%s6865_s17 + $0x28] sm:$0x13 pattern:$0x76325410]  ;;  %v2564_v34 = vrot.slane %v2562_v25, 6 }
  0x23   : > { %v2567_v35 = vrot.slane %v2565_v26, 7  ;;  %v2571_v36 = vshll.u32 %v2536_v24, 16  ;;  %v2578_v37 = vrot.slane %v2576_v30, 6  ;;  %v2581_v38 = vrot.slane %v2579_v31, 7  ;;  %v6551_v30 = vld [vmem:[%s7972_s1 + $0x90] sm:$0xff]  }
  0x24   : > { %5904 = vmatpush3.bf16.msra.mxu1 %v6525_v40  ;;  %v2394_v12 = vsel %vm6920_vm7, %v2389_v11, %v2393_v8  ;;  %v6539_v40 = vld [vmem:[%s7972_s1 + $0x28] sm:$0xff]   ;;  %v2560_v41 = vcombine.high %v5288_v32, %v5288_v32  ;;  %v2590_v43 = vshrl.u32 %v5287_v27, 16  ;;  %v2593_v44 = vshll.u32 %v5287_v27, 16 }
  0x25   : > { %6144 = vmatpush3.bf16.msra.mxu0 %v6526_v45  ;;  %5909 = vmatprep.subr.bf16.mxu1 %v6775_v1  ;;  %v2413_v13 = vcombine.low %v6946_v10, %v2394_v12  ;;  %v2568_v42 = vor.u32 %v2567_v35, %v2564_v34  ;;  %v6733_v45 = vld.sshfl [vmem:[%s6865_s17] sm:$0xf pattern:$0x76325410]  ;;  %v2585_v47 = vshll.u32 %v2544_v29, 16  ;;  %v2604_v48 = vshrl.u32 %v5288_v32, 16 }
  0x26   : > { %6149 = vmatprep.subr.bf16.mxu0 %v6775_v1  ;;  %v2582_v51 = vor.u32 %v2581_v38, %v2578_v37  ;;  %v2592_v52 = vrot.slane %v2590_v43, 6  ;;  %v2595_v53 = vrot.slane %v2593_v44, 7  ;;  %v2599_v54 = vshll.u32 %v2552_v33, 16  ;;  %v6544_v29 = vld [vmem:[%s7972_s1 + $0x378] sm:$0xff]   ;;  %v6548_v35 = vld [vmem:[%s7972_s1 + $0x380] sm:$0xff]  }
  0x27   : > { %5906 = vmatmul.mubr.bf16.vlgmr.msra.gmra.mrb[0].mxu1 %v283_v46  ;;  %v2427_v16 = vrot.slane %v2413_v13, %v6895_v28  ;;  %v6734_v46 = vld.sshfl [vmem:[%s6865_s17 + $0x8] sm:$0xf pattern:$0x76325410]  ;;  %v2573_v56 = vrot.slane %v2571_v36, 7  ;;  %v2606_v57 = vrot.slane %v2604_v48, 6 }
  0x28   : > { %5910 = vmatpush3.bf16.msra.mxu1 %v6529_v59  ;;  %5925 = vmatprep.mubr.msk.bf16.mxu1 %vm6776_vm0, %v6775_v1  ;;  %v2607_v58 = vshll.u32 %v5288_v32, 16  ;;  %v2569_v59 = vrot.slane %v2568_v42, 2  ;;  %v2596_v60 = vor.u32 %v2595_v53, %v2592_v52  ;;  %v2613_v61 = vshll.u32 %v2560_v41, 16  ;;  %v6540_v13 = vld [vmem:[%s7972_s1 + $0x368] sm:$0xff]   ;;  %v6553_v36 = vld [vmem:[%s7972_s1 + $0x98] sm:$0xff]  }
  0x29   : > { %5911 = vmatprep.subr.bf16.mxu1 %v6775_v1  ;;  %v2428_v18 = vcombine.low %v2420_v14, %v2427_v16  ;;  %v2587_v62 = vrot.slane %v2585_v47, 7  ;;  %v2583_v3 = vrot.slane %v2582_v51, 2  ;;  %v394_v12 = vcombine.low %v6733_v45, %v6734_v46  ;;  %v4945_v23 = vld.sshfl [vmem:[%s6865_s17] sm:$0x13 pattern:$0x76325410] }
  0x2a   : > { %v2609_v0 = vrot.slane %v2607_v58, 7  ;;  %v2597_v7 = vrot.slane %v2596_v60, 2  ;;  %v2615_v8 = vrot.slane %v2613_v61, 7  ;;  %v7010_v14 = vsel %vm6920_vm7, %v2569_v59, %v2573_v56  ;;  %v6552_v47 = vld [vmem:[%s7972_s1 + $0x390] sm:$0xff]   ;;  %v6557_v48 = vld [vmem:[%s7972_s1 + $0xa8] sm:$0xff]  }
  0x2b   : > { %6146 = vmatmul.mubr.bf16.vlgmr.msra.gmra.mrb[0].mxu0 %v2428_v18  ;;  %v6547_v18 = vld [vmem:[%s7972_s1 + $0x80] sm:$0xff]   ;;  %v533_v24 = vshrl.u32 %v4945_v23, 16  ;;  %v536_v25 = vshll.u32 %v4945_v23, 16  ;;  %v500_v31 = vcombine.high %v4945_v23, %v4945_v23  ;;  %v606_v53 = vcombine.low %v6935_v4, %v6946_v10  ;;  %v6559_v58 = vld [vmem:[%s7972_s1 + $0xb0] sm:$0xff]  }
  0x2c   : > { %5912 = vmatpush3.bf16.msra.mxu1 %v6531_v5  ;;  %6150 = vmatpush3.bf16.msra.mxu0 %v6530_v17  ;;  %v2601_v5 = vrot.slane %v2599_v54, 7  ;;  %v2610_v6 = vor.u32 %v2609_v0, %v2606_v57  ;;  %v5317_v41 = vld.sshfl [vmem:[%s6865_s17 + $0x4] sm:$0x12 pattern:$0x76325410]  ;;  %v6554_v54 = vld [vmem:[%s7972_s1 + $0x398] sm:$0xff]  }
  0x2d   : > { %5913 = vmatprep.subr.bf16.mxu1 %v6775_v1  ;;  %6165 = vmatprep.mubr.msk.bf16.mxu0 %vm6776_vm0, %v6775_v1  ;;  %v535_v32 = vrot.slane %v533_v24, 6  ;;  %v538_v33 = vrot.slane %v536_v25, 7  ;;  %v542_v38 = vshll.u32 %v500_v31, 16  ;;  %v2758_v51 = vcombine.high %v5317_v41, %v5317_v41  ;;  %v6565_v25 = vld [vmem:[%s7972_s1 + $0xc8] sm:$0xff]  }
  0x2e   : > { %6151 = vmatprep.subr.bf16.mxu0 %v6775_v1  ;;  %v2611_v11 = vrot.slane %v2610_v6, 2  ;;  %v7018_v16 = vsel %vm6920_vm7, %v2597_v7, %v2601_v5  ;;  %v5318_v44 = vld.sshfl [vmem:[%s6865_s17 + $0x8] sm:$0x12 pattern:$0x76325410]  ;;  %v5321_v59 = vrot.slane %v5317_v41, 9 }
  0x2f   : > { %v539_v37 = vor.u32 %v538_v33, %v535_v32  ;;  %v544_v43 = vrot.slane %v542_v38, 7  ;;  %v5319_v45 = vld.sshfl [vmem:[%s6865_s17 + $0xc] sm:$0x12 pattern:$0x76325410]  ;;  %v2766_v52 = vcombine.high %v5318_v44, %v5318_v44  ;;  %v2785_v4 = vrot.slane %v2758_v51, 7 }
  0x30   : > { %5914 = vmatpush3.bf16.msra.mxu1 %v6533_v15  ;;  %6152 = vmatpush3.bf16.msra.mxu0 %v6532_v20  ;;  %v7014_v15 = vsel %vm6920_vm7, %v2583_v3, %v2587_v62  ;;  %v2616_v17 = vsel %vm6920_vm7, %v2611_v11, %v2615_v8  ;;  %v5320_v46 = vld.sshfl [vmem:[%s6865_s17 + $0x10] sm:$0x12 pattern:$0x76325410]  ;;  %v2774_v56 = vcombine.high %v5319_v45, %v5319_v45  ;;  %v5322_v10 = vrot.slane %v5318_v44, 9  ;;  %v6556_v62 = vld [vmem:[%s7972_s1 + $0x3a0] sm:$0xff]  }
  0x31   : > { %5915 = vmatprep.subr.bf16.mxu1 %v6775_v1  ;;  %6153 = vmatprep.subr.bf16.mxu0 %v6775_v1  ;;  %v2635_v20 = vcombine.low %v7018_v16, %v2616_v17  ;;  %v540_v42 = vrot.slane %v539_v37, 2  ;;  %v2782_v57 = vcombine.high %v5320_v46, %v5320_v46  ;;  %v2789_v60 = vrot.slane %v2766_v52, 7  ;;  %v6561_v7 = vld [vmem:[%s7972_s1 + $0xb8] sm:$0xff]   ;;  %v6558_v11 = vld [vmem:[%s7972_s1 + $0x3a8] sm:$0xff]   ;;  %v6567_v33 = vld [vmem:[%s7972_s1 + $0xd0] sm:$0xff]  }
  0x32   : > { %v5323_v61 = vrot.slane %v5319_v45, 9  ;;  %v2793_v3 = vrot.slane %v2774_v56, 7  ;;  %v5324_v5 = vrot.slane %v5320_v46, 9  ;;  %v7111_v8 = vsel %vm7100_vm14, %v5321_v59, %v2785_v4  ;;  %v6569_v38 = vld [vmem:[%s7972_s1 + $0xd8] sm:$0xff]   ;;  %v6573_v44 = vld [vmem:[%s7972_s1 + $0xe8] sm:$0xff]   ;;  %v6572_v51 = vld [vmem:[%s7972_s1 + $0x3e0] sm:$0xff]  }
  0x33   : > { %v2649_v27 = vrot.slane %v2635_v20, %v6895_v28  ;;  %v2797_v6 = vrot.slane %v2782_v57, 7  ;;  %v6560_v20 = vld [vmem:[%s7972_s1 + $0x3b0] sm:$0xff]   ;;  %v6570_v46 = vld [vmem:[%s7972_s1 + $0x3d8] sm:$0xff]   ;;  %v6574_v52 = vld [vmem:[%s7972_s1 + $0x3e8] sm:$0xff]  }
  0x34   : > { %5916 = vmatpush3.bf16.msra.mxu1 %v6535_v19  ;;  %6154 = vmatpush3.bf16.msra.mxu0 %v6534_v39  ;;  %v2634_v19 = vcombine.low %v7010_v14, %v7014_v15  ;;  %v6550_v39 = vld [vmem:[%s7972_s1 + $0x388] sm:$0xff]   ;;  %v7123_v17 = vsel %vm7100_vm14, %v5323_v61, %v2793_v3  ;;  %v6736_v56 = vld.sshfl [vmem:[%s6865_s17 + $0x3c] sm:$0xf pattern:$0x76325410]  ;;  %v6576_v57 = vld [vmem:[%s7972_s1 + $0x3f0] sm:$0xff]  }
  0x35   : > { %5917 = vmatprep.subr.bf16.mxu1 %v6775_v1  ;;  %6155 = vmatprep.subr.bf16.mxu0 %v6775_v1  ;;  %v6578_v59 = vld [vmem:[%s7972_s1 + $0x3f8] sm:$0xff]   ;;  %v6585_v4 = vld [vmem:[%s7972_s1 + $0x110] sm:$0xff]   ;;  %v6582_v61 = vld [vmem:[%s7972_s1 + $0x400] sm:$0xff]  }
  0x36   : > { %v2642_v26 = vrot.slane %v2634_v19, %v6895_v28  ;;  %v6563_v19 = vld [vmem:[%s7972_s1 + $0xc0] sm:$0xff]  }
  0x37   : > { %v6589_v3 = vld [vmem:[%s7972_s1 + $0x120] sm:$0xff]  }
  0x38   : > { %5918 = vmatpush3.bf16.msra.mxu1 %v6537_v21  ;;  %6156 = vmatpush3.bf16.msra.mxu0 %v6536_v49  ;;  %v6542_v21 = vld [vmem:[%s7972_s1 + $0x370] sm:$0xff]   ;;  %v2650_v34 = vcombine.low %v2642_v26, %v2649_v27  ;;  %v545_v49 = vsel %vm6920_vm7, %v540_v42, %v544_v43  ;;  %v6562_v26 = vld [vmem:[%s7972_s1 + $0x3b8] sm:$0xff]  }
  0x39   : > { %5919 = vmatprep.subr.bf16.mxu1 %v6775_v1  ;;  %6157 = vmatprep.subr.bf16.mxu0 %v6775_v1  ;;  %v6568_v43 = vld [vmem:[%s7972_s1 + $0x3d0] sm:$0xff]  }
  0x3c   : > { %5920 = vmatpush3.bf16.msra.mxu1 %v6539_v40  ;;  %6158 = vmatpush3.bf16.msra.mxu0 %v6538_v2  ;;  %v6555_v40 = vld [vmem:[%s7972_s1 + $0xa0] sm:$0xff]   ;;  %v6730_v2 = vld [vmem:[%s7972_s1 + $0x638] sm:$0xff]  }
  0x3d   : > { %5921 = vmatprep.subr.bf16.mxu1 %v6775_v1  ;;  %6159 = vmatprep.subr.bf16.mxu0 %v6775_v1 }
  0x40   : > { %5922 = vmatpush3.bf16.msra.mxu1 %v6541_v55  ;;  %6160 = vmatpush3.bf16.msra.mxu0 %v6540_v13  ;;  %v605_v55 = vcombine.low %v545_v49, %v6930_v63  ;;  %v620_v63 = vrot.slane %v606_v53, %v6895_v28  ;;  %v7119_v13 = vsel %vm7100_vm14, %v5322_v10, %v2789_v60  ;;  %v6575_v49 = vld [vmem:[%s7972_s1 + $0xf0] sm:$0xff]   ;;  %v5005_v10 = vld.sshfl [vmem:[%s6865_s17] sm:$0x12 pattern:$0x76325410] }
  0x41   : > { %5923 = vmatprep.subr.bf16.mxu1 %v6775_v1  ;;  %6161 = vmatprep.subr.bf16.mxu0 %v6775_v1 }
  0x42   : > { %v613_v0 = vrot.slane %v605_v55, %v6895_v28  ;;  %v6735_v55 = vld.sshfl [vmem:[%s6865_s17 + $0x34] sm:$0xf pattern:$0x76325410] }
  0x43   : > { %v2969_v60 = vcombine.low %v6735_v55, %v6736_v56  ;;  %v6604_v56 = vld [vmem:[%s7972_s1 + $0x450] sm:$0xff]  }
  0x44   : > { %5924 = vmatpush3.bf16.msra.mxu1 %v6543_v9  ;;  %6162 = vmatpush3.bf16.msra.mxu0 %v6542_v21  ;;  %v4977_v9 = vld.sshfl [vmem:[%s6865_s17 + $0x18] sm:$0x13 pattern:$0x76325410]  ;;  %v2816_v21 = vcombine.low %v7111_v8, %v7119_v13 }
  0x45   : > { %5929 = vmatprep.subr.bf16.mxu1 %v6775_v1  ;;  %6163 = vmatprep.subr.bf16.mxu0 %v6775_v1  ;;  %v755_v23 = vshrl.u32 %v4977_v9, 16  ;;  %v758_v24 = vshll.u32 %v4977_v9, 16 }
  0x46   : > { %v2824_v27 = vrot.slane %v2816_v21, %v6895_v28  ;;  %v6590_v21 = vld [vmem:[%s7972_s1 + $0x420] sm:$0xff]  }
  0x47   : > { %5926 = vmatmul.mubr.bf16.vlgmr.msra.gmra.mrb[0].mxu1 %v394_v12  ;;  %v621_v12 = vcombine.low %v613_v0, %v620_v63  ;;  %v757_v31 = vrot.slane %v755_v23, 6  ;;  %v760_v32 = vrot.slane %v758_v24, 7  ;;  %v6587_v63 = vld [vmem:[%s7972_s1 + $0x118] sm:$0xff]   ;;  %v6584_v0 = vld [vmem:[%s7972_s1 + $0x408] sm:$0xff]   ;;  %v6597_v24 = vld [vmem:[%s7972_s1 + $0x140] sm:$0xff]  }
  0x48   : > { %5930 = vmatpush3.bf16.msra.mxu1 %v6547_v18  ;;  %5945 = vmatprep.mubr.msk.bf16.mxu1 %vm6776_vm0, %v6775_v1  ;;  %v2798_v18 = vsel %vm7100_vm14, %v5324_v5, %v2797_v6  ;;  %v5009_v5 = vrot.slane %v5005_v10, 9 }
  0x49   : > { %5931 = vmatprep.subr.bf16.mxu1 %v6775_v1  ;;  %6164 = vmatpush3.bf16.msra.mxu0 %v6544_v29 }
  0x4a   : > { %6169 = vmatprep.subr.bf16.mxu0 %v6775_v1 }
  0x4c   : > { %5932 = vmatpush3.bf16.msra.mxu1 %v6549_v22  ;;  %6166 = vmatmul.mubr.bf16.vlgmr.msra.gmra.mrb[0].mxu0 %v2650_v34  ;;  %v2817_v22 = vcombine.low %v7123_v17, %v2798_v18 }
  0x4d   : > { %5933 = vmatprep.subr.bf16.mxu1 %v6775_v1  ;;  %6170 = vmatpush3.bf16.msra.mxu0 %v6548_v35  ;;  %v6564_v35 = vld [vmem:[%s7972_s1 + $0x3c0] sm:$0xff]  }
  0x4e   : > { %6185 = vmatprep.mubr.msk.bf16.mxu0 %vm6776_vm0, %v6775_v1  ;;  %6171 = vmatprep.subr.bf16.mxu0 %v6775_v1  ;;  %v2831_v29 = vrot.slane %v2817_v22, %v6895_v28  ;;  %v6592_v22 = vld [vmem:[%s7972_s1 + $0x428] sm:$0xff]  }
  0x50   : > { %5934 = vmatpush3.bf16.msra.mxu1 %v6551_v30  ;;  %v729_v30 = vcombine.high %v4977_v9, %v4977_v9  ;;  %v2832_v34 = vcombine.low %v2824_v27, %v2831_v29  ;;  %v6591_v9 = vld [vmem:[%s7972_s1 + $0x128] sm:$0xff]   ;;  %v6594_v27 = vld [vmem:[%s7972_s1 + $0x430] sm:$0xff]  }
  0x51   : > { %5935 = vmatprep.subr.bf16.mxu1 %v6775_v1  ;;  %6172 = vmatpush3.bf16.msra.mxu0 %v6550_v39  ;;  %v6566_v39 = vld [vmem:[%s7972_s1 + $0x3c8] sm:$0xff]  }
  0x52   : > { %6173 = vmatprep.subr.bf16.mxu0 %v6775_v1  ;;  %v764_v37 = vshll.u32 %v729_v30, 16  ;;  %v6601_v29 = vld [vmem:[%s7972_s1 + $0x148] sm:$0xff]   ;;  %v6596_v30 = vld [vmem:[%s7972_s1 + $0x438] sm:$0xff]  }
  0x54   : > { %5936 = vmatpush3.bf16.msra.mxu1 %v6553_v36  ;;  %v761_v36 = vor.u32 %v760_v32, %v757_v31  ;;  %v766_v42 = vrot.slane %v764_v37, 7  ;;  %v5409_v31 = vld.sshfl [vmem:[%s6865_s17 + $0x34] sm:$0x13 pattern:$0x76325410] }
  0x55   : > { %5937 = vmatprep.subr.bf16.mxu1 %v6775_v1  ;;  %6174 = vmatpush3.bf16.msra.mxu0 %v6552_v47  ;;  %v6603_v32 = vld [vmem:[%s7972_s1 + $0x150] sm:$0xff]   ;;  %v5412_v37 = vld.sshfl [vmem:[%s6865_s17 + $0x40] sm:$0x13 pattern:$0x76325410] }
  0x56   : > { %6175 = vmatprep.subr.bf16.mxu0 %v6775_v1  ;;  %v762_v41 = vrot.slane %v761_v36, 2  ;;  %v6600_v36 = vld [vmem:[%s7972_s1 + $0x440] sm:$0xff]  }
  0x58   : > { %5938 = vmatpush3.bf16.msra.mxu1 %v6555_v40  ;;  %v6571_v40 = vld [vmem:[%s7972_s1 + $0xe0] sm:$0xff]   ;;  %v767_v45 = vsel %vm6920_vm7, %v762_v41, %v766_v42 }
  0x59   : > { %5939 = vmatprep.subr.bf16.mxu1 %v6775_v1  ;;  %6176 = vmatpush3.bf16.msra.mxu0 %v6554_v54  ;;  %v827_v47 = vcombine.low %v767_v45, %v7010_v14  ;;  %v6579_v54 = vld [vmem:[%s7972_s1 + $0x100] sm:$0xff]   ;;  %v6602_v45 = vld [vmem:[%s7972_s1 + $0x448] sm:$0xff]  }
  0x5a   : > { %6177 = vmatprep.subr.bf16.mxu0 %v6775_v1 }
  0x5b   : > { %v835_v14 = vrot.slane %v827_v47, %v6895_v28  ;;  %v3285_v47 = vshll.u32 %v5412_v37, 16 }
  0x5c   : > { %5940 = vmatpush3.bf16.msra.mxu1 %v6557_v48  ;;  %v828_v48 = vcombine.low %v7014_v15, %v7018_v16  ;;  %v6577_v16 = vld [vmem:[%s7972_s1 + $0xf8] sm:$0xff]  }
  0x5d   : > { %5941 = vmatprep.subr.bf16.mxu1 %v6775_v1  ;;  %6178 = vmatpush3.bf16.msra.mxu0 %v6556_v62  ;;  %v951_v62 = vcombine.high %v5005_v10, %v5005_v10  ;;  %v6739_v10 = vld.sshfl [vmem:[%s6865_s17 + $0x30] sm:$0xf pattern:$0x76325410] }
  0x5e   : > { %6179 = vmatprep.subr.bf16.mxu0 %v6775_v1  ;;  %v842_v15 = vrot.slane %v828_v48, %v6895_v28  ;;  %v6607_v48 = vld [vmem:[%s7972_s1 + $0x160] sm:$0xff]  }
  0x5f   : > { %v985_v6 = vrot.slane %v951_v62, 7 }
  0x60   : > { %5942 = vmatpush3.bf16.msra.mxu1 %v6559_v58  ;;  %v843_v53 = vcombine.low %v835_v14, %v842_v15  ;;  %v6583_v58 = vld [vmem:[%s7972_s1 + $0x108] sm:$0xff]  }
  0x61   : > { %5943 = vmatprep.subr.bf16.mxu1 %v6775_v1  ;;  %6180 = vmatpush3.bf16.msra.mxu0 %v6558_v11  ;;  %v986_v11 = vsel %vm7100_vm14, %v5009_v5, %v985_v6 }
  0x62   : > { %6181 = vmatprep.subr.bf16.mxu0 %v6775_v1  ;;  %v1016_v18 = vcombine.low %v986_v11, %v7111_v8 }
  0x64   : > { %5944 = vmatpush3.bf16.msra.mxu1 %v6561_v7  ;;  %v6586_v7 = vld [vmem:[%s7972_s1 + $0x410] sm:$0xff]   ;;  %v1024_v8 = vrot.slane %v1016_v18, %v6895_v28 }
  0x65   : > { %5949 = vmatprep.subr.bf16.mxu1 %v6775_v1  ;;  %6182 = vmatpush3.bf16.msra.mxu0 %v6560_v20  ;;  %v6593_v20 = vld [vmem:[%s7972_s1 + $0x130] sm:$0xff]  }
  0x66   : > { %6183 = vmatprep.subr.bf16.mxu0 %v6775_v1 }
  0x67   : > { %5946 = vmatmul.mubr.bf16.vlgmr.msra.gmra.mrb[0].mxu1 %v621_v12  ;;  %v6588_v12 = vld [vmem:[%s7972_s1 + $0x418] sm:$0xff]  }
  0x68   : > { %5950 = vmatpush3.bf16.msra.mxu1 %v6563_v19  ;;  %5965 = vmatprep.mubr.msk.bf16.mxu1 %vm6776_vm0, %v6775_v1  ;;  %v1017_v19 = vcombine.low %v7119_v13, %v7123_v17  ;;  %v6595_v17 = vld [vmem:[%s7972_s1 + $0x138] sm:$0xff]  }
  0x69   : > { %5951 = vmatprep.subr.bf16.mxu1 %v6775_v1  ;;  %6184 = vmatpush3.bf16.msra.mxu0 %v6562_v26  ;;  %v6738_v26 = vld.sshfl [vmem:[%s6865_s17 + $0x54] sm:$0xf pattern:$0x76325410] }
  0x6a   : > { %6189 = vmatprep.subr.bf16.mxu0 %v6775_v1  ;;  %v1031_v13 = vrot.slane %v1017_v19, %v6895_v28  ;;  %v6608_v19 = vld [vmem:[%s7972_s1 + $0x460] sm:$0xff]  }
  0x6c   : > { %5952 = vmatpush3.bf16.msra.mxu1 %v6565_v25  ;;  %6186 = vmatmul.mubr.bf16.vlgmr.msra.gmra.mrb[0].mxu0 %v2832_v34  ;;  %v1032_v23 = vcombine.low %v1024_v8, %v1031_v13  ;;  %v6737_v25 = vld.sshfl [vmem:[%s6865_s17 + $0x4c] sm:$0xf pattern:$0x76325410] }
  0x6d   : > { %5953 = vmatprep.subr.bf16.mxu1 %v6775_v1  ;;  %6190 = vmatpush3.bf16.msra.mxu0 %v6564_v35  ;;  %v5411_v34 = vld.sshfl [vmem:[%s6865_s17 + $0x3c] sm:$0x13 pattern:$0x76325410]  ;;  %v3106_v35 = vcombine.low %v6737_v25, %v6738_v26  ;;  %v6610_v25 = vld [vmem:[%s7972_s1 + $0x468] sm:$0xff]  }
  0x6e   : > { %6205 = vmatprep.mubr.msk.bf16.mxu0 %vm6776_vm0, %v6775_v1  ;;  %6191 = vmatprep.subr.bf16.mxu0 %v6775_v1 }
  0x70   : > { %5954 = vmatpush3.bf16.msra.mxu1 %v6567_v33  ;;  %v5410_v33 = vld.sshfl [vmem:[%s6865_s17 + $0x38] sm:$0x13 pattern:$0x76325410] }
  0x71   : > { %5955 = vmatprep.subr.bf16.mxu1 %v6775_v1  ;;  %6192 = vmatpush3.bf16.msra.mxu0 %v6566_v39  ;;  %v3240_v39 = vshrl.u32 %v5409_v31, 16  ;;  %v3254_v41 = vshrl.u32 %v5410_v33, 16  ;;  %v3257_v42 = vshll.u32 %v5410_v33, 16  ;;  %v3222_v15 = vcombine.high %v5410_v33, %v5410_v33 }
  0x72   : > { %6193 = vmatprep.subr.bf16.mxu0 %v6775_v1 }
  0x74   : > { %5956 = vmatpush3.bf16.msra.mxu1 %v6569_v38  ;;  %v6605_v38 = vld [vmem:[%s7972_s1 + $0x158] sm:$0xff]  }
  0x75   : > { %5957 = vmatprep.subr.bf16.mxu1 %v6775_v1  ;;  %6194 = vmatpush3.bf16.msra.mxu0 %v6568_v43  ;;  %v3268_v43 = vshrl.u32 %v5411_v34, 16 }
  0x76   : > { %6195 = vmatprep.subr.bf16.mxu0 %v6775_v1 }
  0x78   : > { %5958 = vmatpush3.bf16.msra.mxu1 %v6571_v40  ;;  %v3243_v40 = vshll.u32 %v5409_v31, 16 }
  0x79   : > { %5959 = vmatprep.subr.bf16.mxu1 %v6775_v1  ;;  %6196 = vmatpush3.bf16.msra.mxu0 %v6570_v46  ;;  %v3282_v46 = vshrl.u32 %v5412_v37, 16 }
  0x7a   : > { %6197 = vmatprep.subr.bf16.mxu0 %v6775_v1  ;;  %v3245_v14 = vrot.slane %v3243_v40, 7  ;;  %v5442_v40 = vld.sshfl [vmem:[%s6865_s17 + $0x50] sm:$0x13 pattern:$0x76325410] }
  0x7c   : > { %5960 = vmatpush3.bf16.msra.mxu1 %v6573_v44  ;;  %v3271_v44 = vshll.u32 %v5411_v34, 16 }
  0x7d   : > { %5961 = vmatprep.subr.bf16.mxu1 %v6775_v1  ;;  %6198 = vmatpush3.bf16.msra.mxu0 %v6572_v51  ;;  %v3242_v51 = vrot.slane %v3240_v39, 6  ;;  %v6614_v39 = vld [vmem:[%s7972_s1 + $0x478] sm:$0xff]  }
  0x7e   : > { %6199 = vmatprep.subr.bf16.mxu0 %v6775_v1  ;;  %v3273_v55 = vrot.slane %v3271_v44, 7 }
  0x80   : > { %5962 = vmatpush3.bf16.msra.mxu1 %v6575_v49  ;;  %v3214_v49 = vcombine.high %v5409_v31, %v5409_v31  ;;  %v6617_v31 = vld [vmem:[%s7972_s1 + $0x180] sm:$0xff]  }
  0x81   : > { %5963 = vmatprep.subr.bf16.mxu1 %v6775_v1  ;;  %6200 = vmatpush3.bf16.msra.mxu0 %v6574_v52  ;;  %v3259_v52 = vrot.slane %v3257_v42, 7  ;;  %v5443_v42 = vld.sshfl [vmem:[%s6865_s17 + $0x54] sm:$0x13 pattern:$0x76325410] }
  0x82   : > { %6201 = vmatprep.subr.bf16.mxu0 %v6775_v1 }
  0x84   : > { %5964 = vmatpush3.bf16.msra.mxu1 %v6577_v16  ;;  %v3256_v16 = vrot.slane %v3254_v41, 6  ;;  %v6621_v41 = vld [vmem:[%s7972_s1 + $0x190] sm:$0xff]  }
  0x85   : > { %5969 = vmatprep.subr.bf16.mxu1 %v6775_v1  ;;  %6202 = vmatpush3.bf16.msra.mxu0 %v6576_v57  ;;  %v3238_v57 = vcombine.high %v5412_v37, %v5412_v37 }
  0x86   : > { %6203 = vmatprep.subr.bf16.mxu0 %v6775_v1  ;;  %v3260_v62 = vor.u32 %v3259_v52, %v3256_v16  ;;  %v3493_v16 = vshll.u32 %v5443_v42, 16  ;;  %v6625_v52 = vld [vmem:[%s7972_s1 + $0x1a0] sm:$0xff]  }
  0x87   : > { %5966 = vmatmul.mubr.bf16.vlgmr.msra.gmra.mrb[0].mxu1 %v843_v53  ;;  %v3230_v53 = vcombine.high %v5411_v34, %v5411_v34  ;;  %v3291_v11 = vshll.u32 %v3238_v57, 16  ;;  %v6612_v34 = vld [vmem:[%s7972_s1 + $0x470] sm:$0xff]  }
  0x88   : > { %5970 = vmatpush3.bf16.msra.mxu1 %v6579_v54  ;;  %5985 = vmatprep.mubr.msk.bf16.mxu1 %vm6776_vm0, %v6775_v1  ;;  %v3270_v54 = vrot.slane %v3268_v43, 6  ;;  %v6618_v43 = vld [vmem:[%s7972_s1 + $0x480] sm:$0xff]  }
  0x89   : > { %5971 = vmatprep.subr.bf16.mxu1 %v6775_v1  ;;  %6204 = vmatpush3.bf16.msra.mxu0 %v6578_v59  ;;  %v3287_v59 = vrot.slane %v3285_v47, 7  ;;  %v3277_v6 = vshll.u32 %v3230_v53, 16 }
  0x8a   : > { %6209 = vmatprep.subr.bf16.mxu0 %v6775_v1  ;;  %v3274_v5 = vor.u32 %v3273_v55, %v3270_v54 }
  0x8b   : > { %v3279_v13 = vrot.slane %v3277_v6, 7 }
  0x8c   : > { %5972 = vmatpush3.bf16.msra.mxu1 %v6583_v58  ;;  %6206 = vmatmul.mubr.bf16.vlgmr.msra.gmra.mrb[0].mxu0 %v2969_v60  ;;  %v3284_v58 = vrot.slane %v3282_v46, 6  ;;  %v6740_v60 = vld.sshfl [vmem:[%s6865_s17 + $0x38] sm:$0xf pattern:$0x76325410]  ;;  %v3275_v8 = vrot.slane %v3274_v5, 2 }
  0x8d   : > { %5973 = vmatprep.subr.bf16.mxu1 %v6775_v1  ;;  %6210 = vmatpush3.bf16.msra.mxu0 %v6582_v61  ;;  %v3246_v61 = vor.u32 %v3245_v14, %v3242_v51  ;;  %v3479_v51 = vshll.u32 %v5442_v40, 16  ;;  %v6620_v14 = vld [vmem:[%s7972_s1 + $0x488] sm:$0xff]  }
  0x8e   : > { %6225 = vmatprep.mubr.msk.bf16.mxu0 %vm6776_vm0, %v6775_v1  ;;  %6211 = vmatprep.subr.bf16.mxu0 %v6775_v1  ;;  %v6627_v5 = vld [vmem:[%s7972_s1 + $0x1a8] sm:$0xff]  }
  0x90   : > { %5974 = vmatpush3.bf16.msra.mxu1 %v6585_v4  ;;  %v6609_v4 = vld [vmem:[%s7972_s1 + $0x168] sm:$0xff]  }
  0x91   : > { %5975 = vmatprep.subr.bf16.mxu1 %v6775_v1  ;;  %6212 = vmatpush3.bf16.msra.mxu0 %v6584_v0  ;;  %v3263_v0 = vshll.u32 %v3222_v15, 16  ;;  %v3490_v15 = vshrl.u32 %v5443_v42, 16 }
  0x92   : > { %6213 = vmatprep.subr.bf16.mxu0 %v6775_v1 }
  0x94   : > { %5976 = vmatpush3.bf16.msra.mxu1 %v6587_v63  ;;  %v3249_v63 = vshll.u32 %v3214_v49, 16  ;;  %v3476_v49 = vshrl.u32 %v5442_v40, 16 }
  0x95   : > { %5977 = vmatprep.subr.bf16.mxu1 %v6775_v1  ;;  %6214 = vmatpush3.bf16.msra.mxu0 %v6586_v7  ;;  %v6611_v7 = vld [vmem:[%s7972_s1 + $0x170] sm:$0xff]  }
  0x96   : > { %6215 = vmatprep.subr.bf16.mxu0 %v6775_v1  ;;  %v3251_v18 = vrot.slane %v3249_v63, 7  ;;  %v6622_v63 = vld [vmem:[%s7972_s1 + $0x490] sm:$0xff]  }
  0x98   : > { %5978 = vmatpush3.bf16.msra.mxu1 %v6589_v3  ;;  %v6606_v3 = vld [vmem:[%s7972_s1 + $0x458] sm:$0xff]  }
  0x99   : > { %5979 = vmatprep.subr.bf16.mxu1 %v6775_v1  ;;  %6216 = vmatpush3.bf16.msra.mxu0 %v6588_v12  ;;  %v3247_v12 = vrot.slane %v3246_v61, 2  ;;  %v3495_v61 = vrot.slane %v3493_v16, 7  ;;  %v6639_v16 = vld [vmem:[%s7972_s1 + $0x1d0] sm:$0xff]  }
  0x9a   : > { %6217 = vmatprep.subr.bf16.mxu0 %v6775_v1 }
  0x9b   : > { %v7363_v26 = vsel %vm6920_vm7, %v3247_v12, %v3251_v18 }
  0x9c   : > { %5980 = vmatpush3.bf16.msra.mxu1 %v6591_v9  ;;  %v3288_v9 = vor.u32 %v3287_v59, %v3284_v58  ;;  %v3478_v58 = vrot.slane %v3476_v49, 6  ;;  %v3481_v59 = vrot.slane %v3479_v51, 7  ;;  %v6632_v51 = vld [vmem:[%s7972_s1 + $0x4b8] sm:$0xff]  }
  0x9d   : > { %5981 = vmatprep.subr.bf16.mxu1 %v6775_v1  ;;  %6218 = vmatpush3.bf16.msra.mxu0 %v6590_v21  ;;  %v3265_v21 = vrot.slane %v3263_v0, 7 }
  0x9e   : > { %6219 = vmatprep.subr.bf16.mxu0 %v6775_v1 }
  0xa0   : > { %5982 = vmatpush3.bf16.msra.mxu1 %v6593_v20  ;;  %v3261_v20 = vrot.slane %v3260_v62, 2 }
  0xa1   : > { %5983 = vmatprep.subr.bf16.mxu1 %v6775_v1  ;;  %6220 = vmatpush3.bf16.msra.mxu0 %v6592_v22  ;;  %v3293_v22 = vrot.slane %v3291_v11, 7  ;;  %v3482_v11 = vor.u32 %v3481_v59, %v3478_v58 }
  0xa2   : > { %6221 = vmatprep.subr.bf16.mxu0 %v6775_v1 }
  0xa4   : > { %5984 = vmatpush3.bf16.msra.mxu1 %v6595_v17  ;;  %v3289_v17 = vrot.slane %v3288_v9, 2  ;;  %v6624_v9 = vld [vmem:[%s7972_s1 + $0x498] sm:$0xff]  }
  0xa5   : > { %5989 = vmatprep.subr.bf16.mxu1 %v6775_v1  ;;  %6222 = vmatpush3.bf16.msra.mxu0 %v6594_v27  ;;  %v7367_v27 = vsel %vm6920_vm7, %v3261_v20, %v3265_v21  ;;  %v6741_v20 = vld.sshfl [vmem:[%s6865_s17 + $0x48] sm:$0xf pattern:$0x76325410] }
  0xa6   : > { %6223 = vmatprep.subr.bf16.mxu0 %v6775_v1  ;;  %v6742_v21 = vld.sshfl [vmem:[%s6865_s17 + $0x50] sm:$0xf pattern:$0x76325410] }
  0xa7   : > { %5986 = vmatmul.mubr.bf16.vlgmr.msra.gmra.mrb[0].mxu1 %v1032_v23  ;;  %v6613_v23 = vld [vmem:[%s7972_s1 + $0x178] sm:$0xff]  }
  0xa8   : > { %5990 = vmatpush3.bf16.msra.mxu1 %v6597_v24  ;;  %6005 = vmatprep.mubr.msk.bf16.mxu1 %vm6776_vm0, %v6775_v1  ;;  %v1169_v24 = vcombine.low %v6739_v10, %v6740_v60  ;;  %v3452_v10 = vcombine.high %v5443_v42, %v5443_v42  ;;  %v3492_v60 = vrot.slane %v3490_v15, 6  ;;  %v5097_v42 = vld.sshfl [vmem:[%s6865_s17 + $0x30] sm:$0x13 pattern:$0x76325410] }
  0xa9   : > { %5991 = vmatprep.subr.bf16.mxu1 %v6775_v1  ;;  %6224 = vmatpush3.bf16.msra.mxu0 %v6596_v30  ;;  %v3294_v30 = vsel %vm6920_vm7, %v3289_v17, %v3293_v22  ;;  %v1443_v49 = vshll.u32 %v5097_v42, 16 }
  0xaa   : > { %6229 = vmatprep.subr.bf16.mxu0 %v6775_v1  ;;  %v3496_v18 = vor.u32 %v3495_v61, %v3492_v60  ;;  %v5474_v60 = vld.sshfl [vmem:[%s6865_s17 + $0x38] sm:$0x12 pattern:$0x76325410] }
  0xab   : > { %v5475_v61 = vld.sshfl [vmem:[%s6865_s17 + $0x3c] sm:$0x12 pattern:$0x76325410] }
  0xac   : > { %5992 = vmatpush3.bf16.msra.mxu1 %v6601_v29  ;;  %6226 = vmatmul.mubr.bf16.vlgmr.msra.gmra.mrb[0].mxu0 %v3106_v35  ;;  %v7371_v29 = vsel %vm6920_vm7, %v3275_v8, %v3279_v13  ;;  %v6619_v35 = vld [vmem:[%s7972_s1 + $0x188] sm:$0xff]   ;;  %v6629_v8 = vld [vmem:[%s7972_s1 + $0x1b0] sm:$0xff]  }
  0xad   : > { %5993 = vmatprep.subr.bf16.mxu1 %v6775_v1  ;;  %6230 = vmatpush3.bf16.msra.mxu0 %v6600_v36  ;;  %v3313_v33 = vcombine.low %v7371_v29, %v3294_v30 }
  0xae   : > { %6245 = vmatprep.mubr.msk.bf16.mxu0 %vm6776_vm0, %v6775_v1  ;;  %6231 = vmatprep.subr.bf16.mxu0 %v6775_v1 }
  0xaf   : > { %v3327_v37 = vrot.slane %v3313_v33, %v6895_v28 }
  0xb0   : > { %5994 = vmatpush3.bf16.msra.mxu1 %v6603_v32  ;;  %v3312_v32 = vcombine.low %v7363_v26, %v7367_v27 }
  0xb1   : > { %5995 = vmatprep.subr.bf16.mxu1 %v6775_v1  ;;  %6232 = vmatpush3.bf16.msra.mxu0 %v6602_v45  ;;  %v5444_v45 = vld.sshfl [vmem:[%s6865_s17 + $0x58] sm:$0x13 pattern:$0x76325410] }
  0xb2   : > { %6233 = vmatprep.subr.bf16.mxu0 %v6775_v1  ;;  %v3320_v36 = vrot.slane %v3312_v32, %v6895_v28  ;;  %v3504_v55 = vshrl.u32 %v5444_v45, 16  ;;  %v3460_v62 = vcombine.high %v5444_v45, %v5444_v45 }
  0xb4   : > { %5996 = vmatpush3.bf16.msra.mxu1 %v6605_v38  ;;  %v5441_v38 = vld.sshfl [vmem:[%s6865_s17 + $0x4c] sm:$0x13 pattern:$0x76325410]  ;;  %v3328_v44 = vcombine.low %v3320_v36, %v3327_v37  ;;  %v3506_v0 = vrot.slane %v3504_v55, 6  ;;  %v3513_v17 = vshll.u32 %v3460_v62, 16  ;;  %v1306_v36 = vcombine.low %v6741_v20, %v6742_v21 }
  0xb5   : > { %5997 = vmatprep.subr.bf16.mxu1 %v6775_v1  ;;  %6234 = vmatpush3.bf16.msra.mxu0 %v6604_v56  ;;  %v3462_v46 = vshrl.u32 %v5441_v38, 16  ;;  %v3465_v47 = vshll.u32 %v5441_v38, 16  ;;  %v3507_v56 = vshll.u32 %v5444_v45, 16  ;;  %v3436_v57 = vcombine.high %v5441_v38, %v5441_v38  ;;  %v6628_v37 = vld [vmem:[%s7972_s1 + $0x4a8] sm:$0xff]   ;;  %v6647_v20 = vld [vmem:[%s7972_s1 + $0x1f0] sm:$0xff]  }
  0xb6   : > { %6235 = vmatprep.subr.bf16.mxu0 %v6775_v1 }
  0xb7   : > { %v3464_v53 = vrot.slane %v3462_v46, 6  ;;  %v3467_v54 = vrot.slane %v3465_v47, 7  ;;  %v6637_v47 = vld [vmem:[%s7972_s1 + $0x1c8] sm:$0xff]  }
  0xb8   : > { %5998 = vmatpush3.bf16.msra.mxu1 %v6607_v48  ;;  %v6623_v48 = vld [vmem:[%s7972_s1 + $0x198] sm:$0xff]  }
  0xb9   : > { %5999 = vmatprep.subr.bf16.mxu1 %v6775_v1  ;;  %6236 = vmatpush3.bf16.msra.mxu0 %v6606_v3  ;;  %v3509_v3 = vrot.slane %v3507_v56, 7  ;;  %v3468_v6 = vor.u32 %v3467_v54, %v3464_v53  ;;  %v1445_v54 = vrot.slane %v1443_v49, 7  ;;  %v6636_v56 = vld [vmem:[%s7972_s1 + $0x4c0] sm:$0xff]  }
  0xba   : > { %6237 = vmatprep.subr.bf16.mxu0 %v6775_v1 }
  0xbb   : > { %v3510_v13 = vor.u32 %v3509_v3, %v3506_v0  ;;  %v3469_v22 = vrot.slane %v3468_v6, 2  ;;  %v5476_v3 = vld.sshfl [vmem:[%s6865_s17 + $0x40] sm:$0x12 pattern:$0x76325410]  ;;  %v6640_v6 = vld [vmem:[%s7972_s1 + $0x4d0] sm:$0xff]  }
  0xbc   : > { %6000 = vmatpush3.bf16.msra.mxu1 %v6609_v4  ;;  %v3444_v4 = vcombine.high %v5442_v40, %v5442_v40 }
  0xbd   : > { %6001 = vmatprep.subr.bf16.mxu1 %v6775_v1  ;;  %6238 = vmatpush3.bf16.msra.mxu0 %v6608_v19  ;;  %v3499_v19 = vshll.u32 %v3452_v10, 16  ;;  %v3511_v33 = vrot.slane %v3510_v13, 2  ;;  %v6638_v10 = vld [vmem:[%s7972_s1 + $0x4c8] sm:$0xff]   ;;  %v5478_v13 = vrot.slane %v5474_v60, 9 }
  0xbe   : > { %6239 = vmatprep.subr.bf16.mxu0 %v6775_v1  ;;  %v3485_v12 = vshll.u32 %v3444_v4, 16  ;;  %v5473_v4 = vld.sshfl [vmem:[%s6865_s17 + $0x34] sm:$0x12 pattern:$0x76325410] }
  0xbf   : > { %v3501_v32 = vrot.slane %v3499_v19, 7  ;;  %v6642_v19 = vld [vmem:[%s7972_s1 + $0x4d8] sm:$0xff]   ;;  %v5477_v21 = vrot.slane %v5473_v4, 9 }
  0xc0   : > { %6002 = vmatpush3.bf16.msra.mxu1 %v6611_v7  ;;  %v3471_v7 = vshll.u32 %v3436_v57, 16  ;;  %v3487_v30 = vrot.slane %v3485_v12, 7  ;;  %v6641_v57 = vld [vmem:[%s7972_s1 + $0x1d8] sm:$0xff]   ;;  %v3674_v12 = vcombine.high %v5475_v61, %v5475_v61 }
  0xc1   : > { %6003 = vmatprep.subr.bf16.mxu1 %v6775_v1  ;;  %6240 = vmatpush3.bf16.msra.mxu0 %v6610_v25  ;;  %v3483_v25 = vrot.slane %v3482_v11, 2 }
  0xc2   : > { %6241 = vmatprep.subr.bf16.mxu0 %v6775_v1 }
  0xc4   : > { %6004 = vmatpush3.bf16.msra.mxu1 %v6613_v23  ;;  %v3473_v23 = vrot.slane %v3471_v7, 7  ;;  %v3666_v7 = vcombine.high %v5474_v60, %v5474_v60 }
  0xc5   : > { %6009 = vmatprep.subr.bf16.mxu1 %v6775_v1  ;;  %6242 = vmatpush3.bf16.msra.mxu0 %v6612_v34  ;;  %v3515_v34 = vrot.slane %v3513_v17, 7  ;;  %v5479_v17 = vrot.slane %v5475_v61, 9 }
  0xc6   : > { %6243 = vmatprep.subr.bf16.mxu0 %v6775_v1  ;;  %v7456_v38 = vsel %vm6920_vm7, %v3469_v22, %v3473_v23  ;;  %v1513_v23 = vcombine.low %v7367_v27, %v7371_v29  ;;  %v6649_v27 = vld [vmem:[%s7972_s1 + $0x1f8] sm:$0xff]   ;;  %v6646_v29 = vld [vmem:[%s7972_s1 + $0x4e8] sm:$0xff]  }
  0xc7   : > { %6006 = vmatmul.mubr.bf16.vlgmr.msra.gmra.mrb[0].mxu1 %v1169_v24  ;;  %v6626_v24 = vld [vmem:[%s7972_s1 + $0x4a0] sm:$0xff]  }
  0xc8   : > { %6010 = vmatpush3.bf16.msra.mxu1 %v6617_v31  ;;  %6025 = vmatprep.mubr.msk.bf16.mxu1 %vm6776_vm0, %v6775_v1  ;;  %v3497_v31 = vrot.slane %v3496_v18, 2  ;;  %v3682_v18 = vcombine.high %v5476_v3, %v5476_v3 }
  0xc9   : > { %6011 = vmatprep.subr.bf16.mxu1 %v6775_v1  ;;  %6244 = vmatpush3.bf16.msra.mxu0 %v6614_v39  ;;  %v7460_v39 = vsel %vm6920_vm7, %v3483_v25, %v3487_v30  ;;  %v3693_v25 = vrot.slane %v3674_v12, 7  ;;  %v5480_v30 = vrot.slane %v5476_v3, 9  ;;  %v6658_v3 = vld [vmem:[%s7972_s1 + $0x518] sm:$0xff]  }
  0xca   : > { %6249 = vmatprep.subr.bf16.mxu0 %v6775_v1  ;;  %v7464_v40 = vsel %vm6920_vm7, %v3497_v31, %v3501_v32  ;;  %v3534_v45 = vcombine.low %v7456_v38, %v7460_v39  ;;  %v3697_v31 = vrot.slane %v3682_v18, 7  ;;  %v6644_v32 = vld [vmem:[%s7972_s1 + $0x4e0] sm:$0xff]  }
  0xcb   : > { %v6667_v18 = vld [vmem:[%s7972_s1 + $0x240] sm:$0xff]  }
  0xcc   : > { %6012 = vmatpush3.bf16.msra.mxu1 %v6619_v35  ;;  %6246 = vmatmul.mubr.bf16.vlgmr.msra.gmra.mrb[0].mxu0 %v3328_v44  ;;  %v6631_v35 = vld [vmem:[%s7972_s1 + $0x1b8] sm:$0xff]   ;;  %v6630_v44 = vld [vmem:[%s7972_s1 + $0x4b0] sm:$0xff]  }
  0xcd   : > { %6013 = vmatprep.subr.bf16.mxu1 %v6775_v1  ;;  %6250 = vmatpush3.bf16.msra.mxu0 %v6618_v43  ;;  %v6635_v43 = vld [vmem:[%s7972_s1 + $0x1c0] sm:$0xff]  }
  0xce   : > { %6265 = vmatprep.mubr.msk.bf16.mxu0 %vm6776_vm0, %v6775_v1  ;;  %6251 = vmatprep.subr.bf16.mxu0 %v6775_v1 }
  0xd0   : > { %6014 = vmatpush3.bf16.msra.mxu1 %v6621_v41  ;;  %v3516_v41 = vsel %vm6920_vm7, %v3511_v33, %v3515_v34 }
  0xd1   : > { %6015 = vmatprep.subr.bf16.mxu1 %v6775_v1  ;;  %6252 = vmatpush3.bf16.msra.mxu0 %v6620_v14  ;;  %v3535_v46 = vcombine.low %v7464_v40, %v3516_v41  ;;  %v3542_v14 = vrot.slane %v3534_v45, %v6895_v28  ;;  %v3698_v41 = vsel %vm7100_vm14, %v5480_v30, %v3697_v31  ;;  %v6672_v31 = vld [vmem:[%s7972_s1 + $0x548] sm:$0xff]  }
  0xd2   : > { %6253 = vmatprep.subr.bf16.mxu0 %v6775_v1 }
  0xd3   : > { %v3549_v15 = vrot.slane %v3535_v46, %v6895_v28  ;;  %v6648_v46 = vld [vmem:[%s7972_s1 + $0x4f0] sm:$0xff]  }
  0xd4   : > { %6016 = vmatpush3.bf16.msra.mxu1 %v6623_v48  ;;  %v1440_v48 = vshrl.u32 %v5097_v42, 16 }
  0xd5   : > { %6017 = vmatprep.subr.bf16.mxu1 %v6775_v1  ;;  %6254 = vmatpush3.bf16.msra.mxu0 %v6622_v63  ;;  %v3550_v55 = vcombine.low %v3542_v14, %v3549_v15  ;;  %v6643_v63 = vld [vmem:[%s7972_s1 + $0x1e0] sm:$0xff]   ;;  %v6650_v15 = vld [vmem:[%s7972_s1 + $0x4f8] sm:$0xff]  }
  0xd6   : > { %6255 = vmatprep.subr.bf16.mxu0 %v6775_v1  ;;  %v1442_v53 = vrot.slane %v1440_v48, 6 }
  0xd8   : > { %6018 = vmatpush3.bf16.msra.mxu1 %v6625_v52  ;;  %v1414_v52 = vcombine.high %v5097_v42, %v5097_v42  ;;  %v1446_v58 = vor.u32 %v1445_v54, %v1442_v53  ;;  %v6651_v42 = vld [vmem:[%s7972_s1 + $0x200] sm:$0xff]  }
  0xd9   : > { %6019 = vmatprep.subr.bf16.mxu1 %v6775_v1  ;;  %6256 = vmatpush3.bf16.msra.mxu0 %v6624_v9  ;;  %v6645_v9 = vld [vmem:[%s7972_s1 + $0x1e8] sm:$0xff]  }
  0xda   : > { %6257 = vmatprep.subr.bf16.mxu0 %v6775_v1  ;;  %v1449_v59 = vshll.u32 %v1414_v52, 16  ;;  %v1447_v62 = vrot.slane %v1446_v58, 2 }
  0xdc   : > { %6020 = vmatpush3.bf16.msra.mxu1 %v6627_v5  ;;  %v1451_v0 = vrot.slane %v1449_v59, 7  ;;  %v3658_v5 = vcombine.high %v5473_v4, %v5473_v4  ;;  %v6654_v4 = vld [vmem:[%s7972_s1 + $0x508] sm:$0xff]  }
  0xdd   : > { %6021 = vmatprep.subr.bf16.mxu1 %v6775_v1  ;;  %6258 = vmatpush3.bf16.msra.mxu0 %v6626_v24  ;;  %v3689_v24 = vrot.slane %v3666_v7, 7  ;;  %v6663_v7 = vld [vmem:[%s7972_s1 + $0x230] sm:$0xff]  }
  0xde   : > { %6259 = vmatprep.subr.bf16.mxu0 %v6775_v1  ;;  %v1452_v11 = vsel %vm6920_vm7, %v1447_v62, %v1451_v0  ;;  %v6661_v62 = vld [vmem:[%s7972_s1 + $0x228] sm:$0xff]  }
  0xdf   : > { %v1512_v22 = vcombine.low %v1452_v11, %v7363_v26  ;;  %v1527_v26 = vrot.slane %v1513_v23, %v6895_v28  ;;  %v6662_v11 = vld [vmem:[%s7972_s1 + $0x528] sm:$0xff]  }
  0xe0   : > { %6022 = vmatpush3.bf16.msra.mxu1 %v6629_v8  ;;  %v3685_v8 = vrot.slane %v3658_v5, 7 }
  0xe1   : > { %6023 = vmatprep.subr.bf16.mxu1 %v6775_v1  ;;  %6260 = vmatpush3.bf16.msra.mxu0 %v6628_v37  ;;  %v1520_v33 = vrot.slane %v1512_v22, %v6895_v28  ;;  %v7563_v37 = vsel %vm7100_vm14, %v5479_v17, %v3693_v25  ;;  %v6673_v17 = vld [vmem:[%s7972_s1 + $0x250] sm:$0xff]   ;;  %v6675_v25 = vld [vmem:[%s7972_s1 + $0x258] sm:$0xff]  }
  0xe2   : > { %6261 = vmatprep.subr.bf16.mxu0 %v6775_v1  ;;  %v7555_v34 = vsel %vm7100_vm14, %v5477_v21, %v3685_v8  ;;  %v3717_v45 = vcombine.low %v7563_v37, %v3698_v41  ;;  %v6664_v21 = vld [vmem:[%s7972_s1 + $0x530] sm:$0xff]   ;;  %v6671_v8 = vld [vmem:[%s7972_s1 + $0x248] sm:$0xff]   ;;  %v6676_v41 = vld [vmem:[%s7972_s1 + $0x558] sm:$0xff]  }
  0xe3   : > { %v5161_v22 = vld.sshfl [vmem:[%s6865_s17 + $0x30] sm:$0x12 pattern:$0x76325410] }
  0xe4   : > { %6024 = vmatpush3.bf16.msra.mxu1 %v6631_v35  ;;  %v1528_v35 = vcombine.low %v1520_v33, %v1527_v26  ;;  %v3731_v14 = vrot.slane %v3717_v45, %v6895_v28  ;;  %v1858_v30 = vcombine.high %v5161_v22, %v5161_v22  ;;  %v5165_v33 = vrot.slane %v5161_v22, 9  ;;  %v6678_v45 = vld [vmem:[%s7972_s1 + $0x560] sm:$0xff]  }
  0xe5   : > { %6029 = vmatprep.subr.bf16.mxu1 %v6775_v1  ;;  %6262 = vmatpush3.bf16.msra.mxu0 %v6630_v44  ;;  %v6747_v22 = vld.sshfl [vmem:[%s6865_s17 + $0x4] sm:$0xf pattern:$0x76325410] }
  0xe6   : > { %6263 = vmatprep.subr.bf16.mxu0 %v6775_v1  ;;  %v1885_v26 = vrot.slane %v1858_v30, 7 }
  0xe7   : > { %6026 = vmatmul.mubr.bf16.vlgmr.msra.gmra.mrb[0].mxu1 %v1306_v36  ;;  %v7559_v36 = vsel %vm7100_vm14, %v5478_v13, %v3689_v24  ;;  %v6666_v13 = vld [vmem:[%s7972_s1 + $0x538] sm:$0xff]   ;;  %v6670_v24 = vld [vmem:[%s7972_s1 + $0x540] sm:$0xff]  }
  0xe8   : > { %6030 = vmatpush3.bf16.msra.mxu1 %v6635_v43  ;;  %6045 = vmatprep.mubr.msk.bf16.mxu1 %vm6776_vm0, %v6775_v1  ;;  %v5129_v43 = vld.sshfl [vmem:[%s6865_s17 + $0x48] sm:$0x13 pattern:$0x76325410]  ;;  %v3716_v44 = vcombine.low %v7555_v34, %v7559_v36 }
  0xe9   : > { %6031 = vmatprep.subr.bf16.mxu1 %v6775_v1  ;;  %6264 = vmatpush3.bf16.msra.mxu0 %v6632_v51  ;;  %v1662_v48 = vshrl.u32 %v5129_v43, 16  ;;  %v1665_v49 = vshll.u32 %v5129_v43, 16  ;;  %v1636_v52 = vcombine.high %v5129_v43, %v5129_v43  ;;  %v1917_v43 = vcombine.low %v7559_v36, %v7563_v37  ;;  %v6683_v37 = vld [vmem:[%s7972_s1 + $0x278] sm:$0xff]  }
  0xea   : > { %6269 = vmatprep.subr.bf16.mxu0 %v6775_v1  ;;  %v3724_v51 = vrot.slane %v3716_v44, %v6895_v28  ;;  %v6681_v44 = vld [vmem:[%s7972_s1 + $0x270] sm:$0xff]  }
  0xeb   : > { %v1664_v53 = vrot.slane %v1662_v48, 6  ;;  %v1667_v54 = vrot.slane %v1665_v49, 7  ;;  %v1671_v59 = vshll.u32 %v1636_v52, 16  ;;  %v1931_v36 = vrot.slane %v1917_v43, %v6895_v28  ;;  %v6685_v48 = vld [vmem:[%s7972_s1 + $0x280] sm:$0xff]   ;;  %v6691_v52 = vld [vmem:[%s7972_s1 + $0x290] sm:$0xff]  }
  0xec   : > { %6032 = vmatpush3.bf16.msra.mxu1 %v6637_v47  ;;  %6266 = vmatmul.mubr.bf16.vlgmr.msra.gmra.mrb[0].mxu0 %v3550_v55  ;;  %v6653_v47 = vld [vmem:[%s7972_s1 + $0x208] sm:$0xff]   ;;  %v3732_v55 = vcombine.low %v3724_v51, %v3731_v14  ;;  %v6745_v49 = vld.sshfl [vmem:[%s6865_s17 + $0x20] sm:$0xf pattern:$0x76325410]  ;;  %v6682_v14 = vld [vmem:[%s7972_s1 + $0x570] sm:$0xff]  }
  0xed   : > { %6033 = vmatprep.subr.bf16.mxu1 %v6775_v1  ;;  %6270 = vmatpush3.bf16.msra.mxu0 %v6636_v56  ;;  %v6652_v56 = vld [vmem:[%s7972_s1 + $0x500] sm:$0xff]   ;;  %v1668_v58 = vor.u32 %v1667_v54, %v1664_v53  ;;  %v1673_v61 = vrot.slane %v1671_v59, 7  ;;  %v6746_v51 = vld.sshfl [vmem:[%s6865_s17 + $0x28] sm:$0xf pattern:$0x76325410] }
  0xee   : > { %6285 = vmatprep.mubr.msk.bf16.mxu0 %vm6776_vm0, %v6775_v1  ;;  %6271 = vmatprep.subr.bf16.mxu0 %v6775_v1  ;;  %v5565_v53 = vld.sshfl [vmem:[%s6865_s17 + $0x8] sm:$0x13 pattern:$0x76325410]  ;;  %v4006_v54 = vcombine.low %v6745_v49, %v6746_v51 }
  0xef   : > { %v1669_v60 = vrot.slane %v1668_v58, 2  ;;  %v6693_v58 = vld [vmem:[%s7972_s1 + $0x298] sm:$0xff]   ;;  %v5568_v59 = vld.sshfl [vmem:[%s6865_s17 + $0x14] sm:$0x13 pattern:$0x76325410] }
  0xf0   : > { %6034 = vmatpush3.bf16.msra.mxu1 %v6639_v16  ;;  %v6655_v16 = vld [vmem:[%s7972_s1 + $0x210] sm:$0xff]   ;;  %v6698_v49 = vld [vmem:[%s7972_s1 + $0x5a8] sm:$0xff]  }
  0xf1   : > { %6035 = vmatprep.subr.bf16.mxu1 %v6775_v1  ;;  %6272 = vmatpush3.bf16.msra.mxu0 %v6638_v10  ;;  %v6659_v10 = vld [vmem:[%s7972_s1 + $0x220] sm:$0xff]   ;;  %v1674_v0 = vsel %vm6920_vm7, %v1669_v60, %v1673_v61 }
  0xf2   : > { %6273 = vmatprep.subr.bf16.mxu0 %v6775_v1  ;;  %v1734_v5 = vcombine.low %v1674_v0, %v7456_v38 }
  0xf4   : > { %6036 = vmatpush3.bf16.msra.mxu1 %v6641_v57  ;;  %v6657_v57 = vld [vmem:[%s7972_s1 + $0x218] sm:$0xff]   ;;  %v1742_v38 = vrot.slane %v1734_v5, %v6895_v28  ;;  %v4185_v5 = vshll.u32 %v5568_v59, 16 }
  0xf5   : > { %6037 = vmatprep.subr.bf16.mxu1 %v6775_v1  ;;  %6274 = vmatpush3.bf16.msra.mxu0 %v6640_v6  ;;  %v1735_v6 = vcombine.low %v7460_v39, %v7464_v40  ;;  %v6665_v40 = vld [vmem:[%s7972_s1 + $0x238] sm:$0xff]  }
  0xf6   : > { %6275 = vmatprep.subr.bf16.mxu0 %v6775_v1 }
  0xf7   : > { %v1749_v39 = vrot.slane %v1735_v6, %v6895_v28  ;;  %v6695_v6 = vld [vmem:[%s7972_s1 + $0x2a0] sm:$0xff]  }
  0xf8   : > { %6038 = vmatpush3.bf16.msra.mxu1 %v6643_v63  ;;  %v6656_v63 = vld [vmem:[%s7972_s1 + $0x510] sm:$0xff]  }
  0xf9   : > { %6039 = vmatprep.subr.bf16.mxu1 %v6775_v1  ;;  %6276 = vmatpush3.bf16.msra.mxu0 %v6642_v19  ;;  %v1750_v12 = vcombine.low %v1742_v38, %v1749_v39  ;;  %v6743_v19 = vld.sshfl [vmem:[%s6865_s17 + $0x8] sm:$0xf pattern:$0x76325410] }
  0xfa   : > { %6277 = vmatprep.subr.bf16.mxu0 %v6775_v1 }
  0xfc   : > { %6040 = vmatpush3.bf16.msra.mxu1 %v6645_v9  ;;  %v6660_v9 = vld [vmem:[%s7972_s1 + $0x520] sm:$0xff]  }
  0xfd   : > { %6041 = vmatprep.subr.bf16.mxu1 %v6775_v1  ;;  %6278 = vmatpush3.bf16.msra.mxu0 %v6644_v32  ;;  %v6677_v32 = vld [vmem:[%s7972_s1 + $0x260] sm:$0xff]  }
  0xfe   : > { %6279 = vmatprep.subr.bf16.mxu0 %v6775_v1 }
 0x100   : > { %6042 = vmatpush3.bf16.msra.mxu1 %v6647_v20  ;;  %v6744_v20 = vld.sshfl [vmem:[%s6865_s17 + $0x10] sm:$0xf pattern:$0x76325410] }
 0x101   : > { %6043 = vmatprep.subr.bf16.mxu1 %v6775_v1  ;;  %6280 = vmatpush3.bf16.msra.mxu0 %v6646_v29  ;;  %v3869_v23 = vcombine.low %v6743_v19, %v6744_v20  ;;  %v6679_v29 = vld [vmem:[%s7972_s1 + $0x268] sm:$0xff]   ;;  %v6692_v19 = vld [vmem:[%s7972_s1 + $0x590] sm:$0xff]  }
 0x102   : > { %6281 = vmatprep.subr.bf16.mxu0 %v6775_v1 }
 0x104   : > { %6044 = vmatpush3.bf16.msra.mxu1 %v6649_v27  ;;  %v6674_v27 = vld [vmem:[%s7972_s1 + $0x550] sm:$0xff]  }
 0x105   : > { %6049 = vmatprep.subr.bf16.mxu1 %v6775_v1  ;;  %6282 = vmatpush3.bf16.msra.mxu0 %v6648_v46  ;;  %v6680_v46 = vld [vmem:[%s7972_s1 + $0x568] sm:$0xff]  }
 0x106   : > { %6283 = vmatprep.subr.bf16.mxu0 %v6775_v1 }
 0x107   : > { %6046 = vmatmul.mubr.bf16.vlgmr.msra.gmra.mrb[0].mxu1 %v1528_v35  ;;  %v1886_v35 = vsel %vm7100_vm14, %v5165_v33, %v1885_v26 }
 0x108   : > { %6050 = vmatpush3.bf16.msra.mxu1 %v6651_v42  ;;  %6065 = vmatprep.mubr.msk.bf16.mxu1 %vm6776_vm0, %v6775_v1  ;;  %v1916_v42 = vcombine.low %v1886_v35, %v7555_v34  ;;  %v6699_v35 = vld [vmem:[%s7972_s1 + $0x2b0] sm:$0xff]  }
 0x109   : > { %6051 = vmatprep.subr.bf16.mxu1 %v6775_v1  ;;  %6284 = vmatpush3.bf16.msra.mxu0 %v6650_v15  ;;  %v6689_v15 = vld [vmem:[%s7972_s1 + $0x288] sm:$0xff]  }
 0x10a   : > { %6289 = vmatprep.subr.bf16.mxu0 %v6775_v1  ;;  %v1924_v34 = vrot.slane %v1916_v42, %v6895_v28 }
 0x10c   : > { %6052 = vmatpush3.bf16.msra.mxu1 %v6653_v47  ;;  %6286 = vmatmul.mubr.bf16.vlgmr.msra.gmra.mrb[0].mxu0 %v3732_v55  ;;  %v1932_v47 = vcombine.low %v1924_v34, %v1931_v36  ;;  %v5566_v55 = vld.sshfl [vmem:[%s6865_s17 + $0xc] sm:$0x13 pattern:$0x76325410] }
 0x10d   : > { %6053 = vmatprep.subr.bf16.mxu1 %v6775_v1  ;;  %6290 = vmatpush3.bf16.msra.mxu0 %v6652_v56  ;;  %v6688_v56 = vld [vmem:[%s7972_s1 + $0x580] sm:$0xff]   ;;  %v4154_v60 = vshrl.u32 %v5566_v55, 16  ;;  %v4157_v61 = vshll.u32 %v5566_v55, 16 }
 0x10e   : > { %6305 = vmatprep.mubr.msk.bf16.mxu0 %vm6776_vm0, %v6775_v1  ;;  %6291 = vmatprep.subr.bf16.mxu0 %v6775_v1 }
 0x110   : > { %6054 = vmatpush3.bf16.msra.mxu1 %v6655_v16  ;;  %v6684_v16 = vld [vmem:[%s7972_s1 + $0x578] sm:$0xff]  }
 0x111   : > { %6055 = vmatprep.subr.bf16.mxu1 %v6775_v1  ;;  %6292 = vmatpush3.bf16.msra.mxu0 %v6654_v4  ;;  %v4140_v4 = vshrl.u32 %v5565_v53, 16 }
 0x112   : > { %6293 = vmatprep.subr.bf16.mxu0 %v6775_v1 }
 0x113   : > { %v4142_v39 = vrot.slane %v4140_v4, 6  ;;  %v6709_v4 = vld [vmem:[%s7972_s1 + $0x2d0] sm:$0xff]  }
 0x114   : > { %6056 = vmatpush3.bf16.msra.mxu1 %v6657_v57  ;;  %v5567_v57 = vld.sshfl [vmem:[%s6865_s17 + $0x10] sm:$0x13 pattern:$0x76325410] }
 0x115   : > { %6057 = vmatprep.subr.bf16.mxu1 %v6775_v1  ;;  %6294 = vmatpush3.bf16.msra.mxu0 %v6656_v63  ;;  %v6690_v63 = vld [vmem:[%s7972_s1 + $0x588] sm:$0xff]   ;;  %v4171_v0 = vshll.u32 %v5567_v57, 16  ;;  %v4130_v38 = vcombine.high %v5567_v57, %v5567_v57 }
 0x116   : > { %6295 = vmatprep.subr.bf16.mxu0 %v6775_v1 }
 0x118   : > { %6058 = vmatpush3.bf16.msra.mxu1 %v6659_v10  ;;  %v4143_v10 = vshll.u32 %v5565_v53, 16 }
 0x119   : > { %6059 = vmatprep.subr.bf16.mxu1 %v6775_v1  ;;  %6296 = vmatpush3.bf16.msra.mxu0 %v6658_v3  ;;  %v4182_v3 = vshrl.u32 %v5568_v59, 16 }
 0x11a   : > { %6297 = vmatprep.subr.bf16.mxu0 %v6775_v1 }
 0x11c   : > { %6060 = vmatpush3.bf16.msra.mxu1 %v6661_v62  ;;  %v4168_v62 = vshrl.u32 %v5567_v57, 16 }
 0x11d   : > { %6061 = vmatprep.subr.bf16.mxu1 %v6775_v1  ;;  %6298 = vmatpush3.bf16.msra.mxu0 %v6660_v9  ;;  %v4122_v9 = vcombine.high %v5566_v55, %v5566_v55  ;;  %v6700_v55 = vld [vmem:[%s7972_s1 + $0x5b0] sm:$0xff]  }
 0x11e   : > { %6299 = vmatprep.subr.bf16.mxu0 %v6775_v1  ;;  %v4170_v20 = vrot.slane %v4168_v62, 6  ;;  %v5599_v62 = vld.sshfl [vmem:[%s6865_s17 + $0x28] sm:$0x13 pattern:$0x76325410] }
 0x11f   : > { %v4163_v30 = vshll.u32 %v4122_v9, 16 }
 0x120   : > { %6062 = vmatpush3.bf16.msra.mxu1 %v6663_v7  ;;  %v4114_v7 = vcombine.high %v5565_v53, %v5565_v53 }
 0x121   : > { %6063 = vmatprep.subr.bf16.mxu1 %v6775_v1  ;;  %6300 = vmatpush3.bf16.msra.mxu0 %v6662_v11  ;;  %v4145_v11 = vrot.slane %v4143_v10, 7  ;;  %v4165_v43 = vrot.slane %v4163_v30, 7  ;;  %v5597_v10 = vld.sshfl [vmem:[%s6865_s17 + $0x20] sm:$0x13 pattern:$0x76325410] }
 0x122   : > { %6301 = vmatprep.subr.bf16.mxu0 %v6775_v1 }
 0x124   : > { %6064 = vmatpush3.bf16.msra.mxu1 %v6665_v40  ;;  %v4138_v40 = vcombine.high %v5568_v59, %v5568_v59  ;;  %v6702_v59 = vld [vmem:[%s7972_s1 + $0x5b8] sm:$0xff]  }
 0x125   : > { %6069 = vmatprep.subr.bf16.mxu1 %v6775_v1  ;;  %6302 = vmatpush3.bf16.msra.mxu0 %v6664_v21  ;;  %v4173_v21 = vrot.slane %v4171_v0, 7  ;;  %v6711_v0 = vld [vmem:[%s7972_s1 + $0x2d8] sm:$0xff]  }
 0x126   : > { %6303 = vmatprep.subr.bf16.mxu0 %v6775_v1 }
 0x127   : > { %6066 = vmatmul.mubr.bf16.vlgmr.msra.gmra.mrb[0].mxu1 %v1750_v12  ;;  %v4156_v12 = vrot.slane %v4154_v60, 6  ;;  %v4174_v26 = vor.u32 %v4173_v21, %v4170_v20 }
 0x128   : > { %6070 = vmatpush3.bf16.msra.mxu1 %v6667_v18  ;;  %6085 = vmatprep.mubr.msk.bf16.mxu1 %vm6776_vm0, %v6775_v1  ;;  %v4159_v18 = vrot.slane %v4157_v61, 7  ;;  %v5598_v61 = vld.sshfl [vmem:[%s6865_s17 + $0x24] sm:$0x13 pattern:$0x76325410] }
 0x129   : > { %6071 = vmatprep.subr.bf16.mxu1 %v6775_v1  ;;  %6304 = vmatpush3.bf16.msra.mxu0 %v6666_v13  ;;  %v4187_v13 = vrot.slane %v4185_v5, 7  ;;  %v4175_v36 = vrot.slane %v4174_v26, 2  ;;  %v4362_v5 = vshrl.u32 %v5597_v10, 16  ;;  %v4379_v9 = vshll.u32 %v5598_v61, 16 }
 0x12a   : > { %6309 = vmatprep.subr.bf16.mxu0 %v6775_v1  ;;  %v4160_v33 = vor.u32 %v4159_v18, %v4156_v12  ;;  %v6713_v18 = vld [vmem:[%s7972_s1 + $0x2e0] sm:$0xff]   ;;  %v4344_v20 = vcombine.high %v5598_v61, %v5598_v61 }
 0x12b   : > { %v4364_v21 = vrot.slane %v4362_v5, 6  ;;  %v5629_v5 = vld.sshfl [vmem:[%s6865_s17 + $0x8] sm:$0x12 pattern:$0x76325410] }
 0x12c   : > { %6072 = vmatpush3.bf16.msra.mxu1 %v6671_v8  ;;  %6306 = vmatmul.mubr.bf16.vlgmr.msra.gmra.mrb[0].mxu0 %v3869_v23  ;;  %v4184_v8 = vrot.slane %v4182_v3, 6  ;;  %v6748_v23 = vld.sshfl [vmem:[%s6865_s17 + $0xc] sm:$0xf pattern:$0x76325410]  ;;  %v4161_v34 = vrot.slane %v4160_v33, 2 }
 0x12d   : > { %6073 = vmatprep.subr.bf16.mxu1 %v6775_v1  ;;  %6310 = vmatpush3.bf16.msra.mxu0 %v6670_v24  ;;  %v4146_v24 = vor.u32 %v4145_v11, %v4142_v39  ;;  %v5600_v3 = vld.sshfl [vmem:[%s6865_s17 + $0x2c] sm:$0x13 pattern:$0x76325410]  ;;  %v4390_v39 = vshrl.u32 %v5599_v62, 16 }
 0x12e   : > { %6325 = vmatprep.mubr.msk.bf16.mxu0 %vm6776_vm0, %v6775_v1  ;;  %6311 = vmatprep.subr.bf16.mxu0 %v6775_v1  ;;  %v4404_v11 = vshrl.u32 %v5600_v3, 16  ;;  %v4407_v12 = vshll.u32 %v5600_v3, 16  ;;  %v6715_v33 = vld [vmem:[%s7972_s1 + $0x2e8] sm:$0xff]  }
 0x130   : > { %6074 = vmatpush3.bf16.msra.mxu1 %v6673_v17  ;;  %v6697_v17 = vld [vmem:[%s7972_s1 + $0x2a8] sm:$0xff]  }
 0x131   : > { %6075 = vmatprep.subr.bf16.mxu1 %v6775_v1  ;;  %6312 = vmatpush3.bf16.msra.mxu0 %v6672_v31  ;;  %v4177_v31 = vshll.u32 %v4130_v38, 16  ;;  %v6708_v38 = vld [vmem:[%s7972_s1 + $0x5c8] sm:$0xff]  }
 0x132   : > { %6313 = vmatprep.subr.bf16.mxu0 %v6775_v1 }
 0x134   : > { %6076 = vmatpush3.bf16.msra.mxu1 %v6675_v25  ;;  %v4149_v25 = vshll.u32 %v4114_v7, 16  ;;  %v4376_v7 = vshrl.u32 %v5598_v61, 16 }
 0x135   : > { %6077 = vmatprep.subr.bf16.mxu1 %v6775_v1  ;;  %6314 = vmatpush3.bf16.msra.mxu0 %v6674_v27  ;;  %v4188_v27 = vor.u32 %v4187_v13, %v4184_v8  ;;  %v4352_v13 = vcombine.high %v5599_v62, %v5599_v62 }
 0x136   : > { %6315 = vmatprep.subr.bf16.mxu0 %v6775_v1  ;;  %v4151_v42 = vrot.slane %v4149_v25, 7  ;;  %v4392_v25 = vrot.slane %v4390_v39, 6  ;;  %v4558_v39 = vcombine.high %v5629_v5, %v5629_v5 }
 0x138   : > { %6078 = vmatpush3.bf16.msra.mxu1 %v6677_v32  ;;  %v6694_v32 = vld [vmem:[%s7972_s1 + $0x598] sm:$0xff]  }
 0x139   : > { %6079 = vmatprep.subr.bf16.mxu1 %v6775_v1  ;;  %6316 = vmatpush3.bf16.msra.mxu0 %v6676_v41  ;;  %v4147_v41 = vrot.slane %v4146_v24, 2  ;;  %v6710_v24 = vld [vmem:[%s7972_s1 + $0x5d0] sm:$0xff]  }
 0x13a   : > { %6317 = vmatprep.subr.bf16.mxu0 %v6775_v1 }
 0x13b   : > { %v4152_v51 = vsel %vm6920_vm7, %v4147_v41, %v4151_v42  ;;  %v4385_v41 = vshll.u32 %v4344_v20, 16  ;;  %v4399_v42 = vshll.u32 %v4352_v13, 16  ;;  %v4585_v20 = vrot.slane %v4558_v39, 7  ;;  %v6727_v13 = vld [vmem:[%s7972_s1 + $0x620] sm:$0xff]  }
 0x13c   : > { %6080 = vmatpush3.bf16.msra.mxu1 %v6679_v29  ;;  %v4191_v29 = vshll.u32 %v4138_v40, 16  ;;  %v4393_v40 = vshll.u32 %v5599_v62, 16 }
 0x13d   : > { %6081 = vmatprep.subr.bf16.mxu1 %v6775_v1  ;;  %6318 = vmatpush3.bf16.msra.mxu0 %v6678_v45  ;;  %v6696_v45 = vld [vmem:[%s7972_s1 + $0x5a0] sm:$0xff]  }
 0x13e   : > { %6319 = vmatprep.subr.bf16.mxu0 %v6775_v1  ;;  %v4395_v30 = vrot.slane %v4393_v40, 7 }
 0x140   : > { %6082 = vmatpush3.bf16.msra.mxu1 %v6681_v44  ;;  %v4179_v44 = vrot.slane %v4177_v31, 7  ;;  %v4406_v31 = vrot.slane %v4404_v11, 6  ;;  %v6726_v11 = vld [vmem:[%s7972_s1 + $0x618] sm:$0xff]  }
 0x141   : > { %6083 = vmatprep.subr.bf16.mxu1 %v6775_v1  ;;  %6320 = vmatpush3.bf16.msra.mxu0 %v6680_v46  ;;  %v4193_v46 = vrot.slane %v4191_v29, 7  ;;  %v6749_v29 = vld.sshfl [vmem:[%s6865_s17 + $0x1c] sm:$0xf pattern:$0x76325410] }
 0x142   : > { %6321 = vmatprep.subr.bf16.mxu0 %v6775_v1 }
 0x144   : > { %6084 = vmatpush3.bf16.msra.mxu1 %v6683_v37  ;;  %v4189_v37 = vrot.slane %v4188_v27, 2 }
 0x145   : > { %6089 = vmatprep.subr.bf16.mxu1 %v6775_v1  ;;  %6322 = vmatpush3.bf16.msra.mxu0 %v6682_v14  ;;  %v4166_v14 = vsel %vm6920_vm7, %v4161_v34, %v4165_v43  ;;  %v6712_v43 = vld [vmem:[%s7972_s1 + $0x5d8] sm:$0xff]  }
 0x146   : > { %6323 = vmatprep.subr.bf16.mxu0 %v6775_v1  ;;  %v4212_v53 = vcombine.low %v4152_v51, %v4166_v14  ;;  %v4401_v51 = vrot.slane %v4399_v42, 7  ;;  %v6714_v14 = vld [vmem:[%s7972_s1 + $0x5e0] sm:$0xff]  }
 0x147   : > { %6086 = vmatmul.mubr.bf16.vlgmr.msra.gmra.mrb[0].mxu1 %v1932_v47  ;;  %v6701_v47 = vld [vmem:[%s7972_s1 + $0x2b8] sm:$0xff]  }
 0x148   : > { %6090 = vmatpush3.bf16.msra.mxu1 %v6685_v48  ;;  %6105 = vmatprep.mubr.msk.bf16.mxu1 %vm6776_vm0, %v6775_v1  ;;  %v2069_v48 = vcombine.low %v6747_v22, %v6748_v23  ;;  %v4220_v57 = vrot.slane %v4212_v53, %v6895_v28  ;;  %v4378_v22 = vrot.slane %v4376_v7, 6  ;;  %v4381_v23 = vrot.slane %v4379_v9, 7  ;;  %v6719_v53 = vld [vmem:[%s7972_s1 + $0x2f8] sm:$0xff]   ;;  %v6725_v7 = vld [vmem:[%s7972_s1 + $0x610] sm:$0xff]  }
 0x149   : > { %6091 = vmatprep.subr.bf16.mxu1 %v6775_v1  ;;  %6324 = vmatpush3.bf16.msra.mxu0 %v6684_v16  ;;  %v4194_v16 = vsel %vm6920_vm7, %v4189_v37, %v4193_v46  ;;  %v6717_v37 = vld [vmem:[%s7972_s1 + $0x2f0] sm:$0xff]  }
 0x14a   : > { %6329 = vmatprep.subr.bf16.mxu0 %v6775_v1  ;;  %v5631_v9 = vld.sshfl [vmem:[%s6865_s17 + $0x10] sm:$0x12 pattern:$0x76325410] }
 0x14c   : > { %6092 = vmatpush3.bf16.msra.mxu1 %v6689_v15  ;;  %6326 = vmatmul.mubr.bf16.vlgmr.msra.gmra.mrb[0].mxu0 %v4006_v54  ;;  %v4180_v15 = vsel %vm6920_vm7, %v4175_v36, %v4179_v44  ;;  %v6750_v44 = vld.sshfl [vmem:[%s6865_s17 + $0x24] sm:$0xf pattern:$0x76325410] }
 0x14d   : > { %6093 = vmatprep.subr.bf16.mxu1 %v6775_v1  ;;  %6330 = vmatpush3.bf16.msra.mxu0 %v6688_v56  ;;  %v4213_v54 = vcombine.low %v4180_v15, %v4194_v16  ;;  %v6707_v56 = vld [vmem:[%s7972_s1 + $0x2c8] sm:$0xff]  }
 0x14e   : > { %6345 = vmatprep.mubr.msk.bf16.mxu0 %vm6776_vm0, %v6775_v1  ;;  %6331 = vmatprep.subr.bf16.mxu0 %v6775_v1 }
 0x150   : > { %6094 = vmatpush3.bf16.msra.mxu1 %v6691_v52  ;;  %v6705_v52 = vld [vmem:[%s7972_s1 + $0x2c0] sm:$0xff]  }
 0x151   : > { %6095 = vmatprep.subr.bf16.mxu1 %v6775_v1  ;;  %6332 = vmatpush3.bf16.msra.mxu0 %v6690_v63  ;;  %v6706_v63 = vld [vmem:[%s7972_s1 + $0x5c0] sm:$0xff]  }
 0x152   : > { %6333 = vmatprep.subr.bf16.mxu0 %v6775_v1 }
 0x154   : > { %6096 = vmatpush3.bf16.msra.mxu1 %v6693_v58  ;;  %v4227_v58 = vrot.slane %v4213_v54, %v6895_v28 }
 0x155   : > { %6097 = vmatprep.subr.bf16.mxu1 %v6775_v1  ;;  %6334 = vmatpush3.bf16.msra.mxu0 %v6692_v19  ;;  %v4336_v19 = vcombine.high %v5597_v10, %v5597_v10 }
 0x156   : > { %6335 = vmatprep.subr.bf16.mxu0 %v6775_v1  ;;  %v4228_v60 = vcombine.low %v4220_v57, %v4227_v58 }
 0x157   : > { %v4371_v27 = vshll.u32 %v4336_v19, 16  ;;  %v5633_v19 = vrot.slane %v5629_v5, 9 }
 0x158   : > { %6098 = vmatpush3.bf16.msra.mxu1 %v6695_v6  ;;  %v4365_v6 = vshll.u32 %v5597_v10, 16 }
 0x159   : > { %6099 = vmatprep.subr.bf16.mxu1 %v6775_v1  ;;  %6336 = vmatpush3.bf16.msra.mxu0 %v6694_v32  ;;  %v4409_v32 = vrot.slane %v4407_v12, 7  ;;  %v4574_v12 = vcombine.high %v5631_v9, %v5631_v9 }
 0x15a   : > { %6337 = vmatprep.subr.bf16.mxu0 %v6775_v1  ;;  %v4367_v8 = vrot.slane %v4365_v6, 7  ;;  %v5630_v6 = vld.sshfl [vmem:[%s6865_s17 + $0xc] sm:$0x12 pattern:$0x76325410] }
 0x15b   : > { %v4410_v34 = vor.u32 %v4409_v32, %v4406_v31  ;;  %v4566_v40 = vcombine.high %v5630_v6, %v5630_v6 }
 0x15c   : > { %6100 = vmatpush3.bf16.msra.mxu1 %v6697_v17  ;;  %v4360_v17 = vcombine.high %v5600_v3, %v5600_v3  ;;  %v4368_v26 = vor.u32 %v4367_v8, %v4364_v21  ;;  %v6724_v3 = vld [vmem:[%s7972_s1 + $0x608] sm:$0xff]   ;;  %v5634_v21 = vrot.slane %v5630_v6, 9 }
 0x15d   : > { %6101 = vmatprep.subr.bf16.mxu1 %v6775_v1  ;;  %6338 = vmatpush3.bf16.msra.mxu0 %v6696_v45  ;;  %v4396_v45 = vor.u32 %v4395_v30, %v4392_v25  ;;  %v4411_v16 = vrot.slane %v4410_v34, 2  ;;  %v4589_v8 = vrot.slane %v4566_v40, 7  ;;  %v6728_v25 = vld [vmem:[%s7972_s1 + $0x628] sm:$0xff]   ;;  %v4586_v30 = vsel %vm7100_vm14, %v5633_v19, %v4585_v20 }
 0x15e   : > { %6339 = vmatprep.subr.bf16.mxu0 %v6775_v1  ;;  %v4413_v36 = vshll.u32 %v4360_v17, 16  ;;  %v4369_v46 = vrot.slane %v4368_v26, 2  ;;  %v5635_v17 = vrot.slane %v5631_v9, 9 }
 0x15f   : > { %v4397_v15 = vrot.slane %v4396_v45, 2  ;;  %v4590_v31 = vsel %vm7100_vm14, %v5634_v21, %v4589_v8 }
 0x160   : > { %6102 = vmatpush3.bf16.msra.mxu1 %v6699_v35  ;;  %v4382_v35 = vor.u32 %v4381_v23, %v4378_v22  ;;  %v4593_v22 = vrot.slane %v4574_v12, 7  ;;  %v4616_v26 = vcombine.low %v4586_v30, %v4590_v31 }
 0x161   : > { %6103 = vmatprep.subr.bf16.mxu1 %v6775_v1  ;;  %6340 = vmatpush3.bf16.msra.mxu0 %v6698_v49  ;;  %v4387_v49 = vrot.slane %v4385_v41, 7  ;;  %v4402_v58 = vsel %vm6920_vm7, %v4397_v15, %v4401_v51 }
 0x162   : > { %6341 = vmatprep.subr.bf16.mxu0 %v6775_v1  ;;  %v4594_v32 = vsel %vm7100_vm14, %v5635_v17, %v4593_v22 }
 0x164   : > { %6104 = vmatpush3.bf16.msra.mxu1 %v6701_v47  ;;  %v4373_v47 = vrot.slane %v4371_v27, 7 }
 0x165   : > { %6109 = vmatprep.subr.bf16.mxu1 %v6775_v1  ;;  %6342 = vmatpush3.bf16.msra.mxu0 %v6700_v55  ;;  %v6716_v55 = vld [vmem:[%s7972_s1 + $0x5e8] sm:$0xff]  }
 0x166   : > { %6343 = vmatprep.subr.bf16.mxu0 %v6775_v1  ;;  %v4374_v54 = vsel %vm6920_vm7, %v4369_v46, %v4373_v47 }
 0x167   : > { %6106 = vmatmul.mubr.bf16.vlgmr.msra.gmra.mrb[0].mxu1 %v2069_v48  ;;  %v4383_v48 = vrot.slane %v4382_v35, 2  ;;  %v4624_v35 = vrot.slane %v4616_v26, %v6895_v28 }
 0x168   : > { %6110 = vmatpush3.bf16.msra.mxu1 %v6705_v52  ;;  %6125 = vmatprep.mubr.msk.bf16.mxu1 %vm6776_vm0, %v6775_v1  ;;  %v4415_v52 = vrot.slane %v4413_v36, 7 }
 0x169   : > { %6111 = vmatprep.subr.bf16.mxu1 %v6775_v1  ;;  %6344 = vmatpush3.bf16.msra.mxu0 %v6702_v59  ;;  %v4388_v57 = vsel %vm6920_vm7, %v4383_v48, %v4387_v49 }
 0x16a   : > { %6349 = vmatprep.subr.bf16.mxu0 %v6775_v1  ;;  %v4416_v59 = vsel %vm6920_vm7, %v4411_v16, %v4415_v52 }
 0x16b   : > { %v4435_v10 = vcombine.low %v4402_v58, %v4416_v59 }
 0x16c   : > { %6112 = vmatpush3.bf16.msra.mxu1 %v6707_v56  ;;  %6346 = vmatmul.mubr.bf16.vlgmr.msra.gmra.mrb[0].mxu0 %v4228_v60  ;;  %v2206_v56 = vcombine.low %v6749_v29, %v6750_v44  ;;  %v6718_v60 = vld [vmem:[%s7972_s1 + $0x5f0] sm:$0xff]  }
 0x16d   : > { %6113 = vmatprep.subr.bf16.mxu1 %v6775_v1  ;;  %6350 = vmatpush3.bf16.msra.mxu0 %v6706_v63  ;;  %v4449_v50 = vrot.slane %v4435_v10, %v6895_v28  ;;  %v6720_v63 = vld [vmem:[%s7972_s1 + $0x5f8] sm:$0xff]   ;;  %v6729_v29 = vld [vmem:[%s7972_s1 + $0x630] sm:$0xff]  }
 0x16e   : > { %6365 = vmatprep.mubr.msk.bf16.mxu0 %vm6776_vm0, %v6775_v1  ;;  %6351 = vmatprep.subr.bf16.mxu0 %v6775_v1 }
 0x170   : > { %6114 = vmatpush3.bf16.msra.mxu1 %v6709_v4  ;;  %v4434_v4 = vcombine.low %v4374_v54, %v4388_v57 }
 0x171   : > { %6115 = vmatprep.subr.bf16.mxu1 %v6775_v1  ;;  %6352 = vmatpush3.bf16.msra.mxu0 %v6708_v38  ;;  %v5632_v38 = vld.sshfl [vmem:[%s6865_s17 + $0x14] sm:$0x12 pattern:$0x76325410] }
 0x172   : > { %6353 = vmatprep.subr.bf16.mxu0 %v6775_v1  ;;  %v4442_v61 = vrot.slane %v4434_v4, %v6895_v28  ;;  %v5636_v23 = vrot.slane %v5632_v38, 9 }
 0x174   : > { %6116 = vmatpush3.bf16.msra.mxu1 %v6711_v0  ;;  %v4450_v62 = vcombine.low %v4442_v61, %v4449_v50  ;;  %v6723_v0 = vld [vmem:[%s7972_s1 + $0x600] sm:$0xff]  }
 0x175   : > { %6117 = vmatprep.subr.bf16.mxu1 %v6775_v1  ;;  %6354 = vmatpush3.bf16.msra.mxu0 %v6710_v24 }
 0x176   : > { %6355 = vmatprep.subr.bf16.mxu0 %v6775_v1 }
 0x178   : > { %6118 = vmatpush3.bf16.msra.mxu1 %v6713_v18  ;;  %v4582_v18 = vcombine.high %v5632_v38, %v5632_v38 }
 0x179   : > { %6119 = vmatprep.subr.bf16.mxu1 %v6775_v1  ;;  %6356 = vmatpush3.bf16.msra.mxu0 %v6712_v43 }
 0x17a   : > { %6357 = vmatprep.subr.bf16.mxu0 %v6775_v1  ;;  %v4597_v24 = vrot.slane %v4582_v18, 7 }
 0x17c   : > { %6120 = vmatpush3.bf16.msra.mxu1 %v6715_v33  ;;  %v4598_v33 = vsel %vm7100_vm14, %v5636_v23, %v4597_v24 }
 0x17d   : > { %6121 = vmatprep.subr.bf16.mxu1 %v6775_v1  ;;  %6358 = vmatpush3.bf16.msra.mxu0 %v6714_v14  ;;  %v4617_v27 = vcombine.low %v4594_v32, %v4598_v33 }
 0x17e   : > { %6359 = vmatprep.subr.bf16.mxu0 %v6775_v1 }
 0x17f   : > { %v4631_v41 = vrot.slane %v4617_v27, %v6895_v28 }
 0x180   : > { %6122 = vmatpush3.bf16.msra.mxu1 %v6717_v37 }
 0x181   : > { %6123 = vmatprep.subr.bf16.mxu1 %v6775_v1  ;;  %6360 = vmatpush3.bf16.msra.mxu0 %v6716_v55  ;;  %v4632_v42 = vcombine.low %v4624_v35, %v4631_v41 }
 0x182   : > { %6361 = vmatprep.subr.bf16.mxu0 %v6775_v1 }
 0x184   : > { %6124 = vmatpush3.bf16.msra.mxu1 %v6719_v53 }
 0x185   : > { %6362 = vmatpush3.bf16.msra.mxu0 %v6718_v60 }
 0x186   : > { %6363 = vmatprep.subr.bf16.mxu0 %v6775_v1 }
 0x187   : > { %6126 = vmatmul.mubr.bf16.vlgmr.msra.gmra.mrb[0].mxu1 %v2206_v56 }
 0x189   : > { %6364 = vmatpush3.bf16.msra.mxu0 %v6720_v63 }
 0x18a   : > { %6369 = vmatprep.subr.bf16.mxu0 %v6775_v1 }
 0x18c   : > { %6366 = vmatmul.mubr.bf16.vlgmr.msra.gmra.mrb[0].mxu0 %v4450_v62 }
 0x18d   : > { %6370 = vmatpush3.bf16.msra.mxu0 %v6723_v0  ;;  %6385 = vmatprep.mubr.msk.bf16.mxu0 %vm6776_vm0, %v6775_v1 }
 0x18e   : > { %6371 = vmatprep.subr.bf16.mxu0 %v6775_v1 }
 0x191   : > { %6372 = vmatpush3.bf16.msra.mxu0 %v6724_v3 }
 0x192   : > { %6373 = vmatprep.subr.bf16.mxu0 %v6775_v1 }
 0x195   : > { %6374 = vmatpush3.bf16.msra.mxu0 %v6725_v7 }
 0x196   : > { %6375 = vmatprep.subr.bf16.mxu0 %v6775_v1 }
 0x199   : > { %6376 = vmatpush3.bf16.msra.mxu0 %v6726_v11 }
 0x19a   : > { %6377 = vmatprep.subr.bf16.mxu0 %v6775_v1 }
 0x19d   : > { %6378 = vmatpush3.bf16.msra.mxu0 %v6727_v13 }
 0x19e   : > { %6379 = vmatprep.subr.bf16.mxu0 %v6775_v1 }
 0x1a1   : > { %6380 = vmatpush3.bf16.msra.mxu0 %v6728_v25 }
 0x1a2   : > { %6381 = vmatprep.subr.bf16.mxu0 %v6775_v1 }
 0x1a5   : > { %6382 = vmatpush3.bf16.msra.mxu0 %v6729_v29 }
 0x1a6   : > { %6383 = vmatprep.subr.bf16.mxu0 %v6775_v1 }
 0x1a9   : > { %6384 = vmatpush3.bf16.msra.mxu0 %v6730_v2 }
 0x1ac   : > { %6386 = vmatmul.mubr.bf16.vlgmr.msra.gmra.mrb[0].mxu0 %v4632_v42 }
 0x25a   : > { %v2290_v43 = vpop.f32.mrb[0].mxu1 }
 0x25b   : > { %v6127_v44 = vpop.f32.mrb[1].mxu1 }
 0x25c   : > { %v2293_v45 = vpop.f32.mrb[2].mxu1 }
 0x25d   : > { %v6128_v34 = vpop.f32.mrb[3].mxu1 }
 0x27f   : > { %v4716_v28 = vpop.f32.mrb[0].mxu0 }
 0x280   : > { %v6389_v36 = vadd.f32 %v4716_v28, %v2290_v43  ;;  %v6387_v37 = vpop.f32.mrb[1].mxu0 }
 0x281   : > { %v4719_v46 = vpop.f32.mrb[2].mxu0 }
 0x282   : > { %4725 = vst [vmem:[%s207_s26] sm:$0xff] %v6389_v36  ;;  %v6390_v1 = vadd.f32 %v4719_v46, %v2293_v45  ;;  %v6388_v47 = vpop.f32.mrb[3].mxu0  ;;  %v4734_v48 = vmul.f32 %v6389_v36, %v6389_v36 }
 0x284   : > { %4726 = vst [vmem:[%s207_s26 + $0x8] sm:$0xff] %v6390_v1  ;;  %v4727_v49 = vadd.f32 %v6390_v1, %v6389_v36  ;;  %v4735_v51 = vmul.f32 %v6390_v1, %v6390_v1 }
 0x286   : > { %v4728_v14 = vrot.slane %v4727_v49, 4  ;;  %v4736_v15 = vadd.f32 %v4735_v51, %v4734_v48 }
 0x288   : > { %v4729_v16 = vadd.f32 %v4728_v14, %v4727_v49  ;;  %v4737_v52 = vrot.slane %v4736_v15, 4 }
 0x28a   : > { %v4730_v53 = vrot.slane %v4729_v16, 2  ;;  %v4738_v54 = vadd.f32 %v4737_v52, %v4736_v15 }
 0x28c   : > { %v4731_v55 = vadd.f32 %v4730_v53, %v4729_v16  ;;  %v4739_v56 = vrot.slane %v4738_v54, 2 }
 0x28e   : > { %v4732_v57 = vrot.slane %v4731_v55, 1  ;;  %v4740_v58 = vadd.f32 %v4739_v56, %v4738_v54 }
 0x290   : > { %v4741_v59 = vrot.slane %v4740_v58, 1  ;;  %v4733_v4 = vadd.f32 %v4732_v57, %v4731_v55 }
 0x292   : > { %v4742_v10 = vadd.f32 %v4741_v59, %v4740_v58 }
 0x294   : > { %v4744_v60 = vsel %vm976_vm8, %v4733_v4, %v4742_v10 }
 0x295   : > { %4745 = vst [vmem:[%s213_s30] sm:$0x3] %v4744_v60 }
 0x296 PF: > { %s14_s14 = sadd.s32 1, %s6773_s14   ;;  %s7983_s12 = smov %s6769_s13 }
 0x297   : > { %p11_p6 = scmp.ge.s32.totalorder %s14_s14, 4   ;;  %s7984_s13 = smov %s7986_s15 }
 0x299   :  { %13 = sbr.rel (!%p11_p6) target bundleno = 2 (0x2), region = 104 }

// kernel: encoder_forward.11
= control target key start
LH: loop header
LB: loop body
LE: loop exit
PB: predicated region body
PF: predicated region fallthrough
CT: control target
= control target key end

     0   :  { %s5775_s12 = smov 0   ;;  %s5777_s13 = smov 0   ;;  %s6827_s0 = inlined_call_operand.vmem [shape: bf16[8,4,4,128], index: 0, kind: input, shape index: {}]   ;;  %s6828_s1 = inlined_call_operand.vmem [shape: bf16[25,128,128], index: 1, kind: input, shape index: {}]   ;;  %s6829_s2 = inlined_call_operand.vmem [shape: f32[2,4,128], index: 2, kind: output, shape index: {0}]   ;;  %s6830_s3 = inlined_call_operand.vmem [shape: f32[2,2,128], index: 3, kind: output, shape index: {1}]  }
   0x1   :  { %s5779_s14 = smov 0  }
   0x2 LB: > { %s26_s15 = sadd.s32 1, %s5746_s13  ;;  %p3991_p0 = scmp.ge.s32.totalorder %s5750_s14, 1  ;;  %s5750_s14 = sphi %s5779_s14, %s14_s14   ;;  %s5746_s13 = sphi %s5777_s13, %s6834_s13   ;;  %s5742_s12 = sphi %s5775_s12, %s6833_s12  }
   0x3   : > { %p28_p1 = scmp.ge.s32.totalorder %s26_s15, 2  ;;  %p158_p2 = scmp.lt.s32.totalorder %s5750_s14, 3 }
   0x5   : > { %s6836_s15 = smov (%p28_p1, %s26_s15), 0  ;;  %p159_p3 = pnand %p3991_p0, %p158_p2 }
   0x6   : > { %v5528_v0 = vld [vmem:[%s6828_s1 + $0x40] sm:$0xff] (!%p159_p3)   ;;  %v5752_v1 = vmov (!%p159_p3), 0.0   ;;  %v5530_v3 = vld [vmem:[%s6828_s1 + $0x48] sm:$0xff] (!%p159_p3)   ;;  %vm5753_vm0 = vmmov (!%p159_p3), 0   ;;  %s3992_s22 = sshll.u32 (!%p159_p3), %s5742_s12, 2  ;;  %v5532_v5 = vld [vmem:[%s6828_s1 + $0x50] sm:$0xff] (!%p159_p3)   ;;  %v260_v9 = vlaneseq (!%p159_p3) }
   0x7   : > { %162 = sbr.rel (%p159_p3) target bundleno = 655 (0x28f), region = 28  ;;  %4908 = vmatprep.subr.bf16.mxu1 (!%p159_p3), %v5752_v1  ;;  %5148 = vmatprep.subr.bf16.mxu0 (!%p159_p3), %v5752_v1  ;;  %v5529_v2 = vld [vmem:[%s6828_s1 + $0x300] sm:$0xff] (!%p159_p3)   ;;  %v5531_v4 = vld [vmem:[%s6828_s1 + $0x308] sm:$0xff] (!%p159_p3)   ;;  %p191_p4 = scmp.lt.s32.totalorder (!%p159_p3), %s3992_s22, 7  ;;  %v5533_v6 = vld [vmem:[%s6828_s1 + $0x310] sm:$0xff] (!%p159_p3)  }
   0x8   : > { %4909 = vmatpush3.bf16.msra.mxu1 (!%p159_p3), %v5528_v0  ;;  %4924 = vmatprep.mubr.msk.bf16.mxu1 (!%p159_p3), %vm5753_vm0, %v5752_v1  ;;  %v5534_v7 = vld [vmem:[%s6828_s1 + $0x58] sm:$0xff] (!%p159_p3)   ;;  %v5536_v10 = vld [vmem:[%s6828_s1 + $0x60] sm:$0xff] (!%p159_p3)   ;;  %v5538_v12 = vld [vmem:[%s6828_s1 + $0x68] sm:$0xff] (!%p159_p3)   ;;  %v261_v14 = vshrl.u32 (!%p159_p3), %v260_v9, 7  ;;  %v5754_v17 = vmov (!%p159_p3), 1966171168  }
   0x9   : > { %5149 = vmatpush3.bf16.msra.mxu0 (!%p159_p3), %v5529_v2  ;;  %4910 = vmatprep.subr.bf16.mxu1 (!%p159_p3), %v5752_v1  ;;  %v5535_v8 = vld [vmem:[%s6828_s1 + $0x318] sm:$0xff] (!%p159_p3)   ;;  %v5537_v11 = vld [vmem:[%s6828_s1 + $0x320] sm:$0xff] (!%p159_p3)   ;;  %v5539_v15 = vld [vmem:[%s6828_s1 + $0x328] sm:$0xff] (!%p159_p3)   ;;  %v258_v18 = vunpack.c.l.s4 (!%p159_p3), %v5754_v17  ;;  %vm486_vm1 = vsmask.f32 (!%p159_p3), 256  ;;  %p197_p5 = scmp.lt.s32.totalorder (!%p159_p3), %s5742_s12, 1 }
   0xa   : > { %5150 = vmatprep.subr.bf16.mxu0 (!%p159_p3), %v5752_v1  ;;  %5164 = vmatprep.mubr.msk.bf16.mxu0 (!%p159_p3), %vm5753_vm0, %v5752_v1  ;;  %vm487_vm2 = vsmask.f32 (!%p159_p3), 1284  ;;  %vm489_vm3 = vsmask.f32 (!%p159_p3), 2312  ;;  %vm491_vm5 = vsmask.f32 (!%p159_p3), 3340 }
   0xb   : > { %v259_v19 = vunpack.c.0.s8 (!%p159_p3), %v258_v18  ;;  %vm488_vm4 = vmor (!%p159_p3), %vm486_vm1, %vm487_vm2  ;;  %vm493_vm6 = vsmask.f32 (!%p159_p3), 4368  ;;  %vm495_vm7 = vsmask.f32 (!%p159_p3), 5396  ;;  %v5540_v20 = vld [vmem:[%s6828_s1 + $0x70] sm:$0xff] (!%p159_p3)   ;;  %v5542_v34 = vld [vmem:[%s6828_s1 + $0x78] sm:$0xff] (!%p159_p3)  }
   0xc   : > { %4911 = vmatpush3.bf16.msra.mxu1 (!%p159_p3), %v5530_v3  ;;  %vm490_vm8 = vmor (!%p159_p3), %vm488_vm4, %vm489_vm3  ;;  %vm497_vm9 = vsmask.f32 (!%p159_p3), 6424  ;;  %vm499_vm10 = vsmask.f32 (!%p159_p3), 7452  ;;  %v5541_v24 = vld [vmem:[%s6828_s1 + $0x330] sm:$0xff] (!%p159_p3)   ;;  %v5543_v36 = vld [vmem:[%s6828_s1 + $0x338] sm:$0xff] (!%p159_p3)  }
   0xd   : > { %5151 = vmatpush3.bf16.msra.mxu0 (!%p159_p3), %v5531_v4  ;;  %4912 = vmatprep.subr.bf16.mxu1 (!%p159_p3), %v5752_v1  ;;  %v5858_v22 = vsub.s32 (!%p159_p3), %v259_v19, %v261_v14  ;;  %vm492_vm11 = vmor (!%p159_p3), %vm490_vm8, %vm491_vm5  ;;  %v5544_v40 = vld [vmem:[%s6828_s1] sm:$0xff] (!%p159_p3)   ;;  %v5546_v44 = vld [vmem:[%s6828_s1 + $0x8] sm:$0xff] (!%p159_p3)   ;;  %vm3840_vm1 = vcmask (!%p159_p3), 1040384  }
   0xe   : > { %5152 = vmatprep.subr.bf16.mxu0 %v5752_v1  ;;  %s6838_s22 = smov (!%p191_p4, %s3992_s22), 7  ;;  %vm494_vm12 = vmor %vm492_vm11, %vm493_vm6  ;;  %v5545_v42 = vld [vmem:[%s6828_s1 + $0x340] sm:$0xff]   ;;  %v5547_v45 = vld [vmem:[%s6828_s1 + $0x348] sm:$0xff]   ;;  %s6840_s12 = smov (!%p197_p5, %s5742_s12), 1 }
   0xf   : > { %s4682_s6 = sshll.u32 %s6838_s22, 3  ;;  %vm496_vm13 = vmor %vm494_vm12, %vm495_vm7  ;;  %v5548_v46 = vld [vmem:[%s6828_s1 + $0x10] sm:$0xff]   ;;  %v5550_v50 = vld [vmem:[%s6828_s1 + $0x18] sm:$0xff]   ;;  %s3996_s27 = sshll.u32 %s6840_s12, 1 }
  0x10   : > { %4913 = vmatpush3.bf16.msra.mxu1 %v5532_v5  ;;  %s5842_s17 = scalar_lea.vmem %s6827_s0, %s4682_s6  ;;  %vm498_vm14 = vmor %vm496_vm13, %vm497_vm9  ;;  %v5549_v47 = vld [vmem:[%s6828_s1 + $0x350] sm:$0xff]   ;;  %v5551_v51 = vld [vmem:[%s6828_s1 + $0x358] sm:$0xff]   ;;  %s208_s30 = scalar_lea.vmem %s6830_s3, %s3996_s27 }
  0x11   : > { %5153 = vmatpush3.bf16.msra.mxu0 %v5533_v6  ;;  %4914 = vmatprep.subr.bf16.mxu1 %v5752_v1  ;;  %v3997_v13 = vld [vmem:[%s5842_s17 + $0x8] sm:$0x1]  ;;  %v3998_v16 = vld [vmem:[%s5842_s17 + $0xa] sm:$0x1]  ;;  %vm5871_vm15 = vmor %vm498_vm14, %vm499_vm10 }
  0x12   : > { %5154 = vmatprep.subr.bf16.mxu0 %v5752_v1  ;;  %v256_v21 = vcombine.low %v3997_v13, %v3998_v16  ;;  %v4311_v23 = vld.sshfl [vmem:[%s5842_s17 + $0x2] sm:$0x11 pattern:$0x75316420]  ;;  %v5554_v60 = vld [vmem:[%s6828_s1 + $0x28] sm:$0xff]   ;;  %v5556_v4 = vld [vmem:[%s6828_s1 + $0x30] sm:$0xff]  }
  0x13   : > { %v4312_v25 = vld.sshfl [vmem:[%s5842_s17 + $0x4] sm:$0x11 pattern:$0x75316420]  ;;  %v1932_v26 = vcombine.high %v4311_v23, %v4311_v23  ;;  %v1942_v27 = vshrl.u32 %v4311_v23, 16  ;;  %v5555_v63 = vld [vmem:[%s6828_s1 + $0x368] sm:$0xff]  }
  0x14   : > { %4915 = vmatpush3.bf16.msra.mxu1 %v5534_v7  ;;  %v1940_v28 = vcombine.high %v4312_v25, %v4312_v25  ;;  %v1951_v29 = vshrl.u32 %v4312_v25, 16  ;;  %v263_v31 = vrot.slane %v256_v21, %v5858_v22  ;;  %v4341_v48 = vld.sshfl [vmem:[%s5842_s17 + $0xa] sm:$0x11 pattern:$0x75316420]  ;;  %v5552_v54 = vld [vmem:[%s6828_s1 + $0x20] sm:$0xff]  }
  0x15   : > { %5155 = vmatpush3.bf16.msra.mxu0 %v5535_v8  ;;  %4916 = vmatprep.subr.bf16.mxu1 %v5752_v1  ;;  %v1947_v30 = vshll.u32 %v1932_v26, 16  ;;  %v4342_v49 = vld.sshfl [vmem:[%s5842_s17 + $0xc] sm:$0x11 pattern:$0x75316420]  ;;  %v2092_v52 = vcombine.high %v4341_v48, %v4341_v48  ;;  %v5553_v55 = vld [vmem:[%s6828_s1 + $0x360] sm:$0xff]  }
  0x16   : > { %5156 = vmatprep.subr.bf16.mxu0 %v5752_v1  ;;  %v1956_v33 = vshll.u32 %v1940_v28, 16  ;;  %v270_v39 = vrot.slane %v263_v31, %v5858_v22  ;;  %v2100_v53 = vcombine.high %v4342_v49, %v4342_v49  ;;  %v2102_v56 = vshrl.u32 %v4341_v48, 16  ;;  %v214_v61 = vld [vmem:[%s5842_s17] sm:$0x1]  ;;  %v215_v62 = vld [vmem:[%s5842_s17 + $0x2] sm:$0x1] }
  0x17   : > { %v5880_v35 = vsel %vm5871_vm15, %v1942_v27, %v1947_v30  ;;  %v2111_v57 = vshrl.u32 %v4342_v49, 16  ;;  %v2107_v58 = vshll.u32 %v2092_v52, 16  ;;  %v362_v3 = vcombine.low %v214_v61, %v215_v62  ;;  %v5557_v6 = vld [vmem:[%s6828_s1 + $0x370] sm:$0xff]   ;;  %v5558_v8 = vld [vmem:[%s6828_s1 + $0x38] sm:$0xff]   ;;  %v5561_v14 = vld [vmem:[%s6828_s1 + $0x380] sm:$0xff]  }
  0x18   : > { %4917 = vmatpush3.bf16.msra.mxu1 %v5536_v10  ;;  %v1958_v37 = vsel %vm5871_vm15, %v1951_v29, %v1956_v33  ;;  %v2116_v59 = vshll.u32 %v2100_v53, 16  ;;  %v5559_v10 = vld [vmem:[%s6828_s1 + $0x378] sm:$0xff]   ;;  %v5563_v16 = vld [vmem:[%s6828_s1 + $0x388] sm:$0xff]   ;;  %v5564_v18 = vld [vmem:[%s6828_s1 + $0x90] sm:$0xff]  }
  0x19   : > { %5157 = vmatpush3.bf16.msra.mxu0 %v5537_v11  ;;  %4918 = vmatprep.subr.bf16.mxu1 %v5752_v1  ;;  %v1976_v38 = vcombine.low %v5880_v35, %v1958_v37  ;;  %v5950_v0 = vsel %vm5871_vm15, %v2102_v56, %v2107_v58  ;;  %v369_v7 = vrot.slane %v362_v3, %v5858_v22  ;;  %v4031_v17 = vld.sshfl [vmem:[%s5842_s17] sm:$0x11 pattern:$0x75316420]  ;;  %v5565_v19 = vld [vmem:[%s6828_s1 + $0x390] sm:$0xff]   ;;  %v5567_v23 = vld [vmem:[%s6828_s1 + $0x398] sm:$0xff]  }
  0x1a   : > { %5158 = vmatprep.subr.bf16.mxu0 %v5752_v1  ;;  %v2118_v2 = vsel %vm5871_vm15, %v2111_v57, %v2116_v59  ;;  %v477_v21 = vcombine.high %v4031_v17, %v4031_v17  ;;  %v502_v25 = vshrl.u32 %v4031_v17, 16  ;;  %v5569_v27 = vld [vmem:[%s6828_s1 + $0x3a0] sm:$0xff]   ;;  %v5570_v30 = vld [vmem:[%s6828_s1 + $0xa8] sm:$0xff]   ;;  %v5580_v49 = vld [vmem:[%s6828_s1 + $0xd0] sm:$0xff]  }
  0x1b   : > { %v1983_v41 = vrot.slane %v1976_v38, %v5858_v22  ;;  %v2136_v5 = vcombine.low %v5950_v0, %v2118_v2  ;;  %v376_v11 = vrot.slane %v369_v7, %v5858_v22  ;;  %v6022_v28 = vld.sshfl [vmem:[%s5842_s17 + $0x2] sm:$0x10 pattern:$0x75316420]  ;;  %v5571_v33 = vld [vmem:[%s6828_s1 + $0x3a8] sm:$0xff]   ;;  %v5573_v38 = vld [vmem:[%s6828_s1 + $0x3b0] sm:$0xff]  }
  0x1c   : > { %4919 = vmatpush3.bf16.msra.mxu1 %v5538_v12  ;;  %v5560_v12 = vld [vmem:[%s6828_s1 + $0x80] sm:$0xff]   ;;  %v507_v26 = vshll.u32 %v477_v21, 16  ;;  %v4061_v48 = vld.sshfl [vmem:[%s5842_s17 + $0x8] sm:$0x11 pattern:$0x75316420] }
  0x1d   : > { %5159 = vmatpush3.bf16.msra.mxu0 %v5539_v15  ;;  %4920 = vmatprep.subr.bf16.mxu1 %v5752_v1  ;;  %v1990_v43 = vrot.slane %v1983_v41, %v5858_v22  ;;  %v2143_v9 = vrot.slane %v2136_v5, %v5858_v22  ;;  %v5562_v15 = vld [vmem:[%s6828_s1 + $0x88] sm:$0xff]   ;;  %v4372_v29 = vld.sshfl [vmem:[%s5842_s17 + $0x4] sm:$0x10 pattern:$0x75316420]  ;;  %v5575_v41 = vld [vmem:[%s6828_s1 + $0x3b8] sm:$0xff]   ;;  %v652_v52 = vcombine.high %v4061_v48, %v4061_v48 }
  0x1e   : > { %5160 = vmatprep.subr.bf16.mxu0 %v5752_v1  ;;  %v509_v31 = vsel %vm5871_vm15, %v502_v25, %v507_v26  ;;  %v4389_v37 = vcombine.high %v6022_v28, %v4372_v29  ;;  %v5583_v53 = vld [vmem:[%s6828_s1 + $0x3d8] sm:$0xff]   ;;  %v5585_v57 = vld [vmem:[%s6828_s1 + $0x3e0] sm:$0xff]   ;;  %v5586_v58 = vld [vmem:[%s6828_s1 + $0xe8] sm:$0xff]  }
  0x1f   : > { %v2150_v13 = vrot.slane %v2143_v9, %v5858_v22  ;;  %v667_v56 = vshll.u32 %v652_v52, 16  ;;  %v5587_v59 = vld [vmem:[%s6828_s1 + $0x3e8] sm:$0xff]   ;;  %v4399_v62 = vld [vmem:[%s5842_s17 + $0x14] sm:$0x1]  ;;  %v5591_v7 = vld [vmem:[%s6828_s1 + $0x3f8] sm:$0xff]  }
  0x20   : > { %4921 = vmatpush3.bf16.msra.mxu1 %v5540_v20  ;;  %v5566_v20 = vld [vmem:[%s6828_s1 + $0x98] sm:$0xff]   ;;  %v5588_v2 = vld [vmem:[%s6828_s1 + $0xf0] sm:$0xff]   ;;  %v5592_v9 = vld [vmem:[%s6828_s1 + $0x100] sm:$0xff]  }
  0x21   : > { %5161 = vmatpush3.bf16.msra.mxu0 %v5541_v24  ;;  %4922 = vmatprep.subr.bf16.mxu1 %v5752_v1  ;;  %v5568_v24 = vld [vmem:[%s6828_s1 + $0xa0] sm:$0xff]   ;;  %v5599_v17 = vld [vmem:[%s6828_s1 + $0x418] sm:$0xff]  }
  0x22   : > { %5162 = vmatprep.subr.bf16.mxu0 %v5752_v1  ;;  %v4089_v21 = vld.sshfl [vmem:[%s5842_s17] sm:$0x10 pattern:$0x75316420]  ;;  %v4425_v25 = vld [vmem:[%s5842_s17 + $0x1c] sm:$0x1] }
  0x23   : > { %v4107_v26 = vcombine.high %v4089_v21, %v6022_v28  ;;  %v5606_v28 = vld [vmem:[%s6828_s1 + $0x138] sm:$0xff]   ;;  %v5617_v52 = vld [vmem:[%s6828_s1 + $0x460] sm:$0xff]  }
  0x24   : > { %4923 = vmatpush3.bf16.msra.mxu1 %v5542_v34  ;;  %v536_v34 = vcombine.low %v509_v31, %v5880_v35  ;;  %v5574_v35 = vld [vmem:[%s6828_s1 + $0xb8] sm:$0xff]  }
  0x25   : > { %5163 = vmatpush3.bf16.msra.mxu0 %v5543_v36  ;;  %4928 = vmatprep.subr.bf16.mxu1 %v5752_v1  ;;  %v5572_v36 = vld [vmem:[%s6828_s1 + $0xb0] sm:$0xff]   ;;  %v845_v31 = vrot.slane %v4107_v26, %v5858_v22 }
  0x26   : > { %5168 = vmatprep.subr.bf16.mxu0 %v5752_v1 }
  0x27   : > { %4925 = vmatmul.mubr.bf16.vlgmr.msra.gmra.mrb[0].mxu1 %v270_v39  ;;  %v543_v39 = vrot.slane %v536_v34, %v5858_v22  ;;  %v5607_v34 = vld [vmem:[%s6828_s1 + $0x438] sm:$0xff]  }
  0x28   : > { %4929 = vmatpush3.bf16.msra.mxu1 %v5544_v40  ;;  %5165 = vmatmul.mubr.bf16.vlgmr.msra.gmra.mrb[0].mxu0 %v1990_v43  ;;  %v2285_v40 = vrot.slane %v4389_v37, %v5858_v22  ;;  %v5576_v43 = vld [vmem:[%s6828_s1 + $0xc0] sm:$0xff]  }
  0x29   : > { %5169 = vmatpush3.bf16.msra.mxu0 %v5545_v42  ;;  %4930 = vmatprep.subr.bf16.mxu1 %v5752_v1  ;;  %v550_v42 = vrot.slane %v543_v39, %v5858_v22  ;;  %v5608_v37 = vld [vmem:[%s6828_s1 + $0x140] sm:$0xff]  }
  0x2a   : > { %5170 = vmatprep.subr.bf16.mxu0 %v5752_v1  ;;  %4944 = vmatprep.mubr.msk.bf16.mxu1 %vm5753_vm0, %v5752_v1  ;;  %v5609_v39 = vld [vmem:[%s6828_s1 + $0x440] sm:$0xff]  }
  0x2b   : > { %5184 = vmatprep.mubr.msk.bf16.mxu0 %vm5753_vm0, %v5752_v1 }
  0x2c   : > { %4931 = vmatpush3.bf16.msra.mxu1 %v5546_v44  ;;  %v2292_v44 = vrot.slane %v2285_v40, %v5858_v22  ;;  %v5611_v40 = vld [vmem:[%s6828_s1 + $0x448] sm:$0xff]  }
  0x2d   : > { %5171 = vmatpush3.bf16.msra.mxu0 %v5547_v45  ;;  %4932 = vmatprep.subr.bf16.mxu1 %v5752_v1  ;;  %v5577_v45 = vld [vmem:[%s6828_s1 + $0x3c0] sm:$0xff]  }
  0x2e   : > { %5172 = vmatprep.subr.bf16.mxu0 %v5752_v1 }
  0x30   : > { %4933 = vmatpush3.bf16.msra.mxu1 %v5548_v46  ;;  %v5578_v46 = vld [vmem:[%s6828_s1 + $0xc8] sm:$0xff]  }
  0x31   : > { %5173 = vmatpush3.bf16.msra.mxu0 %v5549_v47  ;;  %4934 = vmatprep.subr.bf16.mxu1 %v5752_v1  ;;  %v5579_v47 = vld [vmem:[%s6828_s1 + $0x3c8] sm:$0xff]  }
  0x32   : > { %5174 = vmatprep.subr.bf16.mxu0 %v5752_v1 }
  0x34   : > { %4935 = vmatpush3.bf16.msra.mxu1 %v5550_v50  ;;  %v5581_v50 = vld [vmem:[%s6828_s1 + $0x3d0] sm:$0xff]  }
  0x35   : > { %5175 = vmatpush3.bf16.msra.mxu0 %v5551_v51  ;;  %4936 = vmatprep.subr.bf16.mxu1 %v5752_v1  ;;  %v5582_v51 = vld [vmem:[%s6828_s1 + $0xd8] sm:$0xff]  }
  0x36   : > { %5176 = vmatprep.subr.bf16.mxu0 %v5752_v1 }
  0x38   : > { %4937 = vmatpush3.bf16.msra.mxu1 %v5552_v54  ;;  %v5584_v54 = vld [vmem:[%s6828_s1 + $0xe0] sm:$0xff]  }
  0x39   : > { %5177 = vmatpush3.bf16.msra.mxu0 %v5553_v55  ;;  %4938 = vmatprep.subr.bf16.mxu1 %v5752_v1  ;;  %v662_v55 = vshrl.u32 %v4061_v48, 16 }
  0x3a   : > { %5178 = vmatprep.subr.bf16.mxu0 %v5752_v1 }
  0x3b   : > { %v669_v61 = vsel %vm5871_vm15, %v662_v55, %v667_v56  ;;  %v5618_v55 = vld [vmem:[%s6828_s1 + $0x168] sm:$0xff]   ;;  %v4116_v56 = vld [vmem:[%s5842_s17 + $0x10] sm:$0x1] }
  0x3c   : > { %4939 = vmatpush3.bf16.msra.mxu1 %v5554_v60  ;;  %v4398_v60 = vld [vmem:[%s5842_s17 + $0x12] sm:$0x1] }
  0x3d   : > { %5179 = vmatpush3.bf16.msra.mxu0 %v5555_v63  ;;  %4940 = vmatprep.subr.bf16.mxu1 %v5752_v1  ;;  %v696_v63 = vcombine.low %v669_v61, %v5950_v0  ;;  %v2407_v3 = vcombine.low %v4398_v60, %v4399_v62  ;;  %v5590_v0 = vld [vmem:[%s6828_s1 + $0xf8] sm:$0xff]   ;;  %v5620_v61 = vld [vmem:[%s6828_s1 + $0x170] sm:$0xff]  }
  0x3e   : > { %5180 = vmatprep.subr.bf16.mxu0 %v5752_v1  ;;  %v5621_v62 = vld [vmem:[%s6828_s1 + $0x470] sm:$0xff]  }
  0x3f   : > { %v703_v5 = vrot.slane %v696_v63, %v5858_v22 }
  0x40   : > { %4941 = vmatpush3.bf16.msra.mxu1 %v5556_v4  ;;  %v5589_v4 = vld [vmem:[%s6828_s1 + $0x3f0] sm:$0xff]  }
  0x41   : > { %5181 = vmatpush3.bf16.msra.mxu0 %v5557_v6  ;;  %4942 = vmatprep.subr.bf16.mxu1 %v5752_v1  ;;  %v2414_v6 = vrot.slane %v2407_v3, %v5858_v22  ;;  %v5622_v3 = vld [vmem:[%s6828_s1 + $0x178] sm:$0xff]  }
  0x42   : > { %5182 = vmatprep.subr.bf16.mxu0 %v5752_v1 }
  0x44   : > { %4943 = vmatpush3.bf16.msra.mxu1 %v5558_v8  ;;  %v710_v8 = vrot.slane %v703_v5, %v5858_v22 }
  0x45   : > { %5183 = vmatpush3.bf16.msra.mxu0 %v5559_v10  ;;  %4948 = vmatprep.subr.bf16.mxu1 %v5752_v1  ;;  %v2421_v10 = vrot.slane %v2414_v6, %v5858_v22 }
  0x46   : > { %5188 = vmatprep.subr.bf16.mxu0 %v5752_v1 }
  0x47   : > { %4945 = vmatmul.mubr.bf16.vlgmr.msra.gmra.mrb[0].mxu1 %v376_v11  ;;  %v5593_v11 = vld [vmem:[%s6828_s1 + $0x400] sm:$0xff]  }
  0x48   : > { %4949 = vmatpush3.bf16.msra.mxu1 %v5560_v12  ;;  %5185 = vmatmul.mubr.bf16.vlgmr.msra.gmra.mrb[0].mxu0 %v2150_v13  ;;  %v5594_v12 = vld [vmem:[%s6828_s1 + $0x108] sm:$0xff]  }
  0x49   : > { %5189 = vmatpush3.bf16.msra.mxu0 %v5561_v14  ;;  %4950 = vmatprep.subr.bf16.mxu1 %v5752_v1  ;;  %v5595_v13 = vld [vmem:[%s6828_s1 + $0x408] sm:$0xff]   ;;  %v5596_v14 = vld [vmem:[%s6828_s1 + $0x110] sm:$0xff]  }
  0x4a   : > { %5190 = vmatprep.subr.bf16.mxu0 %v5752_v1  ;;  %4964 = vmatprep.mubr.msk.bf16.mxu1 %vm5753_vm0, %v5752_v1 }
  0x4b   : > { %5204 = vmatprep.mubr.msk.bf16.mxu0 %vm5753_vm0, %v5752_v1 }
  0x4c   : > { %4951 = vmatpush3.bf16.msra.mxu1 %v5562_v15  ;;  %v5597_v15 = vld [vmem:[%s6828_s1 + $0x410] sm:$0xff]  }
  0x4d   : > { %5191 = vmatpush3.bf16.msra.mxu0 %v5563_v16  ;;  %4952 = vmatprep.subr.bf16.mxu1 %v5752_v1  ;;  %v5598_v16 = vld [vmem:[%s6828_s1 + $0x118] sm:$0xff]  }
  0x4e   : > { %5192 = vmatprep.subr.bf16.mxu0 %v5752_v1 }
  0x50   : > { %4953 = vmatpush3.bf16.msra.mxu1 %v5564_v18  ;;  %v5600_v18 = vld [vmem:[%s6828_s1 + $0x120] sm:$0xff]  }
  0x51   : > { %5193 = vmatpush3.bf16.msra.mxu0 %v5565_v19  ;;  %4954 = vmatprep.subr.bf16.mxu1 %v5752_v1  ;;  %v5601_v19 = vld [vmem:[%s6828_s1 + $0x420] sm:$0xff]  }
  0x52   : > { %5194 = vmatprep.subr.bf16.mxu0 %v5752_v1 }
  0x54   : > { %4955 = vmatpush3.bf16.msra.mxu1 %v5566_v20  ;;  %v5602_v20 = vld [vmem:[%s6828_s1 + $0x128] sm:$0xff]  }
  0x55   : > { %5195 = vmatpush3.bf16.msra.mxu0 %v5567_v23  ;;  %4956 = vmatprep.subr.bf16.mxu1 %v5752_v1  ;;  %v5603_v23 = vld [vmem:[%s6828_s1 + $0x428] sm:$0xff]  }
  0x56   : > { %5196 = vmatprep.subr.bf16.mxu0 %v5752_v1 }
  0x58   : > { %4957 = vmatpush3.bf16.msra.mxu1 %v5568_v24  ;;  %v4424_v24 = vld [vmem:[%s5842_s17 + $0x1a] sm:$0x1] }
  0x59   : > { %5197 = vmatpush3.bf16.msra.mxu0 %v5569_v27  ;;  %4958 = vmatprep.subr.bf16.mxu1 %v5752_v1  ;;  %v5604_v27 = vld [vmem:[%s6828_s1 + $0x130] sm:$0xff]   ;;  %v2536_v29 = vcombine.low %v4424_v24, %v4425_v25  ;;  %v5633_v24 = vld [vmem:[%s6828_s1 + $0x4a0] sm:$0xff]  }
  0x5a   : > { %5198 = vmatprep.subr.bf16.mxu0 %v5752_v1 }
  0x5c   : > { %4959 = vmatpush3.bf16.msra.mxu1 %v5570_v30  ;;  %v5605_v30 = vld [vmem:[%s6828_s1 + $0x430] sm:$0xff]  }
  0x5d   : > { %5199 = vmatpush3.bf16.msra.mxu0 %v5571_v33  ;;  %4960 = vmatprep.subr.bf16.mxu1 %v5752_v1  ;;  %v2543_v33 = vrot.slane %v2536_v29, %v5858_v22  ;;  %v4142_v29 = vld [vmem:[%s5842_s17 + $0x18] sm:$0x1] }
  0x5e   : > { %5200 = vmatprep.subr.bf16.mxu0 %v5752_v1 }
  0x60   : > { %4961 = vmatpush3.bf16.msra.mxu1 %v5572_v36  ;;  %v852_v36 = vrot.slane %v845_v31, %v5858_v22  ;;  %v5635_v31 = vld [vmem:[%s6828_s1 + $0x4a8] sm:$0xff]  }
  0x61   : > { %5201 = vmatpush3.bf16.msra.mxu0 %v5573_v38  ;;  %4962 = vmatprep.subr.bf16.mxu1 %v5752_v1  ;;  %v2550_v38 = vrot.slane %v2543_v33, %v5858_v22 }
  0x62   : > { %5202 = vmatprep.subr.bf16.mxu0 %v5752_v1 }
  0x64   : > { %4963 = vmatpush3.bf16.msra.mxu1 %v5574_v35  ;;  %v5610_v35 = vld [vmem:[%s6828_s1 + $0x148] sm:$0xff]  }
  0x65   : > { %5203 = vmatpush3.bf16.msra.mxu0 %v5575_v41  ;;  %4968 = vmatprep.subr.bf16.mxu1 %v5752_v1  ;;  %v4452_v41 = vld.sshfl [vmem:[%s5842_s17 + $0x12] sm:$0x11 pattern:$0x75316420] }
  0x66   : > { %5208 = vmatprep.subr.bf16.mxu0 %v5752_v1 }
  0x67   : > { %4965 = vmatmul.mubr.bf16.vlgmr.msra.gmra.mrb[0].mxu1 %v550_v42  ;;  %v4453_v42 = vld.sshfl [vmem:[%s5842_s17 + $0x14] sm:$0x11 pattern:$0x75316420] }
  0x68   : > { %4969 = vmatpush3.bf16.msra.mxu1 %v5576_v43  ;;  %5205 = vmatmul.mubr.bf16.vlgmr.msra.gmra.mrb[0].mxu0 %v2292_v44  ;;  %v5612_v43 = vld [vmem:[%s6828_s1 + $0x150] sm:$0xff]   ;;  %v2660_v48 = vcombine.high %v4453_v42, %v4453_v42 }
  0x69   : > { %5209 = vmatpush3.bf16.msra.mxu0 %v5577_v45  ;;  %4970 = vmatprep.subr.bf16.mxu1 %v5752_v1  ;;  %v5613_v44 = vld [vmem:[%s6828_s1 + $0x450] sm:$0xff]   ;;  %v5614_v45 = vld [vmem:[%s6828_s1 + $0x158] sm:$0xff]  }
  0x6a   : > { %5210 = vmatprep.subr.bf16.mxu0 %v5752_v1  ;;  %4984 = vmatprep.mubr.msk.bf16.mxu1 %vm5753_vm0, %v5752_v1 }
  0x6b   : > { %5224 = vmatprep.mubr.msk.bf16.mxu0 %vm5753_vm0, %v5752_v1 }
  0x6c   : > { %4971 = vmatpush3.bf16.msra.mxu1 %v5578_v46  ;;  %v5615_v46 = vld [vmem:[%s6828_s1 + $0x458] sm:$0xff]  }
  0x6d   : > { %5211 = vmatpush3.bf16.msra.mxu0 %v5579_v47  ;;  %4972 = vmatprep.subr.bf16.mxu1 %v5752_v1  ;;  %v2652_v47 = vcombine.high %v4452_v41, %v4452_v41 }
  0x6e   : > { %5212 = vmatprep.subr.bf16.mxu0 %v5752_v1 }
  0x70   : > { %4973 = vmatpush3.bf16.msra.mxu1 %v5580_v49  ;;  %v5616_v49 = vld [vmem:[%s6828_s1 + $0x160] sm:$0xff]  }
  0x71   : > { %5213 = vmatpush3.bf16.msra.mxu0 %v5581_v50  ;;  %4974 = vmatprep.subr.bf16.mxu1 %v5752_v1  ;;  %v2662_v50 = vshrl.u32 %v4452_v41, 16  ;;  %v5639_v41 = vld [vmem:[%s6828_s1 + $0x4b8] sm:$0xff]  }
  0x72   : > { %5214 = vmatprep.subr.bf16.mxu0 %v5752_v1 }
  0x74   : > { %4975 = vmatpush3.bf16.msra.mxu1 %v5582_v51  ;;  %v2671_v51 = vshrl.u32 %v4453_v42, 16 }
  0x75   : > { %5215 = vmatpush3.bf16.msra.mxu0 %v5583_v53  ;;  %4976 = vmatprep.subr.bf16.mxu1 %v5752_v1  ;;  %v2667_v53 = vshll.u32 %v2652_v47, 16  ;;  %v5643_v47 = vld [vmem:[%s6828_s1 + $0x4c8] sm:$0xff]  }
  0x76   : > { %5216 = vmatprep.subr.bf16.mxu0 %v5752_v1 }
  0x78   : > { %4977 = vmatpush3.bf16.msra.mxu1 %v5584_v54  ;;  %v2676_v54 = vshll.u32 %v2660_v48, 16  ;;  %v5644_v48 = vld [vmem:[%s6828_s1 + $0x1d0] sm:$0xff]  }
  0x79   : > { %5217 = vmatpush3.bf16.msra.mxu0 %v5585_v57  ;;  %4978 = vmatprep.subr.bf16.mxu1 %v5752_v1  ;;  %v5619_v57 = vld [vmem:[%s6828_s1 + $0x468] sm:$0xff]  }
  0x7a   : > { %5218 = vmatprep.subr.bf16.mxu0 %v5752_v1  ;;  %v2678_v60 = vsel %vm5871_vm15, %v2671_v51, %v2676_v54  ;;  %v5646_v51 = vld [vmem:[%s6828_s1 + $0x1d8] sm:$0xff]   ;;  %v5648_v54 = vld [vmem:[%s6828_s1 + $0x1e0] sm:$0xff]  }
  0x7c   : > { %4979 = vmatpush3.bf16.msra.mxu1 %v5586_v58  ;;  %v4117_v58 = vld [vmem:[%s5842_s17 + $0x12] sm:$0x1] }
  0x7d   : > { %5219 = vmatpush3.bf16.msra.mxu0 %v5587_v59  ;;  %4980 = vmatprep.subr.bf16.mxu1 %v5752_v1  ;;  %v6268_v59 = vsel %vm5871_vm15, %v2662_v50, %v2667_v53  ;;  %v967_v63 = vcombine.low %v4116_v56, %v4117_v58  ;;  %v4170_v50 = vld.sshfl [vmem:[%s5842_s17 + $0x10] sm:$0x11 pattern:$0x75316420]  ;;  %v5647_v53 = vld [vmem:[%s6828_s1 + $0x4d8] sm:$0xff]   ;;  %v5650_v58 = vld [vmem:[%s6828_s1 + $0x1e8] sm:$0xff]  }
  0x7e   : > { %5220 = vmatprep.subr.bf16.mxu0 %v5752_v1 }
  0x7f   : > { %v974_v5 = vrot.slane %v967_v63, %v5858_v22  ;;  %v4513_v63 = vld.sshfl [vmem:[%s5842_s17 + $0x14] sm:$0x10 pattern:$0x75316420] }
  0x80   : > { %4981 = vmatpush3.bf16.msra.mxu1 %v5588_v2  ;;  %v2696_v2 = vcombine.low %v6268_v59, %v2678_v60 }
  0x81   : > { %5221 = vmatpush3.bf16.msra.mxu0 %v5589_v4  ;;  %4982 = vmatprep.subr.bf16.mxu1 %v5752_v1  ;;  %v5623_v4 = vld [vmem:[%s6828_s1 + $0x478] sm:$0xff]   ;;  %v981_v6 = vrot.slane %v974_v5, %v5858_v22  ;;  %v5653_v5 = vld [vmem:[%s6828_s1 + $0x4f0] sm:$0xff]  }
  0x82   : > { %5222 = vmatprep.subr.bf16.mxu0 %v5752_v1 }
  0x84   : > { %4983 = vmatpush3.bf16.msra.mxu1 %v5590_v0  ;;  %v2703_v0 = vrot.slane %v2696_v2, %v5858_v22 }
  0x85   : > { %5223 = vmatpush3.bf16.msra.mxu0 %v5591_v7  ;;  %4988 = vmatprep.subr.bf16.mxu1 %v5752_v1  ;;  %v5624_v7 = vld [vmem:[%s6828_s1 + $0x180] sm:$0xff]  }
  0x86   : > { %5228 = vmatprep.subr.bf16.mxu0 %v5752_v1 }
  0x87   : > { %4985 = vmatmul.mubr.bf16.vlgmr.msra.gmra.mrb[0].mxu1 %v710_v8  ;;  %v5625_v8 = vld [vmem:[%s6828_s1 + $0x480] sm:$0xff]  }
  0x88   : > { %4989 = vmatpush3.bf16.msra.mxu1 %v5592_v9  ;;  %5225 = vmatmul.mubr.bf16.vlgmr.msra.gmra.mrb[0].mxu0 %v2421_v10  ;;  %v2710_v9 = vrot.slane %v2703_v0, %v5858_v22  ;;  %v5626_v10 = vld [vmem:[%s6828_s1 + $0x188] sm:$0xff]  }
  0x89   : > { %5229 = vmatpush3.bf16.msra.mxu0 %v5593_v11  ;;  %4990 = vmatprep.subr.bf16.mxu1 %v5752_v1  ;;  %v5627_v11 = vld [vmem:[%s6828_s1 + $0x488] sm:$0xff]  }
  0x8a   : > { %5230 = vmatprep.subr.bf16.mxu0 %v5752_v1  ;;  %5004 = vmatprep.mubr.msk.bf16.mxu1 %vm5753_vm0, %v5752_v1 }
  0x8b   : > { %5244 = vmatprep.mubr.msk.bf16.mxu0 %vm5753_vm0, %v5752_v1 }
  0x8c   : > { %4991 = vmatpush3.bf16.msra.mxu1 %v5594_v12  ;;  %v5628_v12 = vld [vmem:[%s6828_s1 + $0x190] sm:$0xff]  }
  0x8d   : > { %5231 = vmatpush3.bf16.msra.mxu0 %v5595_v13  ;;  %4992 = vmatprep.subr.bf16.mxu1 %v5752_v1  ;;  %v4482_v13 = vld.sshfl [vmem:[%s5842_s17 + $0x1a] sm:$0x11 pattern:$0x75316420] }
  0x8e   : > { %5232 = vmatprep.subr.bf16.mxu0 %v5752_v1  ;;  %v2822_v21 = vshrl.u32 %v4482_v13, 16 }
  0x90   : > { %4993 = vmatpush3.bf16.msra.mxu1 %v5596_v14  ;;  %v4483_v14 = vld.sshfl [vmem:[%s5842_s17 + $0x1c] sm:$0x11 pattern:$0x75316420] }
  0x91   : > { %5233 = vmatpush3.bf16.msra.mxu0 %v5597_v15  ;;  %4994 = vmatprep.subr.bf16.mxu1 %v5752_v1  ;;  %v5629_v15 = vld [vmem:[%s6828_s1 + $0x490] sm:$0xff]  }
  0x92   : > { %5234 = vmatprep.subr.bf16.mxu0 %v5752_v1 }
  0x94   : > { %4995 = vmatpush3.bf16.msra.mxu1 %v5598_v16  ;;  %v5630_v16 = vld [vmem:[%s6828_s1 + $0x198] sm:$0xff]  }
  0x95   : > { %5235 = vmatpush3.bf16.msra.mxu0 %v5599_v17  ;;  %4996 = vmatprep.subr.bf16.mxu1 %v5752_v1  ;;  %v5631_v17 = vld [vmem:[%s6828_s1 + $0x498] sm:$0xff]  }
  0x96   : > { %5236 = vmatprep.subr.bf16.mxu0 %v5752_v1 }
  0x98   : > { %4997 = vmatpush3.bf16.msra.mxu1 %v5600_v18  ;;  %v2812_v18 = vcombine.high %v4482_v13, %v4482_v13  ;;  %v5659_v13 = vld [vmem:[%s6828_s1 + $0x508] sm:$0xff]  }
  0x99   : > { %5237 = vmatpush3.bf16.msra.mxu0 %v5601_v19  ;;  %4998 = vmatprep.subr.bf16.mxu1 %v5752_v1  ;;  %v2820_v19 = vcombine.high %v4483_v14, %v4483_v14 }
  0x9a   : > { %5238 = vmatprep.subr.bf16.mxu0 %v5752_v1  ;;  %v2827_v25 = vshll.u32 %v2812_v18, 16 }
  0x9b   : > { %v2836_v26 = vshll.u32 %v2820_v19, 16  ;;  %v5663_v19 = vld [vmem:[%s6828_s1 + $0x518] sm:$0xff]  }
  0x9c   : > { %4999 = vmatpush3.bf16.msra.mxu1 %v5602_v20  ;;  %v5632_v20 = vld [vmem:[%s6828_s1 + $0x1a0] sm:$0xff]  }
  0x9d   : > { %5239 = vmatpush3.bf16.msra.mxu0 %v5603_v23  ;;  %5000 = vmatprep.subr.bf16.mxu1 %v5752_v1  ;;  %v2831_v23 = vshrl.u32 %v4483_v14, 16  ;;  %v5660_v14 = vld [vmem:[%s6828_s1 + $0x210] sm:$0xff]  }
  0x9e   : > { %5240 = vmatprep.subr.bf16.mxu0 %v5752_v1 }
  0x9f   : > { %v2838_v33 = vsel %vm5871_vm15, %v2831_v23, %v2836_v26 }
  0xa0   : > { %5001 = vmatpush3.bf16.msra.mxu1 %v5604_v27  ;;  %v5634_v27 = vld [vmem:[%s6828_s1 + $0x1a8] sm:$0xff]  }
  0xa1   : > { %5241 = vmatpush3.bf16.msra.mxu0 %v5605_v30  ;;  %5002 = vmatprep.subr.bf16.mxu1 %v5752_v1  ;;  %v4143_v30 = vld [vmem:[%s5842_s17 + $0x1a] sm:$0x1] }
  0xa2   : > { %5242 = vmatprep.subr.bf16.mxu0 %v5752_v1 }
  0xa4   : > { %5003 = vmatpush3.bf16.msra.mxu1 %v5606_v28  ;;  %v6351_v28 = vsel %vm5871_vm15, %v2822_v21, %v2827_v25  ;;  %v5666_v25 = vld [vmem:[%s6828_s1 + $0x228] sm:$0xff]  }
  0xa5   : > { %5243 = vmatpush3.bf16.msra.mxu0 %v5607_v34  ;;  %5008 = vmatprep.subr.bf16.mxu1 %v5752_v1  ;;  %v1096_v34 = vcombine.low %v4142_v29, %v4143_v30  ;;  %v4539_v29 = vld [vmem:[%s5842_s17 + $0x4] sm:$0x1]  ;;  %v4540_v30 = vld [vmem:[%s5842_s17 + $0x6] sm:$0x1] }
  0xa6   : > { %5248 = vmatprep.subr.bf16.mxu0 %v5752_v1 }
  0xa7   : > { %5005 = vmatmul.mubr.bf16.vlgmr.msra.gmra.mrb[0].mxu1 %v852_v36  ;;  %v5636_v36 = vld [vmem:[%s6828_s1 + $0x1b0] sm:$0xff]  }
  0xa8   : > { %5009 = vmatpush3.bf16.msra.mxu1 %v5608_v37  ;;  %5245 = vmatmul.mubr.bf16.vlgmr.msra.gmra.mrb[0].mxu0 %v2550_v38  ;;  %v2856_v37 = vcombine.low %v6351_v28, %v2838_v33  ;;  %v5637_v38 = vld [vmem:[%s6828_s1 + $0x4b0] sm:$0xff]  }
  0xa9   : > { %5249 = vmatpush3.bf16.msra.mxu0 %v5609_v39  ;;  %5010 = vmatprep.subr.bf16.mxu1 %v5752_v1  ;;  %v1103_v39 = vrot.slane %v1096_v34, %v5858_v22  ;;  %v5668_v33 = vld [vmem:[%s6828_s1 + $0x230] sm:$0xff]   ;;  %v3127_v34 = vcombine.low %v4539_v29, %v4540_v30 }
  0xaa   : > { %5250 = vmatprep.subr.bf16.mxu0 %v5752_v1  ;;  %5024 = vmatprep.mubr.msk.bf16.mxu1 %vm5753_vm0, %v5752_v1  ;;  %v5700_v30 = vld [vmem:[%s6828_s1 + $0x2b0] sm:$0xff]  }
  0xab   : > { %5264 = vmatprep.mubr.msk.bf16.mxu0 %vm5753_vm0, %v5752_v1  ;;  %v1110_v42 = vrot.slane %v1103_v39, %v5858_v22  ;;  %v5671_v39 = vld [vmem:[%s6828_s1 + $0x538] sm:$0xff]  }
  0xac   : > { %5011 = vmatpush3.bf16.msra.mxu1 %v5610_v35  ;;  %v5638_v35 = vld [vmem:[%s6828_s1 + $0x1b8] sm:$0xff]  }
  0xad   : > { %5251 = vmatpush3.bf16.msra.mxu0 %v5611_v40  ;;  %5012 = vmatprep.subr.bf16.mxu1 %v5752_v1  ;;  %v2863_v40 = vrot.slane %v2856_v37, %v5858_v22 }
  0xae   : > { %5252 = vmatprep.subr.bf16.mxu0 %v5752_v1 }
  0xb0   : > { %5013 = vmatpush3.bf16.msra.mxu1 %v5612_v43  ;;  %v5640_v43 = vld [vmem:[%s6828_s1 + $0x1c0] sm:$0xff]  }
  0xb1   : > { %5253 = vmatpush3.bf16.msra.mxu0 %v5613_v44  ;;  %5014 = vmatprep.subr.bf16.mxu1 %v5752_v1  ;;  %v2870_v44 = vrot.slane %v2863_v40, %v5858_v22  ;;  %v5672_v40 = vld [vmem:[%s6828_s1 + $0x240] sm:$0xff]  }
  0xb2   : > { %5254 = vmatprep.subr.bf16.mxu0 %v5752_v1 }
  0xb4   : > { %5015 = vmatpush3.bf16.msra.mxu1 %v5614_v45  ;;  %v5641_v45 = vld [vmem:[%s6828_s1 + $0x4c0] sm:$0xff]  }
  0xb5   : > { %5255 = vmatpush3.bf16.msra.mxu0 %v5615_v46  ;;  %5016 = vmatprep.subr.bf16.mxu1 %v5752_v1  ;;  %v5642_v46 = vld [vmem:[%s6828_s1 + $0x1c8] sm:$0xff]  }
  0xb6   : > { %5256 = vmatprep.subr.bf16.mxu0 %v5752_v1 }
  0xb8   : > { %5017 = vmatpush3.bf16.msra.mxu1 %v5616_v49  ;;  %v5645_v49 = vld [vmem:[%s6828_s1 + $0x4d0] sm:$0xff]  }
  0xb9   : > { %5257 = vmatpush3.bf16.msra.mxu0 %v5617_v52  ;;  %5018 = vmatprep.subr.bf16.mxu1 %v5752_v1  ;;  %v1212_v52 = vcombine.high %v4170_v50, %v4170_v50 }
  0xba   : > { %5258 = vmatprep.subr.bf16.mxu0 %v5752_v1 }
  0xbb   : > { %v1227_v56 = vshll.u32 %v1212_v52, 16  ;;  %v4230_v52 = vld.sshfl [vmem:[%s5842_s17 + $0x10] sm:$0x10 pattern:$0x75316420] }
  0xbc   : > { %5019 = vmatpush3.bf16.msra.mxu1 %v5618_v55  ;;  %v1222_v55 = vshrl.u32 %v4170_v50, 16  ;;  %v5681_v50 = vld [vmem:[%s6828_s1 + $0x560] sm:$0xff]  }
  0xbd   : > { %5259 = vmatpush3.bf16.msra.mxu0 %v5619_v57  ;;  %5020 = vmatprep.subr.bf16.mxu1 %v5752_v1  ;;  %v5649_v57 = vld [vmem:[%s6828_s1 + $0x4e0] sm:$0xff]  }
  0xbe   : > { %5260 = vmatprep.subr.bf16.mxu0 %v5752_v1  ;;  %v1229_v60 = vsel %vm5871_vm15, %v1222_v55, %v1227_v56  ;;  %v4566_v55 = vld [vmem:[%s5842_s17 + $0xe] sm:$0x1] }
  0xbf   : > { %v1256_v2 = vcombine.low %v1229_v60, %v6268_v59  ;;  %v5654_v59 = vld [vmem:[%s6828_s1 + $0x1f8] sm:$0xff]   ;;  %v5685_v60 = vld [vmem:[%s6828_s1 + $0x570] sm:$0xff]  }
  0xc0   : > { %5021 = vmatpush3.bf16.msra.mxu1 %v5620_v61  ;;  %v6428_v61 = vld.sshfl [vmem:[%s5842_s17 + $0x12] sm:$0x10 pattern:$0x75316420] }
  0xc1   : > { %5261 = vmatpush3.bf16.msra.mxu0 %v5621_v62  ;;  %5022 = vmatprep.subr.bf16.mxu1 %v5752_v1  ;;  %v5651_v62 = vld [vmem:[%s6828_s1 + $0x4e8] sm:$0xff]   ;;  %v1263_v0 = vrot.slane %v1256_v2, %v5858_v22  ;;  %v4248_v56 = vcombine.high %v4230_v52, %v6428_v61  ;;  %v5687_v2 = vld [vmem:[%s6828_s1 + $0x578] sm:$0xff]   ;;  %v5713_v52 = vld [vmem:[%s6828_s1 + $0x5e0] sm:$0xff]  }
  0xc2   : > { %5262 = vmatprep.subr.bf16.mxu0 %v5752_v1 }
  0xc4   : > { %5023 = vmatpush3.bf16.msra.mxu1 %v5622_v3  ;;  %v5652_v3 = vld [vmem:[%s6828_s1 + $0x1f0] sm:$0xff]  }
  0xc5   : > { %5263 = vmatpush3.bf16.msra.mxu0 %v5623_v4  ;;  %5028 = vmatprep.subr.bf16.mxu1 %v5752_v1  ;;  %v4530_v4 = vcombine.high %v6428_v61, %v4513_v63  ;;  %v5686_v61 = vld [vmem:[%s6828_s1 + $0x278] sm:$0xff]  }
  0xc6   : > { %5268 = vmatprep.subr.bf16.mxu0 %v5752_v1 }
  0xc7   : > { %5025 = vmatmul.mubr.bf16.vlgmr.msra.gmra.mrb[0].mxu1 %v981_v6  ;;  %v3005_v6 = vrot.slane %v4530_v4, %v5858_v22  ;;  %v5688_v4 = vld [vmem:[%s6828_s1 + $0x280] sm:$0xff]  }
  0xc8   : > { %5029 = vmatpush3.bf16.msra.mxu1 %v5624_v7  ;;  %5265 = vmatmul.mubr.bf16.vlgmr.msra.gmra.mrb[0].mxu0 %v2710_v9  ;;  %v5655_v7 = vld [vmem:[%s6828_s1 + $0x4f8] sm:$0xff]   ;;  %v5656_v9 = vld [vmem:[%s6828_s1 + $0x200] sm:$0xff]  }
  0xc9   : > { %5269 = vmatpush3.bf16.msra.mxu0 %v5625_v8  ;;  %5030 = vmatprep.subr.bf16.mxu1 %v5752_v1  ;;  %v1270_v8 = vrot.slane %v1263_v0, %v5858_v22  ;;  %v5689_v0 = vld [vmem:[%s6828_s1 + $0x580] sm:$0xff]  }
  0xca   : > { %5270 = vmatprep.subr.bf16.mxu0 %v5752_v1  ;;  %5044 = vmatprep.mubr.msk.bf16.mxu1 %vm5753_vm0, %v5752_v1 }
  0xcb   : > { %5284 = vmatprep.mubr.msk.bf16.mxu0 %vm5753_vm0, %v5752_v1 }
  0xcc   : > { %5031 = vmatpush3.bf16.msra.mxu1 %v5626_v10  ;;  %v3012_v10 = vrot.slane %v3005_v6, %v5858_v22  ;;  %v5691_v6 = vld [vmem:[%s6828_s1 + $0x588] sm:$0xff]  }
  0xcd   : > { %5271 = vmatpush3.bf16.msra.mxu0 %v5627_v11  ;;  %5032 = vmatprep.subr.bf16.mxu1 %v5752_v1  ;;  %v5657_v11 = vld [vmem:[%s6828_s1 + $0x500] sm:$0xff]  }
  0xce   : > { %5272 = vmatprep.subr.bf16.mxu0 %v5752_v1 }
  0xd0   : > { %5033 = vmatpush3.bf16.msra.mxu1 %v5628_v12  ;;  %v5658_v12 = vld [vmem:[%s6828_s1 + $0x208] sm:$0xff]  }
  0xd1   : > { %5273 = vmatpush3.bf16.msra.mxu0 %v5629_v15  ;;  %5034 = vmatprep.subr.bf16.mxu1 %v5752_v1  ;;  %v5661_v15 = vld [vmem:[%s6828_s1 + $0x510] sm:$0xff]  }
  0xd2   : > { %5274 = vmatprep.subr.bf16.mxu0 %v5752_v1 }
  0xd4   : > { %5035 = vmatpush3.bf16.msra.mxu1 %v5630_v16  ;;  %v4200_v16 = vld.sshfl [vmem:[%s5842_s17 + $0x18] sm:$0x11 pattern:$0x75316420] }
  0xd5   : > { %5275 = vmatpush3.bf16.msra.mxu0 %v5631_v17  ;;  %5036 = vmatprep.subr.bf16.mxu1 %v5752_v1  ;;  %v5662_v17 = vld [vmem:[%s6828_s1 + $0x218] sm:$0xff]   ;;  %v1372_v18 = vcombine.high %v4200_v16, %v4200_v16  ;;  %v1382_v21 = vshrl.u32 %v4200_v16, 16  ;;  %v5697_v16 = vld [vmem:[%s6828_s1 + $0x5a0] sm:$0xff]  }
  0xd6   : > { %5276 = vmatprep.subr.bf16.mxu0 %v5752_v1 }
  0xd7   : > { %v1387_v23 = vshll.u32 %v1372_v18, 16 }
  0xd8   : > { %5037 = vmatpush3.bf16.msra.mxu1 %v5632_v20  ;;  %v5664_v20 = vld [vmem:[%s6828_s1 + $0x220] sm:$0xff]  }
  0xd9   : > { %5277 = vmatpush3.bf16.msra.mxu0 %v5633_v24  ;;  %5038 = vmatprep.subr.bf16.mxu1 %v5752_v1  ;;  %v5665_v24 = vld [vmem:[%s6828_s1 + $0x520] sm:$0xff]   ;;  %v1389_v26 = vsel %vm5871_vm15, %v1382_v21, %v1387_v23  ;;  %v5698_v21 = vld [vmem:[%s6828_s1 + $0x2a8] sm:$0xff]  }
  0xda   : > { %5278 = vmatprep.subr.bf16.mxu0 %v5752_v1  ;;  %v4257_v23 = vld [vmem:[%s5842_s17 + $0x2] sm:$0x1] }
  0xdc   : > { %5039 = vmatpush3.bf16.msra.mxu1 %v5634_v27  ;;  %v5667_v27 = vld [vmem:[%s6828_s1 + $0x528] sm:$0xff]  }
  0xdd   : > { %5279 = vmatpush3.bf16.msra.mxu0 %v5635_v31  ;;  %5040 = vmatprep.subr.bf16.mxu1 %v5752_v1  ;;  %v1416_v31 = vcombine.low %v1389_v26, %v6351_v28  ;;  %v5670_v28 = vld [vmem:[%s6828_s1 + $0x238] sm:$0xff]  }
  0xde   : > { %5280 = vmatprep.subr.bf16.mxu0 %v5752_v1 }
  0xdf   : > { %v1423_v37 = vrot.slane %v1416_v31, %v5858_v22 }
  0xe0   : > { %5041 = vmatpush3.bf16.msra.mxu1 %v5636_v36  ;;  %v5669_v36 = vld [vmem:[%s6828_s1 + $0x530] sm:$0xff]  }
  0xe1   : > { %5281 = vmatpush3.bf16.msra.mxu0 %v5637_v38  ;;  %5042 = vmatprep.subr.bf16.mxu1 %v5752_v1  ;;  %v3134_v38 = vrot.slane %v3127_v34, %v5858_v22 }
  0xe2   : > { %5282 = vmatprep.subr.bf16.mxu0 %v5752_v1 }
  0xe4   : > { %5043 = vmatpush3.bf16.msra.mxu1 %v5638_v35  ;;  %v1430_v35 = vrot.slane %v1423_v37, %v5858_v22 }
  0xe5   : > { %5283 = vmatpush3.bf16.msra.mxu0 %v5639_v41  ;;  %5048 = vmatprep.subr.bf16.mxu1 %v5752_v1  ;;  %v3141_v41 = vrot.slane %v3134_v38, %v5858_v22 }
  0xe6   : > { %5288 = vmatprep.subr.bf16.mxu0 %v5752_v1 }
  0xe7   : > { %5045 = vmatmul.mubr.bf16.vlgmr.msra.gmra.mrb[0].mxu1 %v1110_v42  ;;  %v5673_v42 = vld [vmem:[%s6828_s1 + $0x540] sm:$0xff]  }
  0xe8   : > { %5049 = vmatpush3.bf16.msra.mxu1 %v5640_v43  ;;  %5285 = vmatmul.mubr.bf16.vlgmr.msra.gmra.mrb[0].mxu0 %v2870_v44  ;;  %v5674_v43 = vld [vmem:[%s6828_s1 + $0x248] sm:$0xff]  }
  0xe9   : > { %5289 = vmatpush3.bf16.msra.mxu0 %v5641_v45  ;;  %5050 = vmatprep.subr.bf16.mxu1 %v5752_v1  ;;  %v5675_v44 = vld [vmem:[%s6828_s1 + $0x548] sm:$0xff]   ;;  %v5676_v45 = vld [vmem:[%s6828_s1 + $0x250] sm:$0xff]  }
  0xea   : > { %5290 = vmatprep.subr.bf16.mxu0 %v5752_v1  ;;  %5064 = vmatprep.mubr.msk.bf16.mxu1 %vm5753_vm0, %v5752_v1 }
  0xeb   : > { %5304 = vmatprep.mubr.msk.bf16.mxu0 %vm5753_vm0, %v5752_v1 }
  0xec   : > { %5051 = vmatpush3.bf16.msra.mxu1 %v5642_v46  ;;  %v5677_v46 = vld [vmem:[%s6828_s1 + $0x550] sm:$0xff]  }
  0xed   : > { %5291 = vmatpush3.bf16.msra.mxu0 %v5643_v47  ;;  %5052 = vmatprep.subr.bf16.mxu1 %v5752_v1  ;;  %v5678_v47 = vld [vmem:[%s6828_s1 + $0x258] sm:$0xff]  }
  0xee   : > { %5292 = vmatprep.subr.bf16.mxu0 %v5752_v1 }
  0xf0   : > { %5053 = vmatpush3.bf16.msra.mxu1 %v5644_v48  ;;  %v5679_v48 = vld [vmem:[%s6828_s1 + $0x558] sm:$0xff]  }
  0xf1   : > { %5293 = vmatpush3.bf16.msra.mxu0 %v5645_v49  ;;  %5054 = vmatprep.subr.bf16.mxu1 %v5752_v1  ;;  %v5680_v49 = vld [vmem:[%s6828_s1 + $0x260] sm:$0xff]  }
  0xf2   : > { %5294 = vmatprep.subr.bf16.mxu0 %v5752_v1 }
  0xf4   : > { %5055 = vmatpush3.bf16.msra.mxu1 %v5646_v51  ;;  %v5682_v51 = vld [vmem:[%s6828_s1 + $0x268] sm:$0xff]  }
  0xf5   : > { %5295 = vmatpush3.bf16.msra.mxu0 %v5647_v53  ;;  %5056 = vmatprep.subr.bf16.mxu1 %v5752_v1  ;;  %v5683_v53 = vld [vmem:[%s6828_s1 + $0x568] sm:$0xff]  }
  0xf6   : > { %5296 = vmatprep.subr.bf16.mxu0 %v5752_v1 }
  0xf8   : > { %5057 = vmatpush3.bf16.msra.mxu1 %v5648_v54  ;;  %v4565_v54 = vld [vmem:[%s5842_s17 + $0xc] sm:$0x1] }
  0xf9   : > { %5297 = vmatpush3.bf16.msra.mxu0 %v5649_v57  ;;  %5058 = vmatprep.subr.bf16.mxu1 %v5752_v1  ;;  %v5684_v57 = vld [vmem:[%s6828_s1 + $0x270] sm:$0xff]  }
  0xfa   : > { %5298 = vmatprep.subr.bf16.mxu0 %v5752_v1 }
  0xfc   : > { %5059 = vmatpush3.bf16.msra.mxu1 %v5650_v58  ;;  %v3256_v58 = vcombine.low %v4565_v54, %v4566_v55 }
  0xfd   : > { %5299 = vmatpush3.bf16.msra.mxu0 %v5651_v62  ;;  %5060 = vmatprep.subr.bf16.mxu1 %v5752_v1  ;;  %v1565_v62 = vrot.slane %v4248_v56, %v5858_v22 }
  0xfe   : > { %5300 = vmatprep.subr.bf16.mxu0 %v5752_v1  ;;  %v3263_v63 = vrot.slane %v3256_v58, %v5858_v22  ;;  %v4283_v58 = vld [vmem:[%s5842_s17 + $0xa] sm:$0x1] }
 0x100   : > { %5061 = vmatpush3.bf16.msra.mxu1 %v5652_v3  ;;  %v1572_v3 = vrot.slane %v1565_v62, %v5858_v22  ;;  %v5715_v62 = vld [vmem:[%s6828_s1 + $0x5e8] sm:$0xff]  }
 0x101   : > { %5301 = vmatpush3.bf16.msra.mxu0 %v5653_v5  ;;  %5062 = vmatprep.subr.bf16.mxu1 %v5752_v1  ;;  %v3270_v5 = vrot.slane %v3263_v63, %v5858_v22 }
 0x102   : > { %5302 = vmatprep.subr.bf16.mxu0 %v5752_v1 }
 0x104   : > { %5063 = vmatpush3.bf16.msra.mxu1 %v5654_v59  ;;  %v5690_v59 = vld [vmem:[%s6828_s1 + $0x288] sm:$0xff]  }
 0x105   : > { %5303 = vmatpush3.bf16.msra.mxu0 %v5655_v7  ;;  %5068 = vmatprep.subr.bf16.mxu1 %v5752_v1  ;;  %v5692_v7 = vld [vmem:[%s6828_s1 + $0x290] sm:$0xff]  }
 0x106   : > { %5308 = vmatprep.subr.bf16.mxu0 %v5752_v1 }
 0x107   : > { %5065 = vmatmul.mubr.bf16.vlgmr.msra.gmra.mrb[0].mxu1 %v1270_v8  ;;  %v5693_v8 = vld [vmem:[%s6828_s1 + $0x590] sm:$0xff]  }
 0x108   : > { %5069 = vmatpush3.bf16.msra.mxu1 %v5656_v9  ;;  %5305 = vmatmul.mubr.bf16.vlgmr.msra.gmra.mrb[0].mxu0 %v3012_v10  ;;  %v4593_v9 = vld.sshfl [vmem:[%s5842_s17 + $0x4] sm:$0x11 pattern:$0x75316420] }
 0x109   : > { %5309 = vmatpush3.bf16.msra.mxu0 %v5657_v11  ;;  %5070 = vmatprep.subr.bf16.mxu1 %v5752_v1  ;;  %v4594_v10 = vld.sshfl [vmem:[%s5842_s17 + $0x6] sm:$0x11 pattern:$0x75316420]  ;;  %v5694_v11 = vld [vmem:[%s6828_s1 + $0x298] sm:$0xff]  }
 0x10a   : > { %5310 = vmatprep.subr.bf16.mxu0 %v5752_v1  ;;  %5084 = vmatprep.mubr.msk.bf16.mxu1 %vm5753_vm0, %v5752_v1 }
 0x10b   : > { %5324 = vmatprep.mubr.msk.bf16.mxu0 %vm5753_vm0, %v5752_v1 }
 0x10c   : > { %5071 = vmatpush3.bf16.msra.mxu1 %v5658_v12  ;;  %v5695_v12 = vld [vmem:[%s6828_s1 + $0x598] sm:$0xff]  }
 0x10d   : > { %5311 = vmatpush3.bf16.msra.mxu0 %v5659_v13  ;;  %5072 = vmatprep.subr.bf16.mxu1 %v5752_v1  ;;  %v3372_v13 = vcombine.high %v4593_v9, %v4593_v9 }
 0x10e   : > { %5312 = vmatprep.subr.bf16.mxu0 %v5752_v1 }
 0x10f   : > { %v3387_v18 = vshll.u32 %v3372_v13, 16  ;;  %v5724_v13 = vld [vmem:[%s6828_s1 + $0x620] sm:$0xff]  }
 0x110   : > { %5073 = vmatpush3.bf16.msra.mxu1 %v5660_v14  ;;  %v3380_v14 = vcombine.high %v4594_v10, %v4594_v10 }
 0x111   : > { %5313 = vmatpush3.bf16.msra.mxu0 %v5661_v15  ;;  %5074 = vmatprep.subr.bf16.mxu1 %v5752_v1  ;;  %v5696_v15 = vld [vmem:[%s6828_s1 + $0x2a0] sm:$0xff]  }
 0x112   : > { %5314 = vmatprep.subr.bf16.mxu0 %v5752_v1 }
 0x114   : > { %5075 = vmatpush3.bf16.msra.mxu1 %v5662_v17  ;;  %v3382_v17 = vshrl.u32 %v4593_v9, 16  ;;  %v5720_v9 = vld [vmem:[%s6828_s1 + $0x600] sm:$0xff]  }
 0x115   : > { %5315 = vmatpush3.bf16.msra.mxu0 %v5663_v19  ;;  %5076 = vmatprep.subr.bf16.mxu1 %v5752_v1  ;;  %v3391_v19 = vshrl.u32 %v4594_v10, 16  ;;  %v5721_v10 = vld [vmem:[%s6828_s1 + $0x608] sm:$0xff]  }
 0x116   : > { %5316 = vmatprep.subr.bf16.mxu0 %v5752_v1  ;;  %v3389_v26 = vsel %vm5871_vm15, %v3382_v17, %v3387_v18  ;;  %v5726_v18 = vld [vmem:[%s6828_s1 + $0x630] sm:$0xff]  }
 0x118   : > { %5077 = vmatpush3.bf16.msra.mxu1 %v5664_v20  ;;  %v3396_v20 = vshll.u32 %v3380_v14, 16  ;;  %v4653_v14 = vld.sshfl [vmem:[%s5842_s17 + $0x4] sm:$0x10 pattern:$0x75316420] }
 0x119   : > { %5317 = vmatpush3.bf16.msra.mxu0 %v5665_v24  ;;  %5078 = vmatprep.subr.bf16.mxu1 %v5752_v1  ;;  %v4258_v24 = vld [vmem:[%s5842_s17 + $0x4] sm:$0x1] }
 0x11a   : > { %5318 = vmatprep.subr.bf16.mxu0 %v5752_v1  ;;  %v1687_v29 = vcombine.low %v4257_v23, %v4258_v24 }
 0x11c   : > { %5079 = vmatpush3.bf16.msra.mxu1 %v5666_v25  ;;  %v5699_v25 = vld [vmem:[%s6828_s1 + $0x5a8] sm:$0xff]   ;;  %v1694_v34 = vrot.slane %v1687_v29, %v5858_v22 }
 0x11d   : > { %5319 = vmatpush3.bf16.msra.mxu0 %v5667_v27  ;;  %5080 = vmatprep.subr.bf16.mxu1 %v5752_v1  ;;  %v3398_v27 = vsel %vm5871_vm15, %v3391_v19, %v3396_v20  ;;  %v5727_v20 = vld [vmem:[%s6828_s1 + $0x638] sm:$0xff]  }
 0x11e   : > { %5320 = vmatprep.subr.bf16.mxu0 %v5752_v1  ;;  %v3416_v31 = vcombine.low %v3389_v26, %v3398_v27  ;;  %v1701_v38 = vrot.slane %v1694_v34, %v5858_v22 }
 0x120   : > { %5081 = vmatpush3.bf16.msra.mxu1 %v5668_v33  ;;  %v5701_v33 = vld [vmem:[%s6828_s1 + $0x5b0] sm:$0xff]   ;;  %v3423_v37 = vrot.slane %v3416_v31, %v5858_v22 }
 0x121   : > { %5321 = vmatpush3.bf16.msra.mxu0 %v5669_v36  ;;  %5082 = vmatprep.subr.bf16.mxu1 %v5752_v1  ;;  %v5702_v36 = vld [vmem:[%s6828_s1 + $0x2b8] sm:$0xff]  }
 0x122   : > { %5322 = vmatprep.subr.bf16.mxu0 %v5752_v1 }
 0x124   : > { %5083 = vmatpush3.bf16.msra.mxu1 %v5670_v28  ;;  %v5703_v28 = vld [vmem:[%s6828_s1 + $0x5b8] sm:$0xff]  }
 0x125   : > { %5323 = vmatpush3.bf16.msra.mxu0 %v5671_v39  ;;  %5088 = vmatprep.subr.bf16.mxu1 %v5752_v1  ;;  %v5704_v39 = vld [vmem:[%s6828_s1 + $0x2c0] sm:$0xff]  }
 0x126   : > { %5328 = vmatprep.subr.bf16.mxu0 %v5752_v1 }
 0x127   : > { %5085 = vmatmul.mubr.bf16.vlgmr.msra.gmra.mrb[0].mxu1 %v1430_v35  ;;  %v3430_v35 = vrot.slane %v3423_v37, %v5858_v22 }
 0x128   : > { %5089 = vmatpush3.bf16.msra.mxu1 %v5672_v40  ;;  %5325 = vmatmul.mubr.bf16.vlgmr.msra.gmra.mrb[0].mxu0 %v3141_v41  ;;  %v5705_v40 = vld [vmem:[%s6828_s1 + $0x5c0] sm:$0xff]   ;;  %v5706_v41 = vld [vmem:[%s6828_s1 + $0x2c8] sm:$0xff]  }
 0x129   : > { %5329 = vmatpush3.bf16.msra.mxu0 %v5673_v42  ;;  %5090 = vmatprep.subr.bf16.mxu1 %v5752_v1  ;;  %v5707_v42 = vld [vmem:[%s6828_s1 + $0x5c8] sm:$0xff]  }
 0x12a   : > { %5330 = vmatprep.subr.bf16.mxu0 %v5752_v1  ;;  %5104 = vmatprep.mubr.msk.bf16.mxu1 %vm5753_vm0, %v5752_v1 }
 0x12b   : > { %5344 = vmatprep.mubr.msk.bf16.mxu0 %vm5753_vm0, %v5752_v1 }
 0x12c   : > { %5091 = vmatpush3.bf16.msra.mxu1 %v5674_v43  ;;  %v5708_v43 = vld [vmem:[%s6828_s1 + $0x2d0] sm:$0xff]  }
 0x12d   : > { %5331 = vmatpush3.bf16.msra.mxu0 %v5675_v44  ;;  %5092 = vmatprep.subr.bf16.mxu1 %v5752_v1  ;;  %v5709_v44 = vld [vmem:[%s6828_s1 + $0x5d0] sm:$0xff]  }
 0x12e   : > { %5332 = vmatprep.subr.bf16.mxu0 %v5752_v1 }
 0x130   : > { %5093 = vmatpush3.bf16.msra.mxu1 %v5676_v45  ;;  %v4623_v45 = vld.sshfl [vmem:[%s5842_s17 + $0xc] sm:$0x11 pattern:$0x75316420] }
 0x131   : > { %5333 = vmatpush3.bf16.msra.mxu0 %v5677_v46  ;;  %5094 = vmatprep.subr.bf16.mxu1 %v5752_v1  ;;  %v4624_v46 = vld.sshfl [vmem:[%s5842_s17 + $0xe] sm:$0x11 pattern:$0x75316420] }
 0x132   : > { %5334 = vmatprep.subr.bf16.mxu0 %v5752_v1  ;;  %v3551_v55 = vshrl.u32 %v4624_v46, 16 }
 0x134   : > { %5095 = vmatpush3.bf16.msra.mxu1 %v5678_v47  ;;  %v5710_v47 = vld [vmem:[%s6828_s1 + $0x2d8] sm:$0xff]  }
 0x135   : > { %5335 = vmatpush3.bf16.msra.mxu0 %v5679_v48  ;;  %5096 = vmatprep.subr.bf16.mxu1 %v5752_v1  ;;  %v5711_v48 = vld [vmem:[%s6828_s1 + $0x5d8] sm:$0xff]  }
 0x136   : > { %5336 = vmatprep.subr.bf16.mxu0 %v5752_v1 }
 0x138   : > { %5097 = vmatpush3.bf16.msra.mxu1 %v5680_v49  ;;  %v3532_v49 = vcombine.high %v4623_v45, %v4623_v45 }
 0x139   : > { %5337 = vmatpush3.bf16.msra.mxu0 %v5681_v50  ;;  %5098 = vmatprep.subr.bf16.mxu1 %v5752_v1  ;;  %v3540_v50 = vcombine.high %v4624_v46, %v4624_v46 }
 0x13a   : > { %5338 = vmatprep.subr.bf16.mxu0 %v5752_v1  ;;  %v3547_v54 = vshll.u32 %v3532_v49, 16 }
 0x13b   : > { %v3556_v56 = vshll.u32 %v3540_v50, 16 }
 0x13c   : > { %5099 = vmatpush3.bf16.msra.mxu1 %v5682_v51  ;;  %v5712_v51 = vld [vmem:[%s6828_s1 + $0x2e0] sm:$0xff]  }
 0x13d   : > { %5339 = vmatpush3.bf16.msra.mxu0 %v5683_v53  ;;  %5100 = vmatprep.subr.bf16.mxu1 %v5752_v1  ;;  %v3542_v53 = vshrl.u32 %v4623_v45, 16  ;;  %v3558_v63 = vsel %vm5871_vm15, %v3551_v55, %v3556_v56 }
 0x13e   : > { %5340 = vmatprep.subr.bf16.mxu0 %v5752_v1 }
 0x140   : > { %5101 = vmatpush3.bf16.msra.mxu1 %v5684_v57  ;;  %v5714_v57 = vld [vmem:[%s6828_s1 + $0x2e8] sm:$0xff]  }
 0x141   : > { %5341 = vmatpush3.bf16.msra.mxu0 %v5685_v60  ;;  %5102 = vmatprep.subr.bf16.mxu1 %v5752_v1  ;;  %v4284_v60 = vld [vmem:[%s5842_s17 + $0xc] sm:$0x1] }
 0x142   : > { %5342 = vmatprep.subr.bf16.mxu0 %v5752_v1 }
 0x144   : > { %5103 = vmatpush3.bf16.msra.mxu1 %v5686_v61  ;;  %v3549_v61 = vsel %vm5871_vm15, %v3542_v53, %v3547_v54 }
 0x145   : > { %5343 = vmatpush3.bf16.msra.mxu0 %v5687_v2  ;;  %5108 = vmatprep.subr.bf16.mxu1 %v5752_v1  ;;  %v1816_v2 = vcombine.low %v4283_v58, %v4284_v60 }
 0x146   : > { %5348 = vmatprep.subr.bf16.mxu0 %v5752_v1 }
 0x147   : > { %5105 = vmatmul.mubr.bf16.vlgmr.msra.gmra.mrb[0].mxu1 %v1572_v3  ;;  %v5716_v3 = vld [vmem:[%s6828_s1 + $0x2f0] sm:$0xff]   ;;  %v1823_v32 = vrot.slane %v1816_v2, %v5858_v22 }
 0x148   : > { %5109 = vmatpush3.bf16.msra.mxu1 %v5688_v4  ;;  %5345 = vmatmul.mubr.bf16.vlgmr.msra.gmra.mrb[0].mxu0 %v3270_v5  ;;  %v3576_v4 = vcombine.low %v3549_v61, %v3558_v63  ;;  %v5717_v5 = vld [vmem:[%s6828_s1 + $0x5f0] sm:$0xff]  }
 0x149   : > { %5349 = vmatpush3.bf16.msra.mxu0 %v5689_v0  ;;  %5110 = vmatprep.subr.bf16.mxu1 %v5752_v1  ;;  %v5718_v0 = vld [vmem:[%s6828_s1 + $0x2f8] sm:$0xff]  }
 0x14a   : > { %5350 = vmatprep.subr.bf16.mxu0 %v5752_v1  ;;  %5124 = vmatprep.mubr.msk.bf16.mxu1 %vm5753_vm0, %v5752_v1 }
 0x14b   : > { %5364 = vmatprep.mubr.msk.bf16.mxu0 %vm5753_vm0, %v5752_v1 }
 0x14c   : > { %5111 = vmatpush3.bf16.msra.mxu1 %v5690_v59  ;;  %v3583_v59 = vrot.slane %v3576_v4, %v5858_v22 }
 0x14d   : > { %5351 = vmatpush3.bf16.msra.mxu0 %v5691_v6  ;;  %5112 = vmatprep.subr.bf16.mxu1 %v5752_v1  ;;  %v5719_v6 = vld [vmem:[%s6828_s1 + $0x5f8] sm:$0xff]  }
 0x14e   : > { %5352 = vmatprep.subr.bf16.mxu0 %v5752_v1 }
 0x150   : > { %5113 = vmatpush3.bf16.msra.mxu1 %v5692_v7  ;;  %v1830_v7 = vrot.slane %v1823_v32, %v5858_v22 }
 0x151   : > { %5353 = vmatpush3.bf16.msra.mxu0 %v5693_v8  ;;  %5114 = vmatprep.subr.bf16.mxu1 %v5752_v1  ;;  %v3590_v8 = vrot.slane %v3583_v59, %v5858_v22 }
 0x152   : > { %5354 = vmatprep.subr.bf16.mxu0 %v5752_v1 }
 0x154   : > { %5115 = vmatpush3.bf16.msra.mxu1 %v5694_v11  ;;  %v5722_v11 = vld [vmem:[%s6828_s1 + $0x610] sm:$0xff]  }
 0x155   : > { %5355 = vmatpush3.bf16.msra.mxu0 %v5695_v12  ;;  %5116 = vmatprep.subr.bf16.mxu1 %v5752_v1  ;;  %v5723_v12 = vld [vmem:[%s6828_s1 + $0x618] sm:$0xff]  }
 0x156   : > { %5356 = vmatprep.subr.bf16.mxu0 %v5752_v1 }
 0x158   : > { %5117 = vmatpush3.bf16.msra.mxu1 %v5696_v15  ;;  %v5725_v15 = vld [vmem:[%s6828_s1 + $0x628] sm:$0xff]  }
 0x159   : > { %5357 = vmatpush3.bf16.msra.mxu0 %v5697_v16  ;;  %5118 = vmatprep.subr.bf16.mxu1 %v5752_v1  ;;  %v4654_v16 = vld.sshfl [vmem:[%s5842_s17 + $0x6] sm:$0x10 pattern:$0x75316420]  ;;  %s3995_s17 = sshll.u32 %s6840_s12, 2 }
 0x15a   : > { %5358 = vmatprep.subr.bf16.mxu0 %v5752_v1  ;;  %v4671_v17 = vcombine.high %v4653_v14, %v4654_v16  ;;  %s203_s26 = scalar_lea.vmem %s6829_s2, %s3995_s17 }
 0x15c   : > { %5119 = vmatpush3.bf16.msra.mxu1 %v5698_v21  ;;  %v3725_v19 = vrot.slane %v4671_v17, %v5858_v22 }
 0x15d   : > { %5359 = vmatpush3.bf16.msra.mxu0 %v5699_v25  ;;  %5120 = vmatprep.subr.bf16.mxu1 %v5752_v1 }
 0x15e   : > { %5360 = vmatprep.subr.bf16.mxu0 %v5752_v1  ;;  %v3732_v21 = vrot.slane %v3725_v19, %v5858_v22 }
 0x160   : > { %5121 = vmatpush3.bf16.msra.mxu1 %v5700_v30 }
 0x161   : > { %5361 = vmatpush3.bf16.msra.mxu0 %v5701_v33  ;;  %5122 = vmatprep.subr.bf16.mxu1 %v5752_v1 }
 0x162   : > { %5362 = vmatprep.subr.bf16.mxu0 %v5752_v1 }
 0x164   : > { %5123 = vmatpush3.bf16.msra.mxu1 %v5702_v36 }
 0x165   : > { %5363 = vmatpush3.bf16.msra.mxu0 %v5703_v28  ;;  %5128 = vmatprep.subr.bf16.mxu1 %v5752_v1 }
 0x166   : > { %5368 = vmatprep.subr.bf16.mxu0 %v5752_v1 }
 0x167   : > { %5125 = vmatmul.mubr.bf16.vlgmr.msra.gmra.mrb[0].mxu1 %v1701_v38 }
 0x168   : > { %5129 = vmatpush3.bf16.msra.mxu1 %v5704_v39  ;;  %5365 = vmatmul.mubr.bf16.vlgmr.msra.gmra.mrb[0].mxu0 %v3430_v35 }
 0x169   : > { %5369 = vmatpush3.bf16.msra.mxu0 %v5705_v40  ;;  %5130 = vmatprep.subr.bf16.mxu1 %v5752_v1 }
 0x16a   : > { %5370 = vmatprep.subr.bf16.mxu0 %v5752_v1  ;;  %5144 = vmatprep.mubr.msk.bf16.mxu1 %vm5753_vm0, %v5752_v1 }
 0x16b   : > { %5384 = vmatprep.mubr.msk.bf16.mxu0 %vm5753_vm0, %v5752_v1 }
 0x16c   : > { %5131 = vmatpush3.bf16.msra.mxu1 %v5706_v41 }
 0x16d   : > { %5371 = vmatpush3.bf16.msra.mxu0 %v5707_v42  ;;  %5132 = vmatprep.subr.bf16.mxu1 %v5752_v1 }
 0x16e   : > { %5372 = vmatprep.subr.bf16.mxu0 %v5752_v1 }
 0x170   : > { %5133 = vmatpush3.bf16.msra.mxu1 %v5708_v43 }
 0x171   : > { %5373 = vmatpush3.bf16.msra.mxu0 %v5709_v44  ;;  %5134 = vmatprep.subr.bf16.mxu1 %v5752_v1 }
 0x172   : > { %5374 = vmatprep.subr.bf16.mxu0 %v5752_v1 }
 0x174   : > { %5135 = vmatpush3.bf16.msra.mxu1 %v5710_v47 }
 0x175   : > { %5375 = vmatpush3.bf16.msra.mxu0 %v5711_v48  ;;  %5136 = vmatprep.subr.bf16.mxu1 %v5752_v1 }
 0x176   : > { %5376 = vmatprep.subr.bf16.mxu0 %v5752_v1 }
 0x178   : > { %5137 = vmatpush3.bf16.msra.mxu1 %v5712_v51 }
 0x179   : > { %5377 = vmatpush3.bf16.msra.mxu0 %v5713_v52  ;;  %5138 = vmatprep.subr.bf16.mxu1 %v5752_v1 }
 0x17a   : > { %5378 = vmatprep.subr.bf16.mxu0 %v5752_v1 }
 0x17c   : > { %5139 = vmatpush3.bf16.msra.mxu1 %v5714_v57 }
 0x17d   : > { %5379 = vmatpush3.bf16.msra.mxu0 %v5715_v62  ;;  %5140 = vmatprep.subr.bf16.mxu1 %v5752_v1 }
 0x17e   : > { %5380 = vmatprep.subr.bf16.mxu0 %v5752_v1 }
 0x180   : > { %5141 = vmatpush3.bf16.msra.mxu1 %v5716_v3 }
 0x181   : > { %5381 = vmatpush3.bf16.msra.mxu0 %v5717_v5  ;;  %5142 = vmatprep.subr.bf16.mxu1 %v5752_v1 }
 0x182   : > { %5382 = vmatprep.subr.bf16.mxu0 %v5752_v1 }
 0x184   : > { %5143 = vmatpush3.bf16.msra.mxu1 %v5718_v0 }
 0x185   : > { %5383 = vmatpush3.bf16.msra.mxu0 %v5719_v6 }
 0x186   : > { %5388 = vmatprep.subr.bf16.mxu0 %v5752_v1 }
 0x187   : > { %5145 = vmatmul.mubr.bf16.vlgmr.msra.gmra.mrb[0].mxu1 %v1830_v7 }
 0x188   : > { %5385 = vmatmul.mubr.bf16.vlgmr.msra.gmra.mrb[0].mxu0 %v3590_v8 }
 0x189   : > { %5389 = vmatpush3.bf16.msra.mxu0 %v5720_v9  ;;  %5404 = vmatprep.mubr.msk.bf16.mxu0 %vm5753_vm0, %v5752_v1  ;;  %vm3824_vm0 = vcmask 1043456  }
 0x18a   : > { %5390 = vmatprep.subr.bf16.mxu0 %v5752_v1 }
 0x18d   : > { %5391 = vmatpush3.bf16.msra.mxu0 %v5721_v10 }
 0x18e   : > { %5392 = vmatprep.subr.bf16.mxu0 %v5752_v1 }
 0x191   : > { %5393 = vmatpush3.bf16.msra.mxu0 %v5722_v11 }
 0x192   : > { %5394 = vmatprep.subr.bf16.mxu0 %v5752_v1 }
 0x195   : > { %5395 = vmatpush3.bf16.msra.mxu0 %v5723_v12 }
 0x196   : > { %5396 = vmatprep.subr.bf16.mxu0 %v5752_v1 }
 0x199   : > { %5397 = vmatpush3.bf16.msra.mxu0 %v5724_v13 }
 0x19a   : > { %5398 = vmatprep.subr.bf16.mxu0 %v5752_v1 }
 0x19d   : > { %5399 = vmatpush3.bf16.msra.mxu0 %v5725_v15 }
 0x19e   : > { %5400 = vmatprep.subr.bf16.mxu0 %v5752_v1 }
 0x1a1   : > { %5401 = vmatpush3.bf16.msra.mxu0 %v5726_v18 }
 0x1a2   : > { %5402 = vmatprep.subr.bf16.mxu0 %v5752_v1 }
 0x1a5   : > { %5403 = vmatpush3.bf16.msra.mxu0 %v5727_v20 }
 0x1a8   : > { %5405 = vmatmul.mubr.bf16.vlgmr.msra.gmra.mrb[0].mxu0 %v3732_v21 }
 0x25a   : > { %v1914_v23 = vpop.f32.mrb[0].mxu1 }
 0x25b   : > { %v5146_v24 = vpop.f32.mrb[1].mxu1 }
 0x25c   : > { %v1917_v25 = vpop.f32.mrb[2].mxu1 }
 0x25d   : > { %v5147_v26 = vpop.f32.mrb[3].mxu1 }
 0x27b   : > { %v3816_v27 = vpop.f32.mrb[0].mxu0 }
 0x27c   : > { %v5408_v29 = vadd.f32 %v3816_v27, %v1914_v23  ;;  %v5406_v30 = vpop.f32.mrb[1].mxu0 }
 0x27d   : > { %v3819_v1 = vpop.f32.mrb[2].mxu0 }
 0x27e   : > { %3823 = vst [vmem:[%s203_s26] sm:$0xf] %v5408_v29  ;;  %v3825_v22 = vsel %vm3824_vm0, %v5408_v29, 0.0  ;;  %v3832_v31 = vmul.f32 %v5408_v29, %v5408_v29  ;;  %v5407_v33 = vpop.f32.mrb[3].mxu0 }
 0x27f   : > { %v3826_v34 = vrot.slane %v3825_v22, 4 }
 0x280   : > { %v3833_v36 = vsel %vm3824_vm0, %v3832_v31, 0.0 }
 0x281   : > { %v3827_v37 = vadd.f32 %v3826_v34, %v3825_v22  ;;  %v3834_v28 = vrot.slane %v3833_v36, 4 }
 0x283   : > { %v3828_v38 = vrot.slane %v3827_v37, 2  ;;  %v3835_v39 = vadd.f32 %v3834_v28, %v3833_v36 }
 0x285   : > { %v3829_v35 = vadd.f32 %v3828_v38, %v3827_v37  ;;  %v3836_v40 = vrot.slane %v3835_v39, 2 }
 0x287   : > { %v3830_v41 = vrot.slane %v3829_v35, 1  ;;  %v3837_v42 = vadd.f32 %v3836_v40, %v3835_v39 }
 0x289   : > { %v3838_v43 = vrot.slane %v3837_v42, 1  ;;  %v3831_v44 = vadd.f32 %v3830_v41, %v3829_v35 }
 0x28b   : > { %v3839_v45 = vadd.f32 %v3838_v43, %v3837_v42 }
 0x28d   : > { %v3841_v46 = vsel %vm3840_vm1, %v3831_v44, %v3839_v45 }
 0x28e   : > { %3842 = vst [vmem:[%s208_s30] sm:$0x3] %v3841_v46 }
 0x28f PF: > { %s14_s14 = sadd.s32 1, %s5750_s14   ;;  %s6833_s12 = smov %s5746_s13 }
 0x290   : > { %p11_p6 = scmp.ge.s32.totalorder %s14_s14, 4   ;;  %s6834_s13 = smov %s6836_s15 }
 0x292   :  { %13 = sbr.rel (!%p11_p6) target bundleno = 2 (0x2), region = 104 }

</bundles_post_ra>
